<compile_context>
chip_gen: v5e
topology: v5e:2x2
jax: 0.10.0
libtpu: 0.0.40
codegen_flags: <defaults>
</compile_context>

<pallas_src>
import functools

import jax
import jax.numpy as jnp
import numpy as np
from jax import lax
from jax.experimental import pallas as pl
from jax.experimental.pallas import tpu as pltpu

LANE = 128   # lane padding for mu / logvar / z0
TAPS = 25    # 5x5 conv taps


def conv_out_size(s, k, stride, pad):
    return (s + 2 * pad - k) // stride + 1


def _round_up(x, m):
    return (x + m - 1) // m * m


def _chunks(n, chunk):
    """Split range(n) into contiguous chunks of at most `chunk`."""
    return [(i, min(i + chunk, n)) for i in range(0, n, chunk)]


def _tree_sum(parts):
    while len(parts) > 1:
        nxt = [parts[i] + parts[i + 1] for i in range(0, len(parts) - 1, 2)]
        if len(parts) % 2:
            nxt.append(parts[-1])
        parts = nxt
    return parts[0]


def _softplus(x):
    # numerically stable softplus (matches F.softplus), kept in f32
    return jnp.maximum(x, 0.0) + jnp.log1p(jnp.exp(-jnp.abs(x)))


# ----------------------------------------------------------------------------
# Fused Pallas kernel
# ----------------------------------------------------------------------------
def _aux_decoder_kernel(cols1_ref, z_ref, eps_ref,
                        w1_ref, b1_ref,
                        s2_ref, w2_ref, b2_ref,
                        s3_ref, w3_ref, b3_ref,
                        fcwh_ref, fcwz_ref, fcb_ref,
                        wml_ref, bml_ref,
                        out_ref,
                        z2_scr, z3_scr, h3_scr,
                        *, b_tile, nz, r2, r3):
    f32 = jnp.float32
    bf16 = jnp.bfloat16
    m = b_tile * nz
    p3 = fcwh_ref.shape[0]

    def tap_conv(z_scr, w_ref, rows, tap_chunk):
        # 25-tap accumulation split into independent chains (tree-summed).
        parts = []
        for (t0, t1) in _chunks(TAPS, tap_chunk):
            acc = jnp.dot(z_scr[t0 * rows:(t0 + 1) * rows, :].astype(bf16),
                          w_ref[t0], preferred_element_type=f32)
            for t in range(t0 + 1, t1):
                acc = acc + jnp.dot(
                    z_scr[t * rows:(t + 1) * rows, :].astype(bf16),
                    w_ref[t], preferred_element_type=f32)
            parts.append(acc)
        return _tree_sum(parts)

    # ---- conv1 / conv2 / conv3, one image of the tile per loop step ---------
    def conv_body(ii, carry):
        # conv1 + softplus ("2x-1" rescale pre-folded into w1/b1).
        h1 = _softplus(jnp.dot(cols1_ref[ii], w1_ref[...],
                               preferred_element_type=f32) + b1_ref[...])

        # conv2: in-VMEM im2col via constant 0/1 gather matmul, then taps.
        z2_scr[...] = jnp.dot(s2_ref[...], h1.astype(bf16),
                              preferred_element_type=f32)
        h2 = _softplus(tap_conv(z2_scr, w2_ref, r2, 7) + b2_ref[...])

        # conv3 (zero columns of S3 mask the r2-padding rows of h2).
        z3_scr[...] = jnp.dot(s3_ref[...], h2.astype(bf16),
                              preferred_element_type=f32)
        h3 = _softplus(tap_conv(z3_scr, w3_ref, r3, 7) + b3_ref[...])

        # Stage conv3 output, image-major (r3 contiguous rows per (image, nz)),
        # for the batched fc below.
        for j in range(nz):
            row = pl.multiple_of((ii * nz + j) * r3, r3)
            h3_scr[pl.ds(row, r3), :] = h3
        return carry

    lax.fori_loop(0, b_tile, conv_body, 0)

    # ---- fc + softplus, batched over the whole tile (M = b_tile*nz) ---------
    # fc_w rows were re-ordered to (p3, c3o, 800) at prep time so the PyTorch
    # CHW flatten becomes a sum of per-position matmuls; the strided pl.ds
    # gathers the same conv3 position across all images of the tile.
    def fc_pos(p):
        lhs = h3_scr[pl.ds(p, m, stride=r3), :].astype(bf16)     # (m, c3o)
        return jnp.dot(lhs, fcwh_ref[p], preferred_element_type=f32)

    parts = []
    for (p0, p1) in _chunks(p3, 4):
        acc = fc_pos(p0)
        for p in range(p0 + 1, p1):
            acc = acc + fc_pos(p)
        parts.append(acc)
    hc = _tree_sum(parts)                                        # (m, 800)

    zc = jnp.dot(z_ref[...], fcwz_ref[...], preferred_element_type=f32)
    h4 = _softplus(hc + zc + fcb_ref[...])                       # (m, 800)

    # ---- NormalDistributionLinear head + gaussian sample --------------------
    mulv = jnp.dot(h4.astype(bf16), wml_ref[...],
                   preferred_element_type=f32) + bml_ref[...]    # (m, 256)
    mu_p = mulv[:, :LANE]
    lv_p = mulv[:, LANE:2 * LANE]
    z0_p = mu_p + jnp.exp(0.5 * lv_p) * eps_ref[...]

    # One fused, lane/sublane-dense output block: [ z0 | mu | logvar ].
    out_ref[:, 0:LANE] = z0_p
    out_ref[:, LANE:2 * LANE] = mu_p
    out_ref[:, 2 * LANE:3 * LANE] = lv_p


# ----------------------------------------------------------------------------
# Parameter prep: weight folding, gather matrices, fc re-ordering, bf16 cast
# ----------------------------------------------------------------------------
def _build_gather_matrix(h_in, w_in, h_out, w_out, rows_pad, n_cols,
                         k=5, stride=2, pad=2):
    """0/1 matrix S so that (S @ act)[t*rows_pad + p, :] is the activation of
    tap t at output position p (zero rows for conv padding / row padding)."""
    S = np.zeros((k * k * rows_pad, n_cols), np.float32)
    for i in range(k):
        for j in range(k):
            t = i * k + j
            for oh in range(h_out):
                for ow in range(w_out):
                    r = oh * stride + i - pad
                    c = ow * stride + j - pad
                    if 0 <= r < h_in and 0 <= c < w_in:
                        S[t * rows_pad + oh * w_out + ow, r * w_in + c] = 1.0
    return S


def init_params(key, input_height=28, input_channels=1, z_dim=32, z0_dim=100):
    s_h2 = conv_out_size(input_height, 5, 2, 2)
    s_h4 = conv_out_size(s_h2, 5, 2, 2)
    s_h8 = conv_out_size(s_h4, 5, 2, 2)
    fc_in = s_h8 * s_h8 * 32 + z_dim

    keys = jax.random.split(key, 12)

    def u(k, fan_in, shape):
        bound = 1.0 / np.sqrt(fan_in)
        return jax.random.uniform(k, shape, jnp.float32, -bound, bound)

    return {
        "cfg": dict(input_height=input_height, input_channels=input_channels,
                    z_dim=z_dim, z0_dim=z0_dim, s_h8=s_h8),
        "conv1_w": u(keys[0], 5 * 5 * input_channels, (5, 5, input_channels, 16)),
        "conv1_b": u(keys[1], 5 * 5 * input_channels, (16,)),
        "conv2_w": u(keys[2], 5 * 5 * 16, (5, 5, 16, 32)),
        "conv2_b": u(keys[3], 5 * 5 * 16, (32,)),
        "conv3_w": u(keys[4], 5 * 5 * 32, (5, 5, 32, 32)),
        "conv3_b": u(keys[5], 5 * 5 * 32, (32,)),
        "fc_w": u(keys[6], fc_in, (fc_in, 800)),
        "fc_b": u(keys[7], fc_in, (800,)),
        "mu_w": u(keys[8], 800, (800, z0_dim)),
        "mu_b": u(keys[9], 800, (z0_dim,)),
        "lv_w": u(keys[10], 800, (800, z0_dim)),
        "lv_b": u(keys[11], 800, (z0_dim,)),
    }


def prepare_kernel_params(params):
    """Returns (static cfg dict, dict of kernel-ready weight arrays)."""
    cfg = dict(params["cfg"])
    ih, ic, z0d = cfg["input_height"], cfg["input_channels"], cfg["z0_dim"]
    s2 = conv_out_size(ih, 5, 2, 2)
    s4 = conv_out_size(s2, 5, 2, 2)
    s8 = conv_out_size(s4, 5, 2, 2)
    p1, p2, p3 = s2 * s2, s4 * s4, s8 * s8
    r2, r3 = _round_up(p2, 8), _round_up(p3, 8)
    # TODO(synk): lane padding scheme assumes z0_dim <= 128.
    assert z0d <= LANE

    f32, bf16 = jnp.float32, jnp.bfloat16
    w1 = params["conv1_w"]
    c1o = w1.shape[-1]
    c2i, c2o = params["conv2_w"].shape[2], params["conv2_w"].shape[3]
    c3i, c3o = params["conv3_w"].shape[2], params["conv3_w"].shape[3]
    fc_out = params["fc_w"].shape[1]
    nh = params["mu_w"].shape[0]

    # Fold "2x-1" into conv1 (layer-1 im2col pads with 0.5 so padded taps -> 0).
    w1m = (2.0 * w1).reshape(25 * ic, c1o)
    b1m = (params["conv1_b"] - w1.sum(axis=(0, 1, 2))).reshape(1, c1o)

    # 0/1 gather matrices (exact in bf16).  Invariant the kernel relies on:
    # every S3 column >= p2 (an r2-padding row of h2, whose value is
    # softplus(b2) != 0) must be all-zero so those rows never reach conv3.
    S2 = _build_gather_matrix(s2, s2, s4, s4, r2, p1)
    S3 = _build_gather_matrix(s4, s4, s8, s8, r3, r2)
    assert not S3[:, p2:].any(), "r2-padding rows of h2 must be masked by S3"

    # fc: first c3o*p3 rows expect the CHW-flattened conv3 output; re-order so
    # the kernel can consume the (position, channel) layout directly.
    fcw = params["fc_w"]
    fcw_h = fcw[:c3o * p3, :].reshape(c3o, p3, fc_out).transpose(1, 0, 2)
    fcw_z = fcw[c3o * p3:, :]

    # Fuse mu / logvar into one lane-padded (800, 2*LANE) weight + bias; the
    # padded lanes stay zero so padded z0/mu/lv lanes come out as exact zeros
    # (kept in sync with the lane-padded eps built in the wrapper).
    wml = jnp.zeros((nh, 2 * LANE), f32)
    wml = wml.at[:, :z0d].set(params["mu_w"])
    wml = wml.at[:, LANE:LANE + z0d].set(params["lv_w"])
    bml = jnp.zeros((1, 2 * LANE), f32)
    bml = bml.at[0, :z0d].set(params["mu_b"])
    bml = bml.at[0, LANE:LANE + z0d].set(params["lv_b"])

    kw = {
        # Weights (MXU operands) in bf16, biases in f32.
        "w1": w1m.astype(bf16), "b1": b1m.astype(f32),
        "S2": jnp.asarray(S2, dtype=bf16),
        "w2": params["conv2_w"].reshape(25, c2i, c2o).astype(bf16),
        "b2": params["conv2_b"].reshape(1, c2o).astype(f32),
        "S3": jnp.asarray(S3, dtype=bf16),
        "w3": params["conv3_w"].reshape(25, c3i, c3o).astype(bf16),
        "b3": params["conv3_b"].reshape(1, c3o).astype(f32),
        "fcw_h": fcw_h.astype(bf16),          # (p3, c3o, 800)
        "fcw_z": fcw_z.astype(bf16),          # (z_dim, 800)
        "fc_b": params["fc_b"].reshape(1, -1).astype(f32),
        "wml": wml.astype(bf16), "bml": bml.astype(f32),
    }
    return cfg, kw


# ----------------------------------------------------------------------------
# JAX glue: layer-1 im2col + single pallas_call (wrapped in jax.jit at call)
# ----------------------------------------------------------------------------
def _im2col_layer1(x_nhwc, k=5, stride=2, pad=2):
    """Layer-1 im2col with (kh, kw, cin)-ordered features.

    Pads with 0.5: the "2x-1" rescale is folded into conv1's weights and
    2*0.5-1 == 0 reproduces the zero padding the module applies after
    rescaling."""
    b, h, w, c = x_nhwc.shape
    oh = conv_out_size(h, k, stride, pad)
    ow = conv_out_size(w, k, stride, pad)
    xp = jnp.pad(x_nhwc, ((0, 0), (pad, pad), (pad, pad), (0, 0)),
                 constant_values=0.5)
    taps = []
    for i in range(k):
        for j in range(k):
            taps.append(xp[:, i:i + stride * oh:stride,
                           j:j + stride * ow:stride, :])
    cols = jnp.concatenate(taps, axis=-1)              # (B, OH, OW, k*k*C)
    return cols.reshape(b, oh * ow, k * k * c)


def aux_decoder_forward(kw, x_nchw, z, eps, *, cfg, nz=1, b_tile=8):
    ih, ic, z0d = cfg["input_height"], cfg["input_channels"], cfg["z0_dim"]
    b = x_nchw.shape[0]
    assert z.shape[0] == b * nz and eps.shape[0] == b * nz

    bt = max(1, min(b_tile, b))
    bp = _round_up(b, bt)          # batch padded to a multiple of the tile
    n_steps = bp // bt
    m = bt * nz

    # XLA glue: NCHW -> NHWC, layer-1 im2col, batch padding, dtype casts.
    x = x_nchw.reshape(b, ic, ih, ih)
    x = jnp.transpose(x, (0, 2, 3, 1)).astype(jnp.float32)
    cols1 = _im2col_layer1(x).astype(jnp.bfloat16)               # (b, p1, 25*ic)
    cols1 = jnp.pad(cols1, ((0, bp - b), (0, 0), (0, 0)))

    zb = jnp.pad(z.astype(jnp.bfloat16), ((0, (bp - b) * nz), (0, 0)))
    # TODO(synk): torch.randn_like inside sample_gaussian is replaced by a
    # deterministic eps supplied by the caller and consumed inside the kernel.
    epsb = jnp.pad(eps.astype(jnp.float32),
                   ((0, (bp - b) * nz), (0, LANE - eps.shape[1])))

    p1, k1 = cols1.shape[1], cols1.shape[2]
    zd = zb.shape[1]
    r2 = kw["S2"].shape[0] // TAPS
    r3 = kw["S3"].shape[0] // TAPS
    c1o = kw["w1"].shape[1]
    c2o = kw["w2"].shape[2]
    c3o = kw["w3"].shape[2]

    kernel = functools.partial(_aux_decoder_kernel,
                               b_tile=bt, nz=nz, r2=r2, r3=r3)

    def resident(a):
        # Whole-array blocks with constant index maps (weights stay in VMEM).
        if a.ndim == 3:
            return pl.BlockSpec(a.shape, lambda i: (0, 0, 0))
        return pl.BlockSpec(a.shape, lambda i: (0, 0))

    out = pl.pallas_call(
        kernel,
        out_shape=jax.ShapeDtypeStruct((bp * nz, 3 * LANE), jnp.float32),
        grid=(n_steps,),
        in_specs=[
            pl.BlockSpec((bt, p1, k1), lambda i: (i, 0, 0)),     # cols1
            pl.BlockSpec((m, zd), lambda i: (i, 0)),             # z
            pl.BlockSpec((m, LANE), lambda i: (i, 0)),           # eps (padded)
            resident(kw["w1"]), resident(kw["b1"]),
            resident(kw["S2"]), resident(kw["w2"]), resident(kw["b2"]),
            resident(kw["S3"]), resident(kw["w3"]), resident(kw["b3"]),
            resident(kw["fcw_h"]), resident(kw["fcw_z"]), resident(kw["fc_b"]),
            resident(kw["wml"]), resident(kw["bml"]),
        ],
        out_specs=pl.BlockSpec((m, 3 * LANE), lambda i: (i, 0)),
        scratch_shapes=[
            pltpu.VMEM((TAPS * r2, c1o), jnp.float32),   # gathered conv2 taps
            pltpu.VMEM((TAPS * r3, c2o), jnp.float32),   # gathered conv3 taps
            pltpu.VMEM((m * r3, c3o), jnp.float32),      # conv3 outputs (tile)
        ],
        compiler_params=pltpu.CompilerParams(
            dimension_semantics=("parallel",)),
    )(cols1, zb, epsb,
      kw["w1"], kw["b1"], kw["S2"], kw["w2"], kw["b2"],
      kw["S3"], kw["w3"], kw["b3"],
      kw["fcw_h"], kw["fcw_z"], kw["fc_b"], kw["wml"], kw["bml"])

    out = out[:b * nz]
    z0 = out[:, 0:z0d]
    mu = out[:, LANE:LANE + z0d]
    lv = out[:, 2 * LANE:2 * LANE + z0d]
    return z0, mu, lv


# ----------------------------------------------------------------------------
# Pure-JAX reference (correctness check, PyTorch semantics, f32)
# ----------------------------------------------------------------------------
def ref_forward(params, x_nchw, z, eps, nz=1):
    cfg = params["cfg"]
    b = x_nchw.shape[0]
    x = x_nchw.reshape(b, cfg["input_channels"],
                       cfg["input_height"], cfg["input_height"])
    x = jnp.transpose(x, (0, 2, 3, 1)).astype(jnp.float32)
    x = 2.0 * x - 1.0

    def conv(xx, w, bb):
        y = jax.lax.conv_general_dilated(
            xx, w, window_strides=(2, 2), padding=((2, 2), (2, 2)),
            dimension_numbers=("NHWC", "HWIO", "NHWC"))
        return jax.nn.softplus(y + bb)

    h = conv(x, params["conv1_w"], params["conv1_b"])
    h = conv(h, params["conv2_w"], params["conv2_b"])
    h = conv(h, params["conv3_w"], params["conv3_b"])
    h3 = jnp.transpose(h, (0, 3, 1, 2)).reshape(b, -1)      # CHW flatten
    h3 = jnp.repeat(h3, nz, axis=0)
    h3z = jnp.concatenate([h3, z.astype(jnp.float32)], axis=1)
    h4 = jax.nn.softplus(h3z @ params["fc_w"] + params["fc_b"])
    mu = h4 @ params["mu_w"] + params["mu_b"]
    lv = h4 @ params["lv_w"] + params["lv_b"]
    z0 = mu + jnp.exp(0.5 * lv) * eps
    return z0, mu, lv


# ----------------------------------------------------------------------------
if __name__ == "__main__":
    key = jax.random.PRNGKey(0)
    k_param, k_x, k_z, k_eps = jax.random.split(key, 4)

    B, nz = 16, 1                       # grid = B / B_TILE = 2 steps
    input_height, input_channels, z_dim, z0_dim = 28, 1, 32, 100

    params = init_params(k_param, input_height, input_channels, z_dim, z0_dim)
    cfg, kweights = prepare_kernel_params(params)

    x = jax.random.uniform(k_x, (B, input_channels, input_height, input_height),
                           jnp.float32)
    z = jax.random.normal(k_z, (B * nz, z_dim), jnp.float32)
    eps = jax.random.normal(k_eps, (B * nz, z0_dim), jnp.float32)

    fwd = jax.jit(functools.partial(aux_decoder_forward,
                                    cfg=cfg, nz=nz, b_tile=8))
    z0, mu, logvar = fwd(kweights, x, z, eps)
    jax.block_until_ready((z0, mu, logvar))

    # Validate the bf16-weight kernel against the f32 reference.
    z0_r, mu_r, lv_r = ref_forward(params, x, z, eps, nz=nz)
    for a, b_ in ((z0, z0_r), (mu, mu_r), (logvar, lv_r)):
        assert a.shape == b_.shape and a.dtype == b_.dtype
        err = float(jnp.max(jnp.abs(a - b_)))
        assert err < 5e-2, f"mismatch vs reference: {err}"

    print("KERNEL_OK")
</pallas_src>

<mosaic_0001>
module attributes {stable_mosaic.version = 11 : i64} {
  func.func @_aux_decoder_kernel(%arg0: i32, %arg1: memref<8x196x25xbf16, #tpu.memory_space<vmem>>, %arg2: memref<8x32xbf16, #tpu.memory_space<vmem>>, %arg3: memref<8x128xf32, #tpu.memory_space<vmem>>, %arg4: memref<25x16xbf16, #tpu.memory_space<vmem>>, %arg5: memref<1x16xf32, #tpu.memory_space<vmem>>, %arg6: memref<1400x196xbf16, #tpu.memory_space<vmem>>, %arg7: memref<25x16x32xbf16, #tpu.memory_space<vmem>>, %arg8: memref<1x32xf32, #tpu.memory_space<vmem>>, %arg9: memref<400x56xbf16, #tpu.memory_space<vmem>>, %arg10: memref<25x32x32xbf16, #tpu.memory_space<vmem>>, %arg11: memref<1x32xf32, #tpu.memory_space<vmem>>, %arg12: memref<16x32x800xbf16, #tpu.memory_space<vmem>>, %arg13: memref<32x800xbf16, #tpu.memory_space<vmem>>, %arg14: memref<1x800xf32, #tpu.memory_space<vmem>>, %arg15: memref<800x256xbf16, #tpu.memory_space<vmem>>, %arg16: memref<1x256xf32, #tpu.memory_space<vmem>>, %arg17: memref<8x384xf32, #tpu.memory_space<vmem>>, %arg18: memref<1400x16xf32, #tpu.memory_space<vmem>>, %arg19: memref<400x32xf32, #tpu.memory_space<vmem>>, %arg20: memref<128x32xf32, #tpu.memory_space<vmem>>) attributes {dimension_semantics = [#tpu.dimension_semantics<parallel>], iteration_bounds = array<i64: 2>, scalar_prefetch = 0 : i64, scratch_operands = 3 : i64, tpu.core_type = #tpu.core_type<tc>, window_params = [{transform_indices = @transform_0, window_bounds = array<i64: 8, 196, 25>}, {transform_indices = @transform_1, window_bounds = array<i64: 8, 32>}, {transform_indices = @transform_2, window_bounds = array<i64: 8, 128>}, {pipeline_mode = #tpu.pipeline_mode<synchronous>, transform_indices = @transform_3, window_bounds = array<i64: 25, 16>}, {pipeline_mode = #tpu.pipeline_mode<synchronous>, transform_indices = @transform_4, window_bounds = array<i64: 1, 16>}, {pipeline_mode = #tpu.pipeline_mode<synchronous>, transform_indices = @transform_5, window_bounds = array<i64: 1400, 196>}, {pipeline_mode = #tpu.pipeline_mode<synchronous>, transform_indices = @transform_6, window_bounds = array<i64: 25, 16, 32>}, {pipeline_mode = #tpu.pipeline_mode<synchronous>, transform_indices = @transform_7, window_bounds = array<i64: 1, 32>}, {pipeline_mode = #tpu.pipeline_mode<synchronous>, transform_indices = @transform_8, window_bounds = array<i64: 400, 56>}, {pipeline_mode = #tpu.pipeline_mode<synchronous>, transform_indices = @transform_9, window_bounds = array<i64: 25, 32, 32>}, {pipeline_mode = #tpu.pipeline_mode<synchronous>, transform_indices = @transform_10, window_bounds = array<i64: 1, 32>}, {pipeline_mode = #tpu.pipeline_mode<synchronous>, transform_indices = @transform_11, window_bounds = array<i64: 16, 32, 800>}, {pipeline_mode = #tpu.pipeline_mode<synchronous>, transform_indices = @transform_12, window_bounds = array<i64: 32, 800>}, {pipeline_mode = #tpu.pipeline_mode<synchronous>, transform_indices = @transform_13, window_bounds = array<i64: 1, 800>}, {pipeline_mode = #tpu.pipeline_mode<synchronous>, transform_indices = @transform_14, window_bounds = array<i64: 800, 256>}, {pipeline_mode = #tpu.pipeline_mode<synchronous>, transform_indices = @transform_15, window_bounds = array<i64: 1, 256>}, {transform_indices = @transform_16, window_bounds = array<i64: 8, 384>}]} {
    %c0_i32 = arith.constant 0 : i32
    %c8_i32 = arith.constant 8 : i32
    %0 = arith.addi %c0_i32, %c8_i32 : i32
    %c1_i32 = arith.constant 1 : i32
    scf.for %arg21 = %c0_i32 to %0 step %c1_i32  : i32 {
      %128 = arith.index_cast %arg21 : i32 to index
      %c0_101 = arith.constant 0 : index
      %c0_102 = arith.constant 0 : index
      %129 = vector.load %arg1[%128, %c0_101, %c0_102] : memref<8x196x25xbf16, #tpu.memory_space<vmem>>, vector<1x196x25xbf16>
      %130 = vector.shape_cast %129 : vector<1x196x25xbf16> to vector<196x25xbf16>
      %c0_103 = arith.constant 0 : index
      %c0_104 = arith.constant 0 : index
      %131 = vector.load %arg4[%c0_103, %c0_104] : memref<25x16xbf16, #tpu.memory_space<vmem>>, vector<25x16xbf16>
      %cst_105 = arith.constant dense<0.000000e+00> : vector<196x16xf32>
      %132 = tpu.matmul %130, %131, %cst_105 {dimension_numbers = #tpu.dot_dimension_numbers<[1], [0], [0], [1], [0, 0, 1, 1], [], []>} : vector<196x25xbf16>, vector<25x16xbf16>, vector<196x16xf32> -> vector<196x16xf32>
      %c0_106 = arith.constant 0 : index
      %c0_107 = arith.constant 0 : index
      %133 = vector.load %arg5[%c0_106, %c0_107] : memref<1x16xf32, #tpu.memory_space<vmem>>, vector<1x16xf32>
      %134 = vector.broadcast %133 : vector<1x16xf32> to vector<196x16xf32>
      %135 = arith.addf %132, %134 : vector<196x16xf32>
      %cst_108 = arith.constant 0.000000e+00 : f32
      %136 = vector.broadcast %cst_108 : f32 to vector<196x16xf32>
      %137 = arith.maximumf %135, %136 : vector<196x16xf32>
      %138 = math.absf %135 : vector<196x16xf32>
      %cst_109 = arith.constant 0.000000e+00 : f32
      %139 = vector.broadcast %cst_109 : f32 to vector<196x16xf32>
      %140 = arith.subf %139, %138 : vector<196x16xf32>
      %141 = math.exp %140 : vector<196x16xf32>
      %142 = math.log1p %141 : vector<196x16xf32>
      %143 = arith.addf %137, %142 : vector<196x16xf32>
      %c0_110 = arith.constant 0 : index
      %c0_111 = arith.constant 0 : index
      %144 = vector.load %arg6[%c0_110, %c0_111] : memref<1400x196xbf16, #tpu.memory_space<vmem>>, vector<1400x196xbf16>
      %145 = arith.truncf %143 : vector<196x16xf32> to vector<196x16xbf16>
      %cst_112 = arith.constant dense<0.000000e+00> : vector<1400x16xf32>
      %146 = tpu.matmul %144, %145, %cst_112 {dimension_numbers = #tpu.dot_dimension_numbers<[1], [0], [0], [1], [0, 0, 1, 1], [], []>} : vector<1400x196xbf16>, vector<196x16xbf16>, vector<1400x16xf32> -> vector<1400x16xf32>
      %c0_113 = arith.constant 0 : index
      %c0_114 = arith.constant 0 : index
      %147 = vector.load %arg18[%c0_113, %c0_114] : memref<1400x16xf32, #tpu.memory_space<vmem>>, vector<1400x16xf32>
      tpu.vector_store %arg18[%c0_113, %c0_114], %146 {strides = array<i32>} : memref<1400x16xf32, #tpu.memory_space<vmem>>, vector<1400x16xf32>,
      %c0_115 = arith.constant 0 : index
      %c0_116 = arith.constant 0 : index
      %148 = vector.load %arg18[%c0_115, %c0_116] : memref<1400x16xf32, #tpu.memory_space<vmem>>, vector<56x16xf32>
      %149 = arith.truncf %148 : vector<56x16xf32> to vector<56x16xbf16>
      %c0_117 = arith.constant 0 : index
      %c0_118 = arith.constant 0 : index
      %c0_119 = arith.constant 0 : index
      %150 = vector.load %arg7[%c0_117, %c0_118, %c0_119] : memref<25x16x32xbf16, #tpu.memory_space<vmem>>, vector<1x16x32xbf16>
      %151 = vector.shape_cast %150 : vector<1x16x32xbf16> to vector<16x32xbf16>
      %cst_120 = arith.constant dense<0.000000e+00> : vector<56x32xf32>
      %152 = tpu.matmul %149, %151, %cst_120 {dimension_numbers = #tpu.dot_dimension_numbers<[1], [0], [0], [1], [0, 0, 1, 1], [], []>} : vector<56x16xbf16>, vector<16x32xbf16>, vector<56x32xf32> -> vector<56x32xf32>
      %c56 = arith.constant 56 : index
      %c0_121 = arith.constant 0 : index
      %153 = vector.load %arg18[%c56, %c0_121] : memref<1400x16xf32, #tpu.memory_space<vmem>>, vector<56x16xf32>
      %154 = arith.truncf %153 : vector<56x16xf32> to vector<56x16xbf16>
      %c1_122 = arith.constant 1 : index
      %c0_123 = arith.constant 0 : index
      %c0_124 = arith.constant 0 : index
      %155 = vector.load %arg7[%c1_122, %c0_123, %c0_124] : memref<25x16x32xbf16, #tpu.memory_space<vmem>>, vector<1x16x32xbf16>
      %156 = vector.shape_cast %155 : vector<1x16x32xbf16> to vector<16x32xbf16>
      %cst_125 = arith.constant dense<0.000000e+00> : vector<56x32xf32>
      %157 = tpu.matmul %154, %156, %cst_125 {dimension_numbers = #tpu.dot_dimension_numbers<[1], [0], [0], [1], [0, 0, 1, 1], [], []>} : vector<56x16xbf16>, vector<16x32xbf16>, vector<56x32xf32> -> vector<56x32xf32>
      %158 = arith.addf %152, %157 : vector<56x32xf32>
      %c112 = arith.constant 112 : index
      %c0_126 = arith.constant 0 : index
      %159 = vector.load %arg18[%c112, %c0_126] : memref<1400x16xf32, #tpu.memory_space<vmem>>, vector<56x16xf32>
      %160 = arith.truncf %159 : vector<56x16xf32> to vector<56x16xbf16>
      %c2_127 = arith.constant 2 : index
      %c0_128 = arith.constant 0 : index
      %c0_129 = arith.constant 0 : index
      %161 = vector.load %arg7[%c2_127, %c0_128, %c0_129] : memref<25x16x32xbf16, #tpu.memory_space<vmem>>, vector<1x16x32xbf16>
      %162 = vector.shape_cast %161 : vector<1x16x32xbf16> to vector<16x32xbf16>
      %cst_130 = arith.constant dense<0.000000e+00> : vector<56x32xf32>
      %163 = tpu.matmul %160, %162, %cst_130 {dimension_numbers = #tpu.dot_dimension_numbers<[1], [0], [0], [1], [0, 0, 1, 1], [], []>} : vector<56x16xbf16>, vector<16x32xbf16>, vector<56x32xf32> -> vector<56x32xf32>
      %164 = arith.addf %158, %163 : vector<56x32xf32>
      %c168 = arith.constant 168 : index
      %c0_131 = arith.constant 0 : index
      %165 = vector.load %arg18[%c168, %c0_131] : memref<1400x16xf32, #tpu.memory_space<vmem>>, vector<56x16xf32>
      %166 = arith.truncf %165 : vector<56x16xf32> to vector<56x16xbf16>
      %c3_132 = arith.constant 3 : index
      %c0_133 = arith.constant 0 : index
      %c0_134 = arith.constant 0 : index
      %167 = vector.load %arg7[%c3_132, %c0_133, %c0_134] : memref<25x16x32xbf16, #tpu.memory_space<vmem>>, vector<1x16x32xbf16>
      %168 = vector.shape_cast %167 : vector<1x16x32xbf16> to vector<16x32xbf16>
      %cst_135 = arith.constant dense<0.000000e+00> : vector<56x32xf32>
      %169 = tpu.matmul %166, %168, %cst_135 {dimension_numbers = #tpu.dot_dimension_numbers<[1], [0], [0], [1], [0, 0, 1, 1], [], []>} : vector<56x16xbf16>, vector<16x32xbf16>, vector<56x32xf32> -> vector<56x32xf32>
      %170 = arith.addf %164, %169 : vector<56x32xf32>
      %c224 = arith.constant 224 : index
      %c0_136 = arith.constant 0 : index
      %171 = vector.load %arg18[%c224, %c0_136] : memref<1400x16xf32, #tpu.memory_space<vmem>>, vector<56x16xf32>
      %172 = arith.truncf %171 : vector<56x16xf32> to vector<56x16xbf16>
      %c4_137 = arith.constant 4 : index
      %c0_138 = arith.constant 0 : index
      %c0_139 = arith.constant 0 : index
      %173 = vector.load %arg7[%c4_137, %c0_138, %c0_139] : memref<25x16x32xbf16, #tpu.memory_space<vmem>>, vector<1x16x32xbf16>
      %174 = vector.shape_cast %173 : vector<1x16x32xbf16> to vector<16x32xbf16>
      %cst_140 = arith.constant dense<0.000000e+00> : vector<56x32xf32>
      %175 = tpu.matmul %172, %174, %cst_140 {dimension_numbers = #tpu.dot_dimension_numbers<[1], [0], [0], [1], [0, 0, 1, 1], [], []>} : vector<56x16xbf16>, vector<16x32xbf16>, vector<56x32xf32> -> vector<56x32xf32>
      %176 = arith.addf %170, %175 : vector<56x32xf32>
      %c280 = arith.constant 280 : index
      %c0_141 = arith.constant 0 : index
      %177 = vector.load %arg18[%c280, %c0_141] : memref<1400x16xf32, #tpu.memory_space<vmem>>, vector<56x16xf32>
      %178 = arith.truncf %177 : vector<56x16xf32> to vector<56x16xbf16>
      %c5_142 = arith.constant 5 : index
      %c0_143 = arith.constant 0 : index
      %c0_144 = arith.constant 0 : index
      %179 = vector.load %arg7[%c5_142, %c0_143, %c0_144] : memref<25x16x32xbf16, #tpu.memory_space<vmem>>, vector<1x16x32xbf16>
      %180 = vector.shape_cast %179 : vector<1x16x32xbf16> to vector<16x32xbf16>
      %cst_145 = arith.constant dense<0.000000e+00> : vector<56x32xf32>
      %181 = tpu.matmul %178, %180, %cst_145 {dimension_numbers = #tpu.dot_dimension_numbers<[1], [0], [0], [1], [0, 0, 1, 1], [], []>} : vector<56x16xbf16>, vector<16x32xbf16>, vector<56x32xf32> -> vector<56x32xf32>
      %182 = arith.addf %176, %181 : vector<56x32xf32>
      %c336 = arith.constant 336 : index
      %c0_146 = arith.constant 0 : index
      %183 = vector.load %arg18[%c336, %c0_146] : memref<1400x16xf32, #tpu.memory_space<vmem>>, vector<56x16xf32>
      %184 = arith.truncf %183 : vector<56x16xf32> to vector<56x16xbf16>
      %c6_147 = arith.constant 6 : index
      %c0_148 = arith.constant 0 : index
      %c0_149 = arith.constant 0 : index
      %185 = vector.load %arg7[%c6_147, %c0_148, %c0_149] : memref<25x16x32xbf16, #tpu.memory_space<vmem>>, vector<1x16x32xbf16>
      %186 = vector.shape_cast %185 : vector<1x16x32xbf16> to vector<16x32xbf16>
      %cst_150 = arith.constant dense<0.000000e+00> : vector<56x32xf32>
      %187 = tpu.matmul %184, %186, %cst_150 {dimension_numbers = #tpu.dot_dimension_numbers<[1], [0], [0], [1], [0, 0, 1, 1], [], []>} : vector<56x16xbf16>, vector<16x32xbf16>, vector<56x32xf32> -> vector<56x32xf32>
      %188 = arith.addf %182, %187 : vector<56x32xf32>
      %c392 = arith.constant 392 : index
      %c0_151 = arith.constant 0 : index
      %189 = vector.load %arg18[%c392, %c0_151] : memref<1400x16xf32, #tpu.memory_space<vmem>>, vector<56x16xf32>
      %190 = arith.truncf %189 : vector<56x16xf32> to vector<56x16xbf16>
      %c7_152 = arith.constant 7 : index
      %c0_153 = arith.constant 0 : index
      %c0_154 = arith.constant 0 : index
      %191 = vector.load %arg7[%c7_152, %c0_153, %c0_154] : memref<25x16x32xbf16, #tpu.memory_space<vmem>>, vector<1x16x32xbf16>
      %192 = vector.shape_cast %191 : vector<1x16x32xbf16> to vector<16x32xbf16>
      %cst_155 = arith.constant dense<0.000000e+00> : vector<56x32xf32>
      %193 = tpu.matmul %190, %192, %cst_155 {dimension_numbers = #tpu.dot_dimension_numbers<[1], [0], [0], [1], [0, 0, 1, 1], [], []>} : vector<56x16xbf16>, vector<16x32xbf16>, vector<56x32xf32> -> vector<56x32xf32>
      %c448 = arith.constant 448 : index
      %c0_156 = arith.constant 0 : index
      %194 = vector.load %arg18[%c448, %c0_156] : memref<1400x16xf32, #tpu.memory_space<vmem>>, vector<56x16xf32>
      %195 = arith.truncf %194 : vector<56x16xf32> to vector<56x16xbf16>
      %c8_157 = arith.constant 8 : index
      %c0_158 = arith.constant 0 : index
      %c0_159 = arith.constant 0 : index
      %196 = vector.load %arg7[%c8_157, %c0_158, %c0_159] : memref<25x16x32xbf16, #tpu.memory_space<vmem>>, vector<1x16x32xbf16>
      %197 = vector.shape_cast %196 : vector<1x16x32xbf16> to vector<16x32xbf16>
      %cst_160 = arith.constant dense<0.000000e+00> : vector<56x32xf32>
      %198 = tpu.matmul %195, %197, %cst_160 {dimension_numbers = #tpu.dot_dimension_numbers<[1], [0], [0], [1], [0, 0, 1, 1], [], []>} : vector<56x16xbf16>, vector<16x32xbf16>, vector<56x32xf32> -> vector<56x32xf32>
      %199 = arith.addf %193, %198 : vector<56x32xf32>
      %c504 = arith.constant 504 : index
      %c0_161 = arith.constant 0 : index
      %200 = vector.load %arg18[%c504, %c0_161] : memref<1400x16xf32, #tpu.memory_space<vmem>>, vector<56x16xf32>
      %201 = arith.truncf %200 : vector<56x16xf32> to vector<56x16xbf16>
      %c9_162 = arith.constant 9 : index
      %c0_163 = arith.constant 0 : index
      %c0_164 = arith.constant 0 : index
      %202 = vector.load %arg7[%c9_162, %c0_163, %c0_164] : memref<25x16x32xbf16, #tpu.memory_space<vmem>>, vector<1x16x32xbf16>
      %203 = vector.shape_cast %202 : vector<1x16x32xbf16> to vector<16x32xbf16>
      %cst_165 = arith.constant dense<0.000000e+00> : vector<56x32xf32>
      %204 = tpu.matmul %201, %203, %cst_165 {dimension_numbers = #tpu.dot_dimension_numbers<[1], [0], [0], [1], [0, 0, 1, 1], [], []>} : vector<56x16xbf16>, vector<16x32xbf16>, vector<56x32xf32> -> vector<56x32xf32>
      %205 = arith.addf %199, %204 : vector<56x32xf32>
      %c560 = arith.constant 560 : index
      %c0_166 = arith.constant 0 : index
      %206 = vector.load %arg18[%c560, %c0_166] : memref<1400x16xf32, #tpu.memory_space<vmem>>, vector<56x16xf32>
      %207 = arith.truncf %206 : vector<56x16xf32> to vector<56x16xbf16>
      %c10_167 = arith.constant 10 : index
      %c0_168 = arith.constant 0 : index
      %c0_169 = arith.constant 0 : index
      %208 = vector.load %arg7[%c10_167, %c0_168, %c0_169] : memref<25x16x32xbf16, #tpu.memory_space<vmem>>, vector<1x16x32xbf16>
      %209 = vector.shape_cast %208 : vector<1x16x32xbf16> to vector<16x32xbf16>
      %cst_170 = arith.constant dense<0.000000e+00> : vector<56x32xf32>
      %210 = tpu.matmul %207, %209, %cst_170 {dimension_numbers = #tpu.dot_dimension_numbers<[1], [0], [0], [1], [0, 0, 1, 1], [], []>} : vector<56x16xbf16>, vector<16x32xbf16>, vector<56x32xf32> -> vector<56x32xf32>
      %211 = arith.addf %205, %210 : vector<56x32xf32>
      %c616 = arith.constant 616 : index
      %c0_171 = arith.constant 0 : index
      %212 = vector.load %arg18[%c616, %c0_171] : memref<1400x16xf32, #tpu.memory_space<vmem>>, vector<56x16xf32>
      %213 = arith.truncf %212 : vector<56x16xf32> to vector<56x16xbf16>
      %c11_172 = arith.constant 11 : index
      %c0_173 = arith.constant 0 : index
      %c0_174 = arith.constant 0 : index
      %214 = vector.load %arg7[%c11_172, %c0_173, %c0_174] : memref<25x16x32xbf16, #tpu.memory_space<vmem>>, vector<1x16x32xbf16>
      %215 = vector.shape_cast %214 : vector<1x16x32xbf16> to vector<16x32xbf16>
      %cst_175 = arith.constant dense<0.000000e+00> : vector<56x32xf32>
      %216 = tpu.matmul %213, %215, %cst_175 {dimension_numbers = #tpu.dot_dimension_numbers<[1], [0], [0], [1], [0, 0, 1, 1], [], []>} : vector<56x16xbf16>, vector<16x32xbf16>, vector<56x32xf32> -> vector<56x32xf32>
      %217 = arith.addf %211, %216 : vector<56x32xf32>
      %c672 = arith.constant 672 : index
      %c0_176 = arith.constant 0 : index
      %218 = vector.load %arg18[%c672, %c0_176] : memref<1400x16xf32, #tpu.memory_space<vmem>>, vector<56x16xf32>
      %219 = arith.truncf %218 : vector<56x16xf32> to vector<56x16xbf16>
      %c12_177 = arith.constant 12 : index
      %c0_178 = arith.constant 0 : index
      %c0_179 = arith.constant 0 : index
      %220 = vector.load %arg7[%c12_177, %c0_178, %c0_179] : memref<25x16x32xbf16, #tpu.memory_space<vmem>>, vector<1x16x32xbf16>
      %221 = vector.shape_cast %220 : vector<1x16x32xbf16> to vector<16x32xbf16>
      %cst_180 = arith.constant dense<0.000000e+00> : vector<56x32xf32>
      %222 = tpu.matmul %219, %221, %cst_180 {dimension_numbers = #tpu.dot_dimension_numbers<[1], [0], [0], [1], [0, 0, 1, 1], [], []>} : vector<56x16xbf16>, vector<16x32xbf16>, vector<56x32xf32> -> vector<56x32xf32>
      %223 = arith.addf %217, %222 : vector<56x32xf32>
      %c728 = arith.constant 728 : index
      %c0_181 = arith.constant 0 : index
      %224 = vector.load %arg18[%c728, %c0_181] : memref<1400x16xf32, #tpu.memory_space<vmem>>, vector<56x16xf32>
      %225 = arith.truncf %224 : vector<56x16xf32> to vector<56x16xbf16>
      %c13_182 = arith.constant 13 : index
      %c0_183 = arith.constant 0 : index
      %c0_184 = arith.constant 0 : index
      %226 = vector.load %arg7[%c13_182, %c0_183, %c0_184] : memref<25x16x32xbf16, #tpu.memory_space<vmem>>, vector<1x16x32xbf16>
      %227 = vector.shape_cast %226 : vector<1x16x32xbf16> to vector<16x32xbf16>
      %cst_185 = arith.constant dense<0.000000e+00> : vector<56x32xf32>
      %228 = tpu.matmul %225, %227, %cst_185 {dimension_numbers = #tpu.dot_dimension_numbers<[1], [0], [0], [1], [0, 0, 1, 1], [], []>} : vector<56x16xbf16>, vector<16x32xbf16>, vector<56x32xf32> -> vector<56x32xf32>
      %229 = arith.addf %223, %228 : vector<56x32xf32>
      %c784 = arith.constant 784 : index
      %c0_186 = arith.constant 0 : index
      %230 = vector.load %arg18[%c784, %c0_186] : memref<1400x16xf32, #tpu.memory_space<vmem>>, vector<56x16xf32>
      %231 = arith.truncf %230 : vector<56x16xf32> to vector<56x16xbf16>
      %c14_187 = arith.constant 14 : index
      %c0_188 = arith.constant 0 : index
      %c0_189 = arith.constant 0 : index
      %232 = vector.load %arg7[%c14_187, %c0_188, %c0_189] : memref<25x16x32xbf16, #tpu.memory_space<vmem>>, vector<1x16x32xbf16>
      %233 = vector.shape_cast %232 : vector<1x16x32xbf16> to vector<16x32xbf16>
      %cst_190 = arith.constant dense<0.000000e+00> : vector<56x32xf32>
      %234 = tpu.matmul %231, %233, %cst_190 {dimension_numbers = #tpu.dot_dimension_numbers<[1], [0], [0], [1], [0, 0, 1, 1], [], []>} : vector<56x16xbf16>, vector<16x32xbf16>, vector<56x32xf32> -> vector<56x32xf32>
      %c840 = arith.constant 840 : index
      %c0_191 = arith.constant 0 : index
      %235 = vector.load %arg18[%c840, %c0_191] : memref<1400x16xf32, #tpu.memory_space<vmem>>, vector<56x16xf32>
      %236 = arith.truncf %235 : vector<56x16xf32> to vector<56x16xbf16>
      %c15_192 = arith.constant 15 : index
      %c0_193 = arith.constant 0 : index
      %c0_194 = arith.constant 0 : index
      %237 = vector.load %arg7[%c15_192, %c0_193, %c0_194] : memref<25x16x32xbf16, #tpu.memory_space<vmem>>, vector<1x16x32xbf16>
      %238 = vector.shape_cast %237 : vector<1x16x32xbf16> to vector<16x32xbf16>
      %cst_195 = arith.constant dense<0.000000e+00> : vector<56x32xf32>
      %239 = tpu.matmul %236, %238, %cst_195 {dimension_numbers = #tpu.dot_dimension_numbers<[1], [0], [0], [1], [0, 0, 1, 1], [], []>} : vector<56x16xbf16>, vector<16x32xbf16>, vector<56x32xf32> -> vector<56x32xf32>
      %240 = arith.addf %234, %239 : vector<56x32xf32>
      %c896 = arith.constant 896 : index
      %c0_196 = arith.constant 0 : index
      %241 = vector.load %arg18[%c896, %c0_196] : memref<1400x16xf32, #tpu.memory_space<vmem>>, vector<56x16xf32>
      %242 = arith.truncf %241 : vector<56x16xf32> to vector<56x16xbf16>
      %c16 = arith.constant 16 : index
      %c0_197 = arith.constant 0 : index
      %c0_198 = arith.constant 0 : index
      %243 = vector.load %arg7[%c16, %c0_197, %c0_198] : memref<25x16x32xbf16, #tpu.memory_space<vmem>>, vector<1x16x32xbf16>
      %244 = vector.shape_cast %243 : vector<1x16x32xbf16> to vector<16x32xbf16>
      %cst_199 = arith.constant dense<0.000000e+00> : vector<56x32xf32>
      %245 = tpu.matmul %242, %244, %cst_199 {dimension_numbers = #tpu.dot_dimension_numbers<[1], [0], [0], [1], [0, 0, 1, 1], [], []>} : vector<56x16xbf16>, vector<16x32xbf16>, vector<56x32xf32> -> vector<56x32xf32>
      %246 = arith.addf %240, %245 : vector<56x32xf32>
      %c952 = arith.constant 952 : index
      %c0_200 = arith.constant 0 : index
      %247 = vector.load %arg18[%c952, %c0_200] : memref<1400x16xf32, #tpu.memory_space<vmem>>, vector<56x16xf32>
      %248 = arith.truncf %247 : vector<56x16xf32> to vector<56x16xbf16>
      %c17 = arith.constant 17 : index
      %c0_201 = arith.constant 0 : index
      %c0_202 = arith.constant 0 : index
      %249 = vector.load %arg7[%c17, %c0_201, %c0_202] : memref<25x16x32xbf16, #tpu.memory_space<vmem>>, vector<1x16x32xbf16>
      %250 = vector.shape_cast %249 : vector<1x16x32xbf16> to vector<16x32xbf16>
      %cst_203 = arith.constant dense<0.000000e+00> : vector<56x32xf32>
      %251 = tpu.matmul %248, %250, %cst_203 {dimension_numbers = #tpu.dot_dimension_numbers<[1], [0], [0], [1], [0, 0, 1, 1], [], []>} : vector<56x16xbf16>, vector<16x32xbf16>, vector<56x32xf32> -> vector<56x32xf32>
      %252 = arith.addf %246, %251 : vector<56x32xf32>
      %c1008 = arith.constant 1008 : index
      %c0_204 = arith.constant 0 : index
      %253 = vector.load %arg18[%c1008, %c0_204] : memref<1400x16xf32, #tpu.memory_space<vmem>>, vector<56x16xf32>
      %254 = arith.truncf %253 : vector<56x16xf32> to vector<56x16xbf16>
      %c18 = arith.constant 18 : index
      %c0_205 = arith.constant 0 : index
      %c0_206 = arith.constant 0 : index
      %255 = vector.load %arg7[%c18, %c0_205, %c0_206] : memref<25x16x32xbf16, #tpu.memory_space<vmem>>, vector<1x16x32xbf16>
      %256 = vector.shape_cast %255 : vector<1x16x32xbf16> to vector<16x32xbf16>
      %cst_207 = arith.constant dense<0.000000e+00> : vector<56x32xf32>
      %257 = tpu.matmul %254, %256, %cst_207 {dimension_numbers = #tpu.dot_dimension_numbers<[1], [0], [0], [1], [0, 0, 1, 1], [], []>} : vector<56x16xbf16>, vector<16x32xbf16>, vector<56x32xf32> -> vector<56x32xf32>
      %258 = arith.addf %252, %257 : vector<56x32xf32>
      %c1064 = arith.constant 1064 : index
      %c0_208 = arith.constant 0 : index
      %259 = vector.load %arg18[%c1064, %c0_208] : memref<1400x16xf32, #tpu.memory_space<vmem>>, vector<56x16xf32>
      %260 = arith.truncf %259 : vector<56x16xf32> to vector<56x16xbf16>
      %c19 = arith.constant 19 : index
      %c0_209 = arith.constant 0 : index
      %c0_210 = arith.constant 0 : index
      %261 = vector.load %arg7[%c19, %c0_209, %c0_210] : memref<25x16x32xbf16, #tpu.memory_space<vmem>>, vector<1x16x32xbf16>
      %262 = vector.shape_cast %261 : vector<1x16x32xbf16> to vector<16x32xbf16>
      %cst_211 = arith.constant dense<0.000000e+00> : vector<56x32xf32>
      %263 = tpu.matmul %260, %262, %cst_211 {dimension_numbers = #tpu.dot_dimension_numbers<[1], [0], [0], [1], [0, 0, 1, 1], [], []>} : vector<56x16xbf16>, vector<16x32xbf16>, vector<56x32xf32> -> vector<56x32xf32>
      %264 = arith.addf %258, %263 : vector<56x32xf32>
      %c1120 = arith.constant 1120 : index
      %c0_212 = arith.constant 0 : index
      %265 = vector.load %arg18[%c1120, %c0_212] : memref<1400x16xf32, #tpu.memory_space<vmem>>, vector<56x16xf32>
      %266 = arith.truncf %265 : vector<56x16xf32> to vector<56x16xbf16>
      %c20 = arith.constant 20 : index
      %c0_213 = arith.constant 0 : index
      %c0_214 = arith.constant 0 : index
      %267 = vector.load %arg7[%c20, %c0_213, %c0_214] : memref<25x16x32xbf16, #tpu.memory_space<vmem>>, vector<1x16x32xbf16>
      %268 = vector.shape_cast %267 : vector<1x16x32xbf16> to vector<16x32xbf16>
      %cst_215 = arith.constant dense<0.000000e+00> : vector<56x32xf32>
      %269 = tpu.matmul %266, %268, %cst_215 {dimension_numbers = #tpu.dot_dimension_numbers<[1], [0], [0], [1], [0, 0, 1, 1], [], []>} : vector<56x16xbf16>, vector<16x32xbf16>, vector<56x32xf32> -> vector<56x32xf32>
      %270 = arith.addf %264, %269 : vector<56x32xf32>
      %c1176 = arith.constant 1176 : index
      %c0_216 = arith.constant 0 : index
      %271 = vector.load %arg18[%c1176, %c0_216] : memref<1400x16xf32, #tpu.memory_space<vmem>>, vector<56x16xf32>
      %272 = arith.truncf %271 : vector<56x16xf32> to vector<56x16xbf16>
      %c21 = arith.constant 21 : index
      %c0_217 = arith.constant 0 : index
      %c0_218 = arith.constant 0 : index
      %273 = vector.load %arg7[%c21, %c0_217, %c0_218] : memref<25x16x32xbf16, #tpu.memory_space<vmem>>, vector<1x16x32xbf16>
      %274 = vector.shape_cast %273 : vector<1x16x32xbf16> to vector<16x32xbf16>
      %cst_219 = arith.constant dense<0.000000e+00> : vector<56x32xf32>
      %275 = tpu.matmul %272, %274, %cst_219 {dimension_numbers = #tpu.dot_dimension_numbers<[1], [0], [0], [1], [0, 0, 1, 1], [], []>} : vector<56x16xbf16>, vector<16x32xbf16>, vector<56x32xf32> -> vector<56x32xf32>
      %c1232 = arith.constant 1232 : index
      %c0_220 = arith.constant 0 : index
      %276 = vector.load %arg18[%c1232, %c0_220] : memref<1400x16xf32, #tpu.memory_space<vmem>>, vector<56x16xf32>
      %277 = arith.truncf %276 : vector<56x16xf32> to vector<56x16xbf16>
      %c22 = arith.constant 22 : index
      %c0_221 = arith.constant 0 : index
      %c0_222 = arith.constant 0 : index
      %278 = vector.load %arg7[%c22, %c0_221, %c0_222] : memref<25x16x32xbf16, #tpu.memory_space<vmem>>, vector<1x16x32xbf16>
      %279 = vector.shape_cast %278 : vector<1x16x32xbf16> to vector<16x32xbf16>
      %cst_223 = arith.constant dense<0.000000e+00> : vector<56x32xf32>
      %280 = tpu.matmul %277, %279, %cst_223 {dimension_numbers = #tpu.dot_dimension_numbers<[1], [0], [0], [1], [0, 0, 1, 1], [], []>} : vector<56x16xbf16>, vector<16x32xbf16>, vector<56x32xf32> -> vector<56x32xf32>
      %281 = arith.addf %275, %280 : vector<56x32xf32>
      %c1288 = arith.constant 1288 : index
      %c0_224 = arith.constant 0 : index
      %282 = vector.load %arg18[%c1288, %c0_224] : memref<1400x16xf32, #tpu.memory_space<vmem>>, vector<56x16xf32>
      %283 = arith.truncf %282 : vector<56x16xf32> to vector<56x16xbf16>
      %c23 = arith.constant 23 : index
      %c0_225 = arith.constant 0 : index
      %c0_226 = arith.constant 0 : index
      %284 = vector.load %arg7[%c23, %c0_225, %c0_226] : memref<25x16x32xbf16, #tpu.memory_space<vmem>>, vector<1x16x32xbf16>
      %285 = vector.shape_cast %284 : vector<1x16x32xbf16> to vector<16x32xbf16>
      %cst_227 = arith.constant dense<0.000000e+00> : vector<56x32xf32>
      %286 = tpu.matmul %283, %285, %cst_227 {dimension_numbers = #tpu.dot_dimension_numbers<[1], [0], [0], [1], [0, 0, 1, 1], [], []>} : vector<56x16xbf16>, vector<16x32xbf16>, vector<56x32xf32> -> vector<56x32xf32>
      %287 = arith.addf %281, %286 : vector<56x32xf32>
      %c1344 = arith.constant 1344 : index
      %c0_228 = arith.constant 0 : index
      %288 = vector.load %arg18[%c1344, %c0_228] : memref<1400x16xf32, #tpu.memory_space<vmem>>, vector<56x16xf32>
      %289 = arith.truncf %288 : vector<56x16xf32> to vector<56x16xbf16>
      %c24 = arith.constant 24 : index
      %c0_229 = arith.constant 0 : index
      %c0_230 = arith.constant 0 : index
      %290 = vector.load %arg7[%c24, %c0_229, %c0_230] : memref<25x16x32xbf16, #tpu.memory_space<vmem>>, vector<1x16x32xbf16>
      %291 = vector.shape_cast %290 : vector<1x16x32xbf16> to vector<16x32xbf16>
      %cst_231 = arith.constant dense<0.000000e+00> : vector<56x32xf32>
      %292 = tpu.matmul %289, %291, %cst_231 {dimension_numbers = #tpu.dot_dimension_numbers<[1], [0], [0], [1], [0, 0, 1, 1], [], []>} : vector<56x16xbf16>, vector<16x32xbf16>, vector<56x32xf32> -> vector<56x32xf32>
      %293 = arith.addf %287, %292 : vector<56x32xf32>
      %294 = arith.addf %188, %229 : vector<56x32xf32>
      %295 = arith.addf %270, %293 : vector<56x32xf32>
      %296 = arith.addf %294, %295 : vector<56x32xf32>
      %c0_232 = arith.constant 0 : index
      %c0_233 = arith.constant 0 : index
      %297 = vector.load %arg8[%c0_232, %c0_233] : memref<1x32xf32, #tpu.memory_space<vmem>>, vector<1x32xf32>
      %298 = vector.broadcast %297 : vector<1x32xf32> to vector<56x32xf32>
      %299 = arith.addf %296, %298 : vector<56x32xf32>
      %cst_234 = arith.constant 0.000000e+00 : f32
      %300 = vector.broadcast %cst_234 : f32 to vector<56x32xf32>
      %301 = arith.maximumf %299, %300 : vector<56x32xf32>
      %302 = math.absf %299 : vector<56x32xf32>
      %cst_235 = arith.constant 0.000000e+00 : f32
      %303 = vector.broadcast %cst_235 : f32 to vector<56x32xf32>
      %304 = arith.subf %303, %302 : vector<56x32xf32>
      %305 = math.exp %304 : vector<56x32xf32>
      %306 = math.log1p %305 : vector<56x32xf32>
      %307 = arith.addf %301, %306 : vector<56x32xf32>
      %c0_236 = arith.constant 0 : index
      %c0_237 = arith.constant 0 : index
      %308 = vector.load %arg9[%c0_236, %c0_237] : memref<400x56xbf16, #tpu.memory_space<vmem>>, vector<400x56xbf16>
      %309 = arith.truncf %307 : vector<56x32xf32> to vector<56x32xbf16>
      %cst_238 = arith.constant dense<0.000000e+00> : vector<400x32xf32>
      %310 = tpu.matmul %308, %309, %cst_238 {dimension_numbers = #tpu.dot_dimension_numbers<[1], [0], [0], [1], [0, 0, 1, 1], [], []>} : vector<400x56xbf16>, vector<56x32xbf16>, vector<400x32xf32> -> vector<400x32xf32>
      %c0_239 = arith.constant 0 : index
      %c0_240 = arith.constant 0 : index
      %311 = vector.load %arg19[%c0_239, %c0_240] : memref<400x32xf32, #tpu.memory_space<vmem>>, vector<400x32xf32>
      tpu.vector_store %arg19[%c0_239, %c0_240], %310 {strides = array<i32>} : memref<400x32xf32, #tpu.memory_space<vmem>>, vector<400x32xf32>,
      %c0_241 = arith.constant 0 : index
      %c0_242 = arith.constant 0 : index
      %312 = vector.load %arg19[%c0_241, %c0_242] : memref<400x32xf32, #tpu.memory_space<vmem>>, vector<16x32xf32>
      %313 = arith.truncf %312 : vector<16x32xf32> to vector<16x32xbf16>
      %c0_243 = arith.constant 0 : index
      %c0_244 = arith.constant 0 : index
      %c0_245 = arith.constant 0 : index
      %314 = vector.load %arg10[%c0_243, %c0_244, %c0_245] : memref<25x32x32xbf16, #tpu.memory_space<vmem>>, vector<1x32x32xbf16>
      %315 = vector.shape_cast %314 : vector<1x32x32xbf16> to vector<32x32xbf16>
      %cst_246 = arith.constant dense<0.000000e+00> : vector<16x32xf32>
      %316 = tpu.matmul %313, %315, %cst_246 {dimension_numbers = #tpu.dot_dimension_numbers<[1], [0], [0], [1], [0, 0, 1, 1], [], []>} : vector<16x32xbf16>, vector<32x32xbf16>, vector<16x32xf32> -> vector<16x32xf32>
      %c16_247 = arith.constant 16 : index
      %c0_248 = arith.constant 0 : index
      %317 = vector.load %arg19[%c16_247, %c0_248] : memref<400x32xf32, #tpu.memory_space<vmem>>, vector<16x32xf32>
      %318 = arith.truncf %317 : vector<16x32xf32> to vector<16x32xbf16>
      %c1_249 = arith.constant 1 : index
      %c0_250 = arith.constant 0 : index
      %c0_251 = arith.constant 0 : index
      %319 = vector.load %arg10[%c1_249, %c0_250, %c0_251] : memref<25x32x32xbf16, #tpu.memory_space<vmem>>, vector<1x32x32xbf16>
      %320 = vector.shape_cast %319 : vector<1x32x32xbf16> to vector<32x32xbf16>
      %cst_252 = arith.constant dense<0.000000e+00> : vector<16x32xf32>
      %321 = tpu.matmul %318, %320, %cst_252 {dimension_numbers = #tpu.dot_dimension_numbers<[1], [0], [0], [1], [0, 0, 1, 1], [], []>} : vector<16x32xbf16>, vector<32x32xbf16>, vector<16x32xf32> -> vector<16x32xf32>
      %322 = arith.addf %316, %321 : vector<16x32xf32>
      %c32 = arith.constant 32 : index
      %c0_253 = arith.constant 0 : index
      %323 = vector.load %arg19[%c32, %c0_253] : memref<400x32xf32, #tpu.memory_space<vmem>>, vector<16x32xf32>
      %324 = arith.truncf %323 : vector<16x32xf32> to vector<16x32xbf16>
      %c2_254 = arith.constant 2 : index
      %c0_255 = arith.constant 0 : index
      %c0_256 = arith.constant 0 : index
      %325 = vector.load %arg10[%c2_254, %c0_255, %c0_256] : memref<25x32x32xbf16, #tpu.memory_space<vmem>>, vector<1x32x32xbf16>
      %326 = vector.shape_cast %325 : vector<1x32x32xbf16> to vector<32x32xbf16>
      %cst_257 = arith.constant dense<0.000000e+00> : vector<16x32xf32>
      %327 = tpu.matmul %324, %326, %cst_257 {dimension_numbers = #tpu.dot_dimension_numbers<[1], [0], [0], [1], [0, 0, 1, 1], [], []>} : vector<16x32xbf16>, vector<32x32xbf16>, vector<16x32xf32> -> vector<16x32xf32>
      %328 = arith.addf %322, %327 : vector<16x32xf32>
      %c48 = arith.constant 48 : index
      %c0_258 = arith.constant 0 : index
      %329 = vector.load %arg19[%c48, %c0_258] : memref<400x32xf32, #tpu.memory_space<vmem>>, vector<16x32xf32>
      %330 = arith.truncf %329 : vector<16x32xf32> to vector<16x32xbf16>
      %c3_259 = arith.constant 3 : index
      %c0_260 = arith.constant 0 : index
      %c0_261 = arith.constant 0 : index
      %331 = vector.load %arg10[%c3_259, %c0_260, %c0_261] : memref<25x32x32xbf16, #tpu.memory_space<vmem>>, vector<1x32x32xbf16>
      %332 = vector.shape_cast %331 : vector<1x32x32xbf16> to vector<32x32xbf16>
      %cst_262 = arith.constant dense<0.000000e+00> : vector<16x32xf32>
      %333 = tpu.matmul %330, %332, %cst_262 {dimension_numbers = #tpu.dot_dimension_numbers<[1], [0], [0], [1], [0, 0, 1, 1], [], []>} : vector<16x32xbf16>, vector<32x32xbf16>, vector<16x32xf32> -> vector<16x32xf32>
      %334 = arith.addf %328, %333 : vector<16x32xf32>
      %c64 = arith.constant 64 : index
      %c0_263 = arith.constant 0 : index
      %335 = vector.load %arg19[%c64, %c0_263] : memref<400x32xf32, #tpu.memory_space<vmem>>, vector<16x32xf32>
      %336 = arith.truncf %335 : vector<16x32xf32> to vector<16x32xbf16>
      %c4_264 = arith.constant 4 : index
      %c0_265 = arith.constant 0 : index
      %c0_266 = arith.constant 0 : index
      %337 = vector.load %arg10[%c4_264, %c0_265, %c0_266] : memref<25x32x32xbf16, #tpu.memory_space<vmem>>, vector<1x32x32xbf16>
      %338 = vector.shape_cast %337 : vector<1x32x32xbf16> to vector<32x32xbf16>
      %cst_267 = arith.constant dense<0.000000e+00> : vector<16x32xf32>
      %339 = tpu.matmul %336, %338, %cst_267 {dimension_numbers = #tpu.dot_dimension_numbers<[1], [0], [0], [1], [0, 0, 1, 1], [], []>} : vector<16x32xbf16>, vector<32x32xbf16>, vector<16x32xf32> -> vector<16x32xf32>
      %340 = arith.addf %334, %339 : vector<16x32xf32>
      %c80 = arith.constant 80 : index
      %c0_268 = arith.constant 0 : index
      %341 = vector.load %arg19[%c80, %c0_268] : memref<400x32xf32, #tpu.memory_space<vmem>>, vector<16x32xf32>
      %342 = arith.truncf %341 : vector<16x32xf32> to vector<16x32xbf16>
      %c5_269 = arith.constant 5 : index
      %c0_270 = arith.constant 0 : index
      %c0_271 = arith.constant 0 : index
      %343 = vector.load %arg10[%c5_269, %c0_270, %c0_271] : memref<25x32x32xbf16, #tpu.memory_space<vmem>>, vector<1x32x32xbf16>
      %344 = vector.shape_cast %343 : vector<1x32x32xbf16> to vector<32x32xbf16>
      %cst_272 = arith.constant dense<0.000000e+00> : vector<16x32xf32>
      %345 = tpu.matmul %342, %344, %cst_272 {dimension_numbers = #tpu.dot_dimension_numbers<[1], [0], [0], [1], [0, 0, 1, 1], [], []>} : vector<16x32xbf16>, vector<32x32xbf16>, vector<16x32xf32> -> vector<16x32xf32>
      %346 = arith.addf %340, %345 : vector<16x32xf32>
      %c96 = arith.constant 96 : index
      %c0_273 = arith.constant 0 : index
      %347 = vector.load %arg19[%c96, %c0_273] : memref<400x32xf32, #tpu.memory_space<vmem>>, vector<16x32xf32>
      %348 = arith.truncf %347 : vector<16x32xf32> to vector<16x32xbf16>
      %c6_274 = arith.constant 6 : index
      %c0_275 = arith.constant 0 : index
      %c0_276 = arith.constant 0 : index
      %349 = vector.load %arg10[%c6_274, %c0_275, %c0_276] : memref<25x32x32xbf16, #tpu.memory_space<vmem>>, vector<1x32x32xbf16>
      %350 = vector.shape_cast %349 : vector<1x32x32xbf16> to vector<32x32xbf16>
      %cst_277 = arith.constant dense<0.000000e+00> : vector<16x32xf32>
      %351 = tpu.matmul %348, %350, %cst_277 {dimension_numbers = #tpu.dot_dimension_numbers<[1], [0], [0], [1], [0, 0, 1, 1], [], []>} : vector<16x32xbf16>, vector<32x32xbf16>, vector<16x32xf32> -> vector<16x32xf32>
      %352 = arith.addf %346, %351 : vector<16x32xf32>
      %c112_278 = arith.constant 112 : index
      %c0_279 = arith.constant 0 : index
      %353 = vector.load %arg19[%c112_278, %c0_279] : memref<400x32xf32, #tpu.memory_space<vmem>>, vector<16x32xf32>
      %354 = arith.truncf %353 : vector<16x32xf32> to vector<16x32xbf16>
      %c7_280 = arith.constant 7 : index
      %c0_281 = arith.constant 0 : index
      %c0_282 = arith.constant 0 : index
      %355 = vector.load %arg10[%c7_280, %c0_281, %c0_282] : memref<25x32x32xbf16, #tpu.memory_space<vmem>>, vector<1x32x32xbf16>
      %356 = vector.shape_cast %355 : vector<1x32x32xbf16> to vector<32x32xbf16>
      %cst_283 = arith.constant dense<0.000000e+00> : vector<16x32xf32>
      %357 = tpu.matmul %354, %356, %cst_283 {dimension_numbers = #tpu.dot_dimension_numbers<[1], [0], [0], [1], [0, 0, 1, 1], [], []>} : vector<16x32xbf16>, vector<32x32xbf16>, vector<16x32xf32> -> vector<16x32xf32>
      %c128_284 = arith.constant 128 : index
      %c0_285 = arith.constant 0 : index
      %358 = vector.load %arg19[%c128_284, %c0_285] : memref<400x32xf32, #tpu.memory_space<vmem>>, vector<16x32xf32>
      %359 = arith.truncf %358 : vector<16x32xf32> to vector<16x32xbf16>
      %c8_286 = arith.constant 8 : index
      %c0_287 = arith.constant 0 : index
      %c0_288 = arith.constant 0 : index
      %360 = vector.load %arg10[%c8_286, %c0_287, %c0_288] : memref<25x32x32xbf16, #tpu.memory_space<vmem>>, vector<1x32x32xbf16>
      %361 = vector.shape_cast %360 : vector<1x32x32xbf16> to vector<32x32xbf16>
      %cst_289 = arith.constant dense<0.000000e+00> : vector<16x32xf32>
      %362 = tpu.matmul %359, %361, %cst_289 {dimension_numbers = #tpu.dot_dimension_numbers<[1], [0], [0], [1], [0, 0, 1, 1], [], []>} : vector<16x32xbf16>, vector<32x32xbf16>, vector<16x32xf32> -> vector<16x32xf32>
      %363 = arith.addf %357, %362 : vector<16x32xf32>
      %c144 = arith.constant 144 : index
      %c0_290 = arith.constant 0 : index
      %364 = vector.load %arg19[%c144, %c0_290] : memref<400x32xf32, #tpu.memory_space<vmem>>, vector<16x32xf32>
      %365 = arith.truncf %364 : vector<16x32xf32> to vector<16x32xbf16>
      %c9_291 = arith.constant 9 : index
      %c0_292 = arith.constant 0 : index
      %c0_293 = arith.constant 0 : index
      %366 = vector.load %arg10[%c9_291, %c0_292, %c0_293] : memref<25x32x32xbf16, #tpu.memory_space<vmem>>, vector<1x32x32xbf16>
      %367 = vector.shape_cast %366 : vector<1x32x32xbf16> to vector<32x32xbf16>
      %cst_294 = arith.constant dense<0.000000e+00> : vector<16x32xf32>
      %368 = tpu.matmul %365, %367, %cst_294 {dimension_numbers = #tpu.dot_dimension_numbers<[1], [0], [0], [1], [0, 0, 1, 1], [], []>} : vector<16x32xbf16>, vector<32x32xbf16>, vector<16x32xf32> -> vector<16x32xf32>
      %369 = arith.addf %363, %368 : vector<16x32xf32>
      %c160 = arith.constant 160 : index
      %c0_295 = arith.constant 0 : index
      %370 = vector.load %arg19[%c160, %c0_295] : memref<400x32xf32, #tpu.memory_space<vmem>>, vector<16x32xf32>
      %371 = arith.truncf %370 : vector<16x32xf32> to vector<16x32xbf16>
      %c10_296 = arith.constant 10 : index
      %c0_297 = arith.constant 0 : index
      %c0_298 = arith.constant 0 : index
      %372 = vector.load %arg10[%c10_296, %c0_297, %c0_298] : memref<25x32x32xbf16, #tpu.memory_space<vmem>>, vector<1x32x32xbf16>
      %373 = vector.shape_cast %372 : vector<1x32x32xbf16> to vector<32x32xbf16>
      %cst_299 = arith.constant dense<0.000000e+00> : vector<16x32xf32>
      %374 = tpu.matmul %371, %373, %cst_299 {dimension_numbers = #tpu.dot_dimension_numbers<[1], [0], [0], [1], [0, 0, 1, 1], [], []>} : vector<16x32xbf16>, vector<32x32xbf16>, vector<16x32xf32> -> vector<16x32xf32>
      %375 = arith.addf %369, %374 : vector<16x32xf32>
      %c176 = arith.constant 176 : index
      %c0_300 = arith.constant 0 : index
      %376 = vector.load %arg19[%c176, %c0_300] : memref<400x32xf32, #tpu.memory_space<vmem>>, vector<16x32xf32>
      %377 = arith.truncf %376 : vector<16x32xf32> to vector<16x32xbf16>
      %c11_301 = arith.constant 11 : index
      %c0_302 = arith.constant 0 : index
      %c0_303 = arith.constant 0 : index
      %378 = vector.load %arg10[%c11_301, %c0_302, %c0_303] : memref<25x32x32xbf16, #tpu.memory_space<vmem>>, vector<1x32x32xbf16>
      %379 = vector.shape_cast %378 : vector<1x32x32xbf16> to vector<32x32xbf16>
      %cst_304 = arith.constant dense<0.000000e+00> : vector<16x32xf32>
      %380 = tpu.matmul %377, %379, %cst_304 {dimension_numbers = #tpu.dot_dimension_numbers<[1], [0], [0], [1], [0, 0, 1, 1], [], []>} : vector<16x32xbf16>, vector<32x32xbf16>, vector<16x32xf32> -> vector<16x32xf32>
      %381 = arith.addf %375, %380 : vector<16x32xf32>
      %c192 = arith.constant 192 : index
      %c0_305 = arith.constant 0 : index
      %382 = vector.load %arg19[%c192, %c0_305] : memref<400x32xf32, #tpu.memory_space<vmem>>, vector<16x32xf32>
      %383 = arith.truncf %382 : vector<16x32xf32> to vector<16x32xbf16>
      %c12_306 = arith.constant 12 : index
      %c0_307 = arith.constant 0 : index
      %c0_308 = arith.constant 0 : index
      %384 = vector.load %arg10[%c12_306, %c0_307, %c0_308] : memref<25x32x32xbf16, #tpu.memory_space<vmem>>, vector<1x32x32xbf16>
      %385 = vector.shape_cast %384 : vector<1x32x32xbf16> to vector<32x32xbf16>
      %cst_309 = arith.constant dense<0.000000e+00> : vector<16x32xf32>
      %386 = tpu.matmul %383, %385, %cst_309 {dimension_numbers = #tpu.dot_dimension_numbers<[1], [0], [0], [1], [0, 0, 1, 1], [], []>} : vector<16x32xbf16>, vector<32x32xbf16>, vector<16x32xf32> -> vector<16x32xf32>
      %387 = arith.addf %381, %386 : vector<16x32xf32>
      %c208 = arith.constant 208 : index
      %c0_310 = arith.constant 0 : index
      %388 = vector.load %arg19[%c208, %c0_310] : memref<400x32xf32, #tpu.memory_space<vmem>>, vector<16x32xf32>
      %389 = arith.truncf %388 : vector<16x32xf32> to vector<16x32xbf16>
      %c13_311 = arith.constant 13 : index
      %c0_312 = arith.constant 0 : index
      %c0_313 = arith.constant 0 : index
      %390 = vector.load %arg10[%c13_311, %c0_312, %c0_313] : memref<25x32x32xbf16, #tpu.memory_space<vmem>>, vector<1x32x32xbf16>
      %391 = vector.shape_cast %390 : vector<1x32x32xbf16> to vector<32x32xbf16>
      %cst_314 = arith.constant dense<0.000000e+00> : vector<16x32xf32>
      %392 = tpu.matmul %389, %391, %cst_314 {dimension_numbers = #tpu.dot_dimension_numbers<[1], [0], [0], [1], [0, 0, 1, 1], [], []>} : vector<16x32xbf16>, vector<32x32xbf16>, vector<16x32xf32> -> vector<16x32xf32>
      %393 = arith.addf %387, %392 : vector<16x32xf32>
      %c224_315 = arith.constant 224 : index
      %c0_316 = arith.constant 0 : index
      %394 = vector.load %arg19[%c224_315, %c0_316] : memref<400x32xf32, #tpu.memory_space<vmem>>, vector<16x32xf32>
      %395 = arith.truncf %394 : vector<16x32xf32> to vector<16x32xbf16>
      %c14_317 = arith.constant 14 : index
      %c0_318 = arith.constant 0 : index
      %c0_319 = arith.constant 0 : index
      %396 = vector.load %arg10[%c14_317, %c0_318, %c0_319] : memref<25x32x32xbf16, #tpu.memory_space<vmem>>, vector<1x32x32xbf16>
      %397 = vector.shape_cast %396 : vector<1x32x32xbf16> to vector<32x32xbf16>
      %cst_320 = arith.constant dense<0.000000e+00> : vector<16x32xf32>
      %398 = tpu.matmul %395, %397, %cst_320 {dimension_numbers = #tpu.dot_dimension_numbers<[1], [0], [0], [1], [0, 0, 1, 1], [], []>} : vector<16x32xbf16>, vector<32x32xbf16>, vector<16x32xf32> -> vector<16x32xf32>
      %c240 = arith.constant 240 : index
      %c0_321 = arith.constant 0 : index
      %399 = vector.load %arg19[%c240, %c0_321] : memref<400x32xf32, #tpu.memory_space<vmem>>, vector<16x32xf32>
      %400 = arith.truncf %399 : vector<16x32xf32> to vector<16x32xbf16>
      %c15_322 = arith.constant 15 : index
      %c0_323 = arith.constant 0 : index
      %c0_324 = arith.constant 0 : index
      %401 = vector.load %arg10[%c15_322, %c0_323, %c0_324] : memref<25x32x32xbf16, #tpu.memory_space<vmem>>, vector<1x32x32xbf16>
      %402 = vector.shape_cast %401 : vector<1x32x32xbf16> to vector<32x32xbf16>
      %cst_325 = arith.constant dense<0.000000e+00> : vector<16x32xf32>
      %403 = tpu.matmul %400, %402, %cst_325 {dimension_numbers = #tpu.dot_dimension_numbers<[1], [0], [0], [1], [0, 0, 1, 1], [], []>} : vector<16x32xbf16>, vector<32x32xbf16>, vector<16x32xf32> -> vector<16x32xf32>
      %404 = arith.addf %398, %403 : vector<16x32xf32>
      %c256_326 = arith.constant 256 : index
      %c0_327 = arith.constant 0 : index
      %405 = vector.load %arg19[%c256_326, %c0_327] : memref<400x32xf32, #tpu.memory_space<vmem>>, vector<16x32xf32>
      %406 = arith.truncf %405 : vector<16x32xf32> to vector<16x32xbf16>
      %c16_328 = arith.constant 16 : index
      %c0_329 = arith.constant 0 : index
      %c0_330 = arith.constant 0 : index
      %407 = vector.load %arg10[%c16_328, %c0_329, %c0_330] : memref<25x32x32xbf16, #tpu.memory_space<vmem>>, vector<1x32x32xbf16>
      %408 = vector.shape_cast %407 : vector<1x32x32xbf16> to vector<32x32xbf16>
      %cst_331 = arith.constant dense<0.000000e+00> : vector<16x32xf32>
      %409 = tpu.matmul %406, %408, %cst_331 {dimension_numbers = #tpu.dot_dimension_numbers<[1], [0], [0], [1], [0, 0, 1, 1], [], []>} : vector<16x32xbf16>, vector<32x32xbf16>, vector<16x32xf32> -> vector<16x32xf32>
      %410 = arith.addf %404, %409 : vector<16x32xf32>
      %c272 = arith.constant 272 : index
      %c0_332 = arith.constant 0 : index
      %411 = vector.load %arg19[%c272, %c0_332] : memref<400x32xf32, #tpu.memory_space<vmem>>, vector<16x32xf32>
      %412 = arith.truncf %411 : vector<16x32xf32> to vector<16x32xbf16>
      %c17_333 = arith.constant 17 : index
      %c0_334 = arith.constant 0 : index
      %c0_335 = arith.constant 0 : index
      %413 = vector.load %arg10[%c17_333, %c0_334, %c0_335] : memref<25x32x32xbf16, #tpu.memory_space<vmem>>, vector<1x32x32xbf16>
      %414 = vector.shape_cast %413 : vector<1x32x32xbf16> to vector<32x32xbf16>
      %cst_336 = arith.constant dense<0.000000e+00> : vector<16x32xf32>
      %415 = tpu.matmul %412, %414, %cst_336 {dimension_numbers = #tpu.dot_dimension_numbers<[1], [0], [0], [1], [0, 0, 1, 1], [], []>} : vector<16x32xbf16>, vector<32x32xbf16>, vector<16x32xf32> -> vector<16x32xf32>
      %416 = arith.addf %410, %415 : vector<16x32xf32>
      %c288 = arith.constant 288 : index
      %c0_337 = arith.constant 0 : index
      %417 = vector.load %arg19[%c288, %c0_337] : memref<400x32xf32, #tpu.memory_space<vmem>>, vector<16x32xf32>
      %418 = arith.truncf %417 : vector<16x32xf32> to vector<16x32xbf16>
      %c18_338 = arith.constant 18 : index
      %c0_339 = arith.constant 0 : index
      %c0_340 = arith.constant 0 : index
      %419 = vector.load %arg10[%c18_338, %c0_339, %c0_340] : memref<25x32x32xbf16, #tpu.memory_space<vmem>>, vector<1x32x32xbf16>
      %420 = vector.shape_cast %419 : vector<1x32x32xbf16> to vector<32x32xbf16>
      %cst_341 = arith.constant dense<0.000000e+00> : vector<16x32xf32>
      %421 = tpu.matmul %418, %420, %cst_341 {dimension_numbers = #tpu.dot_dimension_numbers<[1], [0], [0], [1], [0, 0, 1, 1], [], []>} : vector<16x32xbf16>, vector<32x32xbf16>, vector<16x32xf32> -> vector<16x32xf32>
      %422 = arith.addf %416, %421 : vector<16x32xf32>
      %c304 = arith.constant 304 : index
      %c0_342 = arith.constant 0 : index
      %423 = vector.load %arg19[%c304, %c0_342] : memref<400x32xf32, #tpu.memory_space<vmem>>, vector<16x32xf32>
      %424 = arith.truncf %423 : vector<16x32xf32> to vector<16x32xbf16>
      %c19_343 = arith.constant 19 : index
      %c0_344 = arith.constant 0 : index
      %c0_345 = arith.constant 0 : index
      %425 = vector.load %arg10[%c19_343, %c0_344, %c0_345] : memref<25x32x32xbf16, #tpu.memory_space<vmem>>, vector<1x32x32xbf16>
      %426 = vector.shape_cast %425 : vector<1x32x32xbf16> to vector<32x32xbf16>
      %cst_346 = arith.constant dense<0.000000e+00> : vector<16x32xf32>
      %427 = tpu.matmul %424, %426, %cst_346 {dimension_numbers = #tpu.dot_dimension_numbers<[1], [0], [0], [1], [0, 0, 1, 1], [], []>} : vector<16x32xbf16>, vector<32x32xbf16>, vector<16x32xf32> -> vector<16x32xf32>
      %428 = arith.addf %422, %427 : vector<16x32xf32>
      %c320 = arith.constant 320 : index
      %c0_347 = arith.constant 0 : index
      %429 = vector.load %arg19[%c320, %c0_347] : memref<400x32xf32, #tpu.memory_space<vmem>>, vector<16x32xf32>
      %430 = arith.truncf %429 : vector<16x32xf32> to vector<16x32xbf16>
      %c20_348 = arith.constant 20 : index
      %c0_349 = arith.constant 0 : index
      %c0_350 = arith.constant 0 : index
      %431 = vector.load %arg10[%c20_348, %c0_349, %c0_350] : memref<25x32x32xbf16, #tpu.memory_space<vmem>>, vector<1x32x32xbf16>
      %432 = vector.shape_cast %431 : vector<1x32x32xbf16> to vector<32x32xbf16>
      %cst_351 = arith.constant dense<0.000000e+00> : vector<16x32xf32>
      %433 = tpu.matmul %430, %432, %cst_351 {dimension_numbers = #tpu.dot_dimension_numbers<[1], [0], [0], [1], [0, 0, 1, 1], [], []>} : vector<16x32xbf16>, vector<32x32xbf16>, vector<16x32xf32> -> vector<16x32xf32>
      %434 = arith.addf %428, %433 : vector<16x32xf32>
      %c336_352 = arith.constant 336 : index
      %c0_353 = arith.constant 0 : index
      %435 = vector.load %arg19[%c336_352, %c0_353] : memref<400x32xf32, #tpu.memory_space<vmem>>, vector<16x32xf32>
      %436 = arith.truncf %435 : vector<16x32xf32> to vector<16x32xbf16>
      %c21_354 = arith.constant 21 : index
      %c0_355 = arith.constant 0 : index
      %c0_356 = arith.constant 0 : index
      %437 = vector.load %arg10[%c21_354, %c0_355, %c0_356] : memref<25x32x32xbf16, #tpu.memory_space<vmem>>, vector<1x32x32xbf16>
      %438 = vector.shape_cast %437 : vector<1x32x32xbf16> to vector<32x32xbf16>
      %cst_357 = arith.constant dense<0.000000e+00> : vector<16x32xf32>
      %439 = tpu.matmul %436, %438, %cst_357 {dimension_numbers = #tpu.dot_dimension_numbers<[1], [0], [0], [1], [0, 0, 1, 1], [], []>} : vector<16x32xbf16>, vector<32x32xbf16>, vector<16x32xf32> -> vector<16x32xf32>
      %c352 = arith.constant 352 : index
      %c0_358 = arith.constant 0 : index
      %440 = vector.load %arg19[%c352, %c0_358] : memref<400x32xf32, #tpu.memory_space<vmem>>, vector<16x32xf32>
      %441 = arith.truncf %440 : vector<16x32xf32> to vector<16x32xbf16>
      %c22_359 = arith.constant 22 : index
      %c0_360 = arith.constant 0 : index
      %c0_361 = arith.constant 0 : index
      %442 = vector.load %arg10[%c22_359, %c0_360, %c0_361] : memref<25x32x32xbf16, #tpu.memory_space<vmem>>, vector<1x32x32xbf16>
      %443 = vector.shape_cast %442 : vector<1x32x32xbf16> to vector<32x32xbf16>
      %cst_362 = arith.constant dense<0.000000e+00> : vector<16x32xf32>
      %444 = tpu.matmul %441, %443, %cst_362 {dimension_numbers = #tpu.dot_dimension_numbers<[1], [0], [0], [1], [0, 0, 1, 1], [], []>} : vector<16x32xbf16>, vector<32x32xbf16>, vector<16x32xf32> -> vector<16x32xf32>
      %445 = arith.addf %439, %444 : vector<16x32xf32>
      %c368 = arith.constant 368 : index
      %c0_363 = arith.constant 0 : index
      %446 = vector.load %arg19[%c368, %c0_363] : memref<400x32xf32, #tpu.memory_space<vmem>>, vector<16x32xf32>
      %447 = arith.truncf %446 : vector<16x32xf32> to vector<16x32xbf16>
      %c23_364 = arith.constant 23 : index
      %c0_365 = arith.constant 0 : index
      %c0_366 = arith.constant 0 : index
      %448 = vector.load %arg10[%c23_364, %c0_365, %c0_366] : memref<25x32x32xbf16, #tpu.memory_space<vmem>>, vector<1x32x32xbf16>
      %449 = vector.shape_cast %448 : vector<1x32x32xbf16> to vector<32x32xbf16>
      %cst_367 = arith.constant dense<0.000000e+00> : vector<16x32xf32>
      %450 = tpu.matmul %447, %449, %cst_367 {dimension_numbers = #tpu.dot_dimension_numbers<[1], [0], [0], [1], [0, 0, 1, 1], [], []>} : vector<16x32xbf16>, vector<32x32xbf16>, vector<16x32xf32> -> vector<16x32xf32>
      %451 = arith.addf %445, %450 : vector<16x32xf32>
      %c384 = arith.constant 384 : index
      %c0_368 = arith.constant 0 : index
      %452 = vector.load %arg19[%c384, %c0_368] : memref<400x32xf32, #tpu.memory_space<vmem>>, vector<16x32xf32>
      %453 = arith.truncf %452 : vector<16x32xf32> to vector<16x32xbf16>
      %c24_369 = arith.constant 24 : index
      %c0_370 = arith.constant 0 : index
      %c0_371 = arith.constant 0 : index
      %454 = vector.load %arg10[%c24_369, %c0_370, %c0_371] : memref<25x32x32xbf16, #tpu.memory_space<vmem>>, vector<1x32x32xbf16>
      %455 = vector.shape_cast %454 : vector<1x32x32xbf16> to vector<32x32xbf16>
      %cst_372 = arith.constant dense<0.000000e+00> : vector<16x32xf32>
      %456 = tpu.matmul %453, %455, %cst_372 {dimension_numbers = #tpu.dot_dimension_numbers<[1], [0], [0], [1], [0, 0, 1, 1], [], []>} : vector<16x32xbf16>, vector<32x32xbf16>, vector<16x32xf32> -> vector<16x32xf32>
      %457 = arith.addf %451, %456 : vector<16x32xf32>
      %458 = arith.addf %352, %393 : vector<16x32xf32>
      %459 = arith.addf %434, %457 : vector<16x32xf32>
      %460 = arith.addf %458, %459 : vector<16x32xf32>
      %c0_373 = arith.constant 0 : index
      %c0_374 = arith.constant 0 : index
      %461 = vector.load %arg11[%c0_373, %c0_374] : memref<1x32xf32, #tpu.memory_space<vmem>>, vector<1x32xf32>
      %462 = vector.broadcast %461 : vector<1x32xf32> to vector<16x32xf32>
      %463 = arith.addf %460, %462 : vector<16x32xf32>
      %cst_375 = arith.constant 0.000000e+00 : f32
      %464 = vector.broadcast %cst_375 : f32 to vector<16x32xf32>
      %465 = arith.maximumf %463, %464 : vector<16x32xf32>
      %466 = math.absf %463 : vector<16x32xf32>
      %cst_376 = arith.constant 0.000000e+00 : f32
      %467 = vector.broadcast %cst_376 : f32 to vector<16x32xf32>
      %468 = arith.subf %467, %466 : vector<16x32xf32>
      %469 = math.exp %468 : vector<16x32xf32>
      %470 = math.log1p %469 : vector<16x32xf32>
      %471 = arith.addf %465, %470 : vector<16x32xf32>
      %c1_i32_377 = arith.constant 1 : i32
      %472 = arith.muli %arg21, %c1_i32_377 : i32
      %c0_i32_378 = arith.constant 0 : i32
      %473 = arith.addi %472, %c0_i32_378 : i32
      %c16_i32 = arith.constant 16 : i32
      %474 = arith.muli %473, %c16_i32 : i32
      %475 = tpu.assume_multiple %474, 16 : i32
      %476 = arith.index_cast %475 : i32 to index
      %c0_379 = arith.constant 0 : index
      %477 = vector.load %arg20[%476, %c0_379] : memref<128x32xf32, #tpu.memory_space<vmem>>, vector<16x32xf32>
      tpu.vector_store %arg20[%476, %c0_379], %471 {strides = array<i32>} : memref<128x32xf32, #tpu.memory_space<vmem>>, vector<16x32xf32>,
    }
    %c8_i32_0 = arith.constant 8 : i32
    %c0 = arith.constant 0 : index
    %c0_1 = arith.constant 0 : index
    %1 = tpu.strided_load %arg20[%c0, %c0_1] {strides = array<i32: 16, 1>} : memref<128x32xf32, #tpu.memory_space<vmem>>, vector<8x32xf32>
    %2 = arith.truncf %1 : vector<8x32xf32> to vector<8x32xbf16>
    %c0_2 = arith.constant 0 : index
    %c0_3 = arith.constant 0 : index
    %c0_4 = arith.constant 0 : index
    %3 = vector.load %arg12[%c0_2, %c0_3, %c0_4] : memref<16x32x800xbf16, #tpu.memory_space<vmem>>, vector<1x32x800xbf16>
    %4 = vector.shape_cast %3 : vector<1x32x800xbf16> to vector<32x800xbf16>
    %cst = arith.constant dense<0.000000e+00> : vector<8x800xf32>
    %5 = tpu.matmul %2, %4, %cst {dimension_numbers = #tpu.dot_dimension_numbers<[1], [0], [0], [1], [0, 0, 1, 1], [], []>} : vector<8x32xbf16>, vector<32x800xbf16>, vector<8x800xf32> -> vector<8x800xf32>
    %c1 = arith.constant 1 : index
    %c0_5 = arith.constant 0 : index
    %6 = tpu.strided_load %arg20[%c1, %c0_5] {strides = array<i32: 16, 1>} : memref<128x32xf32, #tpu.memory_space<vmem>>, vector<8x32xf32>
    %7 = arith.truncf %6 : vector<8x32xf32> to vector<8x32xbf16>
    %c1_6 = arith.constant 1 : index
    %c0_7 = arith.constant 0 : index
    %c0_8 = arith.constant 0 : index
    %8 = vector.load %arg12[%c1_6, %c0_7, %c0_8] : memref<16x32x800xbf16, #tpu.memory_space<vmem>>, vector<1x32x800xbf16>
    %9 = vector.shape_cast %8 : vector<1x32x800xbf16> to vector<32x800xbf16>
    %cst_9 = arith.constant dense<0.000000e+00> : vector<8x800xf32>
    %10 = tpu.matmul %7, %9, %cst_9 {dimension_numbers = #tpu.dot_dimension_numbers<[1], [0], [0], [1], [0, 0, 1, 1], [], []>} : vector<8x32xbf16>, vector<32x800xbf16>, vector<8x800xf32> -> vector<8x800xf32>
    %11 = arith.addf %5, %10 : vector<8x800xf32>
    %c2 = arith.constant 2 : index
    %c0_10 = arith.constant 0 : index
    %12 = tpu.strided_load %arg20[%c2, %c0_10] {strides = array<i32: 16, 1>} : memref<128x32xf32, #tpu.memory_space<vmem>>, vector<8x32xf32>
    %13 = arith.truncf %12 : vector<8x32xf32> to vector<8x32xbf16>
    %c2_11 = arith.constant 2 : index
    %c0_12 = arith.constant 0 : index
    %c0_13 = arith.constant 0 : index
    %14 = vector.load %arg12[%c2_11, %c0_12, %c0_13] : memref<16x32x800xbf16, #tpu.memory_space<vmem>>, vector<1x32x800xbf16>
    %15 = vector.shape_cast %14 : vector<1x32x800xbf16> to vector<32x800xbf16>
    %cst_14 = arith.constant dense<0.000000e+00> : vector<8x800xf32>
    %16 = tpu.matmul %13, %15, %cst_14 {dimension_numbers = #tpu.dot_dimension_numbers<[1], [0], [0], [1], [0, 0, 1, 1], [], []>} : vector<8x32xbf16>, vector<32x800xbf16>, vector<8x800xf32> -> vector<8x800xf32>
    %17 = arith.addf %11, %16 : vector<8x800xf32>
    %c3 = arith.constant 3 : index
    %c0_15 = arith.constant 0 : index
    %18 = tpu.strided_load %arg20[%c3, %c0_15] {strides = array<i32: 16, 1>} : memref<128x32xf32, #tpu.memory_space<vmem>>, vector<8x32xf32>
    %19 = arith.truncf %18 : vector<8x32xf32> to vector<8x32xbf16>
    %c3_16 = arith.constant 3 : index
    %c0_17 = arith.constant 0 : index
    %c0_18 = arith.constant 0 : index
    %20 = vector.load %arg12[%c3_16, %c0_17, %c0_18] : memref<16x32x800xbf16, #tpu.memory_space<vmem>>, vector<1x32x800xbf16>
    %21 = vector.shape_cast %20 : vector<1x32x800xbf16> to vector<32x800xbf16>
    %cst_19 = arith.constant dense<0.000000e+00> : vector<8x800xf32>
    %22 = tpu.matmul %19, %21, %cst_19 {dimension_numbers = #tpu.dot_dimension_numbers<[1], [0], [0], [1], [0, 0, 1, 1], [], []>} : vector<8x32xbf16>, vector<32x800xbf16>, vector<8x800xf32> -> vector<8x800xf32>
    %23 = arith.addf %17, %22 : vector<8x800xf32>
    %c4 = arith.constant 4 : index
    %c0_20 = arith.constant 0 : index
    %24 = tpu.strided_load %arg20[%c4, %c0_20] {strides = array<i32: 16, 1>} : memref<128x32xf32, #tpu.memory_space<vmem>>, vector<8x32xf32>
    %25 = arith.truncf %24 : vector<8x32xf32> to vector<8x32xbf16>
    %c4_21 = arith.constant 4 : index
    %c0_22 = arith.constant 0 : index
    %c0_23 = arith.constant 0 : index
    %26 = vector.load %arg12[%c4_21, %c0_22, %c0_23] : memref<16x32x800xbf16, #tpu.memory_space<vmem>>, vector<1x32x800xbf16>
    %27 = vector.shape_cast %26 : vector<1x32x800xbf16> to vector<32x800xbf16>
    %cst_24 = arith.constant dense<0.000000e+00> : vector<8x800xf32>
    %28 = tpu.matmul %25, %27, %cst_24 {dimension_numbers = #tpu.dot_dimension_numbers<[1], [0], [0], [1], [0, 0, 1, 1], [], []>} : vector<8x32xbf16>, vector<32x800xbf16>, vector<8x800xf32> -> vector<8x800xf32>
    %c5 = arith.constant 5 : index
    %c0_25 = arith.constant 0 : index
    %29 = tpu.strided_load %arg20[%c5, %c0_25] {strides = array<i32: 16, 1>} : memref<128x32xf32, #tpu.memory_space<vmem>>, vector<8x32xf32>
    %30 = arith.truncf %29 : vector<8x32xf32> to vector<8x32xbf16>
    %c5_26 = arith.constant 5 : index
    %c0_27 = arith.constant 0 : index
    %c0_28 = arith.constant 0 : index
    %31 = vector.load %arg12[%c5_26, %c0_27, %c0_28] : memref<16x32x800xbf16, #tpu.memory_space<vmem>>, vector<1x32x800xbf16>
    %32 = vector.shape_cast %31 : vector<1x32x800xbf16> to vector<32x800xbf16>
    %cst_29 = arith.constant dense<0.000000e+00> : vector<8x800xf32>
    %33 = tpu.matmul %30, %32, %cst_29 {dimension_numbers = #tpu.dot_dimension_numbers<[1], [0], [0], [1], [0, 0, 1, 1], [], []>} : vector<8x32xbf16>, vector<32x800xbf16>, vector<8x800xf32> -> vector<8x800xf32>
    %34 = arith.addf %28, %33 : vector<8x800xf32>
    %c6 = arith.constant 6 : index
    %c0_30 = arith.constant 0 : index
    %35 = tpu.strided_load %arg20[%c6, %c0_30] {strides = array<i32: 16, 1>} : memref<128x32xf32, #tpu.memory_space<vmem>>, vector<8x32xf32>
    %36 = arith.truncf %35 : vector<8x32xf32> to vector<8x32xbf16>
    %c6_31 = arith.constant 6 : index
    %c0_32 = arith.constant 0 : index
    %c0_33 = arith.constant 0 : index
    %37 = vector.load %arg12[%c6_31, %c0_32, %c0_33] : memref<16x32x800xbf16, #tpu.memory_space<vmem>>, vector<1x32x800xbf16>
    %38 = vector.shape_cast %37 : vector<1x32x800xbf16> to vector<32x800xbf16>
    %cst_34 = arith.constant dense<0.000000e+00> : vector<8x800xf32>
    %39 = tpu.matmul %36, %38, %cst_34 {dimension_numbers = #tpu.dot_dimension_numbers<[1], [0], [0], [1], [0, 0, 1, 1], [], []>} : vector<8x32xbf16>, vector<32x800xbf16>, vector<8x800xf32> -> vector<8x800xf32>
    %40 = arith.addf %34, %39 : vector<8x800xf32>
    %c7 = arith.constant 7 : index
    %c0_35 = arith.constant 0 : index
    %41 = tpu.strided_load %arg20[%c7, %c0_35] {strides = array<i32: 16, 1>} : memref<128x32xf32, #tpu.memory_space<vmem>>, vector<8x32xf32>
    %42 = arith.truncf %41 : vector<8x32xf32> to vector<8x32xbf16>
    %c7_36 = arith.constant 7 : index
    %c0_37 = arith.constant 0 : index
    %c0_38 = arith.constant 0 : index
    %43 = vector.load %arg12[%c7_36, %c0_37, %c0_38] : memref<16x32x800xbf16, #tpu.memory_space<vmem>>, vector<1x32x800xbf16>
    %44 = vector.shape_cast %43 : vector<1x32x800xbf16> to vector<32x800xbf16>
    %cst_39 = arith.constant dense<0.000000e+00> : vector<8x800xf32>
    %45 = tpu.matmul %42, %44, %cst_39 {dimension_numbers = #tpu.dot_dimension_numbers<[1], [0], [0], [1], [0, 0, 1, 1], [], []>} : vector<8x32xbf16>, vector<32x800xbf16>, vector<8x800xf32> -> vector<8x800xf32>
    %46 = arith.addf %40, %45 : vector<8x800xf32>
    %c8 = arith.constant 8 : index
    %c0_40 = arith.constant 0 : index
    %47 = tpu.strided_load %arg20[%c8, %c0_40] {strides = array<i32: 16, 1>} : memref<128x32xf32, #tpu.memory_space<vmem>>, vector<8x32xf32>
    %48 = arith.truncf %47 : vector<8x32xf32> to vector<8x32xbf16>
    %c8_41 = arith.constant 8 : index
    %c0_42 = arith.constant 0 : index
    %c0_43 = arith.constant 0 : index
    %49 = vector.load %arg12[%c8_41, %c0_42, %c0_43] : memref<16x32x800xbf16, #tpu.memory_space<vmem>>, vector<1x32x800xbf16>
    %50 = vector.shape_cast %49 : vector<1x32x800xbf16> to vector<32x800xbf16>
    %cst_44 = arith.constant dense<0.000000e+00> : vector<8x800xf32>
    %51 = tpu.matmul %48, %50, %cst_44 {dimension_numbers = #tpu.dot_dimension_numbers<[1], [0], [0], [1], [0, 0, 1, 1], [], []>} : vector<8x32xbf16>, vector<32x800xbf16>, vector<8x800xf32> -> vector<8x800xf32>
    %c9 = arith.constant 9 : index
    %c0_45 = arith.constant 0 : index
    %52 = tpu.strided_load %arg20[%c9, %c0_45] {strides = array<i32: 16, 1>} : memref<128x32xf32, #tpu.memory_space<vmem>>, vector<8x32xf32>
    %53 = arith.truncf %52 : vector<8x32xf32> to vector<8x32xbf16>
    %c9_46 = arith.constant 9 : index
    %c0_47 = arith.constant 0 : index
    %c0_48 = arith.constant 0 : index
    %54 = vector.load %arg12[%c9_46, %c0_47, %c0_48] : memref<16x32x800xbf16, #tpu.memory_space<vmem>>, vector<1x32x800xbf16>
    %55 = vector.shape_cast %54 : vector<1x32x800xbf16> to vector<32x800xbf16>
    %cst_49 = arith.constant dense<0.000000e+00> : vector<8x800xf32>
    %56 = tpu.matmul %53, %55, %cst_49 {dimension_numbers = #tpu.dot_dimension_numbers<[1], [0], [0], [1], [0, 0, 1, 1], [], []>} : vector<8x32xbf16>, vector<32x800xbf16>, vector<8x800xf32> -> vector<8x800xf32>
    %57 = arith.addf %51, %56 : vector<8x800xf32>
    %c10 = arith.constant 10 : index
    %c0_50 = arith.constant 0 : index
    %58 = tpu.strided_load %arg20[%c10, %c0_50] {strides = array<i32: 16, 1>} : memref<128x32xf32, #tpu.memory_space<vmem>>, vector<8x32xf32>
    %59 = arith.truncf %58 : vector<8x32xf32> to vector<8x32xbf16>
    %c10_51 = arith.constant 10 : index
    %c0_52 = arith.constant 0 : index
    %c0_53 = arith.constant 0 : index
    %60 = vector.load %arg12[%c10_51, %c0_52, %c0_53] : memref<16x32x800xbf16, #tpu.memory_space<vmem>>, vector<1x32x800xbf16>
    %61 = vector.shape_cast %60 : vector<1x32x800xbf16> to vector<32x800xbf16>
    %cst_54 = arith.constant dense<0.000000e+00> : vector<8x800xf32>
    %62 = tpu.matmul %59, %61, %cst_54 {dimension_numbers = #tpu.dot_dimension_numbers<[1], [0], [0], [1], [0, 0, 1, 1], [], []>} : vector<8x32xbf16>, vector<32x800xbf16>, vector<8x800xf32> -> vector<8x800xf32>
    %63 = arith.addf %57, %62 : vector<8x800xf32>
    %c11 = arith.constant 11 : index
    %c0_55 = arith.constant 0 : index
    %64 = tpu.strided_load %arg20[%c11, %c0_55] {strides = array<i32: 16, 1>} : memref<128x32xf32, #tpu.memory_space<vmem>>, vector<8x32xf32>
    %65 = arith.truncf %64 : vector<8x32xf32> to vector<8x32xbf16>
    %c11_56 = arith.constant 11 : index
    %c0_57 = arith.constant 0 : index
    %c0_58 = arith.constant 0 : index
    %66 = vector.load %arg12[%c11_56, %c0_57, %c0_58] : memref<16x32x800xbf16, #tpu.memory_space<vmem>>, vector<1x32x800xbf16>
    %67 = vector.shape_cast %66 : vector<1x32x800xbf16> to vector<32x800xbf16>
    %cst_59 = arith.constant dense<0.000000e+00> : vector<8x800xf32>
    %68 = tpu.matmul %65, %67, %cst_59 {dimension_numbers = #tpu.dot_dimension_numbers<[1], [0], [0], [1], [0, 0, 1, 1], [], []>} : vector<8x32xbf16>, vector<32x800xbf16>, vector<8x800xf32> -> vector<8x800xf32>
    %69 = arith.addf %63, %68 : vector<8x800xf32>
    %c12 = arith.constant 12 : index
    %c0_60 = arith.constant 0 : index
    %70 = tpu.strided_load %arg20[%c12, %c0_60] {strides = array<i32: 16, 1>} : memref<128x32xf32, #tpu.memory_space<vmem>>, vector<8x32xf32>
    %71 = arith.truncf %70 : vector<8x32xf32> to vector<8x32xbf16>
    %c12_61 = arith.constant 12 : index
    %c0_62 = arith.constant 0 : index
    %c0_63 = arith.constant 0 : index
    %72 = vector.load %arg12[%c12_61, %c0_62, %c0_63] : memref<16x32x800xbf16, #tpu.memory_space<vmem>>, vector<1x32x800xbf16>
    %73 = vector.shape_cast %72 : vector<1x32x800xbf16> to vector<32x800xbf16>
    %cst_64 = arith.constant dense<0.000000e+00> : vector<8x800xf32>
    %74 = tpu.matmul %71, %73, %cst_64 {dimension_numbers = #tpu.dot_dimension_numbers<[1], [0], [0], [1], [0, 0, 1, 1], [], []>} : vector<8x32xbf16>, vector<32x800xbf16>, vector<8x800xf32> -> vector<8x800xf32>
    %c13 = arith.constant 13 : index
    %c0_65 = arith.constant 0 : index
    %75 = tpu.strided_load %arg20[%c13, %c0_65] {strides = array<i32: 16, 1>} : memref<128x32xf32, #tpu.memory_space<vmem>>, vector<8x32xf32>
    %76 = arith.truncf %75 : vector<8x32xf32> to vector<8x32xbf16>
    %c13_66 = arith.constant 13 : index
    %c0_67 = arith.constant 0 : index
    %c0_68 = arith.constant 0 : index
    %77 = vector.load %arg12[%c13_66, %c0_67, %c0_68] : memref<16x32x800xbf16, #tpu.memory_space<vmem>>, vector<1x32x800xbf16>
    %78 = vector.shape_cast %77 : vector<1x32x800xbf16> to vector<32x800xbf16>
    %cst_69 = arith.constant dense<0.000000e+00> : vector<8x800xf32>
    %79 = tpu.matmul %76, %78, %cst_69 {dimension_numbers = #tpu.dot_dimension_numbers<[1], [0], [0], [1], [0, 0, 1, 1], [], []>} : vector<8x32xbf16>, vector<32x800xbf16>, vector<8x800xf32> -> vector<8x800xf32>
    %80 = arith.addf %74, %79 : vector<8x800xf32>
    %c14 = arith.constant 14 : index
    %c0_70 = arith.constant 0 : index
    %81 = tpu.strided_load %arg20[%c14, %c0_70] {strides = array<i32: 16, 1>} : memref<128x32xf32, #tpu.memory_space<vmem>>, vector<8x32xf32>
    %82 = arith.truncf %81 : vector<8x32xf32> to vector<8x32xbf16>
    %c14_71 = arith.constant 14 : index
    %c0_72 = arith.constant 0 : index
    %c0_73 = arith.constant 0 : index
    %83 = vector.load %arg12[%c14_71, %c0_72, %c0_73] : memref<16x32x800xbf16, #tpu.memory_space<vmem>>, vector<1x32x800xbf16>
    %84 = vector.shape_cast %83 : vector<1x32x800xbf16> to vector<32x800xbf16>
    %cst_74 = arith.constant dense<0.000000e+00> : vector<8x800xf32>
    %85 = tpu.matmul %82, %84, %cst_74 {dimension_numbers = #tpu.dot_dimension_numbers<[1], [0], [0], [1], [0, 0, 1, 1], [], []>} : vector<8x32xbf16>, vector<32x800xbf16>, vector<8x800xf32> -> vector<8x800xf32>
    %86 = arith.addf %80, %85 : vector<8x800xf32>
    %c15 = arith.constant 15 : index
    %c0_75 = arith.constant 0 : index
    %87 = tpu.strided_load %arg20[%c15, %c0_75] {strides = array<i32: 16, 1>} : memref<128x32xf32, #tpu.memory_space<vmem>>, vector<8x32xf32>
    %88 = arith.truncf %87 : vector<8x32xf32> to vector<8x32xbf16>
    %c15_76 = arith.constant 15 : index
    %c0_77 = arith.constant 0 : index
    %c0_78 = arith.constant 0 : index
    %89 = vector.load %arg12[%c15_76, %c0_77, %c0_78] : memref<16x32x800xbf16, #tpu.memory_space<vmem>>, vector<1x32x800xbf16>
    %90 = vector.shape_cast %89 : vector<1x32x800xbf16> to vector<32x800xbf16>
    %cst_79 = arith.constant dense<0.000000e+00> : vector<8x800xf32>
    %91 = tpu.matmul %88, %90, %cst_79 {dimension_numbers = #tpu.dot_dimension_numbers<[1], [0], [0], [1], [0, 0, 1, 1], [], []>} : vector<8x32xbf16>, vector<32x800xbf16>, vector<8x800xf32> -> vector<8x800xf32>
    %92 = arith.addf %86, %91 : vector<8x800xf32>
    %93 = arith.addf %23, %46 : vector<8x800xf32>
    %94 = arith.addf %69, %92 : vector<8x800xf32>
    %95 = arith.addf %93, %94 : vector<8x800xf32>
    %c0_80 = arith.constant 0 : index
    %c0_81 = arith.constant 0 : index
    %96 = vector.load %arg2[%c0_80, %c0_81] : memref<8x32xbf16, #tpu.memory_space<vmem>>, vector<8x32xbf16>
    %c0_82 = arith.constant 0 : index
    %c0_83 = arith.constant 0 : index
    %97 = vector.load %arg13[%c0_82, %c0_83] : memref<32x800xbf16, #tpu.memory_space<vmem>>, vector<32x800xbf16>
    %cst_84 = arith.constant dense<0.000000e+00> : vector<8x800xf32>
    %98 = tpu.matmul %96, %97, %cst_84 {dimension_numbers = #tpu.dot_dimension_numbers<[1], [0], [0], [1], [0, 0, 1, 1], [], []>} : vector<8x32xbf16>, vector<32x800xbf16>, vector<8x800xf32> -> vector<8x800xf32>
    %99 = arith.addf %95, %98 : vector<8x800xf32>
    %c0_85 = arith.constant 0 : index
    %c0_86 = arith.constant 0 : index
    %100 = vector.load %arg14[%c0_85, %c0_86] : memref<1x800xf32, #tpu.memory_space<vmem>>, vector<1x800xf32>
    %101 = vector.broadcast %100 : vector<1x800xf32> to vector<8x800xf32>
    %102 = arith.addf %99, %101 : vector<8x800xf32>
    %cst_87 = arith.constant 0.000000e+00 : f32
    %103 = vector.broadcast %cst_87 : f32 to vector<8x800xf32>
    %104 = arith.maximumf %102, %103 : vector<8x800xf32>
    %105 = math.absf %102 : vector<8x800xf32>
    %cst_88 = arith.constant 0.000000e+00 : f32
    %106 = vector.broadcast %cst_88 : f32 to vector<8x800xf32>
    %107 = arith.subf %106, %105 : vector<8x800xf32>
    %108 = math.exp %107 : vector<8x800xf32>
    %109 = math.log1p %108 : vector<8x800xf32>
    %110 = arith.addf %104, %109 : vector<8x800xf32>
    %111 = arith.truncf %110 : vector<8x800xf32> to vector<8x800xbf16>
    %c0_89 = arith.constant 0 : index
    %c0_90 = arith.constant 0 : index
    %112 = vector.load %arg15[%c0_89, %c0_90] : memref<800x256xbf16, #tpu.memory_space<vmem>>, vector<800x256xbf16>
    %cst_91 = arith.constant dense<0.000000e+00> : vector<8x256xf32>
    %113 = tpu.matmul %111, %112, %cst_91 {dimension_numbers = #tpu.dot_dimension_numbers<[1], [0], [0], [1], [0, 0, 1, 1], [], []>} : vector<8x800xbf16>, vector<800x256xbf16>, vector<8x256xf32> -> vector<8x256xf32>
    %c0_92 = arith.constant 0 : index
    %c0_93 = arith.constant 0 : index
    %114 = vector.load %arg16[%c0_92, %c0_93] : memref<1x256xf32, #tpu.memory_space<vmem>>, vector<1x256xf32>
    %115 = vector.broadcast %114 : vector<1x256xf32> to vector<8x256xf32>
    %116 = arith.addf %113, %115 : vector<8x256xf32>
    %117 = vector.extract_strided_slice %116 {offsets = [0, 0], sizes = [8, 128], strides = [1, 1]} : vector<8x256xf32> to vector<8x128xf32>
    %118 = vector.extract_strided_slice %116 {offsets = [0, 128], sizes = [8, 128], strides = [1, 1]} : vector<8x256xf32> to vector<8x128xf32>
    %cst_94 = arith.constant 5.000000e-01 : f32
    %119 = vector.broadcast %cst_94 : f32 to vector<8x128xf32>
    %120 = arith.mulf %119, %118 : vector<8x128xf32>
    %121 = math.exp %120 : vector<8x128xf32>
    %c0_95 = arith.constant 0 : index
    %c0_96 = arith.constant 0 : index
    %122 = vector.load %arg3[%c0_95, %c0_96] : memref<8x128xf32, #tpu.memory_space<vmem>>, vector<8x128xf32>
    %123 = arith.mulf %121, %122 : vector<8x128xf32>
    %124 = arith.addf %117, %123 : vector<8x128xf32>
    %c0_97 = arith.constant 0 : index
    %c0_98 = arith.constant 0 : index
    %125 = vector.load %arg17[%c0_97, %c0_98] : memref<8x384xf32, #tpu.memory_space<vmem>>, vector<8x128xf32>
    tpu.vector_store %arg17[%c0_97, %c0_98], %124 {strides = array<i32>} : memref<8x384xf32, #tpu.memory_space<vmem>>, vector<8x128xf32>,
    %c0_99 = arith.constant 0 : index
    %c128 = arith.constant 128 : index
    %126 = vector.load %arg17[%c0_99, %c128] : memref<8x384xf32, #tpu.memory_space<vmem>>, vector<8x128xf32>
    tpu.vector_store %arg17[%c0_99, %c128], %117 {strides = array<i32>} : memref<8x384xf32, #tpu.memory_space<vmem>>, vector<8x128xf32>,
    %c0_100 = arith.constant 0 : index
    %c256 = arith.constant 256 : index
    %127 = vector.load %arg17[%c0_100, %c256] : memref<8x384xf32, #tpu.memory_space<vmem>>, vector<8x128xf32>
    tpu.vector_store %arg17[%c0_100, %c256], %118 {strides = array<i32>} : memref<8x384xf32, #tpu.memory_space<vmem>>, vector<8x128xf32>,
    return
  }
  func.func @transform_0(%arg0: i32) -> (i32, i32, i32) {
    %c0_i32 = arith.constant 0 : i32
    %c0_i32_0 = arith.constant 0 : i32
    %c0_i32_1 = arith.constant 0 : i32
    return %arg0, %c0_i32, %c0_i32_0 : i32, i32, i32
  }
  func.func @transform_1(%arg0: i32) -> (i32, i32) {
    %c0_i32 = arith.constant 0 : i32
    %c0_i32_0 = arith.constant 0 : i32
    return %arg0, %c0_i32 : i32, i32
  }
  func.func @transform_2(%arg0: i32) -> (i32, i32) {
    %c0_i32 = arith.constant 0 : i32
    %c0_i32_0 = arith.constant 0 : i32
    return %arg0, %c0_i32 : i32, i32
  }
  func.func @transform_3(%arg0: i32) -> (i32, i32) {
    %c0_i32 = arith.constant 0 : i32
    %c0_i32_0 = arith.constant 0 : i32
    %c0_i32_1 = arith.constant 0 : i32
    return %c0_i32, %c0_i32_0 : i32, i32
  }
  func.func @transform_4(%arg0: i32) -> (i32, i32) {
    %c0_i32 = arith.constant 0 : i32
    %c0_i32_0 = arith.constant 0 : i32
    %c0_i32_1 = arith.constant 0 : i32
    return %c0_i32, %c0_i32_0 : i32, i32
  }
  func.func @transform_5(%arg0: i32) -> (i32, i32) {
    %c0_i32 = arith.constant 0 : i32
    %c0_i32_0 = arith.constant 0 : i32
    %c0_i32_1 = arith.constant 0 : i32
    return %c0_i32, %c0_i32_0 : i32, i32
  }
  func.func @transform_6(%arg0: i32) -> (i32, i32, i32) {
    %c0_i32 = arith.constant 0 : i32
    %c0_i32_0 = arith.constant 0 : i32
    %c0_i32_1 = arith.constant 0 : i32
    %c0_i32_2 = arith.constant 0 : i32
    return %c0_i32, %c0_i32_0, %c0_i32_1 : i32, i32, i32
  }
  func.func @transform_7(%arg0: i32) -> (i32, i32) {
    %c0_i32 = arith.constant 0 : i32
    %c0_i32_0 = arith.constant 0 : i32
    %c0_i32_1 = arith.constant 0 : i32
    return %c0_i32, %c0_i32_0 : i32, i32
  }
  func.func @transform_8(%arg0: i32) -> (i32, i32) {
    %c0_i32 = arith.constant 0 : i32
    %c0_i32_0 = arith.constant 0 : i32
    %c0_i32_1 = arith.constant 0 : i32
    return %c0_i32, %c0_i32_0 : i32, i32
  }
  func.func @transform_9(%arg0: i32) -> (i32, i32, i32) {
    %c0_i32 = arith.constant 0 : i32
    %c0_i32_0 = arith.constant 0 : i32
    %c0_i32_1 = arith.constant 0 : i32
    %c0_i32_2 = arith.constant 0 : i32
    return %c0_i32, %c0_i32_0, %c0_i32_1 : i32, i32, i32
  }
  func.func @transform_10(%arg0: i32) -> (i32, i32) {
    %c0_i32 = arith.constant 0 : i32
    %c0_i32_0 = arith.constant 0 : i32
    %c0_i32_1 = arith.constant 0 : i32
    return %c0_i32, %c0_i32_0 : i32, i32
  }
  func.func @transform_11(%arg0: i32) -> (i32, i32, i32) {
    %c0_i32 = arith.constant 0 : i32
    %c0_i32_0 = arith.constant 0 : i32
    %c0_i32_1 = arith.constant 0 : i32
    %c0_i32_2 = arith.constant 0 : i32
    return %c0_i32, %c0_i32_0, %c0_i32_1 : i32, i32, i32
  }
  func.func @transform_12(%arg0: i32) -> (i32, i32) {
    %c0_i32 = arith.constant 0 : i32
    %c0_i32_0 = arith.constant 0 : i32
    %c0_i32_1 = arith.constant 0 : i32
    return %c0_i32, %c0_i32_0 : i32, i32
  }
  func.func @transform_13(%arg0: i32) -> (i32, i32) {
    %c0_i32 = arith.constant 0 : i32
    %c0_i32_0 = arith.constant 0 : i32
    %c0_i32_1 = arith.constant 0 : i32
    return %c0_i32, %c0_i32_0 : i32, i32
  }
  func.func @transform_14(%arg0: i32) -> (i32, i32) {
    %c0_i32 = arith.constant 0 : i32
    %c0_i32_0 = arith.constant 0 : i32
    %c0_i32_1 = arith.constant 0 : i32
    return %c0_i32, %c0_i32_0 : i32, i32
  }
  func.func @transform_15(%arg0: i32) -> (i32, i32) {
    %c0_i32 = arith.constant 0 : i32
    %c0_i32_0 = arith.constant 0 : i32
    %c0_i32_1 = arith.constant 0 : i32
    return %c0_i32, %c0_i32_0 : i32, i32
  }
  func.func @transform_16(%arg0: i32) -> (i32, i32) {
    %c0_i32 = arith.constant 0 : i32
    %c0_i32_0 = arith.constant 0 : i32
    return %arg0, %c0_i32 : i32, i32
  }
}

</mosaic_0001>

<bundles_post_ra>
// kernel: aux_decoder_forward.1
= control target key start
LH: loop header
LB: loop body
LE: loop exit
PB: predicated region body
PF: predicated region fallthrough
CT: control target
= control target key end

     0   :  { %s15259_s21 = smov 0   ;;  %s21292_s0 = inlined_call_operand.vmem [shape: bf16[16,196,25], index: 0, kind: input, shape index: {}]   ;;  %s21293_s1 = inlined_call_operand.vmem [shape: bf16[16,32], index: 1, kind: input, shape index: {}]   ;;  %s21294_s2 = inlined_call_operand.vmem [shape: f32[16,128], index: 2, kind: input, shape index: {}]   ;;  %s21295_s3 = inlined_call_operand.vmem [shape: bf16[25,16], index: 3, kind: input, shape index: {}]   ;;  %s21296_s4 = inlined_call_operand.vmem [shape: f32[1,16], index: 4, kind: input, shape index: {}]   ;;  %s21297_s5 = inlined_call_operand.vmem [shape: bf16[1400,196], index: 5, kind: input, shape index: {}]   ;;  %s21298_s6 = inlined_call_operand.vmem [shape: bf16[25,16,32], index: 6, kind: input, shape index: {}]   ;;  %s21299_s7 = inlined_call_operand.vmem [shape: f32[1,32], index: 7, kind: input, shape index: {}]   ;;  %s21300_s8 = inlined_call_operand.vmem [shape: bf16[400,56], index: 8, kind: input, shape index: {}]   ;;  %s21301_s9 = inlined_call_operand.vmem [shape: bf16[25,32,32], index: 9, kind: input, shape index: {}]   ;;  %s21302_s10 = inlined_call_operand.vmem [shape: f32[1,32], index: 10, kind: input, shape index: {}]   ;;  %s21303_s11 = inlined_call_operand.vmem [shape: bf16[16,32,800], index: 11, kind: input, shape index: {}]   ;;  %s21304_s12 = inlined_call_operand.vmem [shape: bf16[32,800], index: 12, kind: input, shape index: {}]   ;;  %s21305_s13 = inlined_call_operand.vmem [shape: f32[1,800], index: 13, kind: input, shape index: {}]   ;;  %s21306_s14 = inlined_call_operand.vmem [shape: bf16[800,256], index: 14, kind: input, shape index: {}]   ;;  %s21307_s15 = inlined_call_operand.vmem [shape: f32[1,256], index: 15, kind: input, shape index: {}]   ;;  %s21308_s16 = inlined_call_operand.vmem [shape: f32[16,384], index: 16, kind: output, shape index: {}]  }
   0x1   :  { %21322 = sst [smem:[#allocation39_spill]] %s21292_s0 }
   0x2   :  { %21323 = sst [smem:[#allocation40_spill]] %s21304_s12 }
   0x3   :  { %21324 = sst [smem:[#allocation41_spill]] %s21305_s13 }
   0x4   :  { %21325 = sst [smem:[#allocation42_spill]] %s21306_s14 }
   0x5   :  { %21326 = sst [smem:[#allocation43_spill]] %s21307_s15 }
   0x6 LB: > { %21327 = sst [smem:[#allocation5_spill]] %s15167_s21  ;;  %s11054_s22 = sadd.s32 4294967295, %s15167_s21   ;;  %s15167_s21 = sphi %s15259_s21, %s26_s21  }
   0x7   : > { %p11058_p0 = scmp.ge.s32.totalorder %s15167_s21, 1  ;;  %p482_p1 = scmp.lt.s32.totalorder %s15167_s21, 3 }
   0x9   : > { %p483_p2 = pnand %p11058_p0, %p482_p1 }
   0xa   : > { %s11059_s23 = sshll.u32 (!%p483_p2), %s11054_s22, 3  ;;  %p548_p3 = scmp.lt.s32.totalorder (!%p483_p2), %s11054_s22, 1 }
   0xb   : > { %486 = sbr.rel (%p483_p2) target bundleno = 3677 (0xe5d), region = 84  ;;  %p542_p4 = scmp.lt.s32.totalorder (!%p483_p2), %s11059_s23, 15 }
   0xc   : > { %s21328_s21 = sld [smem:[#allocation39_spill]] (!%p483_p2)  ;;  %s15287_s12 = smov (!%p483_p2), 0  }
  0x10   : > { %s21459_s22 = smov (!%p548_p3, %s11054_s22), 1  ;;  %s21461_s23 = smov (!%p542_p4, %s11059_s23), 15 }
  0x11   : > { %s11061_s24 = sshll.u32 %s21459_s22, 2  ;;  %s11062_s25 = sshll.u32 %s21459_s22, 3 }
  0x12   : > { %s14968_s26 = smul.u32 100, %s21461_s23  ;;  %s15270_s29 = scalar_lea.vmem %s21293_s1, %s11061_s24 }
  0x13   : > { %s15275_s17 = scalar_lea.vmem %s21294_s2, %s11062_s25  ;;  %s14969_s18 = smul.u32 24, %s21459_s22 }
  0x14   : > { %s15280_s15 = scalar_lea.vmem %s21328_s21, %s14968_s26 }
  0x15   : > { %s15285_s23 = scalar_lea.vmem %s21308_s16, %s14969_s18 }
  0x16 LB: >> { %v11119_v0 = vld [vmem:[%s21295_s3 + $0x8] sm:$0xf]  ;;  %v14342_v1 = vld [vmem:[%s21295_s3 + $0x8] sm:$0x10]  ;;  %vm718_vm0 = vcmask 1043456   ;;  %vm719_vm1 = vcmask 1044480   ;;  %s15171_s12 = sphi %s15287_s12, %s567_s12  }
  0x17   : >> { %v11120_v2 = vor.u32 %v14342_v1, %v11119_v0  ;;  %v15173_v3 = vmov 65535   ;;  %s14328_s13 = smul.u32 100, %s15171_s12  ;;  %v14341_v7 = vld [vmem:[%s21295_s3] sm:$0xff]  ;;  %vm678_vm2 = vcmask 203776  }
  0x18   : >> { %v720_v4 = vsel %vm718_vm0, 4294967295, %v15173_v3  ;;  %v15325_v16 = vld [vmem:[%s21296_s4] ss:$0 sm:$0xff] }
  0x19   : >> { %v721_v5 = vsel %vm719_vm1, %v720_v4, 0  ;;  %s15304_s27 = scalar_lea.vmem %s15280_s15, %s14328_s13  ;;  %21329 = vst [vmem:[#allocation6_spill] sm:$0xff] %v15325_v16  ;;  %s12612_s13 = sshll.u32 %s15171_s12, 4 }
  0x1a   : >> { %v723_v6 = vand.u32 %v11120_v2, %v721_v5  ;;  %v14329_v8 = vld [vmem:[%s15304_s27] sm:$0xff]  ;;  %v14330_v9 = vld [vmem:[%s15304_s27 + $0x8] sm:$0xff]  ;;  %v14331_v10 = vld [vmem:[%s15304_s27 + $0x10] sm:$0xff]  ;;  %s6690_s14 = scalar_lea.vmem [#allocation4], %s12612_s13  ;;  %s567_s12 = sadd.s32 1, %s15171_s12  }
  0x1b   : >> { %v14332_v11 = vld [vmem:[%s15304_s27 + $0x18] sm:$0xff]  ;;  %v14333_v12 = vld [vmem:[%s15304_s27 + $0x20] sm:$0xff]  ;;  %v14334_v13 = vld [vmem:[%s15304_s27 + $0x28] sm:$0xff]  ;;  %p564_p5 = scmp.ge.s32.totalorder %s567_s12, 8  }
  0x1c   : >> { %731 = vmatpush.bf16.msra.mxu0 %v723_v6  ;;  %v14335_v14 = vld [vmem:[%s15304_s27 + $0x30] sm:$0xff]  ;;  %v14336_v15 = vld [vmem:[%s15304_s27 + $0x38] sm:$0xff]  ;;  %v14337_v17 = vld [vmem:[%s15304_s27 + $0x40] sm:$0xff]  ;;  %s21453_s28 = sld [smem:[#allocation40_spill]] (%p564_p5) }
  0x1d   : >> { %v14338_v29 = vld [vmem:[%s15304_s27 + $0x48] sm:$0xff]  ;;  %v14339_v43 = vld [vmem:[%s15304_s27 + $0x50] sm:$0xff]  ;;  %v14340_v57 = vld [vmem:[%s15304_s27 + $0x58] sm:$0xff]  ;;  %s21454_s25 = sld [smem:[#allocation42_spill]] (%p564_p5) }
  0x1e   : >> { %v595_v60 = vld [vmem:[%s15304_s27 + $0x60] sm:$0x3]  ;;  %s21455_s18 = sld [smem:[#allocation41_spill]] (%p564_p5) }
  0x1f   : >> { %v653_v61 = vunpack.c.l.b16 %v595_v60 }
  0x20   : >> { %732 = vmatpush.bf16.msra.mxu0 %v14341_v7 }
  0x21   : >> { %v666_v62 = vpack.c.b16 %v653_v61, %v653_v61 }
  0x23   : >> { %11121 = vmatmul.msk.bf16.vlgmr.msra.gmra.mxu0 %vm678_vm2, %v14329_v8 }
  0x33   : >> { %11122 = vmatmul.msk.bf16.gmra.mxu0 %vm678_vm2, %v14330_v9 }
  0x43   : >> { %11123 = vmatmul.msk.bf16.gmra.mxu0 %vm678_vm2, %v14331_v10 }
  0x53   : >> { %11124 = vmatmul.msk.bf16.gmra.mxu0 %vm678_vm2, %v14332_v11 }
  0x63   : >> { %11125 = vmatmul.msk.bf16.gmra.mxu0 %vm678_vm2, %v14333_v12 }
  0x73   : >> { %11126 = vmatmul.msk.bf16.gmra.mxu0 %vm678_vm2, %v14334_v13 }
  0x83   : >> { %11127 = vmatmul.msk.bf16.gmra.mxu0 %vm678_vm2, %v14335_v14 }
  0x93   : >> { %11128 = vmatmul.msk.bf16.gmra.mxu0 %vm678_vm2, %v14336_v15 }
  0xa0   : >> { %v734_v18 = vpop.f32.mrf.mxu0 }
  0xa1   : >> { %v735_v19 = vadd.f32 %v15325_v16, %v734_v18 }
  0xa3   : >> { %v823_v20 = vand.u32 2147483647, %v735_v19  ;;  %11129 = vmatmul.msk.bf16.gmra.mxu0 %vm678_vm2, %v14337_v17  ;;  %v798_v50 = vmax.f32 %v735_v19, 0.0 }
  0xa5   : >> { %v848_v21 = vsub.f32 0.0, %v823_v20 }
  0xa7   : >> { %v873_v22 = vmul.f32 1.442695, %v848_v21 }
  0xa8   : >> { %v736_v23 = vpop.f32.mrf.mxu0 }
  0xa9   : >> { %14990 = vpow2.f32 %v873_v22  ;;  %v737_v24 = vadd.f32 %v15325_v16, %v736_v23 }
  0xab   : >> { %v824_v25 = vand.u32 2147483647, %v737_v24  ;;  %v799_v51 = vmax.f32 %v737_v24, 0.0 }
  0xad   : >> { %v849_v26 = vsub.f32 0.0, %v824_v25 }
  0xaf   : >> { %v14991_v27 = vpop.eup %14990  ;;  %v875_v28 = vmul.f32 1.442695, %v849_v26 }
  0xb0   : >> { %v739_v30 = vpop.f32.mrf.mxu0  ;;  %v923_v31 = vadd.f32 1.0, %v14991_v27  ;;  %v926_v33 = vmul.f32 -0.5, %v14991_v27  ;;  %v929_v39 = vand.u32 2147483647, %v14991_v27 }
  0xb1   : >> { %14992 = vpow2.f32 %v875_v28  ;;  %v15342_v2 = vadd.f32 %v15325_v16, %v739_v30 }
  0xb2   : >> { %14994 = vlog2.f32 %v923_v31  ;;  %v927_v38 = vadd.f32 1.0, %v926_v33  ;;  %vm930_vm3 = vcmp.lt.f32.partialorder %v929_v39, 0.0004427343 }
  0xb3   : >> { %11130 = vmatmul.msk.bf16.gmra.mxu0 %vm678_vm2, %v14338_v29  ;;  %21331 = vst [vmem:[#allocation8_spill] sm:$0xff] %v15342_v2  ;;  %v825_v4 = vand.u32 2147483647, %v15342_v2 }
  0xb4   : >> { %v928_v44 = vmul.f32 %v14991_v27, %v927_v38 }
  0xb5   : >> { %v850_v5 = vsub.f32 0.0, %v825_v4 }
  0xb7   : >> { %v14993_v32 = vpop.eup %14992  ;;  %v877_v8 = vmul.f32 1.442695, %v850_v5 }
  0xb8   : >> { %v741_v34 = vpop.f32.mrf.mxu0  ;;  %v932_v35 = vadd.f32 1.0, %v14993_v32  ;;  %v935_v36 = vmul.f32 -0.5, %v14993_v32  ;;  %v14995_v37 = vpop.eup %14994  ;;  %v938_v42 = vand.u32 2147483647, %v14993_v32 }
  0xb9   : >> { %v925_v40 = vmul.f32 0.6931472, %v14995_v37  ;;  %v15346_v6 = vadd.f32 %v15325_v16, %v741_v34 }
  0xba   : >> { %14996 = vlog2.f32 %v932_v35  ;;  %v936_v41 = vadd.f32 1.0, %v935_v36  ;;  %vm939_vm4 = vcmp.lt.f32.partialorder %v938_v42, 0.0004427343 }
  0xbb   : >> { %v931_v47 = vsel %vm930_vm3, %v928_v44, %v925_v40  ;;  %21332 = vst [vmem:[#allocation9_spill] sm:$0xff] %v15346_v6  ;;  %v826_v9 = vand.u32 2147483647, %v15346_v6  ;;  %14998 = vpow2.f32 %v877_v8 }
  0xbc   : >> { %v937_v49 = vmul.f32 %v14993_v32, %v936_v41  ;;  %v1148_v53 = vadd.f32 %v931_v47, %v798_v50 }
  0xbd   : >> { %v851_v13 = vsub.f32 0.0, %v826_v9 }
  0xbf   : >> { %v879_v23 = vmul.f32 1.442695, %v851_v13 }
  0xc0   : >> { %v14997_v45 = vpop.eup %14996  ;;  %v744_v46 = vpop.f32.mrf.mxu0 }
  0xc1   : >> { %v934_v48 = vmul.f32 0.6931472, %v14997_v45  ;;  %v15350_v10 = vadd.f32 %v15325_v16, %v744_v46  ;;  %v15370_v22 = vpop.eup %14998  ;;  %15000 = vpow2.f32 %v879_v23 }
  0xc2   : >> { %21334 = vst [vmem:[#allocation11_spill] sm:$0xff] %v15370_v22  ;;  %v941_v33 = vadd.f32 1.0, %v15370_v22 }
  0xc3   : >> { %11131 = vmatmul.msk.bf16.gmra.mxu0 %vm678_vm2, %v14339_v43  ;;  %v940_v52 = vsel %vm939_vm4, %v937_v49, %v934_v48  ;;  %21333 = vst [vmem:[#allocation10_spill] sm:$0xff] %v15350_v10  ;;  %v827_v15 = vand.u32 2147483647, %v15350_v10 }
  0xc4   : >> { %v1149_v54 = vadd.f32 %v940_v52, %v799_v51  ;;  %15002 = vlog2.f32 %v941_v33 }
  0xc5   : >> { %v852_v26 = vsub.f32 0.0, %v827_v15 }
  0xc6   : >> { %v15335_v55 = vpack.c.bf16 %v1149_v54, %v1148_v53 }
  0xc7   : >> { %v881_v38 = vmul.f32 1.442695, %v852_v26  ;;  %v15396_v51 = vpop.eup %15000 }
  0xc8   : >> { %21330 = vst [vmem:[#allocation7_spill] sm:$0xff] %v15335_v55  ;;  %v746_v56 = vpop.f32.mrf.mxu0 }
  0xc9   : >> { %v15353_v11 = vadd.f32 %v15325_v16, %v746_v56  ;;  %15004 = vpow2.f32 %v881_v38  ;;  %21335 = vst [vmem:[#allocation12_spill] sm:$0xff] %v15396_v51  ;;  %v15435_v38 = vmul.f32 -0.5, %v15370_v22 }
  0xcb   : >> { %v828_v17 = vand.u32 2147483647, %v15353_v11 }
  0xcd   : >> { %v853_v27 = vsub.f32 0.0, %v828_v17 }
  0xcf   : >> { %v883_v39 = vmul.f32 1.442695, %v853_v27 }
  0xd0   : >> { %v749_v58 = vpop.f32.mrf.mxu0 }
  0xd1   : >> { %v15356_v12 = vadd.f32 %v15325_v16, %v749_v58  ;;  %15006 = vpow2.f32 %v883_v39 }
  0xd3   : >> { %11132 = vmatmul.msk.bf16.gmra.mxu0 %vm678_vm2, %v14340_v57  ;;  %v829_v19 = vand.u32 2147483647, %v15356_v12 }
  0xd5   : >> { %v854_v28 = vsub.f32 0.0, %v829_v19 }
  0xd7   : >> { %v885_v41 = vmul.f32 1.442695, %v854_v28 }
  0xd8   : >> { %v751_v59 = vpop.f32.mrf.mxu0 }
  0xd9   : >> { %v15368_v21 = vadd.f32 %v15325_v16, %v751_v59  ;;  %15008 = vpow2.f32 %v885_v41 }
  0xdb   : >> { %v830_v31 = vand.u32 2147483647, %v15368_v21 }
  0xdd   : >> { %v855_v44 = vsub.f32 0.0, %v830_v31 }
  0xdf   : >> { %v887_v54 = vmul.f32 1.442695, %v855_v44 }
  0xe0   : >> { %v754_v63 = vpop.f32.mrf.mxu0 }
  0xe1   : >> { %v15377_v29 = vadd.f32 %v15325_v16, %v754_v63  ;;  %v15402_v63 = vpop.eup %15002 }
  0xe2   : >> { %21336 = vst [vmem:[#allocation13_spill] sm:$0xff] %v15402_v63 }
  0xe3   : >> { %11133 = vmatmul.msk.bf16.gmra.mxu0 %vm678_vm2, %v666_v62  ;;  %v831_v42 = vand.u32 2147483647, %v15377_v29  ;;  %v950_v62 = vadd.f32 1.0, %v15396_v51 }
  0xe5   : >> { %v856_v52 = vsub.f32 0.0, %v831_v42  ;;  %v15441_v42 = vmul.f32 -0.5, %v15396_v51 }
  0xe8   : >> { %v756_v0 = vpop.f32.mrf.mxu0 }
  0xe9   : >> { %v15386_v34 = vadd.f32 %v15325_v16, %v756_v0  ;;  %v889_v0 = vmul.f32 1.442695, %v856_v52 }
  0xeb   : >> { %v832_v47 = vand.u32 2147483647, %v15386_v34 }
  0xed   : >> { %v857_v58 = vsub.f32 0.0, %v832_v47 }
  0xf0   : >> { %v759_v1 = vpop.f32.mrf.mxu0 }
  0xf1   : >> { %v15382_v32 = vadd.f32 %v15325_v16, %v759_v1  ;;  %v15404_v1 = vpop.eup %15004 }
  0xf2   : >> { %v15407_v5 = vpop.eup %15006 }
  0xf3   : >> { %v833_v45 = vand.u32 2147483647, %v15382_v32  ;;  %v15409_v8 = vpop.eup %15008  ;;  %v968_v19 = vadd.f32 1.0, %v15407_v5 }
  0xf4   : >> { %v977_v28 = vadd.f32 1.0, %v15409_v8 }
  0xf5   : >> { %v858_v56 = vsub.f32 0.0, %v833_v45  ;;  %v15447_v45 = vmul.f32 -0.5, %v15404_v1 }
  0xf8   : >> { %v761_v3 = vpop.f32.mrf.mxu0 }
  0xf9   : >> { %v15373_v24 = vadd.f32 %v15325_v16, %v761_v3  ;;  %v893_v3 = vmul.f32 1.442695, %v858_v56 }
  0xfb   : >> { %v834_v35 = vand.u32 2147483647, %v15373_v24 }
  0xfd   : >> { %v859_v48 = vsub.f32 0.0, %v834_v35 }
  0xff   : >> { %v895_v59 = vmul.f32 1.442695, %v859_v48 }
 0x100   : >> { %v764_v7 = vpop.f32.mrf.mxu0 }
 0x101   : >> { %v15365_v20 = vadd.f32 %v15325_v16, %v764_v7  ;;  %v891_v7 = vmul.f32 1.442695, %v857_v58 }
 0x103   : >> { %v835_v30 = vand.u32 2147483647, %v15365_v20 }
 0x105   : >> { %v860_v43 = vsub.f32 0.0, %v835_v30 }
 0x107   : >> { %v897_v53 = vmul.f32 1.442695, %v860_v43 }
 0x108   : >> { %v766_v14 = vpop.f32.mrf.mxu0 }
 0x109   : >> { %v15361_v18 = vadd.f32 %v15325_v16, %v766_v14  ;;  %v959_v14 = vadd.f32 1.0, %v15404_v1 }
 0x10b   : >> { %v836_v25 = vand.u32 2147483647, %v15361_v18 }
 0x10d   : >> { %v861_v36 = vsub.f32 0.0, %v836_v25 }
 0x10f   : >> { %v899_v49 = vmul.f32 1.442695, %v861_v36 }
 0x110   : >> { %v769_v37 = vpop.f32.mrf.mxu0 }
 0x111   : >> { %v15390_v40 = vadd.f32 %v15325_v16, %v769_v37  ;;  %15010 = vpow2.f32 %v899_v49 }
 0x113   : >> { %v837_v46 = vand.u32 2147483647, %v15390_v40 }
 0x115   : >> { %v862_v50 = vsub.f32 0.0, %v837_v46  ;;  %v15450_v46 = vmul.f32 -0.5, %v15407_v5 }
 0x117   : >> { %v901_v57 = vmul.f32 1.442695, %v862_v50  ;;  %v15411_v13 = vpop.eup %15010  ;;  %v15455_v50 = vmul.f32 -0.5, %v15409_v8 }
 0x118   : >> { %v771_v60 = vpop.f32.mrf.mxu0  ;;  %v1040_v31 = vadd.f32 1.0, %v15411_v13 }
 0x119   : >> { %15012 = vpow2.f32 %v901_v57  ;;  %v15399_v61 = vadd.f32 %v15325_v16, %v771_v60  ;;  %v1046_v16 = vand.u32 2147483647, %v15411_v13 }
 0x11a   : >> { %15014 = vpow2.f32 %v897_v53 }
 0x11b   : >> { %15016 = vpow2.f32 %v887_v54  ;;  %v838_v4 = vand.u32 2147483647, %v15399_v61  ;;  %vm15500_vm7 = vcmp.lt.f32.partialorder %v1046_v16, 0.0004427343 }
 0x11c   : >> { %15018 = vpow2.f32 %v895_v59 }
 0x11d   : >> { %v863_v9 = vsub.f32 0.0, %v838_v4  ;;  %15020 = vlog2.f32 %v950_v62  ;;  %v1043_v62 = vmul.f32 -0.5, %v15411_v13 }
 0x11e   : >> { %15022 = vpow2.f32 %v889_v0 }
 0x11f   : >> { %v15414_v15 = vpop.eup %15012  ;;  %15024 = vpow2.f32 %v893_v3  ;;  %v903_v17 = vmul.f32 1.442695, %v863_v9  ;;  %v1044_v58 = vadd.f32 1.0, %v1043_v62 }
 0x120   : >> { %v15417_v23 = vpop.eup %15014  ;;  %15026 = vpow2.f32 %v891_v7  ;;  %v15419_v25 = vpop.f32.mrf.mxu0  ;;  %v1049_v26 = vadd.f32 1.0, %v15414_v15  ;;  %v1052_v49 = vmul.f32 -0.5, %v15414_v15 }
 0x121   : >> { %21337 = vst [vmem:[#allocation14_spill] sm:$0xff] %v15419_v25  ;;  %v15422_v27 = vpop.eup %15016  ;;  %15028 = vpow2.f32 %v903_v17  ;;  %v1031_v35 = vadd.f32 1.0, %v15417_v23 }
 0x122   : >> { %v15425_v30 = vpop.eup %15018  ;;  %15030 = vlog2.f32 %v959_v14  ;;  %v986_v37 = vadd.f32 1.0, %v15422_v27  ;;  %v15458_v52 = vmul.f32 -0.5, %v15422_v27  ;;  %v1053_v17 = vadd.f32 1.0, %v1052_v49 }
 0x123   : >> { %v15428_v33 = vpop.eup %15020  ;;  %15032 = vlog2.f32 %v968_v19  ;;  %v1022_v41 = vadd.f32 1.0, %v15425_v30  ;;  %v1034_v19 = vmul.f32 -0.5, %v15417_v23  ;;  %v1028_v25 = vand.u32 2147483647, %v15425_v30 }
 0x124   : >> { %v15431_v36 = vpop.eup %15022  ;;  %15034 = vlog2.f32 %v1049_v26  ;;  %v1025_v26 = vmul.f32 -0.5, %v15425_v30 }
 0x125   : >> { %v15437_v39 = vpop.eup %15024  ;;  %15036 = vlog2.f32 %v977_v28  ;;  %v995_v4 = vadd.f32 1.0, %v15431_v36  ;;  %v15472_v7 = vmul.f32 -0.5, %v15431_v36  ;;  %v1035_v6 = vadd.f32 1.0, %v1034_v19 }
 0x126   : >> { %v15444_v44 = vpop.eup %15026  ;;  %15038 = vlog2.f32 %v1040_v31  ;;  %v1013_v57 = vadd.f32 1.0, %v15437_v39  ;;  %v1016_v0 = vmul.f32 -0.5, %v15437_v39  ;;  %v1026_v51 = vadd.f32 1.0, %v1025_v26 }
 0x127   : >> { %v15029_v48 = vpop.eup %15028  ;;  %15040 = vlog2.f32 %v1031_v35  ;;  %v1004_v9 = vadd.f32 1.0, %v15444_v44  ;;  %v1007_v28 = vmul.f32 -0.5, %v15444_v44  ;;  %v1055_v35 = vand.u32 2147483647, %v15414_v15 }
 0x128   : >> { %v15460_v53 = vpop.eup %15030  ;;  %v15462_v54 = vpop.f32.mrf.mxu0  ;;  %v1058_v56 = vadd.f32 1.0, %v15029_v48  ;;  %15042 = vlog2.f32 %v986_v37  ;;  %v1061_v60 = vmul.f32 -0.5, %v15029_v48  ;;  %v1019_v37 = vand.u32 2147483647, %v15437_v39 }
 0x129   : >> { %21338 = vst [vmem:[#allocation15_spill] sm:$0xff] %v15462_v54  ;;  %v15466_v59 = vpop.eup %15032  ;;  %15044 = vlog2.f32 %v1022_v41  ;;  %v1017_v55 = vadd.f32 1.0, %v1016_v0  ;;  %v1064_v54 = vand.u32 2147483647, %v15029_v48  ;;  %vm15490_vm5 = vcmp.lt.f32.partialorder %v1055_v35, 0.0004427343 }
 0x12a   : >> { %v15035_v3 = vpop.eup %15034  ;;  %15046 = vlog2.f32 %v1058_v56  ;;  %v1062_v47 = vadd.f32 1.0, %v1061_v60  ;;  %v1037_v0 = vand.u32 2147483647, %v15417_v23  ;;  %v812_v19 = vmax.f32 %v15390_v40, 0.0 }
 0x12b   : >> { %v15475_v14 = vpop.eup %15036  ;;  %15048 = vlog2.f32 %v1013_v57  ;;  %v1051_v43 = vmul.f32 0.6931472, %v15035_v3  ;;  %v1054_v57 = vmul.f32 %v15414_v15, %v1053_v17  ;;  %v1045_v15 = vmul.f32 %v15411_v13, %v1044_v58 }
 0x12c   : >> { %v15039_v31 = vpop.eup %15038  ;;  %15050 = vlog2.f32 %v1004_v9  ;;  %v1063_v22 = vmul.f32 %v15029_v48, %v1062_v47  ;;  %v813_v26 = vmax.f32 %v15399_v61, 0.0  ;;  %vm1065_vm6 = vcmp.lt.f32.partialorder %v1064_v54, 0.0004427343 }
 0x12d   : >> { %v15041_v56 = vpop.eup %15040  ;;  %v1042_v10 = vmul.f32 0.6931472, %v15039_v31  ;;  %15052 = vlog2.f32 %v995_v4  ;;  %v1057_v3 = vsel %vm15490_vm5, %v1054_v57, %v1051_v43  ;;  %v1036_v4 = vmul.f32 %v15417_v23, %v1035_v6 }
 0x12e   : >> { %v15483_v49 = vpop.eup %15042  ;;  %v1033_v62 = vmul.f32 0.6931472, %v15041_v56  ;;  %v811_v13 = vmax.f32 %v15361_v18, 0.0  ;;  %v1162_v48 = vadd.f32 %v1057_v3, %v812_v19  ;;  %vm15508_vm8 = vcmp.lt.f32.partialorder %v1037_v0, 0.0004427343 }
 0x12f   : >> { %v15045_v2 = vpop.eup %15044  ;;  %v1048_v43 = vsel %vm15500_vm7, %v1045_v15, %v1042_v10  ;;  %v1008_v6 = vadd.f32 1.0, %v1007_v28  ;;  %v810_v10 = vmax.f32 %v15365_v20, 0.0  ;;  %vm15516_vm9 = vcmp.lt.f32.partialorder %v1028_v25, 0.0004427343  ;;  %v21365_v25 = vld [vmem:[#allocation10_spill] sm:$0xff] }
 0x130   : >> { %v15047_v41 = vpop.eup %15046  ;;  %v15488_v63 = vpop.f32.mrf.mxu0  ;;  %v1039_v16 = vsel %vm15508_vm8, %v1036_v4, %v1033_v62  ;;  %v1161_v54 = vadd.f32 %v1048_v43, %v811_v13  ;;  %v1018_v56 = vmul.f32 %v15437_v39, %v1017_v55  ;;  %v999_v60 = vadd.f32 1.0, %v15472_v7 }
 0x131   : >> { %v1060_v9 = vmul.f32 0.6931472, %v15047_v41  ;;  %v15049_v17 = vpop.eup %15048  ;;  %v1024_v41 = vmul.f32 0.6931472, %v15045_v2  ;;  %v1160_v20 = vadd.f32 %v1039_v16, %v810_v10  ;;  %vm15527_vm10 = vcmp.lt.f32.partialorder %v1019_v37, 0.0004427343 }
 0x132   : >> { %v15051_v47 = vpop.eup %15050  ;;  %v1015_v61 = vmul.f32 0.6931472, %v15049_v17  ;;  %v1001_v28 = vand.u32 2147483647, %v15431_v36  ;;  %v1009_v7 = vmul.f32 %v15444_v44, %v1008_v6  ;;  %v990_v0 = vadd.f32 1.0, %v15458_v52 }
 0x133   : >> { %v1066_v35 = vsel %vm1065_vm6, %v1063_v22, %v1060_v9  ;;  %v1027_v22 = vmul.f32 %v15425_v30, %v1026_v51  ;;  %v15053_v23 = vpop.eup %15052  ;;  %v1006_v62 = vmul.f32 0.6931472, %v15051_v47  ;;  %v809_v51 = vmax.f32 %v15373_v24, 0.0 }
 0x134   : >> { %v1163_v58 = vadd.f32 %v1066_v35, %v813_v26  ;;  %v1021_v55 = vsel %vm15527_vm10, %v1018_v56, %v1015_v61  ;;  %v997_v39 = vmul.f32 0.6931472, %v15053_v23  ;;  %v808_v24 = vmax.f32 %v15382_v32, 0.0 }
 0x135   : >> { %v1030_v57 = vsel %vm15516_vm9, %v1027_v22, %v1024_v41  ;;  %v1354_v3 = vpack.c.bf16 %v1161_v54, %v1160_v20  ;;  %v21349_v15 = vand.u32 2147483647, %v15444_v44  ;;  %v1000_v17 = vmul.f32 %v15431_v36, %v999_v60  ;;  %v21364_v20 = vld [vmem:[#allocation12_spill] sm:$0xff]  ;;  %v14352_v44 = vld [vmem:[%s21297_s5 + $0x44] sm:$0xf0] }
 0x136   : >> { %v1355_v2 = vpack.c.bf16 %v1163_v58, %v1162_v48  ;;  %v1159_v9 = vadd.f32 %v1030_v57, %v809_v51  ;;  %v981_v26 = vadd.f32 1.0, %v15455_v50  ;;  %v988_v31 = vmul.f32 0.6931472, %v15483_v49 }
 0x137   : >> { %vm15539_vm11 = vcmp.lt.f32.partialorder %v21349_v15, 0.0004427343  ;;  %v807_v52 = vmax.f32 %v15386_v34, 0.0  ;;  %v1158_v32 = vadd.f32 %v1021_v55, %v808_v24  ;;  %vm15549_vm12 = vcmp.lt.f32.partialorder %v1001_v28, 0.0004427343  ;;  %v21368_v15 = vld [vmem:[#allocation8_spill] sm:$0xff] }
 0x138   : >> { %v15525_v30 = vpop.f32.mrf.mxu0  ;;  %2419 = vmatpush.bf16.msrb.mxu0 %v1355_v2  ;;  %14955 = vmatpush.bf16.msra.mxu1 %v1355_v2  ;;  %v1012_v19 = vsel %vm15539_vm11, %v1009_v7, %v1006_v62  ;;  %v983_v35 = vand.u32 2147483647, %v15409_v8  ;;  %v1003_v36 = vsel %vm15549_vm12, %v1000_v17, %v997_v39  ;;  %v979_v4 = vmul.f32 0.6931472, %v15475_v14  ;;  %v21363_v62 = vld [vmem:[#allocation13_spill] sm:$0xff] }
 0x139   : >> { %v991_v50 = vmul.f32 %v15422_v27, %v990_v0  ;;  %v972_v49 = vadd.f32 1.0, %v15450_v46  ;;  %v806_v34 = vmax.f32 %v15377_v29, 0.0  ;;  %v1353_v43 = vpack.c.bf16 %v1159_v9, %v1158_v32  ;;  %v21367_v7 = vld [vmem:[#allocation9_spill] sm:$0xff] }
 0x13a   : >> { %v1157_v41 = vadd.f32 %v1012_v19, %v807_v52  ;;  %v21354_v47 = vand.u32 2147483647, %v15422_v27  ;;  %v982_v48 = vmul.f32 %v15409_v8, %v981_v26  ;;  %v963_v14 = vadd.f32 1.0, %v15447_v45  ;;  %v11168_v32 = vld [vmem:[%s21297_s5 + $0x40] sm:$0xf] }
 0x13b   : >> { %v970_v40 = vmul.f32 0.6931472, %v15466_v59  ;;  %v805_v46 = vmax.f32 %v15368_v21, 0.0  ;;  %v1156_v27 = vadd.f32 %v1003_v36, %v806_v34  ;;  %vm15574_vm14 = vcmp.lt.f32.partialorder %v983_v35, 0.0004427343  ;;  %v21369_v35 = vld [vmem:[#allocation14_spill] sm:$0xff] }
 0x13c   : >> { %2420 = vmatpush.bf16.msrb.mxu0 %v1354_v3  ;;  %14956 = vmatpush.bf16.msra.mxu1 %v1354_v3  ;;  %vm15562_vm13 = vcmp.lt.f32.partialorder %v21354_v47, 0.0004427343  ;;  %v965_v8 = vand.u32 2147483647, %v15404_v1  ;;  %v985_v61 = vsel %vm15574_vm14, %v982_v48, %v979_v4  ;;  %v961_v45 = vmul.f32 0.6931472, %v15460_v53 }
 0x13d   : >> { %v994_v58 = vsel %vm15562_vm13, %v991_v50, %v988_v31  ;;  %v973_v59 = vmul.f32 %v15407_v5, %v972_v49  ;;  %v954_v21 = vadd.f32 1.0, %v15441_v42  ;;  %v804_v22 = vmax.f32 %v15356_v12, 0.0  ;;  %v21370_v36 = vld [vmem:[#allocation6_spill] sm:$0xff]  ;;  %v21371_v50 = vld [vmem:[#allocation15_spill] sm:$0xff] }
 0x13e   : >> { %v1352_v6 = vpack.c.bf16 %v1157_v41, %v1156_v27  ;;  %v1155_v23 = vadd.f32 %v994_v58, %v805_v46  ;;  %v21359_v10 = vand.u32 2147483647, %v15407_v5  ;;  %v964_v54 = vmul.f32 %v15404_v1, %v963_v14  ;;  %v21362_v5 = vld [vmem:[#allocation11_spill] sm:$0xff] }
 0x13f   : >> { %v945_v53 = vadd.f32 1.0, %v15435_v38  ;;  %v952_v56 = vmul.f32 0.6931472, %v15428_v33  ;;  %v803_v42 = vmax.f32 %v15353_v11, 0.0  ;;  %v1154_v12 = vadd.f32 %v985_v61, %v804_v22  ;;  %v21372_v41 = vld [vmem:[#allocation7_spill] sm:$0xff] }
 0x140   : >> { %v15572_v29 = vpop.f32.mrf.mxu0  ;;  %2421 = vmatpush.bf16.msrb.mxu0 %v1353_v43  ;;  %14957 = vmatpush.bf16.msra.mxu1 %v1353_v43  ;;  %vm15587_vm15 = vcmp.lt.f32.partialorder %v21359_v10, 0.0004427343  ;;  %vm966_vm1 = vcmp.lt.f32.partialorder %v965_v8, 0.0004427343  ;;  %v947_v57 = vand.u32 2147483647, %v21362_v5  ;;  %v955_v1 = vmul.f32 %v21364_v20, %v954_v21 }
 0x141   : >> { %v976_v18 = vsel %vm15587_vm15, %v973_v59, %v970_v40  ;;  %v967_v60 = vsel %vm966_vm1, %v964_v54, %v961_v45  ;;  %v943_v51 = vmul.f32 0.6931472, %v21363_v62  ;;  %v802_v28 = vmax.f32 %v21365_v25, 0.0 }
 0x142   : >> { %v1351_v55 = vpack.c.bf16 %v1155_v23, %v1154_v12  ;;  %v1153_v39 = vadd.f32 %v976_v18, %v803_v42  ;;  %v21366_v38 = vand.u32 2147483647, %v21364_v20  ;;  %v946_v11 = vmul.f32 %v21362_v5, %v945_v53  ;;  %v14354_v12 = vld [vmem:[%s21297_s5 + $0x54] sm:$0xf0] }
 0x143   : >> { %v801_v0 = vmax.f32 %v21367_v7, 0.0  ;;  %v1152_v3 = vadd.f32 %v967_v60, %v802_v28  ;;  %vm948_vm3 = vcmp.lt.f32.partialorder %v947_v57, 0.0004427343  ;;  %v800_v37 = vmax.f32 %v21368_v15, 0.0 }
 0x144   : >> { %2422 = vmatpush.bf16.msrb.mxu0 %v1352_v6  ;;  %14958 = vmatpush.bf16.msra.mxu1 %v1352_v6  ;;  %vm957_vm2 = vcmp.lt.f32.partialorder %v21366_v38, 0.0004427343  ;;  %v949_v9 = vsel %vm948_vm3, %v946_v11, %v943_v51  ;;  %v15614_v4 = vadd.f32 %v21370_v36, %v21369_v35  ;;  %v15618_v49 = vadd.f32 %v21370_v36, %v21371_v50 }
 0x145   : >> { %v958_v33 = vsel %vm957_vm2, %v955_v1, %v952_v56  ;;  %v1350_v17 = vpack.c.bf16 %v1153_v39, %v1152_v3  ;;  %v1150_v26 = vadd.f32 %v949_v9, %v800_v37  ;;  %v11169_v34 = vor.u32 %v14352_v44, %v11168_v32  ;;  %v14356_v32 = vld [vmem:[%s21297_s5 + $0x64] sm:$0xf0] }
 0x146   : >> { %v1151_v19 = vadd.f32 %v958_v33, %v801_v0  ;;  %v839_v47 = vand.u32 2147483647, %v15614_v4  ;;  %v840_v13 = vand.u32 2147483647, %v15618_v49  ;;  %v15632_v58 = vadd.f32 %v21370_v36, %v15525_v30 }
 0x147   : >> { %v15636_v14 = vadd.f32 %v21370_v36, %v15572_v29  ;;  %v15644_v61 = vadd.f32 %v21370_v36, %v15488_v63  ;;  %v11176_v63 = vld [vmem:[%s21297_s5 + $0x50] sm:$0xf]  ;;  %vm2415_vm6 = vcmask 1041408   ;;  %vm2150_vm14 = vcmask 556032  }
 0x148   : >> { %v786_v24 = vpop.f32.mrf.mxu0  ;;  %2423 = vmatpush.bf16.msrb.mxu0 %v1351_v55  ;;  %14959 = vmatpush.bf16.msra.mxu1 %v1351_v55  ;;  %v1349_v31 = vpack.c.bf16 %v1151_v19, %v1150_v26  ;;  %v864_v27 = vsub.f32 0.0, %v839_v47  ;;  %v865_v8 = vsub.f32 0.0, %v840_v13  ;;  %v842_v45 = vand.u32 2147483647, %v15632_v58 }
 0x149   : >> { %v15628_v48 = vadd.f32 %v21370_v36, %v786_v24  ;;  %v843_v29 = vand.u32 2147483647, %v15636_v14  ;;  %v841_v10 = vand.u32 2147483647, %v15644_v61  ;;  %v11177_v20 = vor.u32 %v14354_v12, %v11176_v63 }
 0x14a   : >> { %v905_v22 = vmul.f32 1.442695, %v864_v27  ;;  %v907_v23 = vmul.f32 1.442695, %v865_v8  ;;  %v867_v54 = vsub.f32 0.0, %v842_v45  ;;  %vm3315_vm15 = vcmask 130048  }
 0x14b   : >> { %v844_v30 = vand.u32 2147483647, %v15628_v48  ;;  %v868_v53 = vsub.f32 0.0, %v843_v29  ;;  %v866_v57 = vsub.f32 0.0, %v841_v10 }
 0x14c   : >> { %2424 = vmatpush.bf16.msrb.mxu0 %v1350_v17  ;;  %14960 = vmatpush.bf16.msra.mxu1 %v1350_v17  ;;  %15054 = vpow2.f32 %v905_v22  ;;  %v911_v62 = vmul.f32 1.442695, %v867_v54 }
 0x14d   : >> { %v869_v2 = vsub.f32 0.0, %v844_v30  ;;  %v913_v1 = vmul.f32 1.442695, %v868_v53  ;;  %v909_v28 = vmul.f32 1.442695, %v866_v57 }
 0x14e   : >> { %v11136_v53 = vld [vmem:[%s21297_s5] sm:$0xf] }
 0x14f   : >> { %v915_v60 = vmul.f32 1.442695, %v869_v2 }
 0x150   : >> { %v789_v52 = vpop.f32.mrf.mxu0  ;;  %2425 = vmatpush.bf16.msrb.mxu0 %v1349_v31  ;;  %14961 = vmatpush.bf16.msra.mxu1 %v1349_v31 }
 0x151   : >> { %v15621_v43 = vadd.f32 %v21370_v36, %v789_v52  ;;  %v11184_v52 = vld [vmem:[%s21297_s5 + $0x60] sm:$0xf] }
 0x152   : >> { %v15661_v55 = vpop.eup %15054  ;;  %v11185_v13 = vor.u32 %v14356_v32, %v11184_v52 }
 0x153   : >> { %v845_v40 = vand.u32 2147483647, %v15621_v43  ;;  %v1067_v0 = vadd.f32 1.0, %v15661_v55  ;;  %v15693_v47 = vmul.f32 -0.5, %v15661_v55 }
 0x154   : >> { %2426 = vmatpush.bf16.msrb.mxu0 %v21372_v41  ;;  %14962 = vmatpush.bf16.msra.mxu1 %v21372_v41 }
 0x155   : >> { %v870_v21 = vsub.f32 0.0, %v845_v40 }
 0x157   : >> { %2447 = vmatmul.bf16.vlgmr.msra.gmra.mxu1 %v11169_v34  ;;  %v917_v56 = vmul.f32 1.442695, %v870_v21 }
 0x158   : >> { %v791_v46 = vpop.f32.mrf.mxu0 }
 0x159   : >> { %v15640_v16 = vadd.f32 %v21370_v36, %v791_v46 }
 0x15b   : >> { %v846_v59 = vand.u32 2147483647, %v15640_v16 }
 0x15d   : >> { %v871_v6 = vsub.f32 0.0, %v846_v59 }
 0x15f   : >> { %v919_v18 = vmul.f32 1.442695, %v871_v6 }
 0x160   : >> { %v794_v42 = vpop.f32.mrf.mxu0 }
 0x161   : >> { %v15658_v5 = vadd.f32 %v21370_v36, %v794_v42  ;;  %15056 = vpow2.f32 %v919_v18 }
 0x162   : >> { %15058 = vpow2.f32 %v907_v23 }
 0x163   : >> { %v847_v51 = vand.u32 2147483647, %v15658_v5  ;;  %15060 = vpow2.f32 %v917_v56  ;;  %v14344_v56 = vld [vmem:[%s21297_s5 + $0x4] sm:$0xf0] }
 0x164   : >> { %15062 = vpow2.f32 %v915_v60 }
 0x165   : >> { %v872_v25 = vsub.f32 0.0, %v847_v51  ;;  %15064 = vpow2.f32 %v911_v62  ;;  %v11137_v62 = vor.u32 %v14344_v56, %v11136_v53  ;;  %v818_v56 = vmax.f32 %v15636_v14, 0.0 }
 0x166   : >> { %15066 = vpow2.f32 %v913_v1 }
 0x167   : >> { %v921_v39 = vmul.f32 1.442695, %v872_v25  ;;  %2452 = vmatmul.bf16.gmra.mxu1 %v11177_v20  ;;  %v15663_v38 = vpop.eup %15056  ;;  %2427 = vmatmul.bf16.vlgmr.msrb.gmra.mxu0 %v11137_v62 }
 0x168   : >> { %v796_v11 = vpop.f32.mrf.mxu0  ;;  %v15665_v33 = vpop.eup %15058  ;;  %v1130_v24 = vadd.f32 1.0, %v15663_v38  ;;  %v1133_v34 = vmul.f32 -0.5, %v15663_v38  ;;  %v1136_v63 = vand.u32 2147483647, %v15663_v38 }
 0x169   : >> { %15068 = vpow2.f32 %v921_v39  ;;  %v15667_v7 = vpop.eup %15060  ;;  %v1076_v9 = vadd.f32 1.0, %v15665_v33  ;;  %v1079_v35 = vmul.f32 -0.5, %v15665_v33  ;;  %v1082_v46 = vand.u32 2147483647, %v15665_v33 }
 0x16a   : >> { %15070 = vpow2.f32 %v909_v28  ;;  %v15671_v3 = vpop.eup %15062  ;;  %v1121_v37 = vadd.f32 1.0, %v15667_v7  ;;  %v1124_v8 = vmul.f32 -0.5, %v15667_v7  ;;  %v1134_v2 = vadd.f32 1.0, %v1133_v34 }
 0x16b   : >> { %v15674_v15 = vpop.eup %15064  ;;  %15072 = vlog2.f32 %v1067_v0  ;;  %v1112_v26 = vadd.f32 1.0, %v15671_v3  ;;  %v15704_v59 = vadd.f32 1.0, %v1079_v35  ;;  %v1115_v22 = vmul.f32 -0.5, %v15671_v3 }
 0x16c   : >> { %v15677_v17 = vpop.eup %15066  ;;  %15074 = vlog2.f32 %v1130_v24  ;;  %v1094_v41 = vadd.f32 1.0, %v15674_v15  ;;  %v1097_v45 = vmul.f32 -0.5, %v15674_v15  ;;  %v1100_v6 = vand.u32 2147483647, %v15674_v15 }
 0x16d   : >> { %15076 = vlog2.f32 %v1076_v9  ;;  %v1103_v50 = vadd.f32 1.0, %v15677_v17  ;;  %v1106_v54 = vmul.f32 -0.5, %v15677_v17  ;;  %v1125_v12 = vadd.f32 1.0, %v1124_v8 }
 0x16e   : >> { %15078 = vlog2.f32 %v1121_v37  ;;  %v1098_v60 = vadd.f32 1.0, %v1097_v45  ;;  %v1127_v25 = vand.u32 2147483647, %v15667_v7  ;;  %v1116_v28 = vadd.f32 1.0, %v1115_v22  ;;  %v11192_v22 = vld [vmem:[%s21297_s5 + $0x70] sm:$0xf] }
 0x16f   : >> { %v15069_v19 = vpop.eup %15068  ;;  %v822_v39 = vmax.f32 %v15658_v5, 0.0  ;;  %v1135_v0 = vmul.f32 %v15663_v38, %v1134_v2  ;;  %vm15721_vm5 = vcmp.lt.f32.partialorder %v1136_v63, 0.0004427343  ;;  %v1118_v52 = vand.u32 2147483647, %v15671_v3 }
 0x170   : >> { %v15680_v31 = vpop.eup %15070  ;;  %v1139_v44 = vadd.f32 1.0, %v15069_v19  ;;  %v1142_v36 = vmul.f32 -0.5, %v15069_v19  ;;  %v1145_v10 = vand.u32 2147483647, %v15069_v19  ;;  %v821_v38 = vmax.f32 %v15640_v16, 0.0 }
 0x171   : >> { %v1085_v40 = vadd.f32 1.0, %v15680_v31  ;;  %v15697_v27 = vpop.eup %15072  ;;  %v15701_v30 = vmul.f32 -0.5, %v15680_v31  ;;  %vm15730_vm7 = vcmp.lt.f32.partialorder %v1127_v25, 0.0004427343  ;;  %v1109_v34 = vand.u32 2147483647, %v15677_v17 }
 0x172   : >> { %15080 = vlog2.f32 %v1139_v44  ;;  %v15075_v29 = vpop.eup %15074  ;;  %v1143_v21 = vadd.f32 1.0, %v1142_v36  ;;  %vm1146_vm4 = vcmp.lt.f32.partialorder %v1145_v10, 0.0004427343  ;;  %v1126_v44 = vmul.f32 %v15667_v7, %v1125_v12  ;;  %v14358_v10 = vld [vmem:[%s21297_s5 + $0x74] sm:$0xf0] }
 0x173   : >> { %15082 = vlog2.f32 %v1112_v26  ;;  %v15708_v23 = vpop.eup %15076  ;;  %v1132_v57 = vmul.f32 0.6931472, %v15075_v29  ;;  %v1107_v26 = vadd.f32 1.0, %v1106_v54  ;;  %v1117_v7 = vmul.f32 %v15671_v3, %v1116_v28  ;;  %v11224_v63 = vld [vmem:[%s21297_s5 + $0xb0] sm:$0xf] }
 0x174   : >> { %15084 = vlog2.f32 %v1103_v50  ;;  %v15079_v18 = vpop.eup %15078  ;;  %v1144_v1 = vmul.f32 %v15069_v19, %v1143_v21  ;;  %v820_v8 = vmax.f32 %v15621_v43, 0.0  ;;  %vm15739_vm8 = vcmp.lt.f32.partialorder %v1118_v52, 0.0004427343  ;;  %v14345_v50 = vld [vmem:[%s21297_s5 + $0x14] sm:$0xf] }
 0x175   : >> { %15086 = vlog2.f32 %v1094_v41  ;;  %v1123_v11 = vmul.f32 0.6931472, %v15079_v18  ;;  %v1138_v5 = vsel %vm15721_vm5, %v1135_v0, %v1132_v57  ;;  %v1108_v2 = vmul.f32 %v15677_v17, %v1107_v26 }
 0x176   : >> { %15088 = vlog2.f32 %v1085_v40  ;;  %v1171_v45 = vadd.f32 %v1138_v5, %v821_v38  ;;  %v1089_v3 = vadd.f32 1.0, %v15701_v30  ;;  %v819_v54 = vmax.f32 %v15628_v48, 0.0 }
 0x177   : >> { %2457 = vmatmul.bf16.gmra.mxu1 %v11185_v13  ;;  %v1129_v13 = vsel %vm15730_vm7, %v1126_v44, %v1123_v11  ;;  %vm15754_vm9 = vcmp.lt.f32.partialorder %v1109_v34, 0.0004427343  ;;  %v1091_v53 = vand.u32 2147483647, %v15680_v31  ;;  %v1099_v12 = vmul.f32 %v15674_v15, %v1098_v60  ;;  %v11144_v11 = vld [vmem:[%s21297_s5 + $0x10] sm:$0xf] }
 0x178   : >> { %v15081_v42 = vpop.eup %15080  ;;  %v1170_v18 = vadd.f32 %v1129_v13, %v820_v8  ;;  %v11193_v57 = vor.u32 %v14358_v10, %v11192_v22  ;;  %vm15765_vm10 = vcmp.lt.f32.partialorder %v1100_v6, 0.0004427343  ;;  %v817_v60 = vmax.f32 %v15632_v58, 0.0  ;;  %v11200_v44 = vld [vmem:[%s21297_s5 + $0x80] sm:$0xf] }
 0x179   : >> { %v15083_v51 = vpop.eup %15082  ;;  %v1141_v20 = vmul.f32 0.6931472, %v15081_v42  ;;  %vm15775_vm11 = vcmp.lt.f32.partialorder %v1091_v53, 0.0004427343  ;;  %v1073_v6 = vand.u32 2147483647, %v15661_v55 }
 0x17a   : >> { %v15085_v24 = vpop.eup %15084  ;;  %v1114_v35 = vmul.f32 0.6931472, %v15083_v51  ;;  %v1359_v30 = vpack.c.bf16 %v1171_v45, %v1170_v18  ;;  %v1090_v51 = vmul.f32 %v15680_v31, %v1089_v3  ;;  %v816_v31 = vmax.f32 %v15644_v61, 0.0  ;;  %v14346_v61 = vld [vmem:[%s21297_s5 + $0x14] sm:$0xf0] }
 0x17b   : >> { %v1147_v9 = vsel %vm1146_vm4, %v1144_v1, %v1141_v20  ;;  %v15087_v19 = vpop.eup %15086  ;;  %v1105_v40 = vmul.f32 0.6931472, %v15085_v24  ;;  %v1071_v20 = vadd.f32 1.0, %v15693_v47  ;;  %v1078_v1 = vmul.f32 0.6931472, %v15708_v23 }
 0x17c   : >> { %v1172_v32 = vadd.f32 %v1147_v9, %v822_v39  ;;  %v15089_v36 = vpop.eup %15088  ;;  %v1096_v16 = vmul.f32 0.6931472, %v15087_v19  ;;  %v1120_v43 = vsel %vm15739_vm8, %v1117_v7, %v1114_v35  ;;  %v1069_v47 = vmul.f32 0.6931472, %v15697_v27  ;;  %v11152_v35 = vld [vmem:[%s21297_s5 + $0x20] sm:$0xf] }
 0x17d   : >> { %v1111_v17 = vsel %vm15754_vm9, %v1108_v2, %v1105_v40  ;;  %v1087_v42 = vmul.f32 0.6931472, %v15089_v36  ;;  %v1169_v48 = vadd.f32 %v1120_v43, %v819_v54  ;;  %v1081_v23 = vmul.f32 %v15665_v33, %v15704_v59  ;;  %v14348_v36 = vld [vmem:[%s21297_s5 + $0x24] sm:$0xf0]  ;;  %v11146_v34 = vld [vmem:[%s21297_s5 + $0x18] sm:$0xf0] }
 0x17e   : >> { %v1360_v41 = vpack.c.bf16 %v1172_v32, %v1172_v32  ;;  %v1102_v14 = vsel %vm15765_vm10, %v1099_v12, %v1096_v16  ;;  %v1168_v25 = vadd.f32 %v1111_v17, %v818_v56  ;;  %vm1083_vm12 = vcmp.lt.f32.partialorder %v1082_v46, 0.0004427343  ;;  %v11208_v13 = vld [vmem:[%s21297_s5 + $0x90] sm:$0xf]  ;;  %v14362_v40 = vld [vmem:[%s21297_s5 + $0x94] sm:$0xf0] }
 0x17f   : >> { %v1093_v28 = vsel %vm15775_vm11, %v1090_v51, %v1087_v42  ;;  %v1167_v39 = vadd.f32 %v1102_v14, %v817_v60  ;;  %v1072_v0 = vmul.f32 %v15661_v55, %v1071_v20  ;;  %v1084_v27 = vsel %vm1083_vm12, %v1081_v23, %v1078_v1  ;;  %v14343_v55 = vld [vmem:[%s21297_s5 + $0x4] sm:$0xf]  ;;  %v11160_v8 = vld [vmem:[%s21297_s5 + $0x30] sm:$0xf]  ;;  %v14350_v45 = vld [vmem:[%s21297_s5 + $0x34] sm:$0xf0] }
 0x180   : >> { %v2417_v21 = vsel %vm2415_vm6, %v1360_v41, 0  ;;  %v1358_v58 = vpack.c.bf16 %v1169_v48, %v1168_v25  ;;  %v11145_v24 = vor.u32 %v14346_v61, %v11144_v11  ;;  %v815_v59 = vmax.f32 %v15618_v49, 0.0  ;;  %v11138_v49 = vld [vmem:[%s21297_s5 + $0x8] sm:$0xf0]  ;;  %v14347_v16 = vld [vmem:[%s21297_s5 + $0x24] sm:$0xf] }
 0x181   : >> { %2870 = vmatpush.bf16.msra.mxu2 %v2417_v21  ;;  %14963 = vmatpush.bf16.msra.mxu3 %v2417_v21  ;;  %v1166_v9 = vadd.f32 %v1093_v28, %v816_v31  ;;  %vm1074_vm13 = vcmp.lt.f32.partialorder %v1073_v6, 0.0004427343  ;;  %v814_v46 = vmax.f32 %v15614_v4, 0.0  ;;  %v11141_v32 = vor.u32 %v14343_v55, %v11138_v49  ;;  %v14360_v4 = vld [vmem:[%s21297_s5 + $0x84] sm:$0xf0] }
 0x182   : >> { %v1075_v33 = vsel %vm1074_vm13, %v1072_v0, %v1069_v47  ;;  %2432 = vmatmul.bf16.gmra.mxu0 %v11145_v24  ;;  %v1165_v26 = vadd.f32 %v1084_v27, %v815_v59  ;;  %v11201_v5 = vor.u32 %v14360_v4, %v11200_v44  ;;  %v11153_v38 = vor.u32 %v14348_v36, %v11152_v35  ;;  %v11154_v21 = vld [vmem:[%s21297_s5 + $0x28] sm:$0xf0]  ;;  %v11216_v10 = vld [vmem:[%s21297_s5 + $0xa0] sm:$0xf]  ;;  %v14364_v2 = vld [vmem:[%s21297_s5 + $0xa4] sm:$0xf0] }
 0x183   : >> { %v1357_v37 = vpack.c.bf16 %v1167_v39, %v1166_v9  ;;  %v1164_v52 = vadd.f32 %v1075_v33, %v814_v46  ;;  %v11149_v41 = vor.u32 %v14345_v50, %v11146_v34  ;;  %v11209_v7 = vor.u32 %v14362_v40, %v11208_v13  ;;  %v14349_v3 = vld [vmem:[%s21297_s5 + $0x34] sm:$0xf]  ;;  %v11162_v54 = vld [vmem:[%s21297_s5 + $0x38] sm:$0xf0]  ;;  %v14366_v53 = vld [vmem:[%s21297_s5 + $0xb4] sm:$0xf0] }
 0x184   : >> { %v11161_v29 = vor.u32 %v14350_v45, %v11160_v8  ;;  %v11157_v22 = vor.u32 %v14347_v16, %v11154_v21  ;;  %v11217_v43 = vor.u32 %v14364_v2, %v11216_v10  ;;  %v11165_v18 = vor.u32 %v14349_v3, %v11162_v54  ;;  %v14351_v17 = vld [vmem:[%s21297_s5 + $0x44] sm:$0xf]  ;;  %v11170_v42 = vld [vmem:[%s21297_s5 + $0x48] sm:$0xf0]  ;;  %v14353_v14 = vld [vmem:[%s21297_s5 + $0x54] sm:$0xf] }
 0x185   : >> { %2871 = vmatpush.bf16.msra.mxu2 %v1359_v30  ;;  %14964 = vmatpush.bf16.msra.mxu3 %v1359_v30  ;;  %v1356_v19 = vpack.c.bf16 %v1165_v26, %v1164_v52  ;;  %v11225_v56 = vor.u32 %v14366_v53, %v11224_v63  ;;  %v11173_v12 = vor.u32 %v14351_v17, %v11170_v42  ;;  %v11232_v30 = vld [vmem:[%s21297_s5 + $0xc0] sm:$0xf]  ;;  %v11178_v20 = vld [vmem:[%s21297_s5 + $0x58] sm:$0xf0]  ;;  %v11240_v60 = vld [vmem:[%s21297_s5 + $0xd0] sm:$0xf] }
 0x186   : >> { %v11181_v1 = vor.u32 %v14353_v14, %v11178_v20  ;;  %v14370_v25 = vld [vmem:[%s21297_s5 + $0xd4] sm:$0xf0]  ;;  %v14355_v28 = vld [vmem:[%s21297_s5 + $0x64] sm:$0xf]  ;;  %v11186_v47 = vld [vmem:[%s21297_s5 + $0x68] sm:$0xf0] }
 0x187   : >> { %2462 = vmatmul.bf16.gmra.mxu1 %v11193_v57  ;;  %v14368_v57 = vld [vmem:[%s21297_s5 + $0xc4] sm:$0xf0]  ;;  %v11241_v15 = vor.u32 %v14370_v25, %v11240_v60  ;;  %v11189_v23 = vor.u32 %v14355_v28, %v11186_v47  ;;  %v14357_v27 = vld [vmem:[%s21297_s5 + $0x74] sm:$0xf]  ;;  %v11194_v24 = vld [vmem:[%s21297_s5 + $0x78] sm:$0xf0] }
 0x188   : >> { %v11233_v48 = vor.u32 %v14368_v57, %v11232_v30  ;;  %v14372_v39 = vld [vmem:[%s21297_s5 + $0xe4] sm:$0xf0]  ;;  %v11197_v59 = vor.u32 %v14357_v27, %v11194_v24  ;;  %v11256_v9 = vld [vmem:[%s21297_s5 + $0xf0] sm:$0xf]  ;;  %v14374_v33 = vld [vmem:[%s21297_s5 + $0xf4] sm:$0xf0] }
 0x189   : >> { %2872 = vmatpush.bf16.msra.mxu2 %v1358_v58  ;;  %14965 = vmatpush.bf16.msra.mxu3 %v1358_v58  ;;  %v11248_v58 = vld [vmem:[%s21297_s5 + $0xe0] sm:$0xf]  ;;  %v11257_v46 = vor.u32 %v14374_v33, %v11256_v9  ;;  %v14359_v55 = vld [vmem:[%s21297_s5 + $0x84] sm:$0xf]  ;;  %v11202_v49 = vld [vmem:[%s21297_s5 + $0x88] sm:$0xf0] }
 0x18a   : >> { %v11249_v11 = vor.u32 %v14372_v39, %v11248_v58  ;;  %v14376_v44 = vld [vmem:[%s21297_s5 + $0x104] sm:$0xf0]  ;;  %v11818_v35 = vld [vmem:[%s21297_s5 + $0x558] sm:$0xf0]  ;;  %v11272_v21 = vld [vmem:[%s21297_s5 + $0x110] sm:$0xf] }
 0x18b   : >> { %v11210_v8 = vld [vmem:[%s21297_s5 + $0x98] sm:$0xf0]  ;;  %v14515_v10 = vld [vmem:[%s21297_s5 + $0x564] sm:$0xf]  ;;  %v11826_v2 = vld [vmem:[%s21297_s5 + $0x568] sm:$0xf0] }
 0x18c   : >> { %v11829_v3 = vor.u32 %v14515_v10, %v11826_v2  ;;  %v14363_v17 = vld [vmem:[%s21297_s5 + $0xa4] sm:$0xf]  ;;  %v11218_v42 = vld [vmem:[%s21297_s5 + $0xa8] sm:$0xf0]  ;;  %v1347_v57 = vld [vmem:[%s21297_s5 + $0x570] sm:$0xff]  ;;  %vm5425_vm8 = vcmask 457728  }
 0x18d   : >> { %2873 = vmatpush.bf16.msra.mxu2 %v1357_v37  ;;  %14966 = vmatpush.bf16.msra.mxu3 %v1357_v37  ;;  %v11221_v14 = vor.u32 %v14363_v17, %v11218_v42  ;;  %v11280_v20 = vld [vmem:[%s21297_s5 + $0x120] sm:$0xf]  ;;  %v1885_v60 = vunpack.c.h.b16 %v1347_v57  ;;  %v11226_v27 = vld [vmem:[%s21297_s5 + $0xb8] sm:$0xf0] }
 0x18e   : >> { %v11242_v10 = vld [vmem:[%s21297_s5 + $0xd8] sm:$0xf0] }
 0x18f   : >> { %v2061_v25 = vpack.c.b16 %v1885_v60, %v1885_v60 }
 0x191   : >> { %2874 = vmatpush.bf16.msra.mxu2 %v1356_v19  ;;  %14967 = vmatpush.bf16.msra.mxu3 %v1356_v19  ;;  %v11205_v19 = vor.u32 %v14359_v55, %v11202_v49 }
 0x192   : >> { %2437 = vmatmul.bf16.gmra.mxu0 %v11153_v38 }
 0x194   : >> { %11830 = vmatmul.msk.bf16.vlgmr.msra.gmra.mxu2 %vm2150_vm14, %v11141_v32  ;;  %v11264_v32 = vld [vmem:[%s21297_s5 + $0x100] sm:$0xf] }
 0x195   : >> { %v11265_v36 = vor.u32 %v14376_v44, %v11264_v32 }
 0x197   : >> { %2467 = vmatmul.bf16.gmra.mxu1 %v11201_v5  ;;  %v14513_v5 = vld [vmem:[%s21297_s5 + $0x554] sm:$0xf] }
 0x198   : >> { %v11821_v38 = vor.u32 %v14513_v5, %v11818_v35  ;;  %v14367_v35 = vld [vmem:[%s21297_s5 + $0xc4] sm:$0xf] }
 0x19a   : >> { %11915 = vmatmul.msk.bf16.vlgmr.msra.gmra.mxu3 %vm2150_vm14, %v11821_v38 }
 0x1a2   : >> { %2442 = vmatmul.bf16.gmra.mxu0 %v11161_v29 }
 0x1a4   : >> { %11831 = vmatmul.msk.bf16.gmra.mxu2 %vm2150_vm14, %v11149_v41 }
 0x1a7   : >> { %2472 = vmatmul.bf16.gmra.mxu1 %v11209_v7  ;;  %v14361_v7 = vld [vmem:[%s21297_s5 + $0x94] sm:$0xf] }
 0x1a8   : >> { %v11213_v16 = vor.u32 %v14361_v7, %v11210_v8  ;;  %v14384_v7 = vld [vmem:[%s21297_s5 + $0x144] sm:$0xf0] }
 0x1aa   : >> { %11916 = vmatmul.msk.bf16.gmra.mxu3 %vm2150_vm14, %v11829_v3 }
 0x1b4   : >> { %11832 = vmatmul.msk.bf16.gmra.mxu2 %vm2150_vm14, %v11157_v22  ;;  %v14378_v22 = vld [vmem:[%s21297_s5 + $0x114] sm:$0xf0] }
 0x1b7   : >> { %2477 = vmatmul.bf16.gmra.mxu1 %v11217_v43  ;;  %v11273_v43 = vor.u32 %v14378_v22, %v11272_v21  ;;  %v14369_v22 = vld [vmem:[%s21297_s5 + $0xd4] sm:$0xf] }
 0x1b8   : >> { %v11245_v3 = vor.u32 %v14369_v22, %v11242_v10  ;;  %v14392_v22 = vld [vmem:[%s21297_s5 + $0x184] sm:$0xf0] }
 0x1ba   : >> { %11917 = vmatmul.msk.bf16.gmra.mxu3 %vm2150_vm14, %v2061_v25  ;;  %v14388_v25 = vld [vmem:[%s21297_s5 + $0x164] sm:$0xf0] }
 0x1c4   : >> { %11833 = vmatmul.msk.bf16.gmra.mxu2 %vm2150_vm14, %v11165_v18 }
 0x1c7   : >> { %2482 = vmatmul.bf16.gmra.mxu1 %v11225_v56 }
 0x1d4   : >> { %v15873_v62 = vpop.f32.mrf.mxu1  ;;  %11834 = vmatmul.msk.bf16.gmra.mxu2 %vm2150_vm14, %v11173_v12 }
 0x1d7   : >> { %2487 = vmatmul.bf16.gmra.mxu1 %v11233_v48 }
 0x1dc   : >> { %v15876_v51 = vpop.f32.mrf.mxu1 }
 0x1e4   : >> { %v15890_v6 = vpop.f32.mrf.mxu1  ;;  %11835 = vmatmul.msk.bf16.gmra.mxu2 %vm2150_vm14, %v11181_v1  ;;  %v2428_v26 = vpop.f32.mrf.mxu0  ;;  %v14380_v1 = vld [vmem:[%s21297_s5 + $0x124] sm:$0xf0] }
 0x1e7   : >> { %2492 = vmatmul.bf16.gmra.mxu1 %v11241_v15  ;;  %v11281_v15 = vor.u32 %v14380_v1, %v11280_v20 }
 0x1ec   : >> { %v15893_v31 = vpop.f32.mrf.mxu1  ;;  %v2430_v4 = vpop.f32.mrf.mxu0 }
 0x1f4   : >> { %v15907_v61 = vpop.f32.mrf.mxu1  ;;  %11836 = vmatmul.msk.bf16.gmra.mxu2 %vm2150_vm14, %v11189_v23 }
 0x1f7   : >> { %2497 = vmatmul.bf16.gmra.mxu1 %v11249_v11  ;;  %v14365_v11 = vld [vmem:[%s21297_s5 + $0xb4] sm:$0xf] }
 0x1f8   : >> { %v11229_v33 = vor.u32 %v14365_v11, %v11226_v27 }
 0x1fc   : >> { %v15910_v0 = vpop.f32.mrf.mxu1 }
 0x1ff   : >> { %v2433_v13 = vpop.f32.mrf.mxu0 }
 0x204   : >> { %v15924_v37 = vpop.f32.mrf.mxu1  ;;  %11837 = vmatmul.msk.bf16.gmra.mxu2 %vm2150_vm14, %v11197_v59  ;;  %v14518_v59 = vld [vmem:[%s21298_s6 + $0x8] sm:$0xff] }
 0x205   : >> { %3543 = vmatpush.bf16.msrb.mxu3 %v14518_v59  ;;  %v14373_v59 = vld [vmem:[%s21297_s5 + $0xf4] sm:$0xf] }
 0x207   : >> { %2502 = vmatmul.bf16.gmra.mxu1 %v11257_v46  ;;  %v2435_v18 = vpop.f32.mrf.mxu0  ;;  %v11288_v46 = vld [vmem:[%s21297_s5 + $0x130] sm:$0xf] }
 0x20c   : >> { %v15927_v52 = vpop.f32.mrf.mxu1 }
 0x20f   : >> { %v2438_v30 = vpop.f32.mrf.mxu0 }
 0x214   : >> { %v15947_v50 = vpop.f32.mrf.mxu1  ;;  %11838 = vmatmul.msk.bf16.gmra.mxu2 %vm2150_vm14, %v11205_v19 }
 0x217   : >> { %2507 = vmatmul.bf16.gmra.mxu1 %v11265_v36  ;;  %v2876_v34 = vpop.f32.mrf.mxu2  ;;  %v2440_v58 = vpop.f32.mrf.mxu0  ;;  %v11234_v36 = vld [vmem:[%s21297_s5 + $0xc8] sm:$0xf0] }
 0x218   : >> { %v2877_v41 = vadd.f32 %v2876_v34, %v2428_v26  ;;  %v14382_v26 = vld [vmem:[%s21297_s5 + $0x134] sm:$0xf0] }
 0x219   : >> { %v11289_v49 = vor.u32 %v14382_v26, %v11288_v46  ;;  %v14517_v46 = vld [vmem:[%s21298_s6] sm:$0xff] }
 0x21a   : >> { %3316 = vst.msk [vmem:[#allocation2] sm:$0xff] %vm3315_vm15, %v2877_v41  ;;  %v11237_v41 = vor.u32 %v14367_v35, %v11234_v36  ;;  %3589 = vmatpush.bf16.msra.mxu3 %v14517_v46 }
 0x21c   : >> { %v15952_v40 = vpop.f32.mrf.mxu1 }
 0x21f   : >> { %v2878_v45 = vpop.f32.mrf.mxu2  ;;  %v2443_v55 = vpop.f32.mrf.mxu0 }
 0x220   : >> { %v2879_v29 = vadd.f32 %v2878_v45, %v2430_v4 }
 0x222   : >> { %3317 = vst.msk [vmem:[#allocation2 + $0x8] sm:$0xff] %vm3315_vm15, %v2879_v29 }
 0x224   : >> { %v15973_v54 = vpop.f32.mrf.mxu1  ;;  %11839 = vmatmul.msk.bf16.gmra.mxu2 %vm2150_vm14, %v11213_v16 }
 0x227   : >> { %2512 = vmatmul.bf16.gmra.mxu1 %v11273_v43  ;;  %v2881_v63 = vpop.f32.mrf.mxu2  ;;  %v2445_v5 = vpop.f32.mrf.mxu0 }
 0x228   : >> { %v2882_v53 = vadd.f32 %v2881_v63, %v2433_v13  ;;  %v11296_v13 = vld [vmem:[%s21297_s5 + $0x140] sm:$0xf] }
 0x229   : >> { %v11297_v8 = vor.u32 %v14384_v7, %v11296_v13  ;;  %v11266_v13 = vld [vmem:[%s21297_s5 + $0x108] sm:$0xf0] }
 0x22a   : >> { %3318 = vst.msk [vmem:[#allocation2 + $0x10] sm:$0xff] %vm3315_vm15, %v2882_v53 }
 0x22c   : >> { %v15978_v56 = vpop.f32.mrf.mxu1 }
 0x22f   : >> { %v2883_v12 = vpop.f32.mrf.mxu2 }
 0x230   : >> { %v2884_v48 = vadd.f32 %v2883_v12, %v2435_v18  ;;  %v14386_v18 = vld [vmem:[%s21297_s5 + $0x154] sm:$0xf0] }
 0x232   : >> { %3319 = vst.msk [vmem:[#allocation2 + $0x18] sm:$0xff] %vm3315_vm15, %v2884_v48  ;;  %v14371_v48 = vld [vmem:[%s21297_s5 + $0xe4] sm:$0xf] }
 0x234   : >> { %v15996_v28 = vpop.f32.mrf.mxu1  ;;  %11840 = vmatmul.msk.bf16.gmra.mxu2 %vm2150_vm14, %v11221_v14  ;;  %v11250_v14 = vld [vmem:[%s21297_s5 + $0xe8] sm:$0xf0] }
 0x235   : >> { %v11253_v60 = vor.u32 %v14371_v48, %v11250_v14  ;;  %v14394_v48 = vld [vmem:[%s21297_s5 + $0x194] sm:$0xf0] }
 0x237   : >> { %2517 = vmatmul.bf16.gmra.mxu1 %v11281_v15  ;;  %v2886_v47 = vpop.f32.mrf.mxu2 }
 0x238   : >> { %v2887_v23 = vadd.f32 %v2886_v47, %v2438_v30 }
 0x23a   : >> { %3320 = vst.msk [vmem:[#allocation2 + $0x20] sm:$0xff] %vm3315_vm15, %v2887_v23 }
 0x23c   : >> { %v16001_v39 = vpop.f32.mrf.mxu1 }
 0x23f   : >> { %v2888_v24 = vpop.f32.mrf.mxu2 }
 0x240   : >> { %v2889_v9 = vadd.f32 %v2888_v24, %v2440_v58 }
 0x242   : >> { %3321 = vst.msk [vmem:[#allocation2 + $0x28] sm:$0xff] %vm3315_vm15, %v2889_v9  ;;  %v11258_v9 = vld [vmem:[%s21297_s5 + $0xf8] sm:$0xf0] }
 0x244   : >> { %v16019_v19 = vpop.f32.mrf.mxu1  ;;  %11841 = vmatmul.msk.bf16.gmra.mxu2 %vm2150_vm14, %v11229_v33 }
 0x247   : >> { %2522 = vmatmul.bf16.gmra.mxu1 %v11289_v49  ;;  %v2891_v32 = vpop.f32.mrf.mxu2  ;;  %v14390_v49 = vld [vmem:[%s21297_s5 + $0x174] sm:$0xf0] }
 0x248   : >> { %v2892_v44 = vadd.f32 %v2891_v32, %v2443_v55  ;;  %v11320_v55 = vld [vmem:[%s21297_s5 + $0x170] sm:$0xf] }
 0x249   : >> { %v11321_v35 = vor.u32 %v14390_v49, %v11320_v55 }
 0x24a   : >> { %3322 = vst.msk [vmem:[#allocation2 + $0x30] sm:$0xff] %vm3315_vm15, %v2892_v44 }
 0x24c   : >> { %v16023_v4 = vpop.f32.mrf.mxu1 }
 0x24f   : >> { %v2893_v38 = vpop.f32.mrf.mxu2 }
 0x250   : >> { %v2894_v34 = vadd.f32 %v2893_v38, %v2445_v5 }
 0x252   : >> { %3323 = vst.msk [vmem:[#allocation2 + $0x38] sm:$0xff] %vm3315_vm15, %v2894_v34 }
 0x254   : >> { %v16038_v45 = vpop.f32.mrf.mxu1  ;;  %11842 = vmatmul.msk.bf16.gmra.mxu2 %vm2150_vm14, %v11237_v41  ;;  %v14375_v41 = vld [vmem:[%s21297_s5 + $0x104] sm:$0xf] }
 0x257   : >> { %2527 = vmatmul.bf16.gmra.mxu1 %v11297_v8  ;;  %v2896_v29 = vpop.f32.mrf.mxu2 }
 0x258   : >> { %v2897_v16 = vadd.f32 %v2896_v29, %v15873_v62  ;;  %v11304_v62 = vld [vmem:[%s21297_s5 + $0x150] sm:$0xf] }
 0x259   : >> { %v3504_v63 = vld [vmem:[#allocation2 + $0x38] sm:$0xff]  ;;  %v11305_v42 = vor.u32 %v14386_v18, %v11304_v62  ;;  %v16133_v62 = vpop.f32.mrf.mxu3 }
 0x25a   : >> { %3324 = vst.msk [vmem:[#allocation2 + $0x40] sm:$0xff] %vm3315_vm15, %v2897_v16  ;;  %v11269_v16 = vor.u32 %v14375_v41, %v11266_v13  ;;  %v3496_v41 = vld [vmem:[#allocation2 + $0x28] sm:$0xff] }
 0x25c   : >> { %v16043_v21 = vpop.f32.mrf.mxu1 }
 0x25f   : >> { %v2898_v2 = vpop.f32.mrf.mxu2 }
 0x260   : >> { %v2899_v43 = vadd.f32 %v2898_v2, %v15876_v51 }
 0x261   : >> { %v3505_v53 = vld [vmem:[#allocation2 + $0x40] sm:$0xff]  ;;  %v16151_v14 = vpop.f32.mrf.mxu3 }
 0x262   : >> { %3325 = vst.msk [vmem:[#allocation2 + $0x48] sm:$0xff] %vm3315_vm15, %v2899_v43  ;;  %v3511_v17 = vpack.c.bf16 %v3505_v53, %v3504_v63  ;;  %v14377_v63 = vld [vmem:[%s21297_s5 + $0x114] sm:$0xf]  ;;  %v11274_v53 = vld [vmem:[%s21297_s5 + $0x118] sm:$0xf0] }
 0x264   : >> { %v16059_v12 = vpop.f32.mrf.mxu1  ;;  %11843 = vmatmul.msk.bf16.gmra.mxu2 %vm2150_vm14, %v11245_v3  ;;  %11924 = vmatmul.msk.bf16.vlgmr.msrb.gmra.mxu3 %vm3315_vm15, %v3511_v17 }
 0x267   : >> { %2532 = vmatmul.bf16.gmra.mxu1 %v11305_v42  ;;  %v2901_v51 = vpop.f32.mrf.mxu2  ;;  %v3492_v42 = vld [vmem:[#allocation2 + $0x8] sm:$0xff] }
 0x268   : >> { %v2902_v30 = vadd.f32 %v2901_v51, %v15890_v6  ;;  %v11312_v6 = vld [vmem:[%s21297_s5 + $0x160] sm:$0xf] }
 0x269   : >> { %v3506_v15 = vld [vmem:[#allocation2 + $0x48] sm:$0xff]  ;;  %v11313_v58 = vor.u32 %v14388_v25, %v11312_v6 }
 0x26a   : >> { %3326 = vst.msk [vmem:[#allocation2 + $0x50] sm:$0xff] %vm3315_vm15, %v2902_v30  ;;  %v11277_v30 = vor.u32 %v14377_v63, %v11274_v53  ;;  %v14383_v63 = vld [vmem:[%s21297_s5 + $0x144] sm:$0xf]  ;;  %v11298_v53 = vld [vmem:[%s21297_s5 + $0x148] sm:$0xf0] }
 0x26c   : >> { %v16065_v57 = vpop.f32.mrf.mxu1 }
 0x26f   : >> { %v2903_v20 = vpop.f32.mrf.mxu2 }
 0x270   : >> { %v2904_v1 = vadd.f32 %v2903_v20, %v15893_v31  ;;  %v3491_v20 = vld [vmem:[#allocation2] sm:$0xff] }
 0x271   : >> { %v3507_v47 = vld [vmem:[#allocation2 + $0x50] sm:$0xff] }
 0x272   : >> { %3327 = vst.msk [vmem:[#allocation2 + $0x58] sm:$0xff] %vm3315_vm15, %v2904_v1  ;;  %v3512_v23 = vpack.c.bf16 %v3507_v47, %v3506_v15  ;;  %v3498_v1 = vpack.c.bf16 %v3492_v42, %v3491_v20  ;;  %v16159_v15 = vpop.f32.mrf.mxu3  ;;  %v3497_v42 = vld [vmem:[#allocation2 + $0x30] sm:$0xff] }
 0x274   : >> { %v16081_v11 = vpop.f32.mrf.mxu1  ;;  %11844 = vmatmul.msk.bf16.gmra.mxu2 %vm2150_vm14, %v11253_v60  ;;  %11925 = vmatmul.msk.bf16.gmra.mxu3 %vm3315_vm15, %v3512_v23  ;;  %v14379_v23 = vld [vmem:[%s21297_s5 + $0x124] sm:$0xf] }
 0x277   : >> { %2537 = vmatmul.bf16.gmra.mxu1 %v11313_v58  ;;  %v2906_v31 = vpop.f32.mrf.mxu2  ;;  %v11282_v58 = vld [vmem:[%s21297_s5 + $0x128] sm:$0xf0] }
 0x278   : >> { %v2907_v27 = vadd.f32 %v2906_v31, %v15907_v61  ;;  %v11261_v61 = vor.u32 %v14373_v59, %v11258_v9  ;;  %v11285_v9 = vor.u32 %v14379_v23, %v11282_v58  ;;  %v11306_v23 = vld [vmem:[%s21297_s5 + $0x158] sm:$0xf0] }
 0x279   : >> { %v3508_v32 = vld [vmem:[#allocation2 + $0x58] sm:$0xff] }
 0x27a   : >> { %3328 = vst.msk [vmem:[#allocation2 + $0x60] sm:$0xff] %vm3315_vm15, %v2907_v27  ;;  %v3494_v27 = vld [vmem:[#allocation2 + $0x18] sm:$0xff]  ;;  %v16177_v46 = vpop.f32.mrf.mxu3 }
 0x27c   : >> { %v16087_v24 = vpop.f32.mrf.mxu1 }
 0x27f   : >> { %v2908_v33 = vpop.f32.mrf.mxu2 }
 0x280   : >> { %v2909_v26 = vadd.f32 %v2908_v33, %v15910_v0  ;;  %v14396_v33 = vld [vmem:[%s21297_s5 + $0x1a4] sm:$0xf0] }
 0x281   : >> { %v3509_v44 = vld [vmem:[#allocation2 + $0x60] sm:$0xff] }
 0x282   : >> { %3329 = vst.msk [vmem:[#allocation2 + $0x68] sm:$0xff] %vm3315_vm15, %v2909_v26  ;;  %v3513_v5 = vpack.c.bf16 %v3509_v44, %v3508_v32  ;;  %v3493_v26 = vld [vmem:[#allocation2 + $0x10] sm:$0xff]  ;;  %v16185_v44 = vpop.f32.mrf.mxu3 }
 0x284   : >> { %v16106_v36 = vpop.f32.mrf.mxu1  ;;  %11845 = vmatmul.msk.bf16.gmra.mxu2 %vm2150_vm14, %v11261_v61  ;;  %11926 = vmatmul.msk.bf16.gmra.mxu3 %vm3315_vm15, %v3513_v5  ;;  %v3499_v61 = vpack.c.bf16 %v3494_v27, %v3493_v26 }
 0x287   : >> { %2542 = vmatmul.bf16.gmra.mxu1 %v11321_v35  ;;  %v2911_v0 = vpop.f32.mrf.mxu2  ;;  %v14381_v35 = vld [vmem:[%s21297_s5 + $0x134] sm:$0xf] }
 0x288   : >> { %v2912_v38 = vadd.f32 %v2911_v0, %v15924_v37  ;;  %v11328_v37 = vld [vmem:[%s21297_s5 + $0x180] sm:$0xf]  ;;  %v11290_v0 = vld [vmem:[%s21297_s5 + $0x138] sm:$0xf0] }
 0x289   : >> { %v3510_v8 = vld [vmem:[#allocation2 + $0x68] sm:$0xff]  ;;  %v11329_v2 = vor.u32 %v14392_v22, %v11328_v37  ;;  %v3495_v37 = vld [vmem:[#allocation2 + $0x20] sm:$0xff] }
 0x28a   : >> { %3330 = vst.msk [vmem:[#allocation2 + $0x70] sm:$0xff] %vm3315_vm15, %v2912_v38  ;;  %v3514_v10 = vpack.c.bf16 %v3510_v8, %v3510_v8  ;;  %v14398_v8 = vld [vmem:[%s21297_s5 + $0x1b4] sm:$0xf0]  ;;  %v3500_v22 = vpack.c.bf16 %v3496_v41, %v3495_v37 }
 0x28c   : >> { %v16112_v34 = vpop.f32.mrf.mxu1 }
 0x28f   : >> { %v2913_v7 = vpop.f32.mrf.mxu2 }
 0x290   : >> { %v2914_v29 = vadd.f32 %v2913_v7, %v15927_v52  ;;  %v11293_v7 = vor.u32 %v14381_v35, %v11290_v0  ;;  %v14387_v0 = vld [vmem:[%s21297_s5 + $0x164] sm:$0xf] }
 0x292   : >> { %3331 = vst.msk [vmem:[#allocation2 + $0x78] sm:$0xff] %vm3315_vm15, %v2914_v29  ;;  %v3313_v29 = vpop.f32.mrf.mxu3 }
 0x293   : >> { %v14404_v29 = vld [vmem:[%s21297_s5 + $0x1e4] sm:$0xf0] }
 0x294   : >> { %v16128_v43 = vpop.f32.mrf.mxu1  ;;  %11846 = vmatmul.msk.bf16.gmra.mxu2 %vm2150_vm14, %v11269_v16  ;;  %11927 = vmatmul.msk.bf16.gmra.mxu3 %vm3315_vm15, %v3514_v10  ;;  %v14519_v16 = vld [vmem:[%s21298_s6 + $0x10] sm:$0xff] }
 0x295   : >> { %3649 = vmatpush.bf16.msrb.mxu3 %v14519_v16 }
 0x297   : >> { %2547 = vmatmul.bf16.gmra.mxu1 %v11329_v2  ;;  %v2916_v52 = vpop.f32.mrf.mxu2 }
 0x298   : >> { %v2917_v3 = vadd.f32 %v2916_v52, %v15947_v50  ;;  %v11336_v50 = vld [vmem:[%s21297_s5 + $0x190] sm:$0xf] }
 0x299   : >> { %v11337_v60 = vor.u32 %v14394_v48, %v11336_v50  ;;  %v14400_v50 = vld [vmem:[%s21297_s5 + $0x1c4] sm:$0xf0]  ;;  %v3501_v48 = vpack.c.bf16 %v3497_v42, %v3497_v42 }
 0x29a   : >> { %3332 = vst.msk [vmem:[#allocation2 + $0x80] sm:$0xff] %vm3315_vm15, %v2917_v3 }
 0x29c   : >> { %v16136_v18 = vpop.f32.mrf.mxu1 }
 0x29f   : >> { %v2918_v17 = vpop.f32.mrf.mxu2 }
 0x2a0   : >> { %v2919_v51 = vadd.f32 %v2918_v17, %v15952_v40 }
 0x2a1   : >> { %v3612_v16 = vld [vmem:[#allocation2 + $0x80] sm:$0xff] }
 0x2a2   : >> { %3333 = vst.msk [vmem:[#allocation2 + $0x88] sm:$0xff] %vm3315_vm15, %v2919_v51 }
 0x2a4   : >> { %v16154_v6 = vpop.f32.mrf.mxu1  ;;  %11847 = vmatmul.msk.bf16.gmra.mxu2 %vm2150_vm14, %v11277_v30  ;;  %11932 = vmatmul.msk.bf16.vlgmr.msra.gmra.mxu3 %vm3315_vm15, %v3498_v1  ;;  %v11301_v30 = vor.u32 %v14383_v63, %v11298_v53  ;;  %v14389_v53 = vld [vmem:[%s21297_s5 + $0x174] sm:$0xf] }
 0x2a7   : >> { %2552 = vmatmul.bf16.gmra.mxu1 %v11337_v60  ;;  %v2921_v40 = vpop.f32.mrf.mxu2 }
 0x2a8   : >> { %v2922_v25 = vadd.f32 %v2921_v40, %v15973_v54  ;;  %v11344_v54 = vld [vmem:[%s21297_s5 + $0x1a0] sm:$0xf] }
 0x2a9   : >> { %v11345_v55 = vor.u32 %v14396_v33, %v11344_v54  ;;  %v3610_v54 = vld [vmem:[#allocation2 + $0x70] sm:$0xff] }
 0x2aa   : >> { %3334 = vst.msk [vmem:[#allocation2 + $0x90] sm:$0xff] %vm3315_vm15, %v2922_v25  ;;  %v14385_v25 = vld [vmem:[%s21297_s5 + $0x154] sm:$0xf] }
 0x2ac   : >> { %v16162_v47 = vpop.f32.mrf.mxu1 }
 0x2af   : >> { %v2923_v31 = vpop.f32.mrf.mxu2 }
 0x2b0   : >> { %v2924_v59 = vadd.f32 %v2923_v31, %v15978_v56  ;;  %v3611_v31 = vld [vmem:[#allocation2 + $0x78] sm:$0xff] }
 0x2b1   : >> { %v3617_v33 = vpack.c.bf16 %v3611_v31, %v3610_v54  ;;  %v14391_v54 = vld [vmem:[%s21297_s5 + $0x184] sm:$0xf] }
 0x2b2   : >> { %3335 = vst.msk [vmem:[#allocation2 + $0x98] sm:$0xff] %vm3315_vm15, %v2924_v59  ;;  %v11309_v59 = vor.u32 %v14385_v25, %v11306_v23 }
 0x2b4   : >> { %v16180_v49 = vpop.f32.mrf.mxu1  ;;  %11848 = vmatmul.msk.bf16.gmra.mxu2 %vm2150_vm14, %v11285_v9  ;;  %11933 = vmatmul.msk.bf16.gmra.mxu3 %vm3315_vm15, %v3499_v61  ;;  %v14402_v9 = vld [vmem:[%s21297_s5 + $0x1d4] sm:$0xf0] }
 0x2b7   : >> { %2557 = vmatmul.bf16.gmra.mxu1 %v11345_v55  ;;  %v2926_v56 = vpop.f32.mrf.mxu2 }
 0x2b8   : >> { %v2927_v32 = vadd.f32 %v2926_v56, %v15996_v28  ;;  %v11352_v28 = vld [vmem:[%s21297_s5 + $0x1b0] sm:$0xf] }
 0x2ba   : >> { %3336 = vst.msk [vmem:[#allocation2 + $0xa0] sm:$0xff] %vm3315_vm15, %v2927_v32  ;;  %v14521_v32 = vld [vmem:[%s21298_s6 + $0x20] sm:$0xff] }
 0x2bb   : >> { %3783 = vmatpush.bf16.msra.mxu0 %v14521_v32 }
 0x2bc   : >> { %v16188_v5 = vpop.f32.mrf.mxu1 }
 0x2bf   : >> { %v2928_v38 = vpop.f32.mrf.mxu2 }
 0x2c0   : >> { %v2929_v13 = vadd.f32 %v2928_v38, %v16001_v39  ;;  %v11353_v39 = vor.u32 %v14398_v8, %v11352_v28  ;;  %v11314_v38 = vld [vmem:[%s21297_s5 + $0x168] sm:$0xf0]  ;;  %v11376_v8 = vld [vmem:[%s21297_s5 + $0x1e0] sm:$0xf] }
 0x2c1   : >> { %v11317_v28 = vor.u32 %v14387_v0, %v11314_v38  ;;  %v11392_v0 = vld [vmem:[%s21297_s5 + $0x200] sm:$0xf]  ;;  %v14408_v38 = vld [vmem:[%s21297_s5 + $0x204] sm:$0xf0] }
 0x2c2   : >> { %3337 = vst.msk [vmem:[#allocation2 + $0xa8] sm:$0xff] %vm3315_vm15, %v2929_v13 }
 0x2c4   : >> { %v16207_v10 = vpop.f32.mrf.mxu1  ;;  %11849 = vmatmul.msk.bf16.gmra.mxu2 %vm2150_vm14, %v11293_v7  ;;  %11934 = vmatmul.msk.bf16.gmra.mxu3 %vm3315_vm15, %v3500_v22  ;;  %v11377_v22 = vor.u32 %v14404_v29, %v11376_v8 }
 0x2c7   : >> { %2562 = vmatmul.bf16.gmra.mxu1 %v11353_v39  ;;  %v2931_v2 = vpop.f32.mrf.mxu2 }
 0x2c8   : >> { %v2932_v52 = vadd.f32 %v2931_v2, %v16019_v19  ;;  %v11360_v19 = vld [vmem:[%s21297_s5 + $0x1c0] sm:$0xf] }
 0x2c9   : >> { %v11361_v20 = vor.u32 %v14400_v50, %v11360_v19 }
 0x2ca   : >> { %3338 = vst.msk [vmem:[#allocation2 + $0xb0] sm:$0xff] %vm3315_vm15, %v2932_v52 }
 0x2cc   : >> { %v16213_v3 = vpop.f32.mrf.mxu1 }
 0x2cf   : >> { %v2933_v17 = vpop.f32.mrf.mxu2 }
 0x2d0   : >> { %v2934_v51 = vadd.f32 %v2933_v17, %v16023_v4  ;;  %v11322_v17 = vld [vmem:[%s21297_s5 + $0x178] sm:$0xf0] }
 0x2d1   : >> { %v11325_v50 = vor.u32 %v14389_v53, %v11322_v17 }
 0x2d2   : >> { %3339 = vst.msk [vmem:[#allocation2 + $0xb8] sm:$0xff] %vm3315_vm15, %v2934_v51 }
 0x2d4   : >> { %v16229_v1 = vpop.f32.mrf.mxu1  ;;  %11850 = vmatmul.msk.bf16.gmra.mxu2 %vm2150_vm14, %v11301_v30  ;;  %11935 = vmatmul.msk.bf16.gmra.mxu3 %vm3315_vm15, %v3501_v48  ;;  %v3615_v30 = vld [vmem:[#allocation2 + $0x98] sm:$0xff] }
 0x2d5   : >> { %v14406_v48 = vld [vmem:[%s21297_s5 + $0x1f4] sm:$0xf0] }
 0x2d7   : >> { %2567 = vmatmul.bf16.gmra.mxu1 %v11361_v20  ;;  %v2936_v4 = vpop.f32.mrf.mxu2  ;;  %v14520_v20 = vld [vmem:[%s21298_s6 + $0x18] sm:$0xff] }
 0x2d8   : >> { %v2937_v60 = vadd.f32 %v2936_v4, %v16038_v45  ;;  %v11368_v45 = vld [vmem:[%s21297_s5 + $0x1d0] sm:$0xf]  ;;  %3716 = vmatpush.bf16.msra.mxu3 %v14520_v20 }
 0x2d9   : >> { %v11369_v26 = vor.u32 %v14402_v9, %v11368_v45  ;;  %v3614_v4 = vld [vmem:[#allocation2 + $0x90] sm:$0xff] }
 0x2da   : >> { %3340 = vst.msk [vmem:[#allocation2 + $0xc0] sm:$0xff] %vm3315_vm15, %v2937_v60  ;;  %v3619_v60 = vpack.c.bf16 %v3615_v30, %v3614_v4 }
 0x2dc   : >> { %v16235_v40 = vpop.f32.mrf.mxu1 }
 0x2df   : >> { %v2938_v58 = vpop.f32.mrf.mxu2 }
 0x2e0   : >> { %v2939_v27 = vadd.f32 %v2938_v58, %v16043_v21 }
 0x2e2   : >> { %3341 = vst.msk [vmem:[#allocation2 + $0xc8] sm:$0xff] %vm3315_vm15, %v2939_v27 }
 0x2e4   : >> { %v16251_v61 = vpop.f32.mrf.mxu1  ;;  %11851 = vmatmul.msk.bf16.gmra.mxu2 %vm2150_vm14, %v11309_v59  ;;  %11942 = vmatmul.msk.bf16.vlgmr.msrb.gmra.mxu3 %vm3315_vm15, %v3617_v33  ;;  %v11330_v33 = vld [vmem:[%s21297_s5 + $0x188] sm:$0xf0] }
 0x2e5   : >> { %v11333_v32 = vor.u32 %v14391_v54, %v11330_v33  ;;  %v14395_v54 = vld [vmem:[%s21297_s5 + $0x1a4] sm:$0xf] }
 0x2e7   : >> { %2572 = vmatmul.bf16.gmra.mxu1 %v11369_v26  ;;  %v2941_v21 = vpop.f32.mrf.mxu2  ;;  %v16255_v55 = vpop.f32.mrf.mxu3 }
 0x2e8   : >> { %v2942_v56 = vadd.f32 %v2941_v21, %v16059_v12  ;;  %v3613_v12 = vld [vmem:[#allocation2 + $0x88] sm:$0xff] }
 0x2e9   : >> { %v3618_v37 = vpack.c.bf16 %v3613_v12, %v3612_v16  ;;  %v11393_v12 = vor.u32 %v14408_v38, %v11392_v0  ;;  %v11408_v0 = vld [vmem:[%s21297_s5 + $0x220] sm:$0xf]  ;;  %v14412_v38 = vld [vmem:[%s21297_s5 + $0x224] sm:$0xf0] }
 0x2ea   : >> { %3342 = vst.msk [vmem:[#allocation2 + $0xd0] sm:$0xff] %vm3315_vm15, %v2942_v56 }
 0x2ec   : >> { %v16262_v35 = vpop.f32.mrf.mxu1 }
 0x2ef   : >> { %v2943_v41 = vpop.f32.mrf.mxu2  ;;  %v16270_v13 = vpop.f32.mrf.mxu3 }
 0x2f0   : >> { %v2944_v7 = vadd.f32 %v2943_v41, %v16065_v57 }
 0x2f2   : >> { %3343 = vst.msk [vmem:[#allocation2 + $0xd8] sm:$0xff] %vm3315_vm15, %v2944_v7 }
 0x2f4   : >> { %v16280_v39 = vpop.f32.mrf.mxu1  ;;  %11852 = vmatmul.msk.bf16.gmra.mxu2 %vm2150_vm14, %v11317_v28  ;;  %11943 = vmatmul.msk.bf16.gmra.mxu3 %vm3315_vm15, %v3618_v37 }
 0x2f7   : >> { %2577 = vmatmul.bf16.gmra.mxu1 %v11377_v22  ;;  %v2946_v57 = vpop.f32.mrf.mxu2  ;;  %v16284_v2 = vpop.f32.mrf.mxu3 }
 0x2f8   : >> { %v2947_v52 = vadd.f32 %v2946_v57, %v16081_v11  ;;  %v11384_v11 = vld [vmem:[%s21297_s5 + $0x1f0] sm:$0xf]  ;;  %v14393_v57 = vld [vmem:[%s21297_s5 + $0x194] sm:$0xf] }
 0x2f9   : >> { %v11385_v25 = vor.u32 %v14406_v48, %v11384_v11  ;;  %v3677_v11 = vld [vmem:[#allocation2 + $0xa8] sm:$0xff] }
 0x2fa   : >> { %3344 = vst.msk [vmem:[#allocation2 + $0xe0] sm:$0xff] %vm3315_vm15, %v2947_v52  ;;  %v11338_v52 = vld [vmem:[%s21297_s5 + $0x198] sm:$0xf0] }
 0x2fb   : >> { %v11341_v30 = vor.u32 %v14393_v57, %v11338_v52 }
 0x2fc   : >> { %v16288_v63 = vpop.f32.mrf.mxu1 }
 0x2ff   : >> { %v2948_v42 = vpop.f32.mrf.mxu2  ;;  %v16296_v51 = vpop.f32.mrf.mxu3 }
 0x300   : >> { %v2949_v19 = vadd.f32 %v2948_v42, %v16087_v24 }
 0x301   : >> { %v3744_v27 = vld [vmem:[#allocation2 + $0xe0] sm:$0xff] }
 0x302   : >> { %3345 = vst.msk [vmem:[#allocation2 + $0xe8] sm:$0xff] %vm3315_vm15, %v2949_v19  ;;  %v11400_v19 = vld [vmem:[%s21297_s5 + $0x210] sm:$0xf] }
 0x304   : >> { %v16309_v24 = vpop.f32.mrf.mxu1  ;;  %11853 = vmatmul.msk.bf16.gmra.mxu2 %vm2150_vm14, %v11325_v50  ;;  %11944 = vmatmul.msk.bf16.gmra.mxu3 %vm3315_vm15, %v3619_v60  ;;  %v14410_v50 = vld [vmem:[%s21297_s5 + $0x214] sm:$0xf0] }
 0x305   : >> { %v11401_v20 = vor.u32 %v14410_v50, %v11400_v19  ;;  %v11416_v50 = vld [vmem:[%s21297_s5 + $0x230] sm:$0xf] }
 0x307   : >> { %2582 = vmatmul.bf16.gmra.mxu1 %v11385_v25  ;;  %v2951_v23 = vpop.f32.mrf.mxu2  ;;  %v16313_v58 = vpop.f32.mrf.mxu3 }
 0x308   : >> { %v2952_v31 = vadd.f32 %v2951_v23, %v16106_v36  ;;  %v3616_v36 = vld [vmem:[#allocation2 + $0xa0] sm:$0xff] }
 0x309   : >> { %v3745_v59 = vld [vmem:[#allocation2 + $0xe8] sm:$0xff]  ;;  %v3620_v41 = vpack.c.bf16 %v3616_v36, %v3616_v36 }
 0x30a   : >> { %3346 = vst.msk [vmem:[#allocation2 + $0xf0] sm:$0xff] %vm3315_vm15, %v2952_v31  ;;  %v3751_v45 = vpack.c.bf16 %v3745_v59, %v3744_v27 }
 0x30c   : >> { %v16317_v9 = vpop.f32.mrf.mxu1  ;;  %11962 = vmatmul.msk.bf16.vlgmr.msra.gmra.mxu0 %vm3315_vm15, %v3751_v45 }
 0x30f   : >> { %v2953_v26 = vpop.f32.mrf.mxu2  ;;  %v16326_v21 = vpop.f32.mrf.mxu3 }
 0x310   : >> { %v2954_v56 = vadd.f32 %v2953_v26, %v16112_v34  ;;  %v3680_v26 = vld [vmem:[#allocation2 + $0xc0] sm:$0xff] }
 0x311   : >> { %v3746_v29 = vld [vmem:[#allocation2 + $0xf0] sm:$0xff] }
 0x312   : >> { %3347 = vst.msk [vmem:[#allocation2 + $0xf8] sm:$0xff] %vm3315_vm15, %v2954_v56 }
 0x314   : >> { %v16336_v7 = vpop.f32.mrf.mxu1  ;;  %11854 = vmatmul.msk.bf16.gmra.mxu2 %vm2150_vm14, %v11333_v32  ;;  %11945 = vmatmul.msk.bf16.gmra.mxu3 %vm3315_vm15, %v3620_v41  ;;  %v3679_v41 = vld [vmem:[#allocation2 + $0xb8] sm:$0xff] }
 0x317   : >> { %2587 = vmatmul.bf16.gmra.mxu1 %v11393_v12  ;;  %v2956_v34 = vpop.f32.mrf.mxu2  ;;  %v16340_v28 = vpop.f32.mrf.mxu3  ;;  %v3685_v12 = vpack.c.bf16 %v3680_v26, %v3679_v41  ;;  %v3683_v26 = vld [vmem:[#allocation2 + $0xd8] sm:$0xff] }
 0x318   : >> { %v2957_v8 = vadd.f32 %v2956_v34, %v16128_v43  ;;  %v3678_v43 = vld [vmem:[#allocation2 + $0xb0] sm:$0xff]  ;;  %v11409_v34 = vor.u32 %v14412_v38, %v11408_v0  ;;  %v14416_v0 = vld [vmem:[%s21297_s5 + $0x244] sm:$0xf0]  ;;  %v3687_v38 = vpack.c.bf16 %v3683_v26, %v3683_v26 }
 0x319   : >> { %v3747_v16 = vld [vmem:[#allocation2 + $0xf8] sm:$0xff]  ;;  %v3684_v48 = vpack.c.bf16 %v3678_v43, %v3677_v11 }
 0x31a   : >> { %3348 = vst.msk [vmem:[#allocation2 + $0x100] sm:$0xff] %vm3315_vm15, %v2957_v8  ;;  %v3752_v37 = vpack.c.bf16 %v3747_v16, %v3746_v29  ;;  %v14414_v11 = vld [vmem:[%s21297_s5 + $0x234] sm:$0xf0] }
 0x31c   : >> { %v16344_v22 = vpop.f32.mrf.mxu1  ;;  %11963 = vmatmul.msk.bf16.gmra.mxu0 %vm3315_vm15, %v3752_v37 }
 0x31f   : >> { %v2958_v53 = vpop.f32.mrf.mxu2  ;;  %v3562_v17 = vpop.f32.mrf.mxu3 }
 0x320   : >> { %v2959_v42 = vadd.f32 %v2958_v53, %v16136_v18  ;;  %v14397_v53 = vld [vmem:[%s21297_s5 + $0x1b4] sm:$0xf]  ;;  %v11354_v17 = vld [vmem:[%s21297_s5 + $0x1b8] sm:$0xf0] }
 0x321   : >> { %v3748_v31 = vld [vmem:[#allocation2 + $0x100] sm:$0xff]  ;;  %v11357_v19 = vor.u32 %v14397_v53, %v11354_v17 }
 0x322   : >> { %3349 = vst.msk [vmem:[#allocation2 + $0x108] sm:$0xff] %vm3315_vm15, %v2959_v42  ;;  %v3682_v42 = vld [vmem:[#allocation2 + $0xd0] sm:$0xff] }
 0x324   : >> { %v16361_v4 = vpop.f32.mrf.mxu1  ;;  %11855 = vmatmul.msk.bf16.gmra.mxu2 %vm2150_vm14, %v11341_v30  ;;  %11952 = vmatmul.msk.bf16.vlgmr.msra.gmra.mxu3 %vm3315_vm15, %v3684_v48  ;;  %v14522_v48 = vld [vmem:[%s21298_s6 + $0x28] sm:$0xff] }
 0x325   : >> { %3850 = vmatpush.bf16.msrb.mxu3 %v14522_v48 }
 0x327   : >> { %2592 = vmatmul.bf16.gmra.mxu1 %v11401_v20  ;;  %v2961_v18 = vpop.f32.mrf.mxu2  ;;  %v3591_v60 = vpop.f32.mrf.mxu3  ;;  %v3681_v20 = vld [vmem:[#allocation2 + $0xc8] sm:$0xff] }
 0x328   : >> { %v2962_v25 = vadd.f32 %v2961_v18, %v16154_v6  ;;  %v16367_v23 = vadd.f32 %v3591_v60, %v16255_v55  ;;  %v11346_v6 = vld [vmem:[%s21297_s5 + $0x1a8] sm:$0xf0] }
 0x329   : >> { %v3749_v27 = vld [vmem:[#allocation2 + $0x108] sm:$0xff]  ;;  %v11349_v32 = vor.u32 %v14395_v54, %v11346_v6  ;;  %v14399_v54 = vld [vmem:[%s21297_s5 + $0x1c4] sm:$0xf] }
 0x32a   : >> { %3350 = vst.msk [vmem:[#allocation2 + $0x110] sm:$0xff] %vm3315_vm15, %v2962_v25  ;;  %v3753_v59 = vpack.c.bf16 %v3749_v27, %v3748_v31  ;;  %v11362_v6 = vld [vmem:[%s21297_s5 + $0x1c8] sm:$0xf0] }
 0x32c   : >> { %v16370_v45 = vpop.f32.mrf.mxu1  ;;  %11964 = vmatmul.msk.bf16.gmra.mxu0 %vm3315_vm15, %v3753_v59 }
 0x32f   : >> { %v2963_v33 = vpop.f32.mrf.mxu2  ;;  %v3593_v55 = vpop.f32.mrf.mxu3 }
 0x330   : >> { %v2964_v36 = vadd.f32 %v2963_v33, %v16162_v47  ;;  %v16381_v56 = vadd.f32 %v3593_v55, %v16270_v13 }
 0x331   : >> { %v3750_v29 = vld [vmem:[#allocation2 + $0x110] sm:$0xff] }
 0x332   : >> { %3351 = vst.msk [vmem:[#allocation2 + $0x118] sm:$0xff] %vm3315_vm15, %v2964_v36  ;;  %v3754_v57 = vpack.c.bf16 %v3750_v29, %v3750_v29  ;;  %v11365_v36 = vor.u32 %v14399_v54, %v11362_v6 }
 0x334   : >> { %v16390_v8 = vpop.f32.mrf.mxu1  ;;  %11856 = vmatmul.msk.bf16.gmra.mxu2 %vm2150_vm14, %v11349_v32  ;;  %11953 = vmatmul.msk.bf16.gmra.mxu3 %vm3315_vm15, %v3685_v12  ;;  %v11424_v32 = vld [vmem:[%s21297_s5 + $0x240] sm:$0xf] }
 0x335   : >> { %v11425_v41 = vor.u32 %v14416_v0, %v11424_v32 }
 0x337   : >> { %2597 = vmatmul.bf16.gmra.mxu1 %v11409_v34  ;;  %v2966_v47 = vpop.f32.mrf.mxu2  ;;  %v3596_v13 = vpop.f32.mrf.mxu3 }
 0x338   : >> { %v2967_v16 = vadd.f32 %v2966_v47, %v16180_v49  ;;  %v16396_v37 = vadd.f32 %v3596_v13, %v16284_v2  ;;  %v14523_v13 = vld [vmem:[%s21298_s6 + $0x30] sm:$0xff] }
 0x339   : >> { %3917 = vmatpush.bf16.msrb.mxu0 %v14523_v13 }
 0x33a   : >> { %3352 = vst.msk [vmem:[#allocation2 + $0x120] sm:$0xff] %vm3315_vm15, %v2967_v16  ;;  %v14401_v16 = vld [vmem:[%s21297_s5 + $0x1d4] sm:$0xf] }
 0x33c   : >> { %v16399_v52 = vpop.f32.mrf.mxu1  ;;  %11965 = vmatmul.msk.bf16.gmra.mxu0 %vm3315_vm15, %v3754_v57 }
 0x33f   : >> { %v2968_v43 = vpop.f32.mrf.mxu2  ;;  %v3598_v49 = vpop.f32.mrf.mxu3 }
 0x340   : >> { %v2969_v2 = vadd.f32 %v2968_v43, %v16188_v5  ;;  %v16410_v30 = vadd.f32 %v3598_v49, %v16296_v51  ;;  %v3686_v5 = vpack.c.bf16 %v3682_v42, %v3681_v20  ;;  %v11417_v51 = vor.u32 %v14414_v11, %v11416_v50  ;;  %v11432_v49 = vld [vmem:[%s21297_s5 + $0x250] sm:$0xf]  ;;  %v14418_v42 = vld [vmem:[%s21297_s5 + $0x254] sm:$0xf0] }
 0x341   : >> { %v3812_v53 = vld [vmem:[#allocation2 + $0x120] sm:$0xff]  ;;  %v11433_v50 = vor.u32 %v14418_v42, %v11432_v49 }
 0x342   : >> { %3353 = vst.msk [vmem:[#allocation2 + $0x128] sm:$0xff] %vm3315_vm15, %v2969_v2  ;;  %v3811_v2 = vld [vmem:[#allocation2 + $0x118] sm:$0xff] }
 0x344   : >> { %v16422_v18 = vpop.f32.mrf.mxu1  ;;  %11857 = vmatmul.msk.bf16.gmra.mxu2 %vm2150_vm14, %v11357_v19  ;;  %11954 = vmatmul.msk.bf16.gmra.mxu3 %vm3315_vm15, %v3686_v5  ;;  %v3818_v19 = vpack.c.bf16 %v3812_v53, %v3811_v2 }
 0x347   : >> { %2602 = vmatmul.bf16.gmra.mxu1 %v11417_v51  ;;  %v2971_v60 = vpop.f32.mrf.mxu2  ;;  %v3601_v25 = vpop.f32.mrf.mxu3 }
 0x348   : >> { %v2972_v31 = vadd.f32 %v2971_v60, %v16207_v10  ;;  %v16428_v27 = vadd.f32 %v3601_v25, %v16313_v58  ;;  %v14403_v60 = vld [vmem:[%s21297_s5 + $0x1e4] sm:$0xf]  ;;  %v11378_v25 = vld [vmem:[%s21297_s5 + $0x1e8] sm:$0xf0] }
 0x349   : >> { %v3813_v26 = vld [vmem:[#allocation2 + $0x128] sm:$0xff] }
 0x34a   : >> { %3354 = vst.msk [vmem:[#allocation2 + $0x130] sm:$0xff] %vm3315_vm15, %v2972_v31 }
 0x34c   : >> { %v16431_v59 = vpop.f32.mrf.mxu1 }
 0x34f   : >> { %v2973_v33 = vpop.f32.mrf.mxu2  ;;  %v3603_v55 = vpop.f32.mrf.mxu3 }
 0x350   : >> { %v2974_v10 = vadd.f32 %v2973_v33, %v16213_v3  ;;  %v16441_v58 = vadd.f32 %v3603_v55, %v16326_v21  ;;  %v11440_v33 = vld [vmem:[%s21297_s5 + $0x260] sm:$0xf]  ;;  %v14420_v55 = vld [vmem:[%s21297_s5 + $0x264] sm:$0xf0] }
 0x351   : >> { %v3814_v6 = vld [vmem:[#allocation2 + $0x130] sm:$0xff] }
 0x352   : >> { %21385 = vst [vmem:[#allocation11_spill] sm:$0xff] %v16441_v58 }
 0x353   : >> { %3355 = vst.msk [vmem:[#allocation2 + $0x138] sm:$0xff] %vm3315_vm15, %v2974_v10  ;;  %v3819_v10 = vpack.c.bf16 %v3814_v6, %v3813_v26 }
 0x354   : >> { %v16450_v12 = vpop.f32.mrf.mxu1  ;;  %11858 = vmatmul.msk.bf16.gmra.mxu2 %vm2150_vm14, %v11365_v36  ;;  %11955 = vmatmul.msk.bf16.gmra.mxu3 %vm3315_vm15, %v3687_v38  ;;  %v11441_v36 = vor.u32 %v14420_v55, %v11440_v33 }
 0x357   : >> { %2607 = vmatmul.bf16.gmra.mxu1 %v11425_v41  ;;  %v2976_v3 = vpop.f32.mrf.mxu2  ;;  %v3606_v21 = vpop.f32.mrf.mxu3 }
 0x358   : >> { %v2977_v34 = vadd.f32 %v2976_v3, %v16229_v1  ;;  %v16456_v47 = vadd.f32 %v3606_v21, %v16340_v28  ;;  %v11370_v1 = vld [vmem:[%s21297_s5 + $0x1d8] sm:$0xf0] }
 0x359   : >> { %v11373_v43 = vor.u32 %v14401_v16, %v11370_v1  ;;  %v14405_v16 = vld [vmem:[%s21297_s5 + $0x1f4] sm:$0xf] }
 0x35a   : >> { %3356 = vst.msk [vmem:[#allocation2 + $0x140] sm:$0xff] %vm3315_vm15, %v2977_v34  ;;  %v3815_v49 = vld [vmem:[#allocation2 + $0x138] sm:$0xff] }
 0x35c   : >> { %v16462_v29 = vpop.f32.mrf.mxu1 }
 0x35f   : >> { %v2978_v57 = vpop.f32.mrf.mxu2  ;;  %v3608_v28 = vpop.f32.mrf.mxu3 }
 0x360   : >> { %v2979_v17 = vadd.f32 %v2978_v57, %v16235_v40 }
 0x361   : >> { %v3816_v57 = vld [vmem:[#allocation2 + $0x140] sm:$0xff] }
 0x362   : >> { %3357 = vst.msk [vmem:[#allocation2 + $0x148] sm:$0xff] %vm3315_vm15, %v2979_v17  ;;  %v11448_v17 = vld [vmem:[%s21297_s5 + $0x270] sm:$0xf]  ;;  %v3820_v42 = vpack.c.bf16 %v3816_v57, %v3815_v49 }
 0x364   : >> { %v16478_v11 = vpop.f32.mrf.mxu1  ;;  %11859 = vmatmul.msk.bf16.gmra.mxu2 %vm2150_vm14, %v11373_v43  ;;  %11972 = vmatmul.msk.bf16.vlgmr.msrb.gmra.mxu3 %vm3315_vm15, %v3818_v19  ;;  %v14422_v43 = vld [vmem:[%s21297_s5 + $0x274] sm:$0xf0] }
 0x365   : >> { %v11449_v2 = vor.u32 %v14422_v43, %v11448_v17 }
 0x367   : >> { %2612 = vmatmul.bf16.gmra.mxu1 %v11433_v50  ;;  %v2981_v40 = vpop.f32.mrf.mxu2  ;;  %v3651_v48 = vpop.f32.mrf.mxu3 }
 0x368   : >> { %v2982_v20 = vadd.f32 %v2981_v40, %v16251_v61  ;;  %v16484_v5 = vadd.f32 %v3651_v48, %v16367_v23  ;;  %v11381_v23 = vor.u32 %v14403_v60, %v11378_v25 }
 0x369   : >> { %v3817_v33 = vld [vmem:[#allocation2 + $0x148] sm:$0xff] }
 0x36a   : >> { %3358 = vst.msk [vmem:[#allocation2 + $0x150] sm:$0xff] %vm3315_vm15, %v2982_v20 }
 0x36c   : >> { %v16487_v51 = vpop.f32.mrf.mxu1 }
 0x36f   : >> { %v2983_v31 = vpop.f32.mrf.mxu2  ;;  %v16495_v54 = vpop.f32.mrf.mxu3 }
 0x370   : >> { %v2984_v61 = vadd.f32 %v2983_v31, %v16262_v35 }
 0x371   : >> { %v3878_v3 = vld [vmem:[#allocation2 + $0x150] sm:$0xff] }
 0x372   : >> { %3359 = vst.msk [vmem:[#allocation2 + $0x158] sm:$0xff] %vm3315_vm15, %v2984_v61  ;;  %v14407_v61 = vld [vmem:[%s21297_s5 + $0x204] sm:$0xf] }
 0x374   : >> { %v16505_v32 = vpop.f32.mrf.mxu1  ;;  %11860 = vmatmul.msk.bf16.gmra.mxu2 %vm2150_vm14, %v11381_v23  ;;  %11973 = vmatmul.msk.bf16.gmra.mxu3 %vm3315_vm15, %v3819_v10  ;;  %v11456_v10 = vld [vmem:[%s21297_s5 + $0x280] sm:$0xf] }
 0x377   : >> { %2617 = vmatmul.bf16.gmra.mxu1 %v11441_v36  ;;  %v2986_v35 = vpop.f32.mrf.mxu2  ;;  %v3656_v0 = vpop.f32.mrf.mxu3  ;;  %v14424_v36 = vld [vmem:[%s21297_s5 + $0x284] sm:$0xf0] }
 0x378   : >> { %v2987_v38 = vadd.f32 %v2986_v35, %v16280_v39  ;;  %v16511_v41 = vadd.f32 %v3656_v0, %v16396_v37  ;;  %v11386_v39 = vld [vmem:[%s21297_s5 + $0x1f8] sm:$0xf0]  ;;  %v3821_v0 = vpack.c.bf16 %v3817_v33, %v3817_v33 }
 0x379   : >> { %v3879_v21 = vld [vmem:[#allocation2 + $0x158] sm:$0xff]  ;;  %v11389_v53 = vor.u32 %v14405_v16, %v11386_v39 }
 0x37a   : >> { %3360 = vst.msk [vmem:[#allocation2 + $0x160] sm:$0xff] %vm3315_vm15, %v2987_v38  ;;  %v3885_v34 = vpack.c.bf16 %v3879_v21, %v3878_v3  ;;  %v11457_v38 = vor.u32 %v14424_v36, %v11456_v10  ;;  %v14524_v39 = vld [vmem:[%s21298_s6 + $0x38] sm:$0xff]  ;;  %v14411_v36 = vld [vmem:[%s21297_s5 + $0x224] sm:$0xf] }
 0x37b   : >> { %4044 = vmatpush.bf16.msra.mxu0 %v14524_v39 }
 0x37c   : >> { %v16514_v13 = vpop.f32.mrf.mxu1  ;;  %11982 = vmatmul.msk.bf16.vlgmr.msrb.gmra.mxu0 %vm3315_vm15, %v3885_v34 }
 0x37f   : >> { %v2988_v1 = vpop.f32.mrf.mxu2  ;;  %v16523_v37 = vpop.f32.mrf.mxu3 }
 0x380   : >> { %v2989_v28 = vadd.f32 %v2988_v1, %v16288_v63 }
 0x381   : >> { %v3880_v60 = vld [vmem:[#allocation2 + $0x160] sm:$0xff] }
 0x382   : >> { %3361 = vst.msk [vmem:[#allocation2 + $0x168] sm:$0xff] %vm3315_vm15, %v2989_v28 }
 0x384   : >> { %v16533_v19 = vpop.f32.mrf.mxu1  ;;  %11861 = vmatmul.msk.bf16.gmra.mxu2 %vm2150_vm14, %v11389_v53  ;;  %11974 = vmatmul.msk.bf16.gmra.mxu3 %vm3315_vm15, %v3820_v42 }
 0x387   : >> { %2622 = vmatmul.bf16.gmra.mxu1 %v11449_v2  ;;  %v2991_v63 = vpop.f32.mrf.mxu2  ;;  %v3661_v50 = vpop.f32.mrf.mxu3 }
 0x388   : >> { %v2992_v40 = vadd.f32 %v2991_v63, %v16309_v24  ;;  %v16539_v48 = vadd.f32 %v3661_v50, %v16428_v27  ;;  %v11394_v24 = vld [vmem:[%s21297_s5 + $0x208] sm:$0xf0]  ;;  %v11464_v63 = vld [vmem:[%s21297_s5 + $0x290] sm:$0xf]  ;;  %v14426_v50 = vld [vmem:[%s21297_s5 + $0x294] sm:$0xf0] }
 0x389   : >> { %v3785_v20 = vpop.f32.mrf.mxu0  ;;  %v3881_v25 = vld [vmem:[#allocation2 + $0x168] sm:$0xff]  ;;  %v11397_v26 = vor.u32 %v14407_v61, %v11394_v24 }
 0x38a   : >> { %3362 = vst.msk [vmem:[#allocation2 + $0x170] sm:$0xff] %vm3315_vm15, %v2992_v40  ;;  %v3886_v31 = vpack.c.bf16 %v3881_v25, %v3880_v60  ;;  %v11465_v60 = vor.u32 %v14426_v50, %v11464_v63  ;;  %v14413_v50 = vld [vmem:[%s21297_s5 + $0x234] sm:$0xf] }
 0x38c   : >> { %v16542_v6 = vpop.f32.mrf.mxu1  ;;  %11983 = vmatmul.msk.bf16.gmra.mxu0 %vm3315_vm15, %v3886_v31 }
 0x38f   : >> { %v2993_v27 = vpop.f32.mrf.mxu2  ;;  %v16551_v23 = vpop.f32.mrf.mxu3 }
 0x390   : >> { %21386 = vst [vmem:[#allocation13_spill] sm:$0xff] %v16551_v23  ;;  %v2994_v55 = vadd.f32 %v2993_v27, %v16317_v9 }
 0x391   : >> { %v16560_v35 = vpop.f32.mrf.mxu0  ;;  %v3882_v57 = vld [vmem:[#allocation2 + $0x170] sm:$0xff] }
 0x392   : >> { %3363 = vst.msk [vmem:[#allocation2 + $0x178] sm:$0xff] %vm3315_vm15, %v2994_v55 }
 0x394   : >> { %v16563_v3 = vpop.f32.mrf.mxu1  ;;  %11862 = vmatmul.msk.bf16.gmra.mxu2 %vm2150_vm14, %v11397_v26  ;;  %11975 = vmatmul.msk.bf16.gmra.mxu3 %vm3315_vm15, %v3821_v0 }
 0x397   : >> { %2627 = vmatmul.bf16.gmra.mxu1 %v11457_v38  ;;  %v2996_v9 = vpop.f32.mrf.mxu2  ;;  %v3666_v21 = vpop.f32.mrf.mxu3 }
 0x398   : >> { %v2997_v34 = vadd.f32 %v2996_v9, %v16336_v7  ;;  %v16569_v16 = vadd.f32 %v3666_v21, %v16456_v47  ;;  %v14409_v7 = vld [vmem:[%s21297_s5 + $0x214] sm:$0xf]  ;;  %v11402_v47 = vld [vmem:[%s21297_s5 + $0x218] sm:$0xf0]  ;;  %v14428_v21 = vld [vmem:[%s21297_s5 + $0x2a4] sm:$0xf0] }
 0x399   : >> { %v3790_v1 = vpop.f32.mrf.mxu0  ;;  %v3883_v28 = vld [vmem:[#allocation2 + $0x178] sm:$0xff]  ;;  %v11405_v2 = vor.u32 %v14409_v7, %v11402_v47 }
 0x39a   : >> { %3364 = vst.msk [vmem:[#allocation2 + $0x180] sm:$0xff] %vm3315_vm15, %v2997_v34  ;;  %v3887_v53 = vpack.c.bf16 %v3883_v28, %v3882_v57 }
 0x39c   : >> { %v16575_v17 = vpop.f32.mrf.mxu1  ;;  %11984 = vmatmul.msk.bf16.gmra.mxu0 %vm3315_vm15, %v3887_v53 }
 0x39f   : >> { %v2998_v43 = vpop.f32.mrf.mxu2  ;;  %v3668_v49 = vpop.f32.mrf.mxu3 }
 0x3a0   : >> { %v2999_v42 = vadd.f32 %v2998_v43, %v16344_v22 }
 0x3a1   : >> { %v16591_v40 = vpop.f32.mrf.mxu0  ;;  %v3884_v61 = vld [vmem:[#allocation2 + $0x180] sm:$0xff] }
 0x3a2   : >> { %21387 = vst [vmem:[#allocation12_spill] sm:$0xff] %v16591_v40  ;;  %v3888_v55 = vpack.c.bf16 %v3884_v61, %v3884_v61  ;;  %v14430_v61 = vld [vmem:[%s21297_s5 + $0x2b4] sm:$0xf0] }
 0x3a3   : >> { %3365 = vst.msk [vmem:[#allocation2 + $0x188] sm:$0xff] %vm3315_vm15, %v2999_v42 }
 0x3a4   : >> { %v16594_v25 = vpop.f32.mrf.mxu1  ;;  %11863 = vmatmul.msk.bf16.gmra.mxu2 %vm2150_vm14, %v11405_v2 }
 0x3a7   : >> { %2632 = vmatmul.bf16.gmra.mxu1 %v11465_v60  ;;  %v3001_v22 = vpop.f32.mrf.mxu2  ;;  %v3718_v31 = vpop.f32.mrf.mxu3 }
 0x3a8   : >> { %v3002_v24 = vadd.f32 %v3001_v22, %v16361_v4  ;;  %v3737_v27 = vadd.f32 %v3718_v31, %v16484_v5  ;;  %v11410_v4 = vld [vmem:[%s21297_s5 + $0x228] sm:$0xf0] }
 0x3a9   : >> { %v3795_v33 = vpop.f32.mrf.mxu0  ;;  %v11413_v9 = vor.u32 %v14411_v36, %v11410_v4 }
 0x3aa   : >> { %3366 = vst.msk [vmem:[#allocation2 + $0x190] sm:$0xff] %vm3315_vm15, %v3002_v24  ;;  %v16600_v26 = vadd.f32 %v3785_v20, %v3737_v27  ;;  %v11472_v20 = vld [vmem:[%s21297_s5 + $0x2a0] sm:$0xf]  ;;  %v3945_v49 = vld [vmem:[#allocation2 + $0x188] sm:$0xff] }
 0x3ab   : >> { %v11473_v39 = vor.u32 %v14428_v21, %v11472_v20 }
 0x3ac   : >> { %v16602_v10 = vpop.f32.mrf.mxu1  ;;  %11985 = vmatmul.msk.bf16.gmra.mxu0 %vm3315_vm15, %v3888_v55 }
 0x3af   : >> { %v3003_v0 = vpop.f32.mrf.mxu2  ;;  %v16611_v5 = vpop.f32.mrf.mxu3 }
 0x3b0   : >> { %v3004_v38 = vadd.f32 %v3003_v0, %v16370_v45 }
 0x3b1   : >> { %v16620_v34 = vpop.f32.mrf.mxu0  ;;  %v3946_v53 = vld [vmem:[#allocation2 + $0x190] sm:$0xff] }
 0x3b2   : >> { %21388 = vst [vmem:[#allocation10_spill] sm:$0xff] %v16620_v34  ;;  %v3952_v42 = vpack.c.bf16 %v3946_v53, %v3945_v49  ;;  %v14432_v49 = vld [vmem:[%s21297_s5 + $0x2c4] sm:$0xf0] }
 0x3b3   : >> { %3367 = vst.msk [vmem:[#allocation2 + $0x198] sm:$0xff] %vm3315_vm15, %v3004_v38 }
 0x3b4   : >> { %v16623_v57 = vpop.f32.mrf.mxu1  ;;  %11864 = vmatmul.msk.bf16.gmra.mxu2 %vm2150_vm14, %v11413_v9  ;;  %v14525_v9 = vld [vmem:[%s21298_s6 + $0x40] sm:$0xff] }
 0x3b5   : >> { %3998 = vmatpush.bf16.msra.mxu3 %v14525_v9 }
 0x3b7   : >> { %2637 = vmatmul.bf16.gmra.mxu1 %v11473_v39  ;;  %v3006_v45 = vpop.f32.mrf.mxu2  ;;  %v3723_v28 = vpop.f32.mrf.mxu3 }
 0x3b8   : >> { %v3007_v7 = vadd.f32 %v3006_v45, %v16390_v8  ;;  %v3739_v47 = vadd.f32 %v3723_v28, %v16511_v41  ;;  %v11418_v8 = vld [vmem:[%s21297_s5 + $0x238] sm:$0xf0] }
 0x3b9   : >> { %v3800_v43 = vpop.f32.mrf.mxu0  ;;  %v11421_v31 = vor.u32 %v14413_v50, %v11418_v8 }
 0x3ba   : >> { %3368 = vst.msk [vmem:[#allocation2 + $0x1a0] sm:$0xff] %vm3315_vm15, %v3007_v7  ;;  %v16629_v2 = vadd.f32 %v3790_v1, %v3739_v47  ;;  %v11480_v1 = vld [vmem:[%s21297_s5 + $0x2b0] sm:$0xf]  ;;  %v3947_v20 = vld [vmem:[#allocation2 + $0x198] sm:$0xff] }
 0x3bb   : >> { %v11481_v27 = vor.u32 %v14430_v61, %v11480_v1 }
 0x3bc   : >> { %v16631_v63 = vpop.f32.mrf.mxu1  ;;  %12002 = vmatmul.msk.bf16.vlgmr.msra.gmra.mxu0 %vm3315_vm15, %v3952_v42 }
 0x3bf   : >> { %v3008_v41 = vpop.f32.mrf.mxu2  ;;  %v16640_v60 = vpop.f32.mrf.mxu3 }
 0x3c0   : >> { %21389 = vst [vmem:[#allocation9_spill] sm:$0xff] %v16640_v60  ;;  %v3009_v22 = vadd.f32 %v3008_v41, %v16399_v52 }
 0x3c1   : >> { %v3802_v24 = vpop.f32.mrf.mxu0  ;;  %v3948_v4 = vld [vmem:[#allocation2 + $0x1a0] sm:$0xff] }
 0x3c2   : >> { %3369 = vst.msk [vmem:[#allocation2 + $0x1a8] sm:$0xff] %vm3315_vm15, %v3009_v22  ;;  %v3953_v21 = vpack.c.bf16 %v3948_v4, %v3947_v20 }
 0x3c4   : >> { %v16650_v55 = vpop.f32.mrf.mxu1  ;;  %11865 = vmatmul.msk.bf16.gmra.mxu2 %vm2150_vm14, %v11421_v31 }
 0x3c7   : >> { %2642 = vmatmul.bf16.gmra.mxu1 %v11481_v27  ;;  %v3011_v36 = vpop.f32.mrf.mxu2  ;;  %v3728_v52 = vpop.f32.mrf.mxu3 }
 0x3c8   : >> { %v3012_v0 = vadd.f32 %v3011_v36, %v16422_v18  ;;  %v3741_v38 = vadd.f32 %v3728_v52, %v16539_v48  ;;  %v14415_v18 = vld [vmem:[%s21297_s5 + $0x244] sm:$0xf]  ;;  %v11426_v48 = vld [vmem:[%s21297_s5 + $0x248] sm:$0xf0]  ;;  %v14417_v36 = vld [vmem:[%s21297_s5 + $0x254] sm:$0xf] }
 0x3c9   : >> { %v11429_v47 = vor.u32 %v14415_v18, %v11426_v48  ;;  %v3949_v1 = vld [vmem:[#allocation2 + $0x1a8] sm:$0xff] }
 0x3ca   : >> { %3370 = vst.msk [vmem:[#allocation2 + $0x1b0] sm:$0xff] %vm3315_vm15, %v3012_v0  ;;  %v16659_v39 = vadd.f32 %v3795_v33, %v3741_v38  ;;  %v11488_v33 = vld [vmem:[%s21297_s5 + $0x2c0] sm:$0xf]  ;;  %v14434_v38 = vld [vmem:[%s21297_s5 + $0x2d4] sm:$0xf0] }
 0x3cb   : >> { %v11489_v42 = vor.u32 %v14432_v49, %v11488_v33 }
 0x3cc   : >> { %v16661_v45 = vpop.f32.mrf.mxu1  ;;  %12003 = vmatmul.msk.bf16.gmra.mxu0 %vm3315_vm15, %v3953_v21 }
 0x3cf   : >> { %v3013_v28 = vpop.f32.mrf.mxu2  ;;  %v16670_v53 = vpop.f32.mrf.mxu3 }
 0x3d0   : >> { %21390 = vst [vmem:[#allocation8_spill] sm:$0xff] %v16670_v53  ;;  %v3014_v7 = vadd.f32 %v3013_v28, %v16431_v59 }
 0x3d1   : >> { %v3950_v59 = vld [vmem:[#allocation2 + $0x1b0] sm:$0xff] }
 0x3d2   : >> { %3371 = vst.msk [vmem:[#allocation2 + $0x1b8] sm:$0xff] %vm3315_vm15, %v3014_v7  ;;  %v3954_v61 = vpack.c.bf16 %v3950_v59, %v3949_v1  ;;  %v14436_v1 = vld [vmem:[%s21297_s5 + $0x2e4] sm:$0xf0] }
 0x3d4   : >> { %v16680_v50 = vpop.f32.mrf.mxu1  ;;  %11866 = vmatmul.msk.bf16.gmra.mxu2 %vm2150_vm14, %v11429_v47 }
 0x3d7   : >> { %2647 = vmatmul.bf16.gmra.mxu1 %v11489_v42  ;;  %v3016_v8 = vpop.f32.mrf.mxu2  ;;  %v3733_v41 = vpop.f32.mrf.mxu3 }
 0x3d8   : >> { %v3017_v22 = vadd.f32 %v3016_v8, %v16450_v12  ;;  %v3743_v31 = vadd.f32 %v3733_v41, %v16569_v16  ;;  %v11434_v12 = vld [vmem:[%s21297_s5 + $0x258] sm:$0xf0]  ;;  %v14419_v8 = vld [vmem:[%s21297_s5 + $0x264] sm:$0xf] }
 0x3d9   : >> { %v11437_v0 = vor.u32 %v14417_v36, %v11434_v12 }
 0x3da   : >> { %3372 = vst.msk [vmem:[#allocation2 + $0x1c0] sm:$0xff] %vm3315_vm15, %v3017_v22  ;;  %v16686_v24 = vadd.f32 %v3800_v43, %v3743_v31  ;;  %v11496_v43 = vld [vmem:[%s21297_s5 + $0x2d0] sm:$0xf]  ;;  %v11504_v31 = vld [vmem:[%s21297_s5 + $0x2e0] sm:$0xf] }
 0x3db   : >> { %v11497_v9 = vor.u32 %v14434_v38, %v11496_v43 }
 0x3dc   : >> { %v16688_v27 = vpop.f32.mrf.mxu1  ;;  %12004 = vmatmul.msk.bf16.gmra.mxu0 %vm3315_vm15, %v3954_v61  ;;  %v11505_v61 = vor.u32 %v14436_v1, %v11504_v31 }
 0x3df   : >> { %v3018_v52 = vpop.f32.mrf.mxu2  ;;  %v3735_v16 = vpop.f32.mrf.mxu3 }
 0x3e0   : >> { %v3019_v4 = vadd.f32 %v3018_v52, %v16462_v29  ;;  %v3951_v29 = vld [vmem:[#allocation2 + $0x1b8] sm:$0xff] }
 0x3e1   : >> { %v3959_v7 = vld [vmem:[#allocation2 + $0x1c0] sm:$0xff]  ;;  %v3955_v49 = vpack.c.bf16 %v3951_v29, %v3951_v29 }
 0x3e2   : >> { %3373 = vst.msk [vmem:[#allocation2 + $0x1c8] sm:$0xff] %vm3315_vm15, %v3019_v4 }
 0x3e4   : >> { %v16705_v20 = vpop.f32.mrf.mxu1  ;;  %11867 = vmatmul.msk.bf16.gmra.mxu2 %vm2150_vm14, %v11437_v0 }
 0x3e7   : >> { %2652 = vmatmul.bf16.gmra.mxu1 %v11497_v9  ;;  %v3021_v21 = vpop.f32.mrf.mxu2  ;;  %v3852_v18 = vpop.f32.mrf.mxu3 }
 0x3e8   : >> { %v3022_v48 = vadd.f32 %v3021_v21, %v16478_v11  ;;  %v3871_v28 = vadd.f32 %v3852_v18, %v16600_v26  ;;  %v11442_v11 = vld [vmem:[%s21297_s5 + $0x268] sm:$0xf0]  ;;  %v14421_v18 = vld [vmem:[%s21297_s5 + $0x274] sm:$0xf] }
 0x3e9   : >> { %v3960_v47 = vld [vmem:[#allocation2 + $0x1c8] sm:$0xff]  ;;  %v11445_v22 = vor.u32 %v14419_v8, %v11442_v11 }
 0x3ea   : >> { %3374 = vst.msk [vmem:[#allocation2 + $0x1d0] sm:$0xff] %vm3315_vm15, %v3022_v48  ;;  %v3966_v33 = vpack.c.bf16 %v3960_v47, %v3959_v7  ;;  %v11512_v7 = vld [vmem:[%s21297_s5 + $0x2f0] sm:$0xf]  ;;  %v14438_v47 = vld [vmem:[%s21297_s5 + $0x2f4] sm:$0xf0] }
 0x3ec   : >> { %v16711_v42 = vpop.f32.mrf.mxu1  ;;  %11994 = vmatmul.msk.bf16.vlgmr.msra.gmra.mxu3 %vm3315_vm15, %v3966_v33  ;;  %12005 = vmatmul.msk.bf16.gmra.mxu0 %vm3315_vm15, %v3955_v49  ;;  %v11513_v49 = vor.u32 %v14438_v47, %v11512_v7 }
 0x3ef   : >> { %v3023_v26 = vpop.f32.mrf.mxu2  ;;  %v16721_v41 = vpop.f32.mrf.mxu3 }
 0x3f0   : >> { %v3024_v59 = vadd.f32 %v3023_v26, %v16487_v51 }
 0x3f1   : >> { %v3961_v0 = vld [vmem:[#allocation2 + $0x1d0] sm:$0xff] }
 0x3f2   : >> { %3375 = vst.msk [vmem:[#allocation2 + $0x1d8] sm:$0xff] %vm3315_vm15, %v3024_v59 }
 0x3f4   : >> { %v16731_v36 = vpop.f32.mrf.mxu1  ;;  %11868 = vmatmul.msk.bf16.gmra.mxu2 %vm2150_vm14, %v11445_v22  ;;  %v14526_v22 = vld [vmem:[%s21298_s6 + $0x48] sm:$0xff] }
 0x3f5   : >> { %4104 = vmatpush.bf16.msrb.mxu3 %v14526_v22 }
 0x3f7   : >> { %2657 = vmatmul.bf16.gmra.mxu1 %v11505_v61  ;;  %v3026_v12 = vpop.f32.mrf.mxu2  ;;  %v3857_v52 = vpop.f32.mrf.mxu3 }
 0x3f8   : >> { %v3027_v51 = vadd.f32 %v3026_v12, %v16505_v32  ;;  %v3873_v16 = vadd.f32 %v3857_v52, %v16629_v2  ;;  %v11450_v32 = vld [vmem:[%s21297_s5 + $0x278] sm:$0xf0] }
 0x3f9   : >> { %v3919_v4 = vpop.f32.mrf.mxu0  ;;  %v3962_v43 = vld [vmem:[#allocation2 + $0x1d8] sm:$0xff] }
 0x3fa   : >> { %3376 = vst.msk [vmem:[#allocation2 + $0x1e0] sm:$0xff] %vm3315_vm15, %v3027_v51  ;;  %v16737_v38 = vadd.f32 %v3919_v4, %v3871_v28  ;;  %v3967_v9 = vpack.c.bf16 %v3962_v43, %v3961_v0  ;;  %v11453_v28 = vor.u32 %v14421_v18, %v11450_v32  ;;  %v14440_v18 = vld [vmem:[%s21297_s5 + $0x304] sm:$0xf0] }
 0x3fc   : >> { %v16739_v21 = vpop.f32.mrf.mxu1  ;;  %11995 = vmatmul.msk.bf16.gmra.mxu3 %vm3315_vm15, %v3967_v9  ;;  %v11520_v9 = vld [vmem:[%s21297_s5 + $0x300] sm:$0xf] }
 0x3ff   : >> { %v3028_v2 = vpop.f32.mrf.mxu2  ;;  %v16748_v29 = vpop.f32.mrf.mxu3 }
 0x400   : >> { %21391 = vst [vmem:[#allocation14_spill] sm:$0xff] %v16748_v29  ;;  %v3029_v48 = vadd.f32 %v3028_v2, %v16514_v13  ;;  %v11521_v2 = vor.u32 %v14440_v18, %v11520_v9 }
 0x401   : >> { %v16757_v33 = vpop.f32.mrf.mxu0  ;;  %v3963_v1 = vld [vmem:[#allocation2 + $0x1e0] sm:$0xff] }
 0x402   : >> { %3377 = vst.msk [vmem:[#allocation2 + $0x1e8] sm:$0xff] %vm3315_vm15, %v3029_v48 }
 0x404   : >> { %v16760_v8 = vpop.f32.mrf.mxu1  ;;  %11869 = vmatmul.msk.bf16.gmra.mxu2 %vm2150_vm14, %v11453_v28 }
 0x407   : >> { %2662 = vmatmul.bf16.gmra.mxu1 %v11513_v49  ;;  %v3031_v13 = vpop.f32.mrf.mxu2  ;;  %v3862_v11 = vpop.f32.mrf.mxu3 }
 0x408   : >> { %v3032_v26 = vadd.f32 %v3031_v13, %v16533_v19  ;;  %v3875_v59 = vadd.f32 %v3862_v11, %v16659_v39  ;;  %v14423_v19 = vld [vmem:[%s21297_s5 + $0x284] sm:$0xf]  ;;  %v11458_v39 = vld [vmem:[%s21297_s5 + $0x288] sm:$0xf0] }
 0x409   : >> { %v3924_v31 = vpop.f32.mrf.mxu0  ;;  %v3964_v61 = vld [vmem:[#allocation2 + $0x1e8] sm:$0xff]  ;;  %v11461_v43 = vor.u32 %v14423_v19, %v11458_v39  ;;  %v14442_v19 = vld [vmem:[%s21297_s5 + $0x314] sm:$0xf0] }
 0x40a   : >> { %3378 = vst.msk [vmem:[#allocation2 + $0x1f0] sm:$0xff] %vm3315_vm15, %v3032_v26  ;;  %v16769_v12 = vadd.f32 %v3924_v31, %v3873_v16  ;;  %v3968_v52 = vpack.c.bf16 %v3964_v61, %v3963_v1  ;;  %v14425_v31 = vld [vmem:[%s21297_s5 + $0x294] sm:$0xf] }
 0x40c   : >> { %v16771_v51 = vpop.f32.mrf.mxu1  ;;  %11996 = vmatmul.msk.bf16.gmra.mxu3 %vm3315_vm15, %v3968_v52 }
 0x40f   : >> { %v3033_v4 = vpop.f32.mrf.mxu2  ;;  %v16780_v0 = vpop.f32.mrf.mxu3 }
 0x410   : >> { %21392 = vst [vmem:[#allocation6_spill] sm:$0xff] %v16780_v0  ;;  %v3034_v16 = vadd.f32 %v3033_v4, %v16542_v6 }
 0x411   : >> { %v16789_v32 = vpop.f32.mrf.mxu0  ;;  %v3965_v7 = vld [vmem:[#allocation2 + $0x1f0] sm:$0xff] }
 0x412   : >> { %21393 = vst [vmem:[#allocation15_spill] sm:$0xff] %v16789_v32  ;;  %v3969_v26 = vpack.c.bf16 %v3965_v7, %v3965_v7 }
 0x413   : >> { %3379 = vst.msk [vmem:[#allocation2 + $0x1f8] sm:$0xff] %vm3315_vm15, %v3034_v16 }
 0x414   : >> { %v16792_v48 = vpop.f32.mrf.mxu1  ;;  %11870 = vmatmul.msk.bf16.gmra.mxu2 %vm2150_vm14, %v11461_v43 }
 0x417   : >> { %2667 = vmatmul.bf16.gmra.mxu1 %v11521_v2  ;;  %v3036_v6 = vpop.f32.mrf.mxu2  ;;  %v3867_v28 = vpop.f32.mrf.mxu3 }
 0x418   : >> { %v3037_v47 = vadd.f32 %v3036_v6, %v16563_v3  ;;  %v3877_v49 = vadd.f32 %v3867_v28, %v16686_v24  ;;  %v11466_v3 = vld [vmem:[%s21297_s5 + $0x298] sm:$0xf0] }
 0x419   : >> { %v3929_v13 = vpop.f32.mrf.mxu0  ;;  %v11469_v52 = vor.u32 %v14425_v31, %v11466_v3  ;;  %v14444_v3 = vld [vmem:[%s21297_s5 + $0x324] sm:$0xf0] }
 0x41a   : >> { %3380 = vst.msk [vmem:[#allocation2 + $0x200] sm:$0xff] %vm3315_vm15, %v3037_v47  ;;  %v16798_v11 = vadd.f32 %v3929_v13, %v3875_v59  ;;  %v11528_v59 = vld [vmem:[%s21297_s5 + $0x310] sm:$0xf]  ;;  %v4065_v2 = vld [vmem:[#allocation2 + $0x1f8] sm:$0xff]  ;;  %v14427_v47 = vld [vmem:[%s21297_s5 + $0x2a4] sm:$0xf] }
 0x41b   : >> { %v11529_v4 = vor.u32 %v14442_v19, %v11528_v59  ;;  %v11474_v13 = vld [vmem:[%s21297_s5 + $0x2a8] sm:$0xf0]  ;;  %v14527_v19 = vld [vmem:[%s21298_s6 + $0x50] sm:$0xff] }
 0x41c   : >> { %v16800_v22 = vpop.f32.mrf.mxu1  ;;  %11997 = vmatmul.msk.bf16.gmra.mxu3 %vm3315_vm15, %v3969_v26  ;;  %v11477_v31 = vor.u32 %v14427_v47, %v11474_v13  ;;  %4171 = vmatpush.bf16.msrb.mxu0 %v14527_v19  ;;  %v11544_v13 = vld [vmem:[%s21297_s5 + $0x330] sm:$0xf]  ;;  %v14431_v19 = vld [vmem:[%s21297_s5 + $0x2c4] sm:$0xf] }
 0x41f   : >> { %v3038_v1 = vpop.f32.mrf.mxu2  ;;  %v3869_v24 = vpop.f32.mrf.mxu3 }
 0x420   : >> { %v3039_v61 = vadd.f32 %v3038_v1, %v16575_v17 }
 0x421   : >> { %v16816_v39 = vpop.f32.mrf.mxu0  ;;  %v4066_v43 = vld [vmem:[#allocation2 + $0x200] sm:$0xff] }
 0x422   : >> { %21394 = vst [vmem:[#allocation7_spill] sm:$0xff] %v16816_v39  ;;  %v4072_v28 = vpack.c.bf16 %v4066_v43, %v4065_v2 }
 0x423   : >> { %3381 = vst.msk [vmem:[#allocation2 + $0x208] sm:$0xff] %vm3315_vm15, %v3039_v61 }
 0x424   : >> { %v16819_v16 = vpop.f32.mrf.mxu1  ;;  %11871 = vmatmul.msk.bf16.gmra.mxu2 %vm2150_vm14, %v11469_v52 }
 0x427   : >> { %2672 = vmatmul.bf16.gmra.mxu1 %v11529_v4  ;;  %v3041_v17 = vpop.f32.mrf.mxu2 }
 0x428   : >> { %v3042_v9 = vadd.f32 %v3041_v17, %v16594_v25 }
 0x429   : >> { %v3934_v18 = vpop.f32.mrf.mxu0 }
 0x42a   : >> { %3382 = vst.msk [vmem:[#allocation2 + $0x210] sm:$0xff] %vm3315_vm15, %v3042_v9  ;;  %v16824_v6 = vadd.f32 %v3934_v18, %v3877_v49  ;;  %v11536_v49 = vld [vmem:[%s21297_s5 + $0x320] sm:$0xf]  ;;  %v4067_v17 = vld [vmem:[#allocation2 + $0x208] sm:$0xff]  ;;  %v14429_v18 = vld [vmem:[%s21297_s5 + $0x2b4] sm:$0xf] }
 0x42b   : >> { %v11537_v24 = vor.u32 %v14444_v3, %v11536_v49 }
 0x42c   : >> { %v16826_v7 = vpop.f32.mrf.mxu1  ;;  %12012 = vmatmul.msk.bf16.vlgmr.msrb.gmra.mxu3 %vm3315_vm15, %v4072_v28 }
 0x42f   : >> { %v3043_v25 = vpop.f32.mrf.mxu2 }
 0x430   : >> { %v3044_v26 = vadd.f32 %v3043_v25, %v16602_v10  ;;  %v14446_v25 = vld [vmem:[%s21297_s5 + $0x334] sm:$0xf0] }
 0x431   : >> { %v3936_v1 = vpop.f32.mrf.mxu0  ;;  %v4068_v10 = vld [vmem:[#allocation2 + $0x210] sm:$0xff] }
 0x432   : >> { %3383 = vst.msk [vmem:[#allocation2 + $0x218] sm:$0xff] %vm3315_vm15, %v3044_v26  ;;  %v4073_v43 = vpack.c.bf16 %v4068_v10, %v4067_v17  ;;  %v11490_v17 = vld [vmem:[%s21297_s5 + $0x2c8] sm:$0xf0] }
 0x434   : >> { %v16843_v61 = vpop.f32.mrf.mxu1  ;;  %11872 = vmatmul.msk.bf16.gmra.mxu2 %vm2150_vm14, %v11477_v31  ;;  %v11545_v31 = vor.u32 %v14446_v25, %v11544_v13 }
 0x437   : >> { %2677 = vmatmul.bf16.gmra.mxu1 %v11537_v24  ;;  %v3046_v52 = vpop.f32.mrf.mxu2 }
 0x438   : >> { %v3047_v59 = vadd.f32 %v3046_v52, %v16623_v57  ;;  %v11482_v57 = vld [vmem:[%s21297_s5 + $0x2b8] sm:$0xf0] }
 0x439   : >> { %v16850_v4 = vpop.f32.mrf.mxu0  ;;  %v11485_v47 = vor.u32 %v14429_v18, %v11482_v57  ;;  %v4069_v52 = vld [vmem:[#allocation2 + $0x218] sm:$0xff]  ;;  %v11493_v18 = vor.u32 %v14431_v19, %v11490_v17  ;;  %v11552_v57 = vld [vmem:[%s21297_s5 + $0x340] sm:$0xf]  ;;  %v14433_v17 = vld [vmem:[%s21297_s5 + $0x2d4] sm:$0xf] }
 0x43a   : >> { %3384 = vst.msk [vmem:[#allocation2 + $0x220] sm:$0xff] %vm3315_vm15, %v3047_v59 }
 0x43c   : >> { %v16853_v9 = vpop.f32.mrf.mxu1  ;;  %12013 = vmatmul.msk.bf16.gmra.mxu3 %vm3315_vm15, %v4073_v43 }
 0x43f   : >> { %v3048_v2 = vpop.f32.mrf.mxu2 }
 0x440   : >> { %v3049_v28 = vadd.f32 %v3048_v2, %v16631_v63  ;;  %v14448_v2 = vld [vmem:[%s21297_s5 + $0x344] sm:$0xf0] }
 0x441   : >> { %v16869_v26 = vpop.f32.mrf.mxu0  ;;  %v4070_v3 = vld [vmem:[#allocation2 + $0x220] sm:$0xff] }
 0x442   : >> { %3385 = vst.msk [vmem:[#allocation2 + $0x228] sm:$0xff] %vm3315_vm15, %v3049_v28  ;;  %v4074_v10 = vpack.c.bf16 %v4070_v3, %v4069_v52 }
 0x444   : >> { %v16872_v49 = vpop.f32.mrf.mxu1  ;;  %11873 = vmatmul.msk.bf16.gmra.mxu2 %vm2150_vm14, %v11485_v47  ;;  %v11553_v47 = vor.u32 %v14448_v2, %v11552_v57  ;;  %v11560_v57 = vld [vmem:[%s21297_s5 + $0x350] sm:$0xf]  ;;  %v14450_v2 = vld [vmem:[%s21297_s5 + $0x354] sm:$0xf0] }
 0x447   : >> { %2682 = vmatmul.bf16.gmra.mxu1 %v11545_v31  ;;  %v3051_v63 = vpop.f32.mrf.mxu2 }
 0x448   : >> { %v3052_v1 = vadd.f32 %v3051_v63, %v16650_v55 }
 0x449   : >> { %v16876_v24 = vpop.f32.mrf.mxu0  ;;  %v4071_v25 = vld [vmem:[#allocation2 + $0x228] sm:$0xff] }
 0x44a   : >> { %3386 = vst.msk [vmem:[#allocation2 + $0x230] sm:$0xff] %vm3315_vm15, %v3052_v1  ;;  %v4075_v52 = vpack.c.bf16 %v4071_v25, %v4071_v25 }
 0x44c   : >> { %v16879_v59 = vpop.f32.mrf.mxu1  ;;  %12014 = vmatmul.msk.bf16.gmra.mxu3 %vm3315_vm15, %v4074_v10 }
 0x44f   : >> { %v3053_v43 = vpop.f32.mrf.mxu2 }
 0x450   : >> { %v3054_v55 = vadd.f32 %v3053_v43, %v16661_v45 }
 0x451   : >> { %v16895_v28 = vpop.f32.mrf.mxu0  ;;  %v4132_v3 = vld [vmem:[#allocation2 + $0x230] sm:$0xff] }
 0x452   : >> { %3387 = vst.msk [vmem:[#allocation2 + $0x238] sm:$0xff] %vm3315_vm15, %v3054_v55 }
 0x454   : >> { %v16898_v13 = vpop.f32.mrf.mxu1  ;;  %11874 = vmatmul.msk.bf16.gmra.mxu2 %vm2150_vm14, %v11493_v18 }
 0x457   : >> { %2687 = vmatmul.bf16.gmra.mxu1 %v11553_v47  ;;  %v3056_v45 = vpop.f32.mrf.mxu2 }
 0x458   : >> { %v3057_v31 = vadd.f32 %v3056_v45, %v16680_v50  ;;  %v11498_v50 = vld [vmem:[%s21297_s5 + $0x2d8] sm:$0xf0]  ;;  %v11561_v45 = vor.u32 %v14450_v2, %v11560_v57 }
 0x459   : >> { %v16902_v63 = vpop.f32.mrf.mxu0  ;;  %v4133_v1 = vld [vmem:[#allocation2 + $0x238] sm:$0xff]  ;;  %v11501_v18 = vor.u32 %v14433_v17, %v11498_v50  ;;  %v14435_v50 = vld [vmem:[%s21297_s5 + $0x2e4] sm:$0xf] }
 0x45a   : >> { %3388 = vst.msk [vmem:[#allocation2 + $0x240] sm:$0xff] %vm3315_vm15, %v3057_v31  ;;  %v4139_v10 = vpack.c.bf16 %v4133_v1, %v4132_v3 }
 0x45c   : >> { %v16905_v19 = vpop.f32.mrf.mxu1  ;;  %12015 = vmatmul.msk.bf16.gmra.mxu3 %vm3315_vm15, %v4075_v52  ;;  %12022 = vmatmul.msk.bf16.vlgmr.msrb.gmra.mxu0 %vm3315_vm15, %v4139_v10 }
 0x45f   : >> { %v3058_v43 = vpop.f32.mrf.mxu2 }
 0x460   : >> { %v3059_v55 = vadd.f32 %v3058_v43, %v16688_v27  ;;  %v11506_v43 = vld [vmem:[%s21297_s5 + $0x2e8] sm:$0xf0] }
 0x461   : >> { %v16922_v47 = vpop.f32.mrf.mxu0  ;;  %v4134_v1 = vld [vmem:[#allocation2 + $0x240] sm:$0xff]  ;;  %v11509_v2 = vor.u32 %v14435_v50, %v11506_v43 }
 0x462   : >> { %21395 = vst [vmem:[#allocation16_spill] sm:$0xff] %v16922_v47 }
 0x463   : >> { %3389 = vst.msk [vmem:[#allocation2 + $0x248] sm:$0xff] %vm3315_vm15, %v3059_v55 }
 0x464   : >> { %v16925_v25 = vpop.f32.mrf.mxu1  ;;  %11875 = vmatmul.msk.bf16.gmra.mxu2 %vm2150_vm14, %v11501_v18 }
 0x467   : >> { %2692 = vmatmul.bf16.gmra.mxu1 %v11561_v45  ;;  %v3061_v27 = vpop.f32.mrf.mxu2  ;;  %v11568_v45 = vld [vmem:[%s21297_s5 + $0x360] sm:$0xf] }
 0x468   : >> { %v3062_v31 = vadd.f32 %v3061_v27, %v16705_v20  ;;  %v14452_v27 = vld [vmem:[%s21297_s5 + $0x364] sm:$0xf0] }
 0x469   : >> { %v16929_v3 = vpop.f32.mrf.mxu0 }
 0x46a   : >> { %v4135_v52 = vld [vmem:[#allocation2 + $0x248] sm:$0xff]  ;;  %3390 = vst.msk [vmem:[#allocation2 + $0x250] sm:$0xff] %vm3315_vm15, %v3062_v31  ;;  %v14528_v31 = vld [vmem:[%s21298_s6 + $0x58] sm:$0xff] }
 0x46b   : >> { %v4140_v10 = vpack.c.bf16 %v4135_v52, %v4134_v1  ;;  %4238 = vmatpush.bf16.msra.mxu3 %v14528_v31 }
 0x46c   : >> { %v16932_v17 = vpop.f32.mrf.mxu1 }
 0x46d   : >> { %12023 = vmatmul.msk.bf16.gmra.mxu0 %vm3315_vm15, %v4140_v10 }
 0x46f   : >> { %v3063_v20 = vpop.f32.mrf.mxu2  ;;  %v4000_v55 = vpop.f32.mrf.mxu3 }
 0x470   : >> { %v3064_v18 = vadd.f32 %v3063_v20, %v16711_v42  ;;  %v16943_v57 = vadd.f32 %v16850_v4, %v4000_v55  ;;  %v11569_v42 = vor.u32 %v14452_v27, %v11568_v45 }
 0x471   : >> { %v4063_v1 = vpop.f32.mrf.mxu0  ;;  %v4136_v43 = vld [vmem:[#allocation2 + $0x250] sm:$0xff] }
 0x472   : >> { %3391 = vst.msk [vmem:[#allocation2 + $0x258] sm:$0xff] %vm3315_vm15, %v3064_v18  ;;  %v14437_v18 = vld [vmem:[%s21297_s5 + $0x2f4] sm:$0xf] }
 0x474   : >> { %v16955_v4 = vpop.f32.mrf.mxu1  ;;  %11876 = vmatmul.msk.bf16.gmra.mxu2 %vm2150_vm14, %v11509_v2  ;;  %v11514_v2 = vld [vmem:[%s21297_s5 + $0x2f8] sm:$0xf0] }
 0x477   : >> { %2697 = vmatmul.bf16.gmra.mxu1 %v11569_v42  ;;  %v3066_v52 = vpop.f32.mrf.mxu2  ;;  %v16958_v10 = vpop.f32.mrf.mxu3  ;;  %v11517_v42 = vor.u32 %v14437_v18, %v11514_v2 }
 0x478   : >> { %v3067_v50 = vadd.f32 %v3066_v52, %v16731_v36  ;;  %v11576_v52 = vld [vmem:[%s21297_s5 + $0x370] sm:$0xf] }
 0x479   : >> { %v4137_v20 = vld [vmem:[#allocation2 + $0x258] sm:$0xff] }
 0x47a   : >> { %3392 = vst.msk [vmem:[#allocation2 + $0x260] sm:$0xff] %vm3315_vm15, %v3067_v50  ;;  %v4141_v55 = vpack.c.bf16 %v4137_v20, %v4136_v43  ;;  %v14454_v50 = vld [vmem:[%s21297_s5 + $0x374] sm:$0xf0] }
 0x47b   : >> { %v11577_v43 = vor.u32 %v14454_v50, %v11576_v52 }
 0x47c   : >> { %v16962_v1 = vpop.f32.mrf.mxu1 }
 0x47d   : >> { %12024 = vmatmul.msk.bf16.gmra.mxu0 %vm3315_vm15, %v4141_v55 }
 0x47f   : >> { %v3068_v45 = vpop.f32.mrf.mxu2  ;;  %v4005_v27 = vpop.f32.mrf.mxu3 }
 0x480   : >> { %v3069_v36 = vadd.f32 %v3068_v45, %v16739_v21  ;;  %v16973_v31 = vadd.f32 %v16876_v24, %v4005_v27  ;;  %v14439_v27 = vld [vmem:[%s21297_s5 + $0x304] sm:$0xf] }
 0x481   : >> { %v4138_v55 = vld [vmem:[#allocation2 + $0x260] sm:$0xff] }
 0x482   : >> { %3393 = vst.msk [vmem:[#allocation2 + $0x268] sm:$0xff] %vm3315_vm15, %v3069_v36  ;;  %v4142_v2 = vpack.c.bf16 %v4138_v55, %v4138_v55  ;;  %v11522_v36 = vld [vmem:[%s21297_s5 + $0x308] sm:$0xf0]  ;;  %v14456_v55 = vld [vmem:[%s21297_s5 + $0x384] sm:$0xf0] }
 0x484   : >> { %v16982_v20 = vpop.f32.mrf.mxu1  ;;  %11877 = vmatmul.msk.bf16.gmra.mxu2 %vm2150_vm14, %v11517_v42 }
 0x487   : >> { %2702 = vmatmul.bf16.gmra.mxu1 %v11577_v43  ;;  %v3071_v21 = vpop.f32.mrf.mxu2  ;;  %v16985_v24 = vpop.f32.mrf.mxu3  ;;  %v11525_v43 = vor.u32 %v14439_v27, %v11522_v36 }
 0x488   : >> { %v3072_v18 = vadd.f32 %v3071_v21, %v16760_v8  ;;  %v11584_v21 = vld [vmem:[%s21297_s5 + $0x380] sm:$0xf] }
 0x489   : >> { %v11585_v0 = vor.u32 %v14456_v55, %v11584_v21  ;;  %v11592_v21 = vld [vmem:[%s21297_s5 + $0x390] sm:$0xf]  ;;  %v14458_v55 = vld [vmem:[%s21297_s5 + $0x394] sm:$0xf0] }
 0x48a   : >> { %3394 = vst.msk [vmem:[#allocation2 + $0x270] sm:$0xff] %vm3315_vm15, %v3072_v18  ;;  %v4199_v18 = vld [vmem:[#allocation2 + $0x268] sm:$0xff] }
 0x48c   : >> { %v16989_v45 = vpop.f32.mrf.mxu1 }
 0x48d   : >> { %12025 = vmatmul.msk.bf16.gmra.mxu0 %vm3315_vm15, %v4142_v2 }
 0x48f   : >> { %v3073_v42 = vpop.f32.mrf.mxu2  ;;  %v4010_v52 = vpop.f32.mrf.mxu3 }
 0x490   : >> { %v3074_v50 = vadd.f32 %v3073_v42, %v16771_v51  ;;  %v17000_v8 = vadd.f32 %v16902_v63, %v4010_v52  ;;  %v14441_v42 = vld [vmem:[%s21297_s5 + $0x314] sm:$0xf]  ;;  %v11530_v52 = vld [vmem:[%s21297_s5 + $0x318] sm:$0xf0] }
 0x491   : >> { %v4200_v2 = vld [vmem:[#allocation2 + $0x270] sm:$0xff] }
 0x492   : >> { %3395 = vst.msk [vmem:[#allocation2 + $0x278] sm:$0xff] %vm3315_vm15, %v3074_v50  ;;  %v4206_v39 = vpack.c.bf16 %v4200_v2, %v4199_v18 }
 0x494   : >> { %v17009_v34 = vpop.f32.mrf.mxu1  ;;  %11878 = vmatmul.msk.bf16.gmra.mxu2 %vm2150_vm14, %v11525_v43  ;;  %12032 = vmatmul.msk.bf16.vlgmr.msra.gmra.mxu3 %vm3315_vm15, %v4206_v39 }
 0x497   : >> { %2707 = vmatmul.bf16.gmra.mxu1 %v11585_v0  ;;  %v3076_v51 = vpop.f32.mrf.mxu2  ;;  %v17013_v63 = vpop.f32.mrf.mxu3 }
 0x498   : >> { %21396 = vst [vmem:[#allocation17_spill] sm:$0xff] %v17013_v63  ;;  %v3077_v27 = vadd.f32 %v3076_v51, %v16792_v48  ;;  %v11533_v48 = vor.u32 %v14441_v42, %v11530_v52  ;;  %v14529_v52 = vld [vmem:[%s21298_s6 + $0x60] sm:$0xff] }
 0x499   : >> { %v4201_v18 = vld [vmem:[#allocation2 + $0x278] sm:$0xff]  ;;  %4305 = vmatpush.bf16.msra.mxu0 %v14529_v52 }
 0x49a   : >> { %3396 = vst.msk [vmem:[#allocation2 + $0x280] sm:$0xff] %vm3315_vm15, %v3077_v27  ;;  %v11593_v27 = vor.u32 %v14458_v55, %v11592_v21 }
 0x49c   : >> { %v17017_v36 = vpop.f32.mrf.mxu1 }
 0x49f   : >> { %v3078_v50 = vpop.f32.mrf.mxu2  ;;  %v4015_v39 = vpop.f32.mrf.mxu3 }
 0x4a0   : >> { %v3079_v0 = vadd.f32 %v3078_v50, %v16800_v22  ;;  %v17027_v43 = vadd.f32 %v16929_v3, %v4015_v39  ;;  %v14443_v39 = vld [vmem:[%s21297_s5 + $0x324] sm:$0xf] }
 0x4a1   : >> { %v4202_v2 = vld [vmem:[#allocation2 + $0x280] sm:$0xff] }
 0x4a2   : >> { %3397 = vst.msk [vmem:[#allocation2 + $0x288] sm:$0xff] %vm3315_vm15, %v3079_v0  ;;  %v4207_v51 = vpack.c.bf16 %v4202_v2, %v4201_v18  ;;  %v11538_v0 = vld [vmem:[%s21297_s5 + $0x328] sm:$0xf0]  ;;  %v11600_v2 = vld [vmem:[%s21297_s5 + $0x3a0] sm:$0xf] }
 0x4a3   : >> { %v11541_v18 = vor.u32 %v14443_v39, %v11538_v0 }
 0x4a4   : >> { %v17036_v47 = vpop.f32.mrf.mxu1  ;;  %11879 = vmatmul.msk.bf16.gmra.mxu2 %vm2150_vm14, %v11533_v48  ;;  %12033 = vmatmul.msk.bf16.gmra.mxu3 %vm3315_vm15, %v4207_v51  ;;  %v14460_v51 = vld [vmem:[%s21297_s5 + $0x3a4] sm:$0xf0] }
 0x4a7   : >> { %2712 = vmatmul.bf16.gmra.mxu1 %v11593_v27  ;;  %v3081_v22 = vpop.f32.mrf.mxu2  ;;  %v4017_v3 = vpop.f32.mrf.mxu3 }
 0x4a8   : >> { %v3082_v42 = vadd.f32 %v3081_v22, %v16819_v16 }
 0x4a9   : >> { %v4203_v27 = vld [vmem:[#allocation2 + $0x288] sm:$0xff] }
 0x4aa   : >> { %3398 = vst.msk [vmem:[#allocation2 + $0x290] sm:$0xff] %vm3315_vm15, %v3082_v42  ;;  %v11601_v42 = vor.u32 %v14460_v51, %v11600_v2 }
 0x4ac   : >> { %v17045_v50 = vpop.f32.mrf.mxu1 }
 0x4af   : >> { %v3083_v48 = vpop.f32.mrf.mxu2  ;;  %v4106_v21 = vpop.f32.mrf.mxu3 }
 0x4b0   : >> { %v3084_v16 = vadd.f32 %v3083_v48, %v16826_v7  ;;  %v17055_v55 = vadd.f32 %v4106_v21, %v16943_v57  ;;  %v14445_v48 = vld [vmem:[%s21297_s5 + $0x334] sm:$0xf]  ;;  %v11546_v21 = vld [vmem:[%s21297_s5 + $0x338] sm:$0xf0] }
 0x4b1   : >> { %v4204_v22 = vld [vmem:[#allocation2 + $0x290] sm:$0xff] }
 0x4b2   : >> { %3399 = vst.msk [vmem:[#allocation2 + $0x298] sm:$0xff] %vm3315_vm15, %v3084_v16  ;;  %v4208_v3 = vpack.c.bf16 %v4204_v22, %v4203_v27  ;;  %v11608_v22 = vld [vmem:[%s21297_s5 + $0x3b0] sm:$0xf] }
 0x4b4   : >> { %v17064_v52 = vpop.f32.mrf.mxu1  ;;  %11880 = vmatmul.msk.bf16.gmra.mxu2 %vm2150_vm14, %v11541_v18  ;;  %12034 = vmatmul.msk.bf16.gmra.mxu3 %vm3315_vm15, %v4208_v3  ;;  %v14462_v3 = vld [vmem:[%s21297_s5 + $0x3b4] sm:$0xf0] }
 0x4b7   : >> { %2717 = vmatmul.bf16.gmra.mxu1 %v11601_v42  ;;  %v3086_v7 = vpop.f32.mrf.mxu2  ;;  %v17068_v57 = vpop.f32.mrf.mxu3 }
 0x4b8   : >> { %v3087_v39 = vadd.f32 %v3086_v7, %v16843_v61  ;;  %v11549_v61 = vor.u32 %v14445_v48, %v11546_v21  ;;  %v11609_v7 = vor.u32 %v14462_v3, %v11608_v22 }
 0x4b9   : >> { %v4205_v2 = vld [vmem:[#allocation2 + $0x298] sm:$0xff] }
 0x4ba   : >> { %3400 = vst.msk [vmem:[#allocation2 + $0x2a0] sm:$0xff] %vm3315_vm15, %v3087_v39  ;;  %v4209_v42 = vpack.c.bf16 %v4205_v2, %v4205_v2  ;;  %v14447_v2 = vld [vmem:[%s21297_s5 + $0x344] sm:$0xf] }
 0x4bc   : >> { %v17072_v0 = vpop.f32.mrf.mxu1 }
 0x4bf   : >> { %v3088_v16 = vpop.f32.mrf.mxu2  ;;  %v4111_v18 = vpop.f32.mrf.mxu3 }
 0x4c0   : >> { %v3089_v51 = vadd.f32 %v3088_v16, %v16853_v9  ;;  %v17082_v27 = vadd.f32 %v4111_v18, %v16973_v31 }
 0x4c1   : >> { %v4266_v21 = vld [vmem:[#allocation2 + $0x2a0] sm:$0xff] }
 0x4c2   : >> { %3401 = vst.msk [vmem:[#allocation2 + $0x2a8] sm:$0xff] %vm3315_vm15, %v3089_v51 }
 0x4c4   : >> { %v17091_v39 = vpop.f32.mrf.mxu1  ;;  %11881 = vmatmul.msk.bf16.gmra.mxu2 %vm2150_vm14, %v11549_v61  ;;  %12035 = vmatmul.msk.bf16.gmra.mxu3 %vm3315_vm15, %v4209_v42  ;;  %v11554_v61 = vld [vmem:[%s21297_s5 + $0x348] sm:$0xf0] }
 0x4c7   : >> { %2722 = vmatmul.bf16.gmra.mxu1 %v11609_v7  ;;  %v3091_v9 = vpop.f32.mrf.mxu2  ;;  %v17095_v31 = vpop.f32.mrf.mxu3  ;;  %v11557_v7 = vor.u32 %v14447_v2, %v11554_v61 }
 0x4c8   : >> { %v3092_v48 = vadd.f32 %v3091_v9, %v16872_v49  ;;  %v11616_v9 = vld [vmem:[%s21297_s5 + $0x3c0] sm:$0xf] }
 0x4c9   : >> { %v4267_v16 = vld [vmem:[#allocation2 + $0x2a8] sm:$0xff] }
 0x4ca   : >> { %3402 = vst.msk [vmem:[#allocation2 + $0x2b0] sm:$0xff] %vm3315_vm15, %v3092_v48  ;;  %v4273_v18 = vpack.c.bf16 %v4267_v16, %v4266_v21  ;;  %v14464_v48 = vld [vmem:[%s21297_s5 + $0x3c4] sm:$0xf0] }
 0x4cb   : >> { %v11617_v21 = vor.u32 %v14464_v48, %v11616_v9 }
 0x4cc   : >> { %v17099_v51 = vpop.f32.mrf.mxu1  ;;  %12042 = vmatmul.msk.bf16.vlgmr.msra.gmra.mxu0 %vm3315_vm15, %v4273_v18 }
 0x4cf   : >> { %v3093_v22 = vpop.f32.mrf.mxu2  ;;  %v4116_v3 = vpop.f32.mrf.mxu3 }
 0x4d0   : >> { %v3094_v49 = vadd.f32 %v3093_v22, %v16879_v59  ;;  %v17110_v42 = vadd.f32 %v4116_v3, %v17000_v8 }
 0x4d1   : >> { %v4268_v61 = vld [vmem:[#allocation2 + $0x2b0] sm:$0xff] }
 0x4d2   : >> { %3403 = vst.msk [vmem:[#allocation2 + $0x2b8] sm:$0xff] %vm3315_vm15, %v3094_v49 }
 0x4d4   : >> { %v17119_v16 = vpop.f32.mrf.mxu1  ;;  %11882 = vmatmul.msk.bf16.gmra.mxu2 %vm2150_vm14, %v11557_v7  ;;  %v14449_v7 = vld [vmem:[%s21297_s5 + $0x354] sm:$0xf] }
 0x4d7   : >> { %2727 = vmatmul.bf16.gmra.mxu1 %v11617_v21  ;;  %v3096_v59 = vpop.f32.mrf.mxu2  ;;  %v17122_v8 = vpop.f32.mrf.mxu3 }
 0x4d8   : >> { %21397 = vst [vmem:[#allocation18_spill] sm:$0xff] %v17122_v8  ;;  %v3097_v18 = vadd.f32 %v3096_v59, %v16898_v13  ;;  %v11562_v13 = vld [vmem:[%s21297_s5 + $0x358] sm:$0xf0] }
 0x4d9   : >> { %v4173_v2 = vpop.f32.mrf.mxu0  ;;  %v4269_v22 = vld [vmem:[#allocation2 + $0x2b8] sm:$0xff] }
 0x4da   : >> { %3404 = vst.msk [vmem:[#allocation2 + $0x2c0] sm:$0xff] %vm3315_vm15, %v3097_v18  ;;  %v17127_v3 = vadd.f32 %v4173_v2, %v17055_v55  ;;  %v4274_v49 = vpack.c.bf16 %v4269_v22, %v4268_v61  ;;  %v11565_v18 = vor.u32 %v14449_v7, %v11562_v13  ;;  %v11624_v2 = vld [vmem:[%s21297_s5 + $0x3d0] sm:$0xf]  ;;  %v14466_v61 = vld [vmem:[%s21297_s5 + $0x3d4] sm:$0xf0]  ;;  %v14530_v22 = vld [vmem:[%s21298_s6 + $0x68] sm:$0xff] }
 0x4db   : >> { %4372 = vmatpush.bf16.msrb.mxu3 %v14530_v22 }
 0x4dc   : >> { %v17129_v9 = vpop.f32.mrf.mxu1  ;;  %12043 = vmatmul.msk.bf16.gmra.mxu0 %vm3315_vm15, %v4274_v49 }
 0x4df   : >> { %v3098_v48 = vpop.f32.mrf.mxu2  ;;  %v4121_v21 = vpop.f32.mrf.mxu3 }
 0x4e0   : >> { %v3099_v59 = vadd.f32 %v3098_v48, %v16905_v19  ;;  %v17140_v55 = vadd.f32 %v4121_v21, %v17027_v43  ;;  %v11625_v19 = vor.u32 %v14466_v61, %v11624_v2 }
 0x4e1   : >> { %v17151_v49 = vpop.f32.mrf.mxu0  ;;  %v4270_v8 = vld [vmem:[#allocation2 + $0x2c0] sm:$0xff] }
 0x4e2   : >> { %3405 = vst.msk [vmem:[#allocation2 + $0x2c8] sm:$0xff] %vm3315_vm15, %v3099_v59 }
 0x4e4   : >> { %v17154_v43 = vpop.f32.mrf.mxu1  ;;  %11883 = vmatmul.msk.bf16.gmra.mxu2 %vm2150_vm14, %v11565_v18  ;;  %v14451_v18 = vld [vmem:[%s21297_s5 + $0x364] sm:$0xf] }
 0x4e7   : >> { %2732 = vmatmul.bf16.gmra.mxu1 %v11625_v19  ;;  %v3101_v7 = vpop.f32.mrf.mxu2  ;;  %v4123_v13 = vpop.f32.mrf.mxu3 }
 0x4e8   : >> { %v3102_v48 = vadd.f32 %v3101_v7, %v16925_v25  ;;  %v11570_v25 = vld [vmem:[%s21297_s5 + $0x368] sm:$0xf0] }
 0x4e9   : >> { %v4271_v63 = vld [vmem:[#allocation2 + $0x2c8] sm:$0xff]  ;;  %v11573_v19 = vor.u32 %v14451_v18, %v11570_v25 }
 0x4ea   : >> { %v4178_v21 = vpop.f32.mrf.mxu0  ;;  %3406 = vst.msk [vmem:[#allocation2 + $0x2d0] sm:$0xff] %vm3315_vm15, %v3102_v48  ;;  %v4275_v59 = vpack.c.bf16 %v4271_v63, %v4270_v8  ;;  %v11632_v63 = vld [vmem:[%s21297_s5 + $0x3e0] sm:$0xf] }
 0x4eb   : >> { %v17160_v53 = vadd.f32 %v4178_v21, %v17082_v27  ;;  %v14468_v27 = vld [vmem:[%s21297_s5 + $0x3e4] sm:$0xf0] }
 0x4ec   : >> { %v17162_v22 = vpop.f32.mrf.mxu1  ;;  %12044 = vmatmul.msk.bf16.gmra.mxu0 %vm3315_vm15, %v4275_v59  ;;  %v11633_v7 = vor.u32 %v14468_v27, %v11632_v63 }
 0x4ef   : >> { %v3103_v2 = vpop.f32.mrf.mxu2 }
 0x4f0   : >> { %v3104_v61 = vadd.f32 %v3103_v2, %v16932_v17 }
 0x4f1   : >> { %v4272_v48 = vld [vmem:[#allocation2 + $0x2d0] sm:$0xff] }
 0x4f2   : >> { %v17178_v8 = vpop.f32.mrf.mxu0  ;;  %3407 = vst.msk [vmem:[#allocation2 + $0x2d8] sm:$0xff] %vm3315_vm15, %v3104_v61  ;;  %v4276_v25 = vpack.c.bf16 %v4272_v48, %v4272_v48  ;;  %v14453_v61 = vld [vmem:[%s21297_s5 + $0x374] sm:$0xf] }
 0x4f3   : >> { %21398 = vst [vmem:[#allocation19_spill] sm:$0xff] %v17178_v8 }
 0x4f4   : >> { %v17181_v13 = vpop.f32.mrf.mxu1  ;;  %11884 = vmatmul.msk.bf16.gmra.mxu2 %vm2150_vm14, %v11573_v19  ;;  %v11578_v19 = vld [vmem:[%s21297_s5 + $0x378] sm:$0xf0] }
 0x4f5   : >> { %v11581_v27 = vor.u32 %v14453_v61, %v11578_v19 }
 0x4f7   : >> { %2737 = vmatmul.bf16.gmra.mxu1 %v11633_v7  ;;  %v3106_v17 = vpop.f32.mrf.mxu2  ;;  %v14470_v7 = vld [vmem:[%s21297_s5 + $0x3f4] sm:$0xf0] }
 0x4f8   : >> { %v3107_v21 = vadd.f32 %v3106_v17, %v16955_v4 }
 0x4f9   : >> { %v4333_v48 = vld [vmem:[#allocation2 + $0x2d8] sm:$0xff] }
 0x4fa   : >> { %v4183_v59 = vpop.f32.mrf.mxu0  ;;  %3408 = vst.msk [vmem:[#allocation2 + $0x2e0] sm:$0xff] %vm3315_vm15, %v3107_v21 }
 0x4fb   : >> { %v17187_v18 = vadd.f32 %v4183_v59, %v17110_v42  ;;  %v11640_v42 = vld [vmem:[%s21297_s5 + $0x3f0] sm:$0xf] }
 0x4fc   : >> { %v17189_v2 = vpop.f32.mrf.mxu1  ;;  %12045 = vmatmul.msk.bf16.gmra.mxu0 %vm3315_vm15, %v4276_v25  ;;  %v11641_v25 = vor.u32 %v14470_v7, %v11640_v42 }
 0x4ff   : >> { %v3108_v4 = vpop.f32.mrf.mxu2 }
 0x500   : >> { %v3109_v63 = vadd.f32 %v3108_v4, %v16962_v1 }
 0x501   : >> { %v4334_v21 = vld [vmem:[#allocation2 + $0x2e0] sm:$0xff] }
 0x502   : >> { %v17205_v17 = vpop.f32.mrf.mxu0  ;;  %3409 = vst.msk [vmem:[#allocation2 + $0x2e8] sm:$0xff] %vm3315_vm15, %v3109_v63  ;;  %v4340_v59 = vpack.c.bf16 %v4334_v21, %v4333_v48  ;;  %v14455_v63 = vld [vmem:[%s21297_s5 + $0x384] sm:$0xf]  ;;  %v11648_v48 = vld [vmem:[%s21297_s5 + $0x400] sm:$0xf] }
 0x503   : >> { %21399 = vst [vmem:[#allocation20_spill] sm:$0xff] %v17205_v17 }
 0x504   : >> { %v17208_v32 = vpop.f32.mrf.mxu1  ;;  %11885 = vmatmul.msk.bf16.gmra.mxu2 %vm2150_vm14, %v11581_v27  ;;  %12052 = vmatmul.msk.bf16.vlgmr.msrb.gmra.mxu3 %vm3315_vm15, %v4340_v59  ;;  %v11586_v27 = vld [vmem:[%s21297_s5 + $0x388] sm:$0xf0] }
 0x507   : >> { %2742 = vmatmul.bf16.gmra.mxu1 %v11641_v25  ;;  %v3111_v1 = vpop.f32.mrf.mxu2 }
 0x508   : >> { %v3112_v61 = vadd.f32 %v3111_v1, %v16982_v20  ;;  %v11589_v20 = vor.u32 %v14455_v63, %v11586_v27 }
 0x509   : >> { %v4335_v59 = vld [vmem:[#allocation2 + $0x2e8] sm:$0xff] }
 0x50a   : >> { %v4188_v19 = vpop.f32.mrf.mxu0  ;;  %3410 = vst.msk [vmem:[#allocation2 + $0x2f0] sm:$0xff] %vm3315_vm15, %v3112_v61 }
 0x50b   : >> { %v17215_v4 = vadd.f32 %v4188_v19, %v17140_v55  ;;  %v14472_v55 = vld [vmem:[%s21297_s5 + $0x404] sm:$0xf0] }
 0x50c   : >> { %v17217_v17 = vpop.f32.mrf.mxu1  ;;  %v11649_v61 = vor.u32 %v14472_v55, %v11648_v48 }
 0x50f   : >> { %v3113_v42 = vpop.f32.mrf.mxu2 }
 0x510   : >> { %v3114_v7 = vadd.f32 %v3113_v42, %v16989_v45 }
 0x511   : >> { %v4336_v25 = vld [vmem:[#allocation2 + $0x2f0] sm:$0xff] }
 0x512   : >> { %v4190_v21 = vpop.f32.mrf.mxu0  ;;  %3411 = vst.msk [vmem:[#allocation2 + $0x2f8] sm:$0xff] %vm3315_vm15, %v3114_v7  ;;  %v4341_v1 = vpack.c.bf16 %v4336_v25, %v4335_v59  ;;  %v14457_v7 = vld [vmem:[%s21297_s5 + $0x394] sm:$0xf]  ;;  %v14474_v25 = vld [vmem:[%s21297_s5 + $0x414] sm:$0xf0] }
 0x514   : >> { %v17233_v19 = vpop.f32.mrf.mxu1  ;;  %11886 = vmatmul.msk.bf16.gmra.mxu2 %vm2150_vm14, %v11589_v20  ;;  %12053 = vmatmul.msk.bf16.gmra.mxu3 %vm3315_vm15, %v4341_v1  ;;  %v11594_v20 = vld [vmem:[%s21297_s5 + $0x398] sm:$0xf0]  ;;  %v14531_v1 = vld [vmem:[%s21298_s6 + $0x70] sm:$0xff] }
 0x515   : >> { %v11597_v59 = vor.u32 %v14457_v7, %v11594_v20  ;;  %4499 = vmatpush.bf16.msra.mxu3 %v14531_v1 }
 0x517   : >> { %2747 = vmatmul.bf16.gmra.mxu1 %v11649_v61  ;;  %v3116_v45 = vpop.f32.mrf.mxu2  ;;  %v4240_v63 = vpop.f32.mrf.mxu3 }
 0x518   : >> { %v3117_v27 = vadd.f32 %v3116_v45, %v17009_v34  ;;  %v17239_v42 = vadd.f32 %v4240_v63, %v17127_v3  ;;  %v11656_v3 = vld [vmem:[%s21297_s5 + $0x410] sm:$0xf] }
 0x519   : >> { %v4337_v61 = vld [vmem:[#allocation2 + $0x2f8] sm:$0xff] }
 0x51a   : >> { %3412 = vst.msk [vmem:[#allocation2 + $0x300] sm:$0xff] %vm3315_vm15, %v3117_v27 }
 0x51c   : >> { %v17242_v21 = vpop.f32.mrf.mxu1 }
 0x51f   : >> { %v3118_v48 = vpop.f32.mrf.mxu2  ;;  %v17250_v55 = vpop.f32.mrf.mxu3 }
 0x520   : >> { %v3119_v34 = vadd.f32 %v3118_v48, %v17017_v36  ;;  %v11657_v36 = vor.u32 %v14474_v25, %v11656_v3  ;;  %v14459_v3 = vld [vmem:[%s21297_s5 + $0x3a4] sm:$0xf] }
 0x521   : >> { %v4338_v45 = vld [vmem:[#allocation2 + $0x300] sm:$0xff] }
 0x522   : >> { %3413 = vst.msk [vmem:[#allocation2 + $0x308] sm:$0xff] %vm3315_vm15, %v3119_v34  ;;  %v4342_v63 = vpack.c.bf16 %v4338_v45, %v4337_v61  ;;  %v11664_v45 = vld [vmem:[%s21297_s5 + $0x420] sm:$0xf] }
 0x524   : >> { %v17263_v27 = vpop.f32.mrf.mxu1  ;;  %11887 = vmatmul.msk.bf16.gmra.mxu2 %vm2150_vm14, %v11597_v59  ;;  %12054 = vmatmul.msk.bf16.gmra.mxu3 %vm3315_vm15, %v4342_v63  ;;  %v11602_v59 = vld [vmem:[%s21297_s5 + $0x3a8] sm:$0xf0]  ;;  %v14476_v63 = vld [vmem:[%s21297_s5 + $0x424] sm:$0xf0] }
 0x527   : >> { %2752 = vmatmul.bf16.gmra.mxu1 %v11657_v36  ;;  %v3121_v7 = vpop.f32.mrf.mxu2  ;;  %v4245_v20 = vpop.f32.mrf.mxu3 }
 0x528   : >> { %v3122_v48 = vadd.f32 %v3121_v7, %v17036_v47  ;;  %v17269_v23 = vadd.f32 %v4245_v20, %v17160_v53  ;;  %v11605_v53 = vor.u32 %v14459_v3, %v11602_v59  ;;  %v11665_v7 = vor.u32 %v14476_v63, %v11664_v45 }
 0x529   : >> { %v4339_v61 = vld [vmem:[#allocation2 + $0x308] sm:$0xff] }
 0x52a   : >> { %3414 = vst.msk [vmem:[#allocation2 + $0x310] sm:$0xff] %vm3315_vm15, %v3122_v48  ;;  %v4343_v36 = vpack.c.bf16 %v4339_v61, %v4339_v61  ;;  %v14461_v61 = vld [vmem:[%s21297_s5 + $0x3b4] sm:$0xf] }
 0x52c   : >> { %v17272_v34 = vpop.f32.mrf.mxu1 }
 0x52f   : >> { %v3123_v25 = vpop.f32.mrf.mxu2  ;;  %v17280_v1 = vpop.f32.mrf.mxu3 }
 0x530   : >> { %21400 = vst [vmem:[#allocation21_spill] sm:$0xff] %v17280_v1  ;;  %v3124_v47 = vadd.f32 %v3123_v25, %v17045_v50 }
 0x532   : >> { %3415 = vst.msk [vmem:[#allocation2 + $0x318] sm:$0xff] %vm3315_vm15, %v3124_v47  ;;  %v11610_v47 = vld [vmem:[%s21297_s5 + $0x3b8] sm:$0xf0] }
 0x534   : >> { %v17290_v20 = vpop.f32.mrf.mxu1  ;;  %11888 = vmatmul.msk.bf16.gmra.mxu2 %vm2150_vm14, %v11605_v53  ;;  %12055 = vmatmul.msk.bf16.gmra.mxu3 %vm3315_vm15, %v4343_v36  ;;  %v11672_v36 = vld [vmem:[%s21297_s5 + $0x430] sm:$0xf] }
 0x537   : >> { %2757 = vmatmul.bf16.gmra.mxu1 %v11665_v7  ;;  %v3126_v50 = vpop.f32.mrf.mxu2  ;;  %v4250_v48 = vpop.f32.mrf.mxu3  ;;  %v14478_v7 = vld [vmem:[%s21297_s5 + $0x434] sm:$0xf0] }
 0x538   : >> { %v3127_v3 = vadd.f32 %v3126_v50, %v17064_v52  ;;  %v17296_v59 = vadd.f32 %v4250_v48, %v17187_v18  ;;  %v11613_v18 = vor.u32 %v14461_v61, %v11610_v47  ;;  %v4400_v50 = vld [vmem:[#allocation2 + $0x310] sm:$0xff] }
 0x539   : >> { %v4401_v63 = vld [vmem:[#allocation2 + $0x318] sm:$0xff] }
 0x53a   : >> { %3416 = vst.msk [vmem:[#allocation2 + $0x320] sm:$0xff] %vm3315_vm15, %v3127_v3  ;;  %v4407_v48 = vpack.c.bf16 %v4401_v63, %v4400_v50  ;;  %v11673_v3 = vor.u32 %v14478_v7, %v11672_v36  ;;  %v11618_v36 = vld [vmem:[%s21297_s5 + $0x3c8] sm:$0xf0] }
 0x53c   : >> { %v17299_v25 = vpop.f32.mrf.mxu1 }
 0x53f   : >> { %v3128_v53 = vpop.f32.mrf.mxu2  ;;  %v17307_v45 = vpop.f32.mrf.mxu3 }
 0x540   : >> { %21401 = vst [vmem:[#allocation22_spill] sm:$0xff] %v17307_v45  ;;  %v3129_v52 = vadd.f32 %v3128_v53, %v17072_v0 }
 0x542   : >> { %3417 = vst.msk [vmem:[#allocation2 + $0x328] sm:$0xff] %vm3315_vm15, %v3129_v52 }
 0x544   : >> { %v17317_v58 = vpop.f32.mrf.mxu1  ;;  %11889 = vmatmul.msk.bf16.gmra.mxu2 %vm2150_vm14, %v11613_v18  ;;  %12072 = vmatmul.msk.bf16.vlgmr.msra.gmra.mxu3 %vm3315_vm15, %v4407_v48  ;;  %v14463_v18 = vld [vmem:[%s21297_s5 + $0x3c4] sm:$0xf] }
 0x545   : >> { %v11621_v48 = vor.u32 %v14463_v18, %v11618_v36 }
 0x547   : >> { %2762 = vmatmul.bf16.gmra.mxu1 %v11673_v3  ;;  %v3131_v0 = vpop.f32.mrf.mxu2  ;;  %v4255_v61 = vpop.f32.mrf.mxu3  ;;  %v14532_v3 = vld [vmem:[%s21298_s6 + $0x78] sm:$0xff] }
 0x548   : >> { %v3132_v47 = vadd.f32 %v3131_v0, %v17091_v39  ;;  %v17323_v53 = vadd.f32 %v4255_v61, %v17215_v4  ;;  %v4402_v61 = vld [vmem:[#allocation2 + $0x320] sm:$0xff]  ;;  %4453 = vmatpush.bf16.msrb.mxu0 %v14532_v3 }
 0x549   : >> { %v4307_v45 = vpop.f32.mrf.mxu0  ;;  %v4403_v4 = vld [vmem:[#allocation2 + $0x328] sm:$0xff] }
 0x54a   : >> { %3418 = vst.msk [vmem:[#allocation2 + $0x330] sm:$0xff] %vm3315_vm15, %v3132_v47  ;;  %v17327_v63 = vadd.f32 %v4307_v45, %v17239_v42  ;;  %v11680_v42 = vld [vmem:[%s21297_s5 + $0x440] sm:$0xf]  ;;  %v14480_v45 = vld [vmem:[%s21297_s5 + $0x444] sm:$0xf0]  ;;  %v4408_v47 = vpack.c.bf16 %v4403_v4, %v4402_v61 }
 0x54b   : >> { %v14465_v4 = vld [vmem:[%s21297_s5 + $0x3d4] sm:$0xf]  ;;  %v14482_v61 = vld [vmem:[%s21297_s5 + $0x454] sm:$0xf0] }
 0x54c   : >> { %v17329_v52 = vpop.f32.mrf.mxu1 }
 0x54f   : >> { %v3133_v39 = vpop.f32.mrf.mxu2  ;;  %v4257_v7 = vpop.f32.mrf.mxu3 }
 0x550   : >> { %v3134_v50 = vadd.f32 %v3133_v39, %v17099_v51  ;;  %v11681_v51 = vor.u32 %v14480_v45, %v11680_v42 }
 0x551   : >> { %v17347_v0 = vpop.f32.mrf.mxu0 }
 0x552   : >> { %3419 = vst.msk [vmem:[#allocation2 + $0x338] sm:$0xff] %vm3315_vm15, %v3134_v50 }
 0x554   : >> { %v17350_v18 = vpop.f32.mrf.mxu1  ;;  %11890 = vmatmul.msk.bf16.gmra.mxu2 %vm2150_vm14, %v11621_v48  ;;  %12073 = vmatmul.msk.bf16.gmra.mxu3 %vm3315_vm15, %v4408_v47  ;;  %v11626_v48 = vld [vmem:[%s21297_s5 + $0x3d8] sm:$0xf0] }
 0x555   : >> { %v11629_v3 = vor.u32 %v14465_v4, %v11626_v48 }
 0x557   : >> { %2767 = vmatmul.bf16.gmra.mxu1 %v11681_v51  ;;  %v3136_v36 = vpop.f32.mrf.mxu2  ;;  %v4404_v51 = vld [vmem:[#allocation2 + $0x330] sm:$0xff] }
 0x558   : >> { %v3137_v39 = vadd.f32 %v3136_v36, %v17119_v16 }
 0x559   : >> { %v4312_v7 = vpop.f32.mrf.mxu0  ;;  %v4405_v45 = vld [vmem:[#allocation2 + $0x338] sm:$0xff] }
 0x55a   : >> { %3420 = vst.msk [vmem:[#allocation2 + $0x340] sm:$0xff] %vm3315_vm15, %v3137_v39  ;;  %v17357_v29 = vadd.f32 %v4312_v7, %v17269_v23  ;;  %v11688_v23 = vld [vmem:[%s21297_s5 + $0x450] sm:$0xf]  ;;  %v4409_v36 = vpack.c.bf16 %v4405_v45, %v4404_v51  ;;  %v14467_v45 = vld [vmem:[%s21297_s5 + $0x3e4] sm:$0xf] }
 0x55b   : >> { %v11689_v39 = vor.u32 %v14482_v61, %v11688_v23  ;;  %v14484_v51 = vld [vmem:[%s21297_s5 + $0x464] sm:$0xf0] }
 0x55c   : >> { %v17359_v50 = vpop.f32.mrf.mxu1 }
 0x55f   : >> { %v3138_v42 = vpop.f32.mrf.mxu2 }
 0x560   : >> { %v3139_v16 = vadd.f32 %v3138_v42, %v17129_v9 }
 0x561   : >> { %v17374_v47 = vpop.f32.mrf.mxu0  ;;  %v4406_v61 = vld [vmem:[#allocation2 + $0x340] sm:$0xff] }
 0x562   : >> { %21402 = vst [vmem:[#allocation23_spill] sm:$0xff] %v17374_v47 }
 0x563   : >> { %3421 = vst.msk [vmem:[#allocation2 + $0x348] sm:$0xff] %vm3315_vm15, %v3139_v16  ;;  %v11634_v16 = vld [vmem:[%s21297_s5 + $0x3e8] sm:$0xf0] }
 0x564   : >> { %v17377_v7 = vpop.f32.mrf.mxu1  ;;  %11891 = vmatmul.msk.bf16.gmra.mxu2 %vm2150_vm14, %v11629_v3  ;;  %12074 = vmatmul.msk.bf16.gmra.mxu3 %vm3315_vm15, %v4409_v36 }
 0x567   : >> { %2772 = vmatmul.bf16.gmra.mxu1 %v11689_v39  ;;  %v3141_v9 = vpop.f32.mrf.mxu2 }
 0x568   : >> { %v3142_v4 = vadd.f32 %v3141_v9, %v17154_v43  ;;  %v11637_v43 = vor.u32 %v14467_v45, %v11634_v16 }
 0x569   : >> { %v4317_v48 = vpop.f32.mrf.mxu0 }
 0x56a   : >> { %3422 = vst.msk [vmem:[#allocation2 + $0x350] sm:$0xff] %vm3315_vm15, %v3142_v4  ;;  %v17384_v42 = vadd.f32 %v4317_v48, %v17296_v59  ;;  %v11696_v59 = vld [vmem:[%s21297_s5 + $0x460] sm:$0xf]  ;;  %v4414_v39 = vld [vmem:[#allocation2 + $0x348] sm:$0xff]  ;;  %v4410_v48 = vpack.c.bf16 %v4406_v61, %v4406_v61 }
 0x56b   : >> { %v11697_v40 = vor.u32 %v14484_v51, %v11696_v59  ;;  %v11642_v59 = vld [vmem:[%s21297_s5 + $0x3f8] sm:$0xf0] }
 0x56c   : >> { %v17386_v47 = vpop.f32.mrf.mxu1 }
 0x56f   : >> { %v3143_v3 = vpop.f32.mrf.mxu2 }
 0x570   : >> { %v3144_v23 = vadd.f32 %v3143_v3, %v17162_v22 }
 0x571   : >> { %v17401_v36 = vpop.f32.mrf.mxu0  ;;  %v4415_v9 = vld [vmem:[#allocation2 + $0x350] sm:$0xff] }
 0x572   : >> { %21403 = vst [vmem:[#allocation24_spill] sm:$0xff] %v17401_v36  ;;  %v4421_v4 = vpack.c.bf16 %v4415_v9, %v4414_v39  ;;  %v11704_v39 = vld [vmem:[%s21297_s5 + $0x470] sm:$0xf] }
 0x573   : >> { %3423 = vst.msk [vmem:[#allocation2 + $0x358] sm:$0xff] %vm3315_vm15, %v3144_v23 }
 0x574   : >> { %v17404_v22 = vpop.f32.mrf.mxu1  ;;  %11892 = vmatmul.msk.bf16.gmra.mxu2 %vm2150_vm14, %v11637_v43  ;;  %12064 = vmatmul.msk.bf16.vlgmr.msrb.gmra.mxu0 %vm3315_vm15, %v4421_v4  ;;  %v14469_v43 = vld [vmem:[%s21297_s5 + $0x3f4] sm:$0xf] }
 0x575   : >> { %12075 = vmatmul.msk.bf16.gmra.mxu3 %vm3315_vm15, %v4410_v48 }
 0x577   : >> { %2777 = vmatmul.bf16.gmra.mxu1 %v11697_v40  ;;  %v3146_v45 = vpop.f32.mrf.mxu2 }
 0x578   : >> { %v3147_v16 = vadd.f32 %v3146_v45, %v17181_v13  ;;  %v11645_v13 = vor.u32 %v14469_v43, %v11642_v59 }
 0x579   : >> { %v4322_v3 = vpop.f32.mrf.mxu0 }
 0x57a   : >> { %3424 = vst.msk [vmem:[#allocation2 + $0x360] sm:$0xff] %vm3315_vm15, %v3147_v16  ;;  %v17412_v23 = vadd.f32 %v4322_v3, %v17323_v53  ;;  %v14486_v53 = vld [vmem:[%s21297_s5 + $0x474] sm:$0xf0] }
 0x57b   : >> { %v4416_v4 = vld [vmem:[#allocation2 + $0x358] sm:$0xff]  ;;  %v11705_v16 = vor.u32 %v14486_v53, %v11704_v39  ;;  %v11650_v39 = vld [vmem:[%s21297_s5 + $0x408] sm:$0xf0] }
 0x57c   : >> { %v17414_v61 = vpop.f32.mrf.mxu1 }
 0x57f   : >> { %v3148_v40 = vpop.f32.mrf.mxu2 }
 0x580   : >> { %v3149_v51 = vadd.f32 %v3148_v40, %v17189_v2 }
 0x581   : >> { %v4324_v9 = vpop.f32.mrf.mxu0  ;;  %v4417_v48 = vld [vmem:[#allocation2 + $0x360] sm:$0xff] }
 0x582   : >> { %3425 = vst.msk [vmem:[#allocation2 + $0x368] sm:$0xff] %vm3315_vm15, %v3149_v51  ;;  %v4422_v45 = vpack.c.bf16 %v4417_v48, %v4416_v4  ;;  %v14488_v48 = vld [vmem:[%s21297_s5 + $0x484] sm:$0xf0] }
 0x584   : >> { %v17430_v3 = vpop.f32.mrf.mxu1  ;;  %11893 = vmatmul.msk.bf16.gmra.mxu2 %vm2150_vm14, %v11645_v13  ;;  %12065 = vmatmul.msk.bf16.gmra.mxu0 %vm3315_vm15, %v4422_v45  ;;  %v14471_v13 = vld [vmem:[%s21297_s5 + $0x404] sm:$0xf] }
 0x585   : >> { %v14533_v45 = vld [vmem:[%s21298_s6 + $0x80] sm:$0xff] }
 0x586   : >> { %4559 = vmatpush.bf16.msra.mxu0 %v14533_v45 }
 0x587   : >> { %2782 = vmatmul.bf16.gmra.mxu1 %v11705_v16  ;;  %v3151_v2 = vpop.f32.mrf.mxu2  ;;  %v4374_v43 = vpop.f32.mrf.mxu3 }
 0x588   : >> { %v3152_v59 = vadd.f32 %v3151_v2, %v17208_v32  ;;  %v4393_v40 = vadd.f32 %v4374_v43, %v17327_v63  ;;  %v11653_v63 = vor.u32 %v14471_v13, %v11650_v39 }
 0x589   : >> { %v4418_v16 = vld [vmem:[#allocation2 + $0x368] sm:$0xff] }
 0x58a   : >> { %3426 = vst.msk [vmem:[#allocation2 + $0x370] sm:$0xff] %vm3315_vm15, %v3152_v59  ;;  %v17438_v9 = vadd.f32 %v4393_v40, %v16737_v38  ;;  %v11712_v38 = vld [vmem:[%s21297_s5 + $0x480] sm:$0xf] }
 0x58c   : >> { %v17440_v51 = vpop.f32.mrf.mxu1 }
 0x58f   : >> { %v3153_v53 = vpop.f32.mrf.mxu2  ;;  %v17448_v4 = vpop.f32.mrf.mxu3 }
 0x590   : >> { %v3154_v32 = vadd.f32 %v3153_v53, %v17217_v17  ;;  %v11713_v17 = vor.u32 %v14488_v48, %v11712_v38  ;;  %v11658_v38 = vld [vmem:[%s21297_s5 + $0x418] sm:$0xf0] }
 0x591   : >> { %v4419_v2 = vld [vmem:[#allocation2 + $0x370] sm:$0xff] }
 0x592   : >> { %3427 = vst.msk [vmem:[#allocation2 + $0x378] sm:$0xff] %vm3315_vm15, %v3154_v32  ;;  %v4423_v43 = vpack.c.bf16 %v4419_v2, %v4418_v16 }
 0x594   : >> { %v17461_v59 = vpop.f32.mrf.mxu1  ;;  %11894 = vmatmul.msk.bf16.gmra.mxu2 %vm2150_vm14, %v11653_v63  ;;  %12066 = vmatmul.msk.bf16.gmra.mxu0 %vm3315_vm15, %v4423_v43  ;;  %v14473_v63 = vld [vmem:[%s21297_s5 + $0x414] sm:$0xf]  ;;  %v14490_v43 = vld [vmem:[%s21297_s5 + $0x494] sm:$0xf0] }
 0x595   : >> { %v11661_v2 = vor.u32 %v14473_v63, %v11658_v38 }
 0x597   : >> { %2787 = vmatmul.bf16.gmra.mxu1 %v11713_v17  ;;  %v3156_v40 = vpop.f32.mrf.mxu2  ;;  %v4379_v13 = vpop.f32.mrf.mxu3 }
 0x598   : >> { %v3157_v39 = vadd.f32 %v3156_v40, %v17233_v19  ;;  %v4395_v53 = vadd.f32 %v4379_v13, %v17357_v29 }
 0x599   : >> { %v4420_v19 = vld [vmem:[#allocation2 + $0x378] sm:$0xff] }
 0x59a   : >> { %3428 = vst.msk [vmem:[#allocation2 + $0x380] sm:$0xff] %vm3315_vm15, %v3157_v39  ;;  %v17469_v32 = vadd.f32 %v4395_v53, %v16769_v12  ;;  %v11720_v12 = vld [vmem:[%s21297_s5 + $0x490] sm:$0xf]  ;;  %v4424_v17 = vpack.c.bf16 %v4420_v19, %v4420_v19  ;;  %v14475_v19 = vld [vmem:[%s21297_s5 + $0x424] sm:$0xf] }
 0x59b   : >> { %v11721_v40 = vor.u32 %v14490_v43, %v11720_v12 }
 0x59c   : >> { %21404 = vst [vmem:[#allocation25_spill] sm:$0xff] %v17469_v32  ;;  %v17471_v45 = vpop.f32.mrf.mxu1 }
 0x59f   : >> { %v3158_v48 = vpop.f32.mrf.mxu2  ;;  %v17479_v16 = vpop.f32.mrf.mxu3 }
 0x5a0   : >> { %21405 = vst [vmem:[#allocation26_spill] sm:$0xff] %v17479_v16  ;;  %v3159_v29 = vadd.f32 %v3158_v48, %v17242_v21 }
 0x5a2   : >> { %3429 = vst.msk [vmem:[#allocation2 + $0x388] sm:$0xff] %vm3315_vm15, %v3159_v29  ;;  %v11666_v29 = vld [vmem:[%s21297_s5 + $0x428] sm:$0xf0] }
 0x5a3   : >> { %v11669_v43 = vor.u32 %v14475_v19, %v11666_v29 }
 0x5a4   : >> { %v17489_v13 = vpop.f32.mrf.mxu1  ;;  %11895 = vmatmul.msk.bf16.gmra.mxu2 %vm2150_vm14, %v11661_v2  ;;  %12067 = vmatmul.msk.bf16.gmra.mxu0 %vm3315_vm15, %v4424_v17  ;;  %v14492_v17 = vld [vmem:[%s21297_s5 + $0x4a4] sm:$0xf0] }
 0x5a7   : >> { %2792 = vmatmul.bf16.gmra.mxu1 %v11721_v40  ;;  %v3161_v21 = vpop.f32.mrf.mxu2  ;;  %v4384_v39 = vpop.f32.mrf.mxu3  ;;  %v4520_v40 = vld [vmem:[#allocation2 + $0x380] sm:$0xff] }
 0x5a8   : >> { %v3162_v53 = vadd.f32 %v3161_v21, %v17263_v27  ;;  %v4397_v63 = vadd.f32 %v4384_v39, %v17384_v42 }
 0x5a9   : >> { %v4521_v27 = vld [vmem:[#allocation2 + $0x388] sm:$0xff] }
 0x5aa   : >> { %3430 = vst.msk [vmem:[#allocation2 + $0x390] sm:$0xff] %vm3315_vm15, %v3162_v53  ;;  %v17497_v38 = vadd.f32 %v4397_v63, %v16798_v11  ;;  %v11728_v11 = vld [vmem:[%s21297_s5 + $0x4a0] sm:$0xf]  ;;  %v4527_v21 = vpack.c.bf16 %v4521_v27, %v4520_v40 }
 0x5ab   : >> { %v11729_v39 = vor.u32 %v14492_v17, %v11728_v11 }
 0x5ac   : >> { %21406 = vst [vmem:[#allocation27_spill] sm:$0xff] %v17497_v38  ;;  %v17499_v48 = vpop.f32.mrf.mxu1 }
 0x5af   : >> { %v3163_v2 = vpop.f32.mrf.mxu2  ;;  %v17507_v12 = vpop.f32.mrf.mxu3 }
 0x5b0   : >> { %21407 = vst [vmem:[#allocation28_spill] sm:$0xff] %v17507_v12  ;;  %v3164_v42 = vadd.f32 %v3163_v2, %v17272_v34 }
 0x5b2   : >> { %3431 = vst.msk [vmem:[#allocation2 + $0x398] sm:$0xff] %vm3315_vm15, %v3164_v42  ;;  %v14477_v42 = vld [vmem:[%s21297_s5 + $0x434] sm:$0xf] }
 0x5b4   : >> { %v17517_v53 = vpop.f32.mrf.mxu1  ;;  %11896 = vmatmul.msk.bf16.gmra.mxu2 %vm2150_vm14, %v11669_v43  ;;  %12082 = vmatmul.msk.bf16.vlgmr.msra.gmra.mxu0 %vm3315_vm15, %v4527_v21  ;;  %v11674_v43 = vld [vmem:[%s21297_s5 + $0x438] sm:$0xf0]  ;;  %v14494_v21 = vld [vmem:[%s21297_s5 + $0x4b4] sm:$0xf0] }
 0x5b5   : >> { %v11677_v40 = vor.u32 %v14477_v42, %v11674_v43 }
 0x5b7   : >> { %2797 = vmatmul.bf16.gmra.mxu1 %v11729_v39  ;;  %v3166_v34 = vpop.f32.mrf.mxu2  ;;  %v4389_v63 = vpop.f32.mrf.mxu3  ;;  %v14534_v39 = vld [vmem:[%s21298_s6 + $0x88] sm:$0xff] }
 0x5b8   : >> { %v3167_v19 = vadd.f32 %v3166_v34, %v17290_v20  ;;  %v4399_v29 = vadd.f32 %v4389_v63, %v17412_v23  ;;  %v4522_v34 = vld [vmem:[#allocation2 + $0x390] sm:$0xff]  ;;  %4626 = vmatpush.bf16.msrb.mxu3 %v14534_v39 }
 0x5b9   : >> { %v4523_v20 = vld [vmem:[#allocation2 + $0x398] sm:$0xff] }
 0x5ba   : >> { %3432 = vst.msk [vmem:[#allocation2 + $0x3a0] sm:$0xff] %vm3315_vm15, %v3167_v19  ;;  %v17525_v2 = vadd.f32 %v4399_v29, %v16824_v6  ;;  %v11736_v6 = vld [vmem:[%s21297_s5 + $0x4b0] sm:$0xf]  ;;  %v4528_v63 = vpack.c.bf16 %v4523_v20, %v4522_v34  ;;  %v11682_v20 = vld [vmem:[%s21297_s5 + $0x448] sm:$0xf0] }
 0x5bb   : >> { %v11737_v19 = vor.u32 %v14494_v21, %v11736_v6  ;;  %v14496_v34 = vld [vmem:[%s21297_s5 + $0x4c4] sm:$0xf0] }
 0x5bc   : >> { %21408 = vst [vmem:[#allocation29_spill] sm:$0xff] %v17525_v2  ;;  %v17527_v27 = vpop.f32.mrf.mxu1 }
 0x5bf   : >> { %v3168_v11 = vpop.f32.mrf.mxu2  ;;  %v4391_v17 = vpop.f32.mrf.mxu3 }
 0x5c0   : >> { %v3169_v23 = vadd.f32 %v3168_v11, %v17299_v25  ;;  %v14479_v17 = vld [vmem:[%s21297_s5 + $0x444] sm:$0xf] }
 0x5c1   : >> { %v11685_v39 = vor.u32 %v14479_v17, %v11682_v20 }
 0x5c2   : >> { %3433 = vst.msk [vmem:[#allocation2 + $0x3a8] sm:$0xff] %vm3315_vm15, %v3169_v23 }
 0x5c4   : >> { %v17546_v25 = vpop.f32.mrf.mxu1  ;;  %11897 = vmatmul.msk.bf16.gmra.mxu2 %vm2150_vm14, %v11677_v40  ;;  %12083 = vmatmul.msk.bf16.gmra.mxu0 %vm3315_vm15, %v4528_v63  ;;  %v4524_v63 = vld [vmem:[#allocation2 + $0x3a0] sm:$0xff] }
 0x5c7   : >> { %2802 = vmatmul.bf16.gmra.mxu1 %v11737_v19  ;;  %v3171_v29 = vpop.f32.mrf.mxu2  ;;  %v17550_v42 = vpop.f32.mrf.mxu3 }
 0x5c8   : >> { %v3172_v43 = vadd.f32 %v3171_v29, %v17317_v58  ;;  %v11744_v58 = vld [vmem:[%s21297_s5 + $0x4c0] sm:$0xf] }
 0x5c9   : >> { %v4525_v6 = vld [vmem:[#allocation2 + $0x3a8] sm:$0xff]  ;;  %v11745_v29 = vor.u32 %v14496_v34, %v11744_v58 }
 0x5ca   : >> { %3434 = vst.msk [vmem:[#allocation2 + $0x3b0] sm:$0xff] %vm3315_vm15, %v3172_v43  ;;  %v4529_v19 = vpack.c.bf16 %v4525_v6, %v4524_v63  ;;  %v14481_v6 = vld [vmem:[%s21297_s5 + $0x454] sm:$0xf] }
 0x5cc   : >> { %v17554_v11 = vpop.f32.mrf.mxu1 }
 0x5cf   : >> { %v3173_v23 = vpop.f32.mrf.mxu2  ;;  %v17562_v40 = vpop.f32.mrf.mxu3 }
 0x5d0   : >> { %v3174_v21 = vadd.f32 %v3173_v23, %v17329_v52 }
 0x5d1   : >> { %v4526_v34 = vld [vmem:[#allocation2 + $0x3b0] sm:$0xff] }
 0x5d2   : >> { %3435 = vst.msk [vmem:[#allocation2 + $0x3b8] sm:$0xff] %vm3315_vm15, %v3174_v21  ;;  %v11690_v21 = vld [vmem:[%s21297_s5 + $0x458] sm:$0xf0]  ;;  %v4530_v2 = vpack.c.bf16 %v4526_v34, %v4526_v34  ;;  %v14483_v34 = vld [vmem:[%s21297_s5 + $0x464] sm:$0xf] }
 0x5d4   : >> { %v17572_v43 = vpop.f32.mrf.mxu1  ;;  %11898 = vmatmul.msk.bf16.gmra.mxu2 %vm2150_vm14, %v11685_v39  ;;  %12084 = vmatmul.msk.bf16.gmra.mxu0 %vm3315_vm15, %v4529_v19  ;;  %v11693_v19 = vor.u32 %v14481_v6, %v11690_v21 }
 0x5d7   : >> { %2807 = vmatmul.bf16.gmra.mxu1 %v11745_v29  ;;  %v3176_v52 = vpop.f32.mrf.mxu2  ;;  %v17576_v17 = vpop.f32.mrf.mxu3  ;;  %v14498_v29 = vld [vmem:[%s21297_s5 + $0x4d4] sm:$0xf0] }
 0x5d8   : >> { %v3177_v20 = vadd.f32 %v3176_v52, %v17350_v18  ;;  %v11752_v18 = vld [vmem:[%s21297_s5 + $0x4d0] sm:$0xf] }
 0x5d9   : >> { %v4587_v52 = vld [vmem:[#allocation2 + $0x3b8] sm:$0xff]  ;;  %v11753_v12 = vor.u32 %v14498_v29, %v11752_v18  ;;  %v14500_v18 = vld [vmem:[%s21297_s5 + $0x4e4] sm:$0xf0] }
 0x5da   : >> { %3436 = vst.msk [vmem:[#allocation2 + $0x3c0] sm:$0xff] %vm3315_vm15, %v3177_v20 }
 0x5dc   : >> { %v17580_v23 = vpop.f32.mrf.mxu1 }
 0x5df   : >> { %v3178_v39 = vpop.f32.mrf.mxu2  ;;  %v17588_v58 = vpop.f32.mrf.mxu3 }
 0x5e0   : >> { %21409 = vst [vmem:[#allocation30_spill] sm:$0xff] %v17588_v58  ;;  %v3179_v63 = vadd.f32 %v3178_v39, %v17359_v50 }
 0x5e1   : >> { %v4588_v20 = vld [vmem:[#allocation2 + $0x3c0] sm:$0xff] }
 0x5e2   : >> { %3437 = vst.msk [vmem:[#allocation2 + $0x3c8] sm:$0xff] %vm3315_vm15, %v3179_v63  ;;  %v4594_v38 = vpack.c.bf16 %v4588_v20, %v4587_v52 }
 0x5e4   : >> { %v17598_v36 = vpop.f32.mrf.mxu1  ;;  %11899 = vmatmul.msk.bf16.gmra.mxu2 %vm2150_vm14, %v11693_v19  ;;  %12085 = vmatmul.msk.bf16.gmra.mxu0 %vm3315_vm15, %v4530_v2  ;;  %v11698_v2 = vld [vmem:[%s21297_s5 + $0x468] sm:$0xf0] }
 0x5e5   : >> { %12092 = vmatmul.msk.bf16.vlgmr.msrb.gmra.mxu3 %vm3315_vm15, %v4594_v38  ;;  %v11701_v19 = vor.u32 %v14483_v34, %v11698_v2 }
 0x5e7   : >> { %2812 = vmatmul.bf16.gmra.mxu1 %v11753_v12  ;;  %v3181_v50 = vpop.f32.mrf.mxu2  ;;  %v17603_v6 = vpop.f32.mrf.mxu3 }
 0x5e8   : >> { %v3182_v21 = vadd.f32 %v3181_v50, %v17377_v7  ;;  %v11760_v7 = vld [vmem:[%s21297_s5 + $0x4e0] sm:$0xf] }
 0x5e9   : >> { %v4589_v52 = vld [vmem:[#allocation2 + $0x3c8] sm:$0xff] }
 0x5ea   : >> { %3438 = vst.msk [vmem:[#allocation2 + $0x3d0] sm:$0xff] %vm3315_vm15, %v3182_v21 }
 0x5ec   : >> { %v17607_v39 = vpop.f32.mrf.mxu1 }
 0x5ef   : >> { %v3183_v63 = vpop.f32.mrf.mxu2  ;;  %v17615_v38 = vpop.f32.mrf.mxu3 }
 0x5f0   : >> { %21410 = vst [vmem:[#allocation31_spill] sm:$0xff] %v17615_v38  ;;  %v3184_v12 = vadd.f32 %v3183_v63, %v17386_v47  ;;  %v11761_v38 = vor.u32 %v14500_v18, %v11760_v7 }
 0x5f1   : >> { %v4455_v29 = vpop.f32.mrf.mxu0  ;;  %v4590_v20 = vld [vmem:[#allocation2 + $0x3d0] sm:$0xff] }
 0x5f2   : >> { %3439 = vst.msk [vmem:[#allocation2 + $0x3d8] sm:$0xff] %vm3315_vm15, %v3184_v12  ;;  %v17626_v50 = vadd.f32 %v17550_v42, %v4455_v29  ;;  %v4595_v21 = vpack.c.bf16 %v4590_v20, %v4589_v52  ;;  %v14535_v12 = vld [vmem:[%s21298_s6 + $0x90] sm:$0xff] }
 0x5f3   : >> { %4693 = vmatpush.bf16.msrb.mxu0 %v14535_v12  ;;  %v11768_v20 = vld [vmem:[%s21297_s5 + $0x4f0] sm:$0xf] }
 0x5f4   : >> { %v17628_v47 = vpop.f32.mrf.mxu1  ;;  %11900 = vmatmul.msk.bf16.gmra.mxu2 %vm2150_vm14, %v11701_v19 }
 0x5f5   : >> { %12093 = vmatmul.msk.bf16.gmra.mxu3 %vm3315_vm15, %v4595_v21  ;;  %v14502_v21 = vld [vmem:[%s21297_s5 + $0x4f4] sm:$0xf0] }
 0x5f7   : >> { %2817 = vmatmul.bf16.gmra.mxu1 %v11761_v38  ;;  %v3186_v34 = vpop.f32.mrf.mxu2  ;;  %v14485_v38 = vld [vmem:[%s21297_s5 + $0x474] sm:$0xf] }
 0x5f8   : >> { %v3187_v2 = vadd.f32 %v3186_v34, %v17404_v22  ;;  %v17633_v63 = vpop.f32.mrf.mxu3  ;;  %v11706_v22 = vld [vmem:[%s21297_s5 + $0x478] sm:$0xf0] }
 0x5f9   : >> { %v17638_v42 = vpop.f32.mrf.mxu0  ;;  %v11709_v52 = vor.u32 %v14485_v38, %v11706_v22 }
 0x5fa   : >> { %3440 = vst.msk [vmem:[#allocation2 + $0x3e0] sm:$0xff] %vm3315_vm15, %v3187_v2  ;;  %v4591_v2 = vld [vmem:[#allocation2 + $0x3d8] sm:$0xff] }
 0x5fc   : >> { %v17641_v7 = vpop.f32.mrf.mxu1 }
 0x5ff   : >> { %v3188_v19 = vpop.f32.mrf.mxu2 }
 0x600   : >> { %v3189_v18 = vadd.f32 %v3188_v19, %v17414_v61  ;;  %v4518_v29 = vpop.f32.mrf.mxu3  ;;  %v11769_v61 = vor.u32 %v14502_v21, %v11768_v20 }
 0x601   : >> { %v4460_v34 = vpop.f32.mrf.mxu0  ;;  %v4592_v12 = vld [vmem:[#allocation2 + $0x3e0] sm:$0xff] }
 0x602   : >> { %3441 = vst.msk [vmem:[#allocation2 + $0x3e8] sm:$0xff] %vm3315_vm15, %v3189_v18  ;;  %v17658_v16 = vadd.f32 %v17576_v17, %v4460_v34  ;;  %v4596_v32 = vpack.c.bf16 %v4592_v12, %v4591_v2  ;;  %v14487_v17 = vld [vmem:[%s21297_s5 + $0x484] sm:$0xf]  ;;  %v14504_v2 = vld [vmem:[%s21297_s5 + $0x504] sm:$0xf0] }
 0x604   : >> { %v17660_v19 = vpop.f32.mrf.mxu1  ;;  %11901 = vmatmul.msk.bf16.gmra.mxu2 %vm2150_vm14, %v11709_v52  ;;  %v11714_v52 = vld [vmem:[%s21297_s5 + $0x488] sm:$0xf0] }
 0x605   : >> { %12094 = vmatmul.msk.bf16.gmra.mxu3 %vm3315_vm15, %v4596_v32  ;;  %v11717_v21 = vor.u32 %v14487_v17, %v11714_v52 }
 0x607   : >> { %2822 = vmatmul.bf16.gmra.mxu1 %v11769_v61  ;;  %v3191_v38 = vpop.f32.mrf.mxu2 }
 0x608   : >> { %v3192_v22 = vadd.f32 %v3191_v38, %v17430_v3  ;;  %v11776_v3 = vld [vmem:[%s21297_s5 + $0x500] sm:$0xf] }
 0x609   : >> { %v17665_v29 = vpop.f32.mrf.mxu0  ;;  %v4593_v34 = vld [vmem:[#allocation2 + $0x3e8] sm:$0xff] }
 0x60a   : >> { %3442 = vst.msk [vmem:[#allocation2 + $0x3f0] sm:$0xff] %vm3315_vm15, %v3192_v22  ;;  %v4597_v38 = vpack.c.bf16 %v4593_v34, %v4593_v34  ;;  %v11777_v22 = vor.u32 %v14504_v2, %v11776_v3  ;;  %v11722_v34 = vld [vmem:[%s21297_s5 + $0x498] sm:$0xf0] }
 0x60c   : >> { %v17668_v18 = vpop.f32.mrf.mxu1 }
 0x60f   : >> { %v3193_v20 = vpop.f32.mrf.mxu2 }
 0x610   : >> { %v3194_v32 = vadd.f32 %v3193_v20, %v17440_v51 }
 0x611   : >> { %v4465_v12 = vpop.f32.mrf.mxu0  ;;  %v4654_v20 = vld [vmem:[#allocation2 + $0x3f0] sm:$0xff] }
 0x612   : >> { %3443 = vst.msk [vmem:[#allocation2 + $0x3f8] sm:$0xff] %vm3315_vm15, %v3194_v32  ;;  %v17685_v61 = vadd.f32 %v17603_v6, %v4465_v12  ;;  %v14506_v12 = vld [vmem:[%s21297_s5 + $0x514] sm:$0xf0] }
 0x614   : >> { %v17687_v1 = vpop.f32.mrf.mxu1  ;;  %11902 = vmatmul.msk.bf16.gmra.mxu2 %vm2150_vm14, %v11717_v21  ;;  %v14489_v21 = vld [vmem:[%s21297_s5 + $0x494] sm:$0xf] }
 0x615   : >> { %12095 = vmatmul.msk.bf16.gmra.mxu3 %vm3315_vm15, %v4597_v38  ;;  %v11725_v2 = vor.u32 %v14489_v21, %v11722_v34 }
 0x617   : >> { %2827 = vmatmul.bf16.gmra.mxu1 %v11777_v22  ;;  %v3196_v51 = vpop.f32.mrf.mxu2 }
 0x618   : >> { %v3197_v17 = vadd.f32 %v3196_v51, %v17461_v59 }
 0x619   : >> { %v17692_v52 = vpop.f32.mrf.mxu0  ;;  %v4655_v8 = vld [vmem:[#allocation2 + $0x3f8] sm:$0xff] }
 0x61a   : >> { %21411 = vst [vmem:[#allocation32_spill] sm:$0xff] %v17692_v52  ;;  %v4661_v6 = vpack.c.bf16 %v4655_v8, %v4654_v20  ;;  %v11784_v8 = vld [vmem:[%s21297_s5 + $0x510] sm:$0xf] }
 0x61b   : >> { %3444 = vst.msk [vmem:[#allocation2 + $0x400] sm:$0xff] %vm3315_vm15, %v3197_v17  ;;  %v11785_v51 = vor.u32 %v14506_v12, %v11784_v8  ;;  %v11792_v12 = vld [vmem:[%s21297_s5 + $0x520] sm:$0xf] }
 0x61c   : >> { %v17695_v32 = vpop.f32.mrf.mxu1  ;;  %12102 = vmatmul.msk.bf16.vlgmr.msrb.gmra.mxu0 %vm3315_vm15, %v4661_v6 }
 0x61f   : >> { %v3198_v59 = vpop.f32.mrf.mxu2 }
 0x620   : >> { %v3199_v3 = vadd.f32 %v3198_v59, %v17471_v45 }
 0x621   : >> { %v4470_v38 = vpop.f32.mrf.mxu0 }
 0x622   : >> { %3445 = vst.msk [vmem:[#allocation2 + $0x408] sm:$0xff] %vm3315_vm15, %v3199_v3  ;;  %v17713_v22 = vadd.f32 %v17633_v63, %v4470_v38  ;;  %v4656_v21 = vld [vmem:[#allocation2 + $0x400] sm:$0xff]  ;;  %v11730_v3 = vld [vmem:[%s21297_s5 + $0x4a8] sm:$0xf0]  ;;  %v14508_v38 = vld [vmem:[%s21297_s5 + $0x524] sm:$0xf0] }
 0x623   : >> { %v14491_v63 = vld [vmem:[%s21297_s5 + $0x4a4] sm:$0xf] }
 0x624   : >> { %v17715_v17 = vpop.f32.mrf.mxu1  ;;  %11903 = vmatmul.msk.bf16.gmra.mxu2 %vm2150_vm14, %v11725_v2  ;;  %v11733_v8 = vor.u32 %v14491_v63, %v11730_v3 }
 0x627   : >> { %2832 = vmatmul.bf16.gmra.mxu1 %v11785_v51  ;;  %v3201_v45 = vpop.f32.mrf.mxu2  ;;  %v14536_v51 = vld [vmem:[%s21298_s6 + $0x98] sm:$0xff] }
 0x628   : >> { %v3202_v20 = vadd.f32 %v3201_v45, %v17489_v13  ;;  %4760 = vmatpush.bf16.msra.mxu3 %v14536_v51  ;;  %v11800_v51 = vld [vmem:[%s21297_s5 + $0x530] sm:$0xf] }
 0x629   : >> { %v4472_v6 = vpop.f32.mrf.mxu0  ;;  %v4657_v34 = vld [vmem:[#allocation2 + $0x408] sm:$0xff] }
 0x62a   : >> { %3446 = vst.msk [vmem:[#allocation2 + $0x410] sm:$0xff] %vm3315_vm15, %v3202_v20  ;;  %v4662_v59 = vpack.c.bf16 %v4657_v34, %v4656_v21 }
 0x62c   : >> { %v17720_v52 = vpop.f32.mrf.mxu1  ;;  %12103 = vmatmul.msk.bf16.gmra.mxu0 %vm3315_vm15, %v4662_v59 }
 0x62f   : >> { %v3203_v2 = vpop.f32.mrf.mxu2 }
 0x630   : >> { %v3204_v13 = vadd.f32 %v3203_v2, %v17499_v48  ;;  %v11793_v48 = vor.u32 %v14508_v38, %v11792_v12 }
 0x631   : >> { %v4561_v45 = vpop.f32.mrf.mxu0  ;;  %v4658_v63 = vld [vmem:[#allocation2 + $0x410] sm:$0xff] }
 0x632   : >> { %3447 = vst.msk [vmem:[#allocation2 + $0x418] sm:$0xff] %vm3315_vm15, %v3204_v13  ;;  %v17741_v20 = vadd.f32 %v4561_v45, %v17626_v50  ;;  %v14493_v50 = vld [vmem:[%s21297_s5 + $0x4b4] sm:$0xf]  ;;  %v14510_v45 = vld [vmem:[%s21297_s5 + $0x534] sm:$0xf0] }
 0x634   : >> { %v17743_v6 = vpop.f32.mrf.mxu1  ;;  %11904 = vmatmul.msk.bf16.gmra.mxu2 %vm2150_vm14, %v11733_v8  ;;  %v11738_v8 = vld [vmem:[%s21297_s5 + $0x4b8] sm:$0xf0] }
 0x635   : >> { %v11741_v38 = vor.u32 %v14493_v50, %v11738_v8 }
 0x637   : >> { %2837 = vmatmul.bf16.gmra.mxu1 %v11793_v48  ;;  %v3206_v21 = vpop.f32.mrf.mxu2 }
 0x638   : >> { %v3207_v34 = vadd.f32 %v3206_v21, %v17517_v53 }
 0x639   : >> { %v17747_v59 = vpop.f32.mrf.mxu0  ;;  %v4659_v3 = vld [vmem:[#allocation2 + $0x418] sm:$0xff] }
 0x63a   : >> { %3448 = vst.msk [vmem:[#allocation2 + $0x420] sm:$0xff] %vm3315_vm15, %v3207_v34  ;;  %v4663_v2 = vpack.c.bf16 %v4659_v3, %v4658_v63  ;;  %v11801_v34 = vor.u32 %v14510_v45, %v11800_v51  ;;  %v11808_v45 = vld [vmem:[%s21297_s5 + $0x540] sm:$0xf] }
 0x63c   : >> { %v17750_v13 = vpop.f32.mrf.mxu1  ;;  %12104 = vmatmul.msk.bf16.gmra.mxu0 %vm3315_vm15, %v4663_v2 }
 0x63f   : >> { %v3208_v53 = vpop.f32.mrf.mxu2 }
 0x640   : >> { %v3209_v12 = vadd.f32 %v3208_v53, %v17527_v27 }
 0x641   : >> { %v4566_v48 = vpop.f32.mrf.mxu0  ;;  %v4660_v3 = vld [vmem:[#allocation2 + $0x420] sm:$0xff] }
 0x642   : >> { %3449 = vst.msk [vmem:[#allocation2 + $0x428] sm:$0xff] %vm3315_vm15, %v3209_v12  ;;  %v17768_v21 = vadd.f32 %v4566_v48, %v17658_v16  ;;  %v4664_v8 = vpack.c.bf16 %v4660_v3, %v4660_v3  ;;  %v14495_v16 = vld [vmem:[%s21297_s5 + $0x4c4] sm:$0xf]  ;;  %v11746_v12 = vld [vmem:[%s21297_s5 + $0x4c8] sm:$0xf0] }
 0x643   : >> { %v11749_v51 = vor.u32 %v14495_v16, %v11746_v12  ;;  %v14512_v48 = vld [vmem:[%s21297_s5 + $0x544] sm:$0xf0] }
 0x644   : >> { %v17770_v63 = vpop.f32.mrf.mxu1  ;;  %11905 = vmatmul.msk.bf16.gmra.mxu2 %vm2150_vm14, %v11741_v38 }
 0x647   : >> { %2842 = vmatmul.bf16.gmra.mxu1 %v11801_v34  ;;  %v3211_v27 = vpop.f32.mrf.mxu2 }
 0x648   : >> { %v3212_v2 = vadd.f32 %v3211_v27, %v17546_v25 }
 0x649   : >> { %v17774_v50 = vpop.f32.mrf.mxu0  ;;  %v4721_v27 = vld [vmem:[#allocation2 + $0x428] sm:$0xff] }
 0x64a   : >> { %21412 = vst [vmem:[#allocation33_spill] sm:$0xff] %v17774_v50  ;;  %v11809_v50 = vor.u32 %v14512_v48, %v11808_v45 }
 0x64b   : >> { %3450 = vst.msk [vmem:[#allocation2 + $0x430] sm:$0xff] %vm3315_vm15, %v3212_v2 }
 0x64c   : >> { %v17777_v53 = vpop.f32.mrf.mxu1  ;;  %12105 = vmatmul.msk.bf16.gmra.mxu0 %vm3315_vm15, %v4664_v8 }
 0x64f   : >> { %v3213_v38 = vpop.f32.mrf.mxu2 }
 0x650   : >> { %v3214_v25 = vadd.f32 %v3213_v38, %v17554_v11 }
 0x651   : >> { %v4571_v34 = vpop.f32.mrf.mxu0 }
 0x652   : >> { %v4722_v3 = vld [vmem:[#allocation2 + $0x430] sm:$0xff]  ;;  %3451 = vst.msk [vmem:[#allocation2 + $0x438] sm:$0xff] %vm3315_vm15, %v3214_v25  ;;  %v17795_v2 = vadd.f32 %v4571_v34, %v17685_v61  ;;  %v14514_v34 = vld [vmem:[%s21297_s5 + $0x554] sm:$0xf0] }
 0x653   : >> { %v4728_v8 = vpack.c.bf16 %v4722_v3, %v4721_v27  ;;  %v14497_v61 = vld [vmem:[%s21297_s5 + $0x4d4] sm:$0xf] }
 0x654   : >> { %v17797_v11 = vpop.f32.mrf.mxu1  ;;  %11906 = vmatmul.msk.bf16.gmra.mxu2 %vm2150_vm14, %v11749_v51  ;;  %v11754_v51 = vld [vmem:[%s21297_s5 + $0x4d8] sm:$0xf0] }
 0x655   : >> { %12112 = vmatmul.msk.bf16.vlgmr.msra.gmra.mxu3 %vm3315_vm15, %v4728_v8  ;;  %v11757_v48 = vor.u32 %v14497_v61, %v11754_v51 }
 0x657   : >> { %2847 = vmatmul.bf16.gmra.mxu1 %v11809_v50  ;;  %v3216_v16 = vpop.f32.mrf.mxu2 }
 0x658   : >> { %v3217_v12 = vadd.f32 %v3216_v16, %v17572_v43  ;;  %v11816_v43 = vld [vmem:[%s21297_s5 + $0x550] sm:$0xf] }
 0x659   : >> { %v17802_v38 = vpop.f32.mrf.mxu0  ;;  %v4723_v3 = vld [vmem:[#allocation2 + $0x438] sm:$0xff] }
 0x65a   : >> { %21413 = vst [vmem:[#allocation34_spill] sm:$0xff] %v17802_v38  ;;  %v11817_v38 = vor.u32 %v14514_v34, %v11816_v43 }
 0x65b   : >> { %3452 = vst.msk [vmem:[#allocation2 + $0x440] sm:$0xff] %vm3315_vm15, %v3217_v12 }
 0x65c   : >> { %v17805_v25 = vpop.f32.mrf.mxu1 }
 0x65f   : >> { %v3218_v45 = vpop.f32.mrf.mxu2 }
 0x660   : >> { %v3219_v50 = vadd.f32 %v3218_v45, %v17580_v23 }
 0x661   : >> { %v4576_v27 = vpop.f32.mrf.mxu0 }
 0x662   : >> { %v4724_v8 = vld [vmem:[#allocation2 + $0x440] sm:$0xff]  ;;  %3453 = vst.msk [vmem:[#allocation2 + $0x448] sm:$0xff] %vm3315_vm15, %v3219_v50  ;;  %v17822_v16 = vadd.f32 %v4576_v27, %v17713_v22 }
 0x663   : >> { %v4729_v12 = vpack.c.bf16 %v4724_v8, %v4723_v3  ;;  %v14537_v50 = vld [vmem:[%s21298_s6 + $0xa0] sm:$0xff] }
 0x664   : >> { %v17824_v23 = vpop.f32.mrf.mxu1  ;;  %11907 = vmatmul.msk.bf16.gmra.mxu2 %vm2150_vm14, %v11757_v48  ;;  %4827 = vmatpush.bf16.msra.mxu0 %v14537_v50  ;;  %v11824_v8 = vld [vmem:[%s21297_s5 + $0x560] sm:$0xf] }
 0x665   : >> { %12113 = vmatmul.msk.bf16.gmra.mxu3 %vm3315_vm15, %v4729_v12  ;;  %v14516_v12 = vld [vmem:[%s21297_s5 + $0x564] sm:$0xf0] }
 0x666   : >> { %v11825_v50 = vor.u32 %v14516_v12, %v11824_v8 }
 0x667   : >> { %2852 = vmatmul.bf16.gmra.mxu1 %v11817_v38  ;;  %v3221_v61 = vpop.f32.mrf.mxu2  ;;  %v14499_v38 = vld [vmem:[%s21297_s5 + $0x4e4] sm:$0xf] }
 0x668   : >> { %v3222_v51 = vadd.f32 %v3221_v61, %v17598_v36  ;;  %v4628_v45 = vpop.f32.mrf.mxu3  ;;  %v11762_v36 = vld [vmem:[%s21297_s5 + $0x4e8] sm:$0xf0] }
 0x669   : >> { %v17833_v22 = vadd.f32 %v4628_v45, %v17741_v20  ;;  %v4578_v27 = vpop.f32.mrf.mxu0  ;;  %v11765_v20 = vor.u32 %v14499_v38, %v11762_v36  ;;  %v4725_v61 = vld [vmem:[#allocation2 + $0x448] sm:$0xff] }
 0x66a   : >> { %3454 = vst.msk [vmem:[#allocation2 + $0x450] sm:$0xff] %vm3315_vm15, %v3222_v51 }
 0x66c   : >> { %v17836_v43 = vpop.f32.mrf.mxu1 }
 0x66f   : >> { %v3223_v48 = vpop.f32.mrf.mxu2 }
 0x670   : >> { %v3224_v34 = vadd.f32 %v3223_v48, %v17607_v39  ;;  %v17845_v3 = vpop.f32.mrf.mxu3 }
 0x671   : >> { %v4726_v51 = vld [vmem:[#allocation2 + $0x450] sm:$0xff] }
 0x672   : >> { %3455 = vst.msk [vmem:[#allocation2 + $0x458] sm:$0xff] %vm3315_vm15, %v3224_v34  ;;  %v4730_v45 = vpack.c.bf16 %v4726_v51, %v4725_v61  ;;  %v14501_v34 = vld [vmem:[%s21297_s5 + $0x4f4] sm:$0xf] }
 0x674   : >> { %v17854_v27 = vpop.f32.mrf.mxu1  ;;  %11908 = vmatmul.msk.bf16.gmra.mxu2 %vm2150_vm14, %v11765_v20  ;;  %v11770_v20 = vld [vmem:[%s21297_s5 + $0x4f8] sm:$0xf0] }
 0x675   : >> { %12114 = vmatmul.msk.bf16.gmra.mxu3 %vm3315_vm15, %v4730_v45  ;;  %v11773_v45 = vor.u32 %v14501_v34, %v11770_v20 }
 0x677   : >> { %2857 = vmatmul.bf16.gmra.mxu1 %v11825_v50  ;;  %v3226_v39 = vpop.f32.mrf.mxu2 }
 0x678   : >> { %v3227_v38 = vadd.f32 %v3226_v39, %v17628_v47  ;;  %v4633_v36 = vpop.f32.mrf.mxu3  ;;  %v15126_v47 = vld [vmem:[%s21297_s5 + $0x570] sm:$0xff] }
 0x679   : >> { %v17860_v48 = vadd.f32 %v4633_v36, %v17768_v21  ;;  %v4727_v12 = vld [vmem:[#allocation2 + $0x458] sm:$0xff]  ;;  %v1884_v21 = vunpack.c.l.b16 %v15126_v47 }
 0x67a   : >> { %3456 = vst.msk [vmem:[#allocation2 + $0x460] sm:$0xff] %vm3315_vm15, %v3227_v38  ;;  %v4731_v50 = vpack.c.bf16 %v4727_v12, %v4727_v12 }
 0x67b   : >> { %v2060_v39 = vpack.c.b16 %v1884_v21, %v1884_v21  ;;  %v14503_v21 = vld [vmem:[%s21297_s5 + $0x504] sm:$0xf] }
 0x67c   : >> { %v17863_v60 = vpop.f32.mrf.mxu1 }
 0x67f   : >> { %v3228_v8 = vpop.f32.mrf.mxu2 }
 0x680   : >> { %v3229_v61 = vadd.f32 %v3228_v8, %v17641_v7  ;;  %v17875_v51 = vpop.f32.mrf.mxu3 }
 0x681   : >> { %21414 = vst [vmem:[#allocation35_spill] sm:$0xff] %v17875_v51  ;;  %v4788_v8 = vld [vmem:[#allocation2 + $0x460] sm:$0xff] }
 0x682   : >> { %3457 = vst.msk [vmem:[#allocation2 + $0x468] sm:$0xff] %vm3315_vm15, %v3229_v61 }
 0x684   : >> { %v17878_v38 = vpop.f32.mrf.mxu1  ;;  %11909 = vmatmul.msk.bf16.gmra.mxu2 %vm2150_vm14, %v11773_v45 }
 0x685   : >> { %12115 = vmatmul.msk.bf16.gmra.mxu3 %vm3315_vm15, %v4731_v50 }
 0x687   : >> { %2862 = vmatmul.bf16.gmra.mxu1 %v2060_v39  ;;  %v3231_v36 = vpop.f32.mrf.mxu2 }
 0x688   : >> { %v3232_v58 = vadd.f32 %v3231_v36, %v17660_v19  ;;  %v4638_v47 = vpop.f32.mrf.mxu3  ;;  %v11778_v19 = vld [vmem:[%s21297_s5 + $0x508] sm:$0xf0] }
 0x689   : >> { %v17884_v7 = vadd.f32 %v4638_v47, %v17795_v2  ;;  %v4789_v34 = vld [vmem:[#allocation2 + $0x468] sm:$0xff]  ;;  %v11781_v50 = vor.u32 %v14503_v21, %v11778_v19 }
 0x68a   : >> { %3458 = vst.msk [vmem:[#allocation2 + $0x470] sm:$0xff] %vm3315_vm15, %v3232_v58  ;;  %v4795_v20 = vpack.c.bf16 %v4789_v34, %v4788_v8 }
 0x68c   : >> { %v17887_v12 = vpop.f32.mrf.mxu1  ;;  %12122 = vmatmul.msk.bf16.vlgmr.msra.gmra.mxu0 %vm3315_vm15, %v4795_v20 }
 0x68f   : >> { %v3233_v61 = vpop.f32.mrf.mxu2 }
 0x690   : >> { %v3234_v2 = vadd.f32 %v3233_v61, %v17668_v18  ;;  %v17897_v45 = vpop.f32.mrf.mxu3 }
 0x691   : >> { %21415 = vst [vmem:[#allocation36_spill] sm:$0xff] %v17897_v45  ;;  %v4790_v20 = vld [vmem:[#allocation2 + $0x470] sm:$0xff] }
 0x692   : >> { %3459 = vst.msk [vmem:[#allocation2 + $0x478] sm:$0xff] %vm3315_vm15, %v3234_v2 }
 0x694   : >> { %v17900_v58 = vpop.f32.mrf.mxu1  ;;  %11910 = vmatmul.msk.bf16.gmra.mxu2 %vm2150_vm14, %v11781_v50 }
 0x697   : >> { %v3236_v39 = vpop.f32.mrf.mxu2 }
 0x698   : >> { %v3237_v36 = vadd.f32 %v3236_v39, %v17687_v1  ;;  %v4643_v47 = vpop.f32.mrf.mxu3  ;;  %v14505_v1 = vld [vmem:[%s21297_s5 + $0x514] sm:$0xf] }
 0x699   : >> { %v17905_v8 = vadd.f32 %v4643_v47, %v17822_v16  ;;  %v4695_v34 = vpop.f32.mrf.mxu0  ;;  %v4791_v51 = vld [vmem:[#allocation2 + $0x478] sm:$0xff] }
 0x69a   : >> { %3460 = vst.msk [vmem:[#allocation2 + $0x480] sm:$0xff] %vm3315_vm15, %v3237_v36  ;;  %v17909_v18 = vadd.f32 %v4695_v34, %v17833_v22  ;;  %v4796_v21 = vpack.c.bf16 %v4791_v51, %v4790_v20  ;;  %v11786_v16 = vld [vmem:[%s21297_s5 + $0x518] sm:$0xf0]  ;;  %v14538_v34 = vld [vmem:[%s21298_s6 + $0xa8] sm:$0xff] }
 0x69b   : >> { %v11789_v39 = vor.u32 %v14505_v1, %v11786_v16  ;;  %4954 = vmatpush.bf16.msrb.mxu0 %v14538_v34 }
 0x69c   : >> { %v17911_v19 = vpop.f32.mrf.mxu1  ;;  %12123 = vmatmul.msk.bf16.gmra.mxu0 %vm3315_vm15, %v4796_v21 }
 0x69f   : >> { %v3238_v61 = vpop.f32.mrf.mxu2 }
 0x6a0   : >> { %v3239_v2 = vadd.f32 %v3238_v61, %v17695_v32  ;;  %v4645_v50 = vpop.f32.mrf.mxu3 }
 0x6a1   : >> { %v17921_v22 = vpop.f32.mrf.mxu0  ;;  %v4792_v21 = vld [vmem:[#allocation2 + $0x480] sm:$0xff] }
 0x6a2   : >> { %3461 = vst.msk [vmem:[#allocation2 + $0x488] sm:$0xff] %vm3315_vm15, %v3239_v2  ;;  %v11794_v2 = vld [vmem:[%s21297_s5 + $0x528] sm:$0xf0] }
 0x6a4   : >> { %v17924_v51 = vpop.f32.mrf.mxu1  ;;  %11911 = vmatmul.msk.bf16.gmra.mxu2 %vm2150_vm14, %v11789_v39 }
 0x6a7   : >> { %v3241_v36 = vpop.f32.mrf.mxu2 }
 0x6a8   : >> { %v3242_v47 = vadd.f32 %v3241_v36, %v17715_v17  ;;  %v14507_v17 = vld [vmem:[%s21297_s5 + $0x524] sm:$0xf] }
 0x6a9   : >> { %v4700_v20 = vpop.f32.mrf.mxu0  ;;  %v4793_v32 = vld [vmem:[#allocation2 + $0x488] sm:$0xff]  ;;  %v11797_v36 = vor.u32 %v14507_v17, %v11794_v2  ;;  %v14509_v2 = vld [vmem:[%s21297_s5 + $0x534] sm:$0xf] }
 0x6aa   : >> { %3462 = vst.msk [vmem:[#allocation2 + $0x490] sm:$0xff] %vm3315_vm15, %v3242_v47  ;;  %v17933_v1 = vadd.f32 %v4700_v20, %v17860_v48  ;;  %v4797_v16 = vpack.c.bf16 %v4793_v32, %v4792_v21 }
 0x6ac   : >> { %v17935_v61 = vpop.f32.mrf.mxu1  ;;  %12124 = vmatmul.msk.bf16.gmra.mxu0 %vm3315_vm15, %v4797_v16 }
 0x6af   : >> { %v3243_v50 = vpop.f32.mrf.mxu2 }
 0x6b0   : >> { %v3244_v39 = vadd.f32 %v3243_v50, %v17720_v52  ;;  %v11802_v50 = vld [vmem:[%s21297_s5 + $0x538] sm:$0xf0] }
 0x6b1   : >> { %v17945_v48 = vpop.f32.mrf.mxu0  ;;  %v4794_v20 = vld [vmem:[#allocation2 + $0x490] sm:$0xff] }
 0x6b2   : >> { %21416 = vst [vmem:[#allocation37_spill] sm:$0xff] %v17945_v48  ;;  %v4798_v52 = vpack.c.bf16 %v4794_v20, %v4794_v20 }
 0x6b3   : >> { %3463 = vst.msk [vmem:[#allocation2 + $0x498] sm:$0xff] %vm3315_vm15, %v3244_v39 }
 0x6b4   : >> { %v17948_v47 = vpop.f32.mrf.mxu1  ;;  %11912 = vmatmul.msk.bf16.gmra.mxu2 %vm2150_vm14, %v11797_v36  ;;  %v11805_v36 = vor.u32 %v14509_v2, %v11802_v50  ;;  %v14511_v50 = vld [vmem:[%s21297_s5 + $0x544] sm:$0xf] }
 0x6b7   : >> { %v3246_v34 = vpop.f32.mrf.mxu2 }
 0x6b8   : >> { %v3247_v21 = vadd.f32 %v3246_v34, %v17743_v6 }
 0x6b9   : >> { %v4705_v32 = vpop.f32.mrf.mxu0 }
 0x6ba   : >> { %3464 = vst.msk [vmem:[#allocation2 + $0x4a0] sm:$0xff] %vm3315_vm15, %v3247_v21  ;;  %v17954_v16 = vadd.f32 %v4705_v32, %v17884_v7  ;;  %v4855_v45 = vld [vmem:[#allocation2 + $0x498] sm:$0xff] }
 0x6bc   : >> { %v17956_v17 = vpop.f32.mrf.mxu1  ;;  %12125 = vmatmul.msk.bf16.gmra.mxu0 %vm3315_vm15, %v4798_v52 }
 0x6bf   : >> { %v3248_v6 = vpop.f32.mrf.mxu2 }
 0x6c0   : >> { %v3249_v39 = vadd.f32 %v3248_v6, %v17750_v13 }
 0x6c1   : >> { %v17966_v34 = vpop.f32.mrf.mxu0  ;;  %v4856_v21 = vld [vmem:[#allocation2 + $0x4a0] sm:$0xff] }
 0x6c2   : >> { %21417 = vst [vmem:[#allocation38_spill] sm:$0xff] %v17966_v34  ;;  %v4862_v13 = vpack.c.bf16 %v4856_v21, %v4855_v45 }
 0x6c3   : >> { %3465 = vst.msk [vmem:[#allocation2 + $0x4a8] sm:$0xff] %vm3315_vm15, %v3249_v39 }
 0x6c4   : >> { %v17969_v7 = vpop.f32.mrf.mxu1  ;;  %11913 = vmatmul.msk.bf16.gmra.mxu2 %vm2150_vm14, %v11805_v36 }
 0x6c7   : >> { %v3251_v20 = vpop.f32.mrf.mxu2 }
 0x6c8   : >> { %v3252_v32 = vadd.f32 %v3251_v20, %v17770_v63  ;;  %v11810_v63 = vld [vmem:[%s21297_s5 + $0x548] sm:$0xf0] }
 0x6c9   : >> { %v4710_v52 = vpop.f32.mrf.mxu0  ;;  %v11813_v36 = vor.u32 %v14511_v50, %v11810_v63 }
 0x6ca   : >> { %3466 = vst.msk [vmem:[#allocation2 + $0x4b0] sm:$0xff] %vm3315_vm15, %v3252_v32  ;;  %v17975_v48 = vadd.f32 %v4710_v52, %v17905_v8  ;;  %v4857_v50 = vld [vmem:[#allocation2 + $0x4a8] sm:$0xff] }
 0x6cc   : >> { %v17977_v2 = vpop.f32.mrf.mxu1  ;;  %12142 = vmatmul.msk.bf16.vlgmr.msrb.gmra.mxu0 %vm3315_vm15, %v4862_v13 }
 0x6cf   : >> { %v3253_v6 = vpop.f32.mrf.mxu2 }
 0x6d0   : >> { %v3254_v39 = vadd.f32 %v3253_v6, %v17777_v53  ;;  %v14539_v53 = vld [vmem:[%s21298_s6 + $0xb0] sm:$0xff] }
 0x6d1   : >> { %v4712_v20 = vpop.f32.mrf.mxu0  ;;  %v4858_v32 = vld [vmem:[#allocation2 + $0x4b0] sm:$0xff]  ;;  %4908 = vmatpush.bf16.msrb.mxu3 %v14539_v53 }
 0x6d2   : >> { %3467 = vst.msk [vmem:[#allocation2 + $0x4b8] sm:$0xff] %vm3315_vm15, %v3254_v39  ;;  %v4863_v63 = vpack.c.bf16 %v4858_v32, %v4857_v50 }
 0x6d4   : >> { %v17988_v45 = vpop.f32.mrf.mxu1  ;;  %11914 = vmatmul.msk.bf16.gmra.mxu2 %vm2150_vm14, %v11813_v36 }
 0x6d7   : >> { %v3256_v8 = vpop.f32.mrf.mxu2 }
 0x6d8   : >> { %v4762_v21 = vpop.f32.mrf.mxu3  ;;  %v3257_v52 = vadd.f32 %v3256_v8, %v17797_v11 }
 0x6d9   : >> { %v17993_v13 = vadd.f32 %v4762_v21, %v17909_v18  ;;  %v4859_v50 = vld [vmem:[#allocation2 + $0x4b8] sm:$0xff] }
 0x6da   : >> { %3468 = vst.msk [vmem:[#allocation2 + $0x4c0] sm:$0xff] %vm3315_vm15, %v3257_v52 }
 0x6dc   : >> { %v17999_v6 = vpop.f32.mrf.mxu1  ;;  %12143 = vmatmul.msk.bf16.gmra.mxu0 %vm3315_vm15, %v4863_v63 }
 0x6df   : >> { %v3258_v39 = vpop.f32.mrf.mxu2 }
 0x6e0   : >> { %v18002_v36 = vpop.f32.mrf.mxu3  ;;  %v3259_v11 = vadd.f32 %v3258_v39, %v17805_v25 }
 0x6e1   : >> { %v4860_v32 = vld [vmem:[#allocation2 + $0x4c0] sm:$0xff] }
 0x6e2   : >> { %3469 = vst.msk [vmem:[#allocation2 + $0x4c8] sm:$0xff] %vm3315_vm15, %v3259_v11  ;;  %v4864_v63 = vpack.c.bf16 %v4860_v32, %v4859_v50 }
 0x6e4   : >> { %v2853_v18 = vpop.f32.mrf.mxu1 }
 0x6e5   : >> { %v3302_v20 = vadd.f32 %v16133_v62, %v2853_v18 }
 0x6e7   : >> { %3486 = vst.msk [vmem:[#allocation2 + $0x550] sm:$0xff] %vm3315_vm15, %v3302_v20  ;;  %v3261_v8 = vpop.f32.mrf.mxu2 }
 0x6e8   : >> { %v4767_v21 = vpop.f32.mrf.mxu3  ;;  %v3262_v52 = vadd.f32 %v3261_v8, %v17824_v23 }
 0x6e9   : >> { %v4783_v53 = vadd.f32 %v4767_v21, %v17933_v1  ;;  %v4861_v8 = vld [vmem:[#allocation2 + $0x4c8] sm:$0xff] }
 0x6ea   : >> { %3470 = vst.msk [vmem:[#allocation2 + $0x4d0] sm:$0xff] %vm3315_vm15, %v3262_v52 }
 0x6ec   : >> { %v2855_v34 = vpop.f32.mrf.mxu1  ;;  %12144 = vmatmul.msk.bf16.gmra.mxu0 %vm3315_vm15, %v4864_v63 }
 0x6ed   : >> { %v3304_v25 = vadd.f32 %v16151_v14, %v2855_v34 }
 0x6ef   : >> { %3487 = vst.msk [vmem:[#allocation2 + $0x558] sm:$0xff] %vm3315_vm15, %v3304_v25  ;;  %v3263_v62 = vpop.f32.mrf.mxu2 }
 0x6f0   : >> { %v18014_v39 = vpop.f32.mrf.mxu3  ;;  %v3264_v11 = vadd.f32 %v3263_v62, %v17836_v43  ;;  %v4865_v43 = vpack.c.bf16 %v4861_v8, %v4861_v8 }
 0x6f1   : >> { %v4869_v34 = vld [vmem:[#allocation2 + $0x4d0] sm:$0xff] }
 0x6f2   : >> { %3471 = vst.msk [vmem:[#allocation2 + $0x4d8] sm:$0xff] %vm3315_vm15, %v3264_v11 }
 0x6f4   : >> { %v2858_v23 = vpop.f32.mrf.mxu1 }
 0x6f5   : >> { %v3307_v1 = vadd.f32 %v16159_v15, %v2858_v23 }
 0x6f7   : >> { %3488 = vst.msk [vmem:[#allocation2 + $0x560] sm:$0xff] %vm3315_vm15, %v3307_v1  ;;  %v3266_v18 = vpop.f32.mrf.mxu2 }
 0x6f8   : >> { %v4772_v20 = vpop.f32.mrf.mxu3  ;;  %v3267_v21 = vadd.f32 %v3266_v18, %v17854_v27 }
 0x6f9   : >> { %v4785_v14 = vadd.f32 %v4772_v20, %v17954_v16  ;;  %v4870_v32 = vld [vmem:[#allocation2 + $0x4d8] sm:$0xff] }
 0x6fa   : >> { %3472 = vst.msk [vmem:[#allocation2 + $0x4e0] sm:$0xff] %vm3315_vm15, %v3267_v21  ;;  %v4876_v52 = vpack.c.bf16 %v4870_v32, %v4869_v34 }
 0x6fc   : >> { %v2860_v50 = vpop.f32.mrf.mxu1  ;;  %12134 = vmatmul.msk.bf16.vlgmr.msrb.gmra.mxu3 %vm3315_vm15, %v4876_v52  ;;  %12145 = vmatmul.msk.bf16.gmra.mxu0 %vm3315_vm15, %v4865_v43 }
 0x6fd   : >> { %v3309_v15 = vadd.f32 %v16177_v46, %v2860_v50 }
 0x6ff   : >> { %3489 = vst.msk [vmem:[#allocation2 + $0x568] sm:$0xff] %vm3315_vm15, %v3309_v15  ;;  %v3268_v63 = vpop.f32.mrf.mxu2 }
 0x700   : >> { %v18027_v25 = vpop.f32.mrf.mxu3  ;;  %v3269_v27 = vadd.f32 %v3268_v63, %v17863_v60 }
 0x701   : >> { %v4871_v20 = vld [vmem:[#allocation2 + $0x4e0] sm:$0xff] }
 0x702   : >> { %3473 = vst.msk [vmem:[#allocation2 + $0x4e8] sm:$0xff] %vm3315_vm15, %v3269_v27 }
 0x704   : >> { %v2863_v16 = vpop.f32.mrf.mxu1 }
 0x705   : >> { %v3312_v62 = vadd.f32 %v16185_v44, %v2863_v16 }
 0x707   : >> { %3490 = vst.msk [vmem:[#allocation2 + $0x570] sm:$0xff] %vm3315_vm15, %v3312_v62  ;;  %v3271_v11 = vpop.f32.mrf.mxu2 }
 0x708   : >> { %v4777_v23 = vpop.f32.mrf.mxu3  ;;  %v3272_v1 = vadd.f32 %v3271_v11, %v17878_v38 }
 0x709   : >> { %v4787_v46 = vadd.f32 %v4777_v23, %v17975_v48  ;;  %v4829_v18 = vpop.f32.mrf.mxu0  ;;  %v4872_v8 = vld [vmem:[#allocation2 + $0x4e8] sm:$0xff] }
 0x70a   : >> { %3474 = vst.msk [vmem:[#allocation2 + $0x4f0] sm:$0xff] %vm3315_vm15, %v3272_v1  ;;  %v18037_v60 = vadd.f32 %v4829_v18, %v17993_v13  ;;  %v4877_v21 = vpack.c.bf16 %v4872_v8, %v4871_v20  ;;  %v14540_v13 = vld [vmem:[%s21298_s6 + $0xb8] sm:$0xff] }
 0x70b   : >> { %5014 = vmatpush.bf16.msra.mxu3 %v14540_v13 }
 0x70c   : >> { %12135 = vmatmul.msk.bf16.gmra.mxu3 %vm3315_vm15, %v4877_v21  ;;  %v2865_v44 = vpop.f32.mrf.mxu1 }
 0x70f   : >> { %v3273_v34 = vpop.f32.mrf.mxu2 }
 0x710   : >> { %v4779_v32 = vpop.f32.mrf.mxu3  ;;  %v3274_v52 = vadd.f32 %v3273_v34, %v17887_v12 }
 0x711   : >> { %v18041_v43 = vpop.f32.mrf.mxu0  ;;  %v4873_v15 = vld [vmem:[#allocation2 + $0x4f0] sm:$0xff] }
 0x712   : >> { %3475 = vst.msk [vmem:[#allocation2 + $0x4f8] sm:$0xff] %vm3315_vm15, %v3274_v52 }
 0x717   : >> { %v3276_v38 = vpop.f32.mrf.mxu2 }
 0x718   : >> { %v3277_v48 = vadd.f32 %v3276_v38, %v17900_v58 }
 0x719   : >> { %v4834_v50 = vpop.f32.mrf.mxu0  ;;  %v4874_v63 = vld [vmem:[#allocation2 + $0x4f8] sm:$0xff] }
 0x71a   : >> { %3476 = vst.msk [vmem:[#allocation2 + $0x500] sm:$0xff] %vm3315_vm15, %v3277_v48  ;;  %v18049_v27 = vadd.f32 %v4834_v50, %v4783_v53  ;;  %v4878_v16 = vpack.c.bf16 %v4874_v63, %v4873_v15 }
 0x71c   : >> { %12136 = vmatmul.msk.bf16.gmra.mxu3 %vm3315_vm15, %v4878_v16 }
 0x71f   : >> { %v3278_v12 = vpop.f32.mrf.mxu2 }
 0x720   : >> { %v3279_v62 = vadd.f32 %v3278_v12, %v17911_v19 }
 0x721   : >> { %v18053_v11 = vpop.f32.mrf.mxu0  ;;  %v4875_v23 = vld [vmem:[#allocation2 + $0x500] sm:$0xff] }
 0x722   : >> { %3477 = vst.msk [vmem:[#allocation2 + $0x508] sm:$0xff] %vm3315_vm15, %v3279_v62  ;;  %v4879_v20 = vpack.c.bf16 %v4875_v23, %v4875_v23 }
 0x727   : >> { %v3281_v58 = vpop.f32.mrf.mxu2 }
 0x728   : >> { %v3282_v1 = vadd.f32 %v3281_v58, %v17924_v51 }
 0x729   : >> { %v4839_v18 = vpop.f32.mrf.mxu0  ;;  %v4975_v52 = vld [vmem:[#allocation2 + $0x508] sm:$0xff] }
 0x72a   : >> { %3478 = vst.msk [vmem:[#allocation2 + $0x510] sm:$0xff] %vm3315_vm15, %v3282_v1  ;;  %v18058_v53 = vadd.f32 %v4839_v18, %v4785_v14 }
 0x72c   : >> { %12137 = vmatmul.msk.bf16.gmra.mxu3 %vm3315_vm15, %v4879_v20 }
 0x72f   : >> { %v3283_v8 = vpop.f32.mrf.mxu2 }
 0x730   : >> { %v3284_v21 = vadd.f32 %v3283_v8, %v17935_v61  ;;  %v14541_v61 = vld [vmem:[%s21298_s6 + $0xc0] sm:$0xff] }
 0x731   : >> { %v18062_v19 = vpop.f32.mrf.mxu0  ;;  %v4976_v34 = vld [vmem:[#allocation2 + $0x510] sm:$0xff]  ;;  %5081 = vmatpush.bf16.msra.mxu0 %v14541_v61 }
 0x732   : >> { %3479 = vst.msk [vmem:[#allocation2 + $0x518] sm:$0xff] %vm3315_vm15, %v3284_v21  ;;  %v4982_v38 = vpack.c.bf16 %v4976_v34, %v4975_v52 }
 0x737   : >> { %v3286_v44 = vpop.f32.mrf.mxu2 }
 0x738   : >> { %v3287_v32 = vadd.f32 %v3286_v44, %v17948_v47 }
 0x739   : >> { %v4844_v51 = vpop.f32.mrf.mxu0  ;;  %v4977_v16 = vld [vmem:[#allocation2 + $0x518] sm:$0xff] }
 0x73a   : >> { %3480 = vst.msk [vmem:[#allocation2 + $0x520] sm:$0xff] %vm3315_vm15, %v3287_v32  ;;  %v18067_v14 = vadd.f32 %v4844_v51, %v4787_v46 }
 0x73c   : >> { %12152 = vmatmul.msk.bf16.vlgmr.msra.gmra.mxu3 %vm3315_vm15, %v4982_v38 }
 0x73f   : >> { %v3288_v48 = vpop.f32.mrf.mxu2 }
 0x740   : >> { %v3289_v13 = vadd.f32 %v3288_v48, %v17956_v17  ;;  %v5045_v48 = vld [vmem:[#allocation2 + $0x558] sm:$0xff] }
 0x741   : >> { %v4846_v50 = vpop.f32.mrf.mxu0  ;;  %v4978_v15 = vld [vmem:[#allocation2 + $0x520] sm:$0xff] }
 0x742   : >> { %3481 = vst.msk [vmem:[#allocation2 + $0x528] sm:$0xff] %vm3315_vm15, %v3289_v13  ;;  %v4983_v12 = vpack.c.bf16 %v4978_v15, %v4977_v16  ;;  %v5044_v50 = vld [vmem:[#allocation2 + $0x550] sm:$0xff] }
 0x747   : >> { %v3291_v47 = vpop.f32.mrf.mxu2 }
 0x748   : >> { %v3292_v63 = vadd.f32 %v3291_v47, %v17969_v7 }
 0x749   : >> { %v4956_v46 = vpop.f32.mrf.mxu0  ;;  %v4979_v7 = vld [vmem:[#allocation2 + $0x528] sm:$0xff] }
 0x74a   : >> { %3482 = vst.msk [vmem:[#allocation2 + $0x530] sm:$0xff] %vm3315_vm15, %v3292_v63 }
 0x74c   : >> { %12153 = vmatmul.msk.bf16.gmra.mxu3 %vm3315_vm15, %v4983_v12  ;;  %v5047_v12 = vld [vmem:[#allocation2 + $0x568] sm:$0xff] }
 0x74f   : >> { %v3293_v62 = vpop.f32.mrf.mxu2 }
 0x750   : >> { %v3294_v58 = vadd.f32 %v3293_v62, %v17977_v2  ;;  %v5046_v62 = vld [vmem:[#allocation2 + $0x560] sm:$0xff] }
 0x751   : >> { %v18079_v23 = vpop.f32.mrf.mxu0  ;;  %v4980_v1 = vld [vmem:[#allocation2 + $0x530] sm:$0xff] }
 0x752   : >> { %3483 = vst.msk [vmem:[#allocation2 + $0x538] sm:$0xff] %vm3315_vm15, %v3294_v58  ;;  %v4984_v8 = vpack.c.bf16 %v4980_v1, %v4979_v7  ;;  %v5051_v58 = vpack.c.bf16 %v5047_v12, %v5046_v62  ;;  %v5048_v7 = vld [vmem:[#allocation2 + $0x570] sm:$0xff] }
 0x757   : >> { %v3296_v17 = vpop.f32.mrf.mxu2 }
 0x758   : >> { %v3297_v18 = vadd.f32 %v3296_v17, %v17988_v45 }
 0x759   : >> { %v4961_v20 = vpop.f32.mrf.mxu0  ;;  %v4981_v2 = vld [vmem:[#allocation2 + $0x538] sm:$0xff] }
 0x75a   : >> { %3484 = vst.msk [vmem:[#allocation2 + $0x540] sm:$0xff] %vm3315_vm15, %v3297_v18  ;;  %v4985_v38 = vpack.c.bf16 %v4981_v2, %v4981_v2 }
 0x75c   : >> { %12154 = vmatmul.msk.bf16.gmra.mxu3 %vm3315_vm15, %v4984_v8  ;;  %v5052_v8 = vpack.c.bf16 %v5048_v7, %v5048_v7 }
 0x75f   : >> { %v3298_v21 = vpop.f32.mrf.mxu2 }
 0x760   : >> { %v3299_v44 = vadd.f32 %v3298_v21, %v17999_v6  ;;  %v5050_v6 = vpack.c.bf16 %v5045_v48, %v5044_v50 }
 0x761   : >> { %v18086_v34 = vpop.f32.mrf.mxu0  ;;  %v5042_v51 = vld [vmem:[#allocation2 + $0x540] sm:$0xff] }
 0x762   : >> { %3485 = vst.msk [vmem:[#allocation2 + $0x548] sm:$0xff] %vm3315_vm15, %v3299_v44 }
 0x769   : >> { %v4966_v32 = vpop.f32.mrf.mxu0  ;;  %v5043_v52 = vld [vmem:[#allocation2 + $0x548] sm:$0xff] }
 0x76a   : >> { %v5049_v45 = vpack.c.bf16 %v5043_v52, %v5042_v51 }
 0x76c   : >> { %12155 = vmatmul.msk.bf16.gmra.mxu3 %vm3315_vm15, %v4985_v38  ;;  %12162 = vmatmul.msk.bf16.vlgmr.msra.gmra.mxu0 %vm3315_vm15, %v5049_v45 }
 0x771   : >> { %v18091_v61 = vpop.f32.mrf.mxu0 }
 0x779   : >> { %v4971_v13 = vpop.f32.mrf.mxu0 }
 0x77c   : >> { %12163 = vmatmul.msk.bf16.gmra.mxu0 %vm3315_vm15, %v5050_v6 }
 0x77f   : >> { %v4910_v47 = vpop.f32.mrf.mxu3 }
 0x780   : >> { %v4957_v15 = vadd.f32 %v4956_v46, %v4910_v47 }
 0x781   : >> { %v4973_v63 = vpop.f32.mrf.mxu0 }
 0x782   : >> { %v4049_v63 = vadd.f32 %v16869_v26, %v16958_v10 }
 0x787   : >> { %v4912_v16 = vpop.f32.mrf.mxu3 }
 0x78c   : >> { %12164 = vmatmul.msk.bf16.gmra.mxu0 %vm3315_vm15, %v5051_v58 }
 0x78f   : >> { %v4915_v17 = vpop.f32.mrf.mxu3 }
 0x790   : >> { %v4962_v1 = vadd.f32 %v4961_v20, %v4915_v17 }
 0x797   : >> { %v18095_v18 = vpop.f32.mrf.mxu3 }
 0x79c   : >> { %12165 = vmatmul.msk.bf16.gmra.mxu0 %vm3315_vm15, %v5052_v8 }
 0x79f   : >> { %v4920_v21 = vpop.f32.mrf.mxu3 }
 0x7a0   : >> { %v18098_v44 = vadd.f32 %v4966_v32, %v4920_v21  ;;  %v3671_v32 = vadd.f32 %v16495_v54, %v16381_v56  ;;  %v18126_v54 = vld [vmem:[%s21299_s7] ss:$0 sm:$0xff] }
 0x7a2   : >> { %v3738_v62 = vadd.f32 %v16611_v5, %v3671_v32 }
 0x7a7   : >> { %v18100_v2 = vpop.f32.mrf.mxu3 }
 0x7af   : >> { %v4925_v46 = vpop.f32.mrf.mxu3 }
 0x7b0   : >> { %v18102_v51 = vadd.f32 %v4971_v13, %v4925_v46  ;;  %v4126_v13 = vadd.f32 %v17068_v57, %v4049_v63  ;;  %v3805_v57 = vadd.f32 %v16560_v35, %v3738_v62  ;;  %v21419_v63 = vld [vmem:[#allocation9_spill] sm:$0xff] }
 0x7b2   : >> { %v4193_v17 = vadd.f32 %v17151_v49, %v4126_v13  ;;  %v21420_v13 = vld [vmem:[#allocation19_spill] sm:$0xff] }
 0x7b4   : >> { %v4260_v26 = vadd.f32 %v17250_v55, %v4193_v17  ;;  %v3872_v55 = vadd.f32 %v16721_v41, %v3805_v57  ;;  %v21423_v17 = vld [vmem:[#allocation35_spill] sm:$0xff] }
 0x7b6   : >> { %v4327_v5 = vadd.f32 %v17347_v0, %v4260_v26  ;;  %v3939_v0 = vadd.f32 %v16757_v33, %v3872_v55  ;;  %v21418_v33 = vld [vmem:[#allocation30_spill] sm:$0xff]  ;;  %v21424_v26 = vld [vmem:[#allocation12_spill] sm:$0xff] }
 0x7b7   : >> { %v4927_v52 = vpop.f32.mrf.mxu3 }
 0x7bf   : >> { %v5016_v38 = vpop.f32.mrf.mxu3 }
 0x7c0   : >> { %v5035_v45 = vadd.f32 %v5016_v38, %v4957_v15  ;;  %v4504_v15 = vadd.f32 %v17562_v40, %v17638_v42  ;;  %v4959_v40 = vadd.f32 %v18079_v23, %v4912_v16  ;;  %v3673_v38 = vadd.f32 %v16523_v37, %v16410_v30  ;;  %v21422_v37 = vld [vmem:[#allocation21_spill] sm:$0xff] }
 0x7c2   : >> { %v3740_v32 = vadd.f32 %v21419_v63, %v3673_v38 }
 0x7c7   : >> { %v5018_v48 = vpop.f32.mrf.mxu3 }
 0x7c8   : >> { %v5036_v8 = vadd.f32 %v5018_v48, %v4959_v40 }
 0x7cf   : >> { %v5021_v50 = vpop.f32.mrf.mxu3 }
 0x7d0   : >> { %v5037_v20 = vadd.f32 %v5021_v50, %v4962_v1  ;;  %v4581_v1 = vadd.f32 %v17747_v59, %v4504_v15 }
 0x7d2   : >> { %v4648_v10 = vadd.f32 %v17845_v3, %v4581_v1  ;;  %v4394_v3 = vadd.f32 %v17448_v4, %v4327_v5  ;;  %v4054_v4 = vadd.f32 %v16895_v28, %v16985_v24  ;;  %v21421_v24 = vld [vmem:[#allocation33_spill] sm:$0xff] }
 0x7d4   : >> { %v4715_v49 = vadd.f32 %v17921_v22, %v4648_v10  ;;  %v5110_v16 = vadd.f32 %v4394_v3, %v3939_v0  ;;  %v3807_v10 = vadd.f32 %v21424_v26, %v3740_v32  ;;  %v21427_v3 = vld [vmem:[#allocation25_spill] sm:$0xff] }
 0x7d7   : >> { %v18104_v6 = vpop.f32.mrf.mxu3 }
 0x7df   : >> { %v18106_v47 = vpop.f32.mrf.mxu3 }
 0x7e7   : >> { %v18112_v12 = vpop.f32.mrf.mxu3 }
 0x7e9   : >> { %v5083_v58 = vpop.f32.mrf.mxu0 }
 0x7ea   : >> { %v5102_v7 = vadd.f32 %v5083_v58, %v5035_v45  ;;  %v4128_v45 = vadd.f32 %v17095_v31, %v4054_v4 }
 0x7ec   : >> { %v5116_v56 = vadd.f32 %v5102_v7, %v18037_v60  ;;  %v4782_v60 = vadd.f32 %v18002_v36, %v4715_v49  ;;  %v4195_v15 = vadd.f32 %v21420_v13, %v4128_v45  ;;  %v21426_v49 = vld [vmem:[#allocation37_spill] sm:$0xff]  ;;  %v21433_v45 = vld [vmem:[#allocation8_spill] sm:$0xff]  ;;  %v21436_v13 = vld [vmem:[#allocation18_spill] sm:$0xff] }
 0x7ee   : >> { %v5123_v42 = vadd.f32 %v5116_v56, %v17438_v9  ;;  %v4849_v22 = vadd.f32 %v18041_v43, %v4782_v60  ;;  %v4509_v43 = vadd.f32 %v21418_v33, %v17665_v29  ;;  %v4262_v31 = vadd.f32 %v21422_v37, %v4195_v15  ;;  %v21425_v56 = vld [vmem:[#allocation23_spill] sm:$0xff]  ;;  %v21428_v60 = vld [vmem:[#allocation14_spill] sm:$0xff]  ;;  %v21438_v37 = vld [vmem:[#allocation20_spill] sm:$0xff] }
 0x7ef   : >> { %v18134_v59 = vpop.f32.mrf.mxu3 }
 0x7f0   : >> { %v18139_v21 = vadd.f32 %v18126_v54, %v5123_v42  ;;  %v4583_v62 = vadd.f32 %v21421_v24, %v4509_v43  ;;  %v4329_v57 = vadd.f32 %v21425_v56, %v4262_v31  ;;  %v4964_v42 = vadd.f32 %v18086_v34, %v18095_v18  ;;  %v21432_v34 = vld [vmem:[#allocation15_spill] sm:$0xff] }
 0x7f1   : >> { %v5085_v35 = vpop.f32.mrf.mxu0 }
 0x7f2   : >> { %v5148_v23 = vand.u32 2147483647, %v18139_v21  ;;  %v5103_v9 = vadd.f32 %v5085_v35, %v5036_v8  ;;  %v4650_v1 = vadd.f32 %v21423_v17, %v4583_v62  ;;  %v3874_v8 = vadd.f32 %v21428_v60, %v3807_v10  ;;  %v21429_v35 = vld [vmem:[#allocation26_spill] sm:$0xff]  ;;  %v21439_v17 = vld [vmem:[#allocation32_spill] sm:$0xff] }
 0x7f3   : >> { %v4396_v0 = vadd.f32 %v21429_v35, %v4329_v57  ;;  %v5039_v10 = vadd.f32 %v18106_v47, %v18098_v44  ;;  %v21443_v60 = vld [vmem:[#allocation22_spill] sm:$0xff]  ;;  %v21445_v47 = vld [vmem:[#allocation36_spill] sm:$0xff] }
 0x7f4   : >> { %v5155_v41 = vsub.f32 0.0, %v5148_v23  ;;  %v5117_v46 = vadd.f32 %v5103_v9, %v4849_v22  ;;  %v4717_v40 = vadd.f32 %v21426_v49, %v4650_v1  ;;  %v5038_v23 = vadd.f32 %v18104_v6, %v4964_v42  ;;  %v21435_v6 = vld [vmem:[#allocation16_spill] sm:$0xff]  ;;  %v21440_v1 = vld [vmem:[#allocation31_spill] sm:$0xff]  ;;  %v21441_v49 = vld [vmem:[#allocation6_spill] sm:$0xff] }
 0x7f5   : >> { %v3941_v18 = vadd.f32 %v21432_v34, %v3874_v8  ;;  %v21442_v42 = vld [vmem:[#allocation34_spill] sm:$0xff] }
 0x7f6   : >> { %v5162_v52 = vmul.f32 1.442695, %v5155_v41  ;;  %v5124_v36 = vadd.f32 %v5117_v46, %v5110_v16  ;;  %v21430_v16 = vld [vmem:[#allocation11_spill] sm:$0xff]  ;;  %v21431_v41 = vld [vmem:[#allocation13_spill] sm:$0xff] }
 0x7f7   : >> { %v5033_v48 = vpop.f32.mrf.mxu3  ;;  %v3675_v46 = vadd.f32 %v21431_v41, %v21430_v16  ;;  %v5112_v43 = vadd.f32 %v4396_v0, %v3941_v18  ;;  %v21446_v41 = vld [vmem:[#allocation24_spill] sm:$0xff] }
 0x7f8   : >> { %15090 = vpow2.f32 %v5162_v52  ;;  %v18152_v50 = vadd.f32 %v18126_v54, %v5124_v36  ;;  %v21434_v48 = vld [vmem:[#allocation17_spill] sm:$0xff] }
 0x7f9   : >> { %v5088_v28 = vpop.f32.mrf.mxu0  ;;  %v4059_v33 = vadd.f32 %v21435_v6, %v21434_v48  ;;  %v21448_v6 = vld [vmem:[#allocation28_spill] sm:$0xff] }
 0x7fa   : >> { %v5149_v58 = vand.u32 2147483647, %v18152_v50  ;;  %v5104_v30 = vadd.f32 %v5088_v28, %v5037_v20 }
 0x7fb   : >> { %v4130_v15 = vadd.f32 %v21436_v13, %v4059_v33 }
 0x7fc   : >> { %v5156_v7 = vsub.f32 0.0, %v5149_v58  ;;  %v5118_v29 = vadd.f32 %v5104_v30, %v18049_v27  ;;  %v4784_v27 = vadd.f32 %v18014_v39, %v4717_v40  ;;  %v3742_v39 = vadd.f32 %v21433_v45, %v3675_v46  ;;  %v21437_v30 = vld [vmem:[#allocation10_spill] sm:$0xff] }
 0x7fd   : >> { %v4197_v31 = vadd.f32 %v21438_v37, %v4130_v15  ;;  %v5141_v37 = vmax.f32 %v18139_v21, 0.0 }
 0x7fe   : >> { %v15091_v5 = vpop.eup %15090  ;;  %v5164_v55 = vmul.f32 1.442695, %v5156_v7  ;;  %v5125_v20 = vadd.f32 %v5118_v29, %v21427_v3  ;;  %v4851_v52 = vadd.f32 %v18053_v11, %v4784_v27  ;;  %v3809_v11 = vadd.f32 %v21437_v30, %v3742_v39  ;;  %v21444_v27 = vld [vmem:[#allocation7_spill] sm:$0xff] }
 0x7ff   : >> { %v5176_v22 = vadd.f32 1.0, %v15091_v5  ;;  %v5179_v28 = vmul.f32 -0.5, %v15091_v5  ;;  %v4514_v7 = vadd.f32 %v21440_v1, %v21439_v17  ;;  %v4264_v8 = vadd.f32 %v21443_v60, %v4197_v31 }
 0x800   : >> { %15092 = vpow2.f32 %v5164_v55  ;;  %v18172_v9 = vadd.f32 %v18126_v54, %v5125_v20  ;;  %v3876_v40 = vadd.f32 %v21441_v49, %v3809_v11  ;;  %v5142_v31 = vmax.f32 %v18152_v50, 0.0 }
 0x801   : >> { %v5090_v4 = vpop.f32.mrf.mxu0  ;;  %15094 = vlog2.f32 %v5176_v22  ;;  %v4585_v55 = vadd.f32 %v21442_v42, %v4514_v7  ;;  %v5180_v20 = vadd.f32 1.0, %v5179_v28  ;;  %v5182_v22 = vand.u32 2147483647, %v15091_v5 }
 0x802   : >> { %v5150_v36 = vand.u32 2147483647, %v18172_v9  ;;  %v5105_v38 = vadd.f32 %v5090_v4, %v5038_v23  ;;  %v3943_v44 = vadd.f32 %v21444_v27, %v3876_v40  ;;  %v4331_v46 = vadd.f32 %v21446_v41, %v4264_v8  ;;  %v21452_v41 = vld [vmem:[#allocation29_spill] sm:$0xff] }
 0x803   : >> { %v4652_v23 = vadd.f32 %v21445_v47, %v4585_v55  ;;  %v5181_v45 = vmul.f32 %v15091_v5, %v5180_v20  ;;  %vm18205_vm1 = vcmp.lt.f32.partialorder %v5182_v22, 0.0004427343  ;;  %v5041_v42 = vadd.f32 %v18134_v59, %v18102_v51 }
 0x804   : >> { %v5157_v63 = vsub.f32 0.0, %v5150_v36  ;;  %v5119_v32 = vadd.f32 %v5105_v38, %v4851_v52  ;;  %v21447_v52 = vld [vmem:[#allocation38_spill] sm:$0xff]  ;;  %v4969_v38 = vadd.f32 %v18091_v61, %v18100_v2  ;;  %v4398_v33 = vadd.f32 %v21448_v6, %v4331_v46 }
 0x805   : >> { %v4719_v36 = vadd.f32 %v21447_v52, %v4652_v23 }
 0x806   : >> { %v15093_v24 = vpop.eup %15092  ;;  %v5166_v62 = vmul.f32 1.442695, %v5157_v63  ;;  %v5126_v58 = vadd.f32 %v5119_v32, %v5112_v43  ;;  %v21449_v63 = vld [vmem:[#allocation27_spill] sm:$0xff]  ;;  %v5040_v28 = vadd.f32 %v18112_v12, %v4969_v38 }
 0x807   : >> { %v5185_v29 = vadd.f32 1.0, %v15093_v24  ;;  %v15095_v26 = vpop.eup %15094  ;;  %v5188_v57 = vmul.f32 -0.5, %v15093_v24  ;;  %v5191_v39 = vand.u32 2147483647, %v15093_v24 }
 0x808   : >> { %15096 = vpow2.f32 %v5166_v62  ;;  %v18190_v56 = vadd.f32 %v18126_v54, %v5126_v58  ;;  %v5178_v16 = vmul.f32 0.6931472, %v15095_v26 }
 0x809   : >> { %v5093_v3 = vpop.f32.mrf.mxu0  ;;  %15098 = vlog2.f32 %v5185_v29  ;;  %v5189_v4 = vadd.f32 1.0, %v5188_v57  ;;  %vm5192_vm2 = vcmp.lt.f32.partialorder %v5191_v39, 0.0004427343  ;;  %v5114_v29 = vadd.f32 %v4398_v33, %v3943_v44 }
 0x80a   : >> { %v5151_v35 = vand.u32 2147483647, %v18190_v56  ;;  %v5106_v0 = vadd.f32 %v5093_v3, %v5039_v10  ;;  %v5184_v61 = vsel %vm18205_vm1, %v5181_v45, %v5178_v16  ;;  %v5143_v39 = vmax.f32 %v18172_v9, 0.0 }
 0x80b   : >> { %v5190_v58 = vmul.f32 %v15093_v24, %v5189_v4  ;;  %v18220_v1 = vadd.f32 %v5184_v61, %v5141_v37 }
 0x80c   : >> { %v5158_v34 = vsub.f32 0.0, %v5151_v35  ;;  %v5120_v18 = vadd.f32 %v5106_v0, %v18058_v53  ;;  %v4786_v53 = vadd.f32 %v18027_v25, %v4719_v36 }
 0x80e   : >> { %v15097_v48 = vpop.eup %15096  ;;  %v5168_v43 = vmul.f32 1.442695, %v5158_v34  ;;  %v5127_v32 = vadd.f32 %v5120_v18, %v21449_v63  ;;  %v4853_v30 = vadd.f32 %v18062_v19, %v4786_v53 }
 0x80f   : >> { %v15099_v15 = vpop.eup %15098  ;;  %v5194_v62 = vadd.f32 1.0, %v15097_v48  ;;  %v5197_v10 = vmul.f32 -0.5, %v15097_v48  ;;  %v5200_v0 = vand.u32 2147483647, %v15097_v48 }
 0x810   : >> { %15100 = vpow2.f32 %v5168_v43  ;;  %v18214_v2 = vadd.f32 %v18126_v54, %v5127_v32  ;;  %v5187_v5 = vmul.f32 0.6931472, %v15099_v15 }
 0x811   : >> { %v5095_v11 = vpop.f32.mrf.mxu0  ;;  %15102 = vlog2.f32 %v5194_v62  ;;  %v5198_v60 = vadd.f32 1.0, %v5197_v10  ;;  %vm5201_vm3 = vcmp.lt.f32.partialorder %v5200_v0, 0.0004427343 }
 0x812   : >> { %v5152_v25 = vand.u32 2147483647, %v18214_v2  ;;  %v5107_v12 = vadd.f32 %v5095_v11, %v5040_v28  ;;  %v5193_v17 = vsel %vm5192_vm2, %v5190_v58, %v5187_v5 }
 0x813   : >> { %v18222_v7 = vadd.f32 %v5193_v17, %v5142_v31  ;;  %v5199_v23 = vmul.f32 %v15097_v48, %v5198_v60 }
 0x814   : >> { %v5159_v26 = vsub.f32 0.0, %v5152_v25  ;;  %v5121_v24 = vadd.f32 %v5107_v12, %v4853_v30 }
 0x815   : >> { %v5296_v19 = vpack.c.bf16 %v18222_v7, %v18220_v1  ;;  %v14545_v1 = vld [vmem:[%s21300_s8 + $0x18] sm:$0xff]  ;;  %v14546_v7 = vld [vmem:[%s21300_s8 + $0x20] sm:$0xff] }
 0x816   : >> { %v15101_v21 = vpop.eup %15100  ;;  %v5170_v57 = vmul.f32 1.442695, %v5159_v26  ;;  %v5128_v50 = vadd.f32 %v5121_v24, %v5114_v29  ;;  %v5145_v26 = vmax.f32 %v18214_v2, 0.0  ;;  %v14542_v2 = vld [vmem:[%s21300_s8] sm:$0xff] }
 0x817   : >> { %v5203_v49 = vadd.f32 1.0, %v15101_v21  ;;  %v15103_v40 = vpop.eup %15102  ;;  %v5206_v3 = vmul.f32 -0.5, %v15101_v21  ;;  %v5209_v16 = vand.u32 2147483647, %v15101_v21 }
 0x818   : >> { %15104 = vpow2.f32 %v5170_v57  ;;  %v18229_v55 = vadd.f32 %v18126_v54, %v5128_v50  ;;  %v5196_v22 = vmul.f32 0.6931472, %v15103_v40 }
 0x819   : >> { %v5098_v20 = vpop.f32.mrf.mxu0  ;;  %15106 = vlog2.f32 %v5203_v49  ;;  %v5207_v47 = vadd.f32 1.0, %v5206_v3  ;;  %vm5210_vm4 = vcmp.lt.f32.partialorder %v5209_v16, 0.0004427343  ;;  %v14570_v16 = vld [vmem:[%s21301_s9 + $0x18] sm:$0xff] }
 0x81a   : >> { %v5153_v8 = vand.u32 2147483647, %v18229_v55  ;;  %v5108_v35 = vadd.f32 %v5098_v20, %v5041_v42  ;;  %v5202_v4 = vsel %vm5201_vm3, %v5199_v23, %v5196_v22  ;;  %v5146_v24 = vmax.f32 %v18229_v55, 0.0  ;;  %v14543_v55 = vld [vmem:[%s21300_s8 + $0x8] sm:$0xff]  ;;  %v14550_v23 = vld [vmem:[%s21300_s8 + $0x40] sm:$0xff]  ;;  %5725 = vmatpush.bf16.msrb.mxu0 %v14570_v16  ;;  %v14581_v16 = vld [vmem:[%s21301_s9 + $0x70] sm:$0xff] }
 0x81b   : >> { %v5208_v38 = vmul.f32 %v15101_v21, %v5207_v47  ;;  %v5241_v33 = vadd.f32 %v5202_v4, %v5143_v39  ;;  %v14549_v47 = vld [vmem:[%s21300_s8 + $0x38] sm:$0xff] }
 0x81c   : >> { %v5160_v27 = vsub.f32 0.0, %v5153_v8  ;;  %v5122_v44 = vadd.f32 %v5108_v35, %v18067_v14  ;;  %v5144_v14 = vmax.f32 %v18190_v56, 0.0 }
 0x81e   : >> { %v15105_v51 = vpop.eup %15104  ;;  %v5172_v59 = vmul.f32 1.442695, %v5160_v27  ;;  %v5129_v46 = vadd.f32 %v5122_v44, %v21452_v41  ;;  %v14544_v27 = vld [vmem:[%s21300_s8 + $0x10] sm:$0xff] }
 0x81f   : >> { %v15107_v34 = vpop.eup %15106  ;;  %v5212_v18 = vadd.f32 1.0, %v15105_v51  ;;  %v5215_v53 = vmul.f32 -0.5, %v15105_v51  ;;  %v5218_v9 = vand.u32 2147483647, %v15105_v51  ;;  %v14548_v44 = vld [vmem:[%s21300_s8 + $0x30] sm:$0xff] }
 0x820   : >> { %15108 = vpow2.f32 %v5172_v59  ;;  %v5140_v52 = vadd.f32 %v18126_v54, %v5129_v46  ;;  %v5205_v36 = vmul.f32 0.6931472, %v15107_v34  ;;  %v14551_v46 = vld [vmem:[%s21300_s8 + $0x48] sm:$0xff] }
 0x821   : >> { %v5100_v45 = vpop.f32.mrf.mxu0  ;;  %15110 = vlog2.f32 %v5212_v18  ;;  %v5216_v61 = vadd.f32 1.0, %v5215_v53  ;;  %vm5219_vm5 = vcmp.lt.f32.partialorder %v5218_v9, 0.0004427343  ;;  %v14568_v34 = vld [vmem:[%s21301_s9 + $0x8] sm:$0xff]  ;;  %v14567_v18 = vld [vmem:[%s21301_s9] sm:$0xff]  ;;  %v14574_v53 = vld [vmem:[%s21301_s9 + $0x38] sm:$0xff] }
 0x822   : >> { %v5154_v48 = vand.u32 2147483647, %v5140_v52  ;;  %v5211_v6 = vsel %vm5210_vm4, %v5208_v38, %v5205_v36  ;;  %v5147_v60 = vmax.f32 %v5140_v52, 0.0  ;;  %v14616_v52 = vld [vmem:[%s21301_s9 + $0x188] sm:$0xff]  ;;  %v14552_v38 = vld [vmem:[%s21300_s8 + $0x50] sm:$0xff] }
 0x823   : >> { %v5242_v43 = vadd.f32 %v5211_v6, %v5144_v14  ;;  %v5217_v11 = vmul.f32 %v15105_v51, %v5216_v61  ;;  %v14569_v51 = vld [vmem:[%s21301_s9 + $0x10] sm:$0xff]  ;;  %v14554_v61 = vld [vmem:[%s21300_s8 + $0x60] sm:$0xff] }
 0x824   : >> { %v5161_v63 = vsub.f32 0.0, %v5154_v48  ;;  %5726 = vmatpush.bf16.msrb.mxu0 %v14569_v51  ;;  %v14572_v48 = vld [vmem:[%s21301_s9 + $0x28] sm:$0xff] }
 0x825   : >> { %v5297_v32 = vpack.c.bf16 %v5242_v43, %v5241_v33  ;;  %v14571_v33 = vld [vmem:[%s21301_s9 + $0x20] sm:$0xff] }
 0x826   : >> { %v15109_v13 = vpop.eup %15108  ;;  %v5174_v15 = vmul.f32 1.442695, %v5161_v63  ;;  %v14553_v63 = vld [vmem:[%s21300_s8 + $0x58] sm:$0xff] }
 0x827   : >> { %v5221_v28 = vadd.f32 1.0, %v15109_v13  ;;  %v5224_v54 = vmul.f32 -0.5, %v15109_v13  ;;  %v15111_v62 = vpop.eup %15110  ;;  %v5227_v58 = vand.u32 2147483647, %v15109_v13 }
 0x828   : >> { %15112 = vpow2.f32 %v5174_v15  ;;  %v5214_v5 = vmul.f32 0.6931472, %v15111_v62  ;;  %5754 = vmatpush.bf16.msra.mxu0 %v14568_v34 }
 0x829   : >> { %15114 = vlog2.f32 %v5221_v28  ;;  %v5225_v56 = vadd.f32 1.0, %v5224_v54  ;;  %vm5228_vm6 = vcmp.lt.f32.partialorder %v5227_v58, 0.0004427343  ;;  %v14573_v54 = vld [vmem:[%s21301_s9 + $0x30] sm:$0xff]  ;;  %v14576_v58 = vld [vmem:[%s21301_s9 + $0x48] sm:$0xff] }
 0x82a   : >> { %v5220_v12 = vsel %vm5219_vm5, %v5217_v11, %v5214_v5  ;;  %v14575_v11 = vld [vmem:[%s21301_s9 + $0x40] sm:$0xff] }
 0x82b   : >> { %v5226_v29 = vmul.f32 %v15109_v13, %v5225_v56  ;;  %v5243_v21 = vadd.f32 %v5220_v12, %v5145_v26 }
 0x82c   : >> { %5755 = vmatpush.bf16.msra.mxu0 %v14567_v18  ;;  %v14586_v18 = vld [vmem:[%s21301_s9 + $0x98] sm:$0xff] }
 0x82e   : >> { %v15113_v30 = vpop.eup %15112 }
 0x82f   : >> { %v15115_v37 = vpop.eup %15114  ;;  %v5230_v31 = vadd.f32 1.0, %v15113_v30  ;;  %v5233_v25 = vmul.f32 -0.5, %v15113_v30  ;;  %v5236_v49 = vand.u32 2147483647, %v15113_v30 }
 0x830   : >> { %v5223_v17 = vmul.f32 0.6931472, %v15115_v37 }
 0x831   : >> { %15116 = vlog2.f32 %v5230_v31  ;;  %v5234_v50 = vadd.f32 1.0, %v5233_v25  ;;  %vm5237_vm7 = vcmp.lt.f32.partialorder %v5236_v49, 0.0004427343  ;;  %v14555_v31 = vld [vmem:[%s21300_s8 + $0x68] sm:$0xff] }
 0x832   : >> { %v5229_v10 = vsel %vm5228_vm6, %v5226_v29, %v5223_v17  ;;  %v14578_v29 = vld [vmem:[%s21301_s9 + $0x58] sm:$0xff] }
 0x833   : >> { %v5244_v57 = vadd.f32 %v5229_v10, %v5146_v24  ;;  %v5235_v20 = vmul.f32 %v15113_v30, %v5234_v50  ;;  %v14577_v24 = vld [vmem:[%s21301_s9 + $0x50] sm:$0xff] }
 0x835   : >> { %v5298_v40 = vpack.c.bf16 %v5244_v57, %v5243_v21  ;;  %v14556_v21 = vld [vmem:[%s21300_s8 + $0x70] sm:$0xff] }
 0x837   : >> { %v15117_v42 = vpop.eup %15116 }
 0x838   : >> { %v5232_v3 = vmul.f32 0.6931472, %v15117_v42 }
 0x83a   : >> { %v5238_v8 = vsel %vm5237_vm7, %v5235_v20, %v5232_v3  ;;  %v14579_v3 = vld [vmem:[%s21301_s9 + $0x60] sm:$0xff] }
 0x83b   : >> { %v5245_v35 = vadd.f32 %v5238_v8, %v5147_v60  ;;  %v14557_v60 = vld [vmem:[%s21300_s8 + $0x78] sm:$0xff] }
 0x83d   : >> { %v5299_v0 = vpack.c.bf16 %v5245_v35, %v5245_v35 }
 0x83f   : >> { %v5502_v22 = vsel %vm718_vm0, %v5299_v0, 0  ;;  %vm5638_vm0 = vcmask 261120  }
 0x840   : >> { %5508 = vmatpush.bf16.msrb.mxu3 %v5502_v22  ;;  %v14584_v22 = vld [vmem:[%s21301_s9 + $0x88] sm:$0xff] }
 0x844   : >> { %5509 = vmatpush.bf16.msrb.mxu3 %v5298_v40  ;;  %v14580_v40 = vld [vmem:[%s21301_s9 + $0x68] sm:$0xff] }
 0x848   : >> { %5510 = vmatpush.bf16.msrb.mxu3 %v5297_v32 }
 0x84c   : >> { %5511 = vmatpush.bf16.msrb.mxu3 %v5296_v19  ;;  %v14547_v19 = vld [vmem:[%s21300_s8 + $0x28] sm:$0xff] }
 0x84f   : >> { %12266 = vmatmul.msk.bf16.vlgmr.msrb.gmra.mxu3 %vm5425_vm8, %v14542_v2 }
 0x850   : >> { %6637 = vmatpush.bf16.msra.mxu3 %v14616_v52  ;;  %v14585_v52 = vld [vmem:[%s21301_s9 + $0x90] sm:$0xff] }
 0x85f   : >> { %12267 = vmatmul.msk.bf16.gmra.mxu3 %vm5425_vm8, %v14543_v55  ;;  %v14583_v55 = vld [vmem:[%s21301_s9 + $0x80] sm:$0xff] }
 0x86f   : >> { %12268 = vmatmul.msk.bf16.gmra.mxu3 %vm5425_vm8, %v14544_v27 }
 0x87f   : >> { %12269 = vmatmul.msk.bf16.gmra.mxu3 %vm5425_vm8, %v14545_v1  ;;  %v14558_v1 = vld [vmem:[%s21300_s8 + $0x80] sm:$0xff] }
 0x88f   : >> { %12270 = vmatmul.msk.bf16.gmra.mxu3 %vm5425_vm8, %v14546_v7 }
 0x89f   : >> { %12271 = vmatmul.msk.bf16.gmra.mxu3 %vm5425_vm8, %v14547_v19 }
 0x8af   : >> { %12272 = vmatmul.msk.bf16.gmra.mxu3 %vm5425_vm8, %v14548_v44 }
 0x8bf   : >> { %12273 = vmatmul.msk.bf16.gmra.mxu3 %vm5425_vm8, %v14549_v47  ;;  %v14582_v47 = vld [vmem:[%s21301_s9 + $0x78] sm:$0xff] }
 0x8cf   : >> { %12274 = vmatmul.msk.bf16.gmra.mxu3 %vm5425_vm8, %v14550_v23 }
 0x8d2   : >> { %v5513_v59 = vpop.f32.mrf.mxu3 }
 0x8d3   : >> { %5639 = vst.msk [vmem:[#allocation3] sm:$0xff] %vm5638_vm0, %v5513_v59  ;;  %v14559_v59 = vld [vmem:[%s21300_s8 + $0x88] sm:$0xff] }
 0x8da   : >> { %v5515_v41 = vpop.f32.mrf.mxu3  ;;  %v5689_v15 = vld [vmem:[#allocation3] sm:$0xff] }
 0x8db   : >> { %5640 = vst.msk [vmem:[#allocation3 + $0x8] sm:$0xff] %vm5638_vm0, %v5515_v41 }
 0x8df   : >> { %12275 = vmatmul.msk.bf16.gmra.mxu3 %vm5425_vm8, %v14551_v46 }
 0x8e2   : >> { %v5518_v4 = vpop.f32.mrf.mxu3  ;;  %v5690_v32 = vld [vmem:[#allocation3 + $0x8] sm:$0xff] }
 0x8e3   : >> { %5641 = vst.msk [vmem:[#allocation3 + $0x10] sm:$0xff] %vm5638_vm0, %v5518_v4  ;;  %v5691_v28 = vpack.c.bf16 %v5690_v32, %v5689_v15 }
 0x8ea   : >> { %v5520_v36 = vpop.f32.mrf.mxu3  ;;  %v5696_v39 = vld [vmem:[#allocation3 + $0x10] sm:$0xff] }
 0x8eb   : >> { %5642 = vst.msk [vmem:[#allocation3 + $0x18] sm:$0xff] %vm5638_vm0, %v5520_v36 }
 0x8ef   : >> { %12276 = vmatmul.msk.bf16.gmra.mxu3 %vm5425_vm8, %v14552_v38  ;;  %v14560_v38 = vld [vmem:[%s21300_s8 + $0x90] sm:$0xff] }
 0x8f2   : >> { %v5523_v45 = vpop.f32.mrf.mxu3  ;;  %v5697_v14 = vld [vmem:[#allocation3 + $0x18] sm:$0xff] }
 0x8f3   : >> { %5643 = vst.msk [vmem:[#allocation3 + $0x20] sm:$0xff] %vm5638_vm0, %v5523_v45  ;;  %v5698_v6 = vpack.c.bf16 %v5697_v14, %v5696_v39 }
 0x8f5   : >> { %12303 = vmatmul.msk.bf16.vlgmr.msrb.gmra.mxu0 %vm5638_vm0, %v5698_v6  ;;  %v14588_v6 = vld [vmem:[%s21301_s9 + $0xa8] sm:$0xff] }
 0x8f6   : >> { %5791 = vmatpush.bf16.msrb.mxu0 %v14572_v48 }
 0x8fa   : >> { %v5525_v43 = vpop.f32.mrf.mxu3  ;;  %5792 = vmatpush.bf16.msrb.mxu0 %v14571_v33  ;;  %v5762_v56 = vld [vmem:[#allocation3 + $0x20] sm:$0xff] }
 0x8fb   : >> { %5644 = vst.msk [vmem:[#allocation3 + $0x28] sm:$0xff] %vm5638_vm0, %v5525_v43  ;;  %v14587_v43 = vld [vmem:[%s21301_s9 + $0xa0] sm:$0xff] }
 0x8ff   : >> { %12277 = vmatmul.msk.bf16.gmra.mxu3 %vm5425_vm8, %v14553_v63 }
 0x902   : >> { %v5528_v13 = vpop.f32.mrf.mxu3  ;;  %v5763_v9 = vld [vmem:[#allocation3 + $0x28] sm:$0xff] }
 0x903   : >> { %5645 = vst.msk [vmem:[#allocation3 + $0x30] sm:$0xff] %vm5638_vm0, %v5528_v13  ;;  %v5764_v30 = vpack.c.bf16 %v5763_v9, %v5762_v56  ;;  %v14561_v13 = vld [vmem:[%s21300_s8 + $0x98] sm:$0xff] }
 0x905   : >> { %12312 = vmatmul.msk.bf16.vlgmr.msra.gmra.mxu0 %vm5638_vm0, %v5691_v28 }
 0x906   : >> { %5830 = vmatpush.bf16.msra.mxu0 %v14574_v53 }
 0x90a   : >> { %v5530_v62 = vpop.f32.mrf.mxu3  ;;  %5831 = vmatpush.bf16.msra.mxu0 %v14573_v54  ;;  %v5801_v17 = vld [vmem:[#allocation3 + $0x30] sm:$0xff] }
 0x90b   : >> { %5646 = vst.msk [vmem:[#allocation3 + $0x38] sm:$0xff] %vm5638_vm0, %v5530_v62  ;;  %v14590_v62 = vld [vmem:[%s21301_s9 + $0xb8] sm:$0xff] }
 0x90f   : >> { %12278 = vmatmul.msk.bf16.gmra.mxu3 %vm5425_vm8, %v14554_v61 }
 0x912   : >> { %v5533_v5 = vpop.f32.mrf.mxu3  ;;  %v5802_v25 = vld [vmem:[#allocation3 + $0x38] sm:$0xff] }
 0x913   : >> { %5647 = vst.msk [vmem:[#allocation3 + $0x40] sm:$0xff] %vm5638_vm0, %v5533_v5  ;;  %v5803_v26 = vpack.c.bf16 %v5802_v25, %v5801_v17  ;;  %v14589_v5 = vld [vmem:[%s21301_s9 + $0xb0] sm:$0xff]  ;;  %v14592_v17 = vld [vmem:[%s21301_s9 + $0xc8] sm:$0xff] }
 0x915   : >> { %12325 = vmatmul.msk.bf16.vlgmr.msrb.gmra.mxu0 %vm5638_vm0, %v5764_v30 }
 0x916   : >> { %5869 = vmatpush.bf16.msrb.mxu0 %v14576_v58 }
 0x91a   : >> { %v5535_v37 = vpop.f32.mrf.mxu3  ;;  %5870 = vmatpush.bf16.msrb.mxu0 %v14575_v11  ;;  %v5840_v49 = vld [vmem:[#allocation3 + $0x40] sm:$0xff]  ;;  %v14562_v11 = vld [vmem:[%s21300_s8 + $0xa0] sm:$0xff] }
 0x91b   : >> { %5648 = vst.msk [vmem:[#allocation3 + $0x48] sm:$0xff] %vm5638_vm0, %v5535_v37 }
 0x91f   : >> { %12279 = vmatmul.msk.bf16.gmra.mxu3 %vm5425_vm8, %v14555_v31 }
 0x922   : >> { %v5538_v12 = vpop.f32.mrf.mxu3  ;;  %v5841_v57 = vld [vmem:[#allocation3 + $0x48] sm:$0xff] }
 0x923   : >> { %5649 = vst.msk [vmem:[#allocation3 + $0x50] sm:$0xff] %vm5638_vm0, %v5538_v12  ;;  %v5842_v42 = vpack.c.bf16 %v5841_v57, %v5840_v49 }
 0x925   : >> { %12338 = vmatmul.msk.bf16.vlgmr.msra.gmra.mxu0 %vm5638_vm0, %v5803_v26 }
 0x926   : >> { %5908 = vmatpush.bf16.msra.mxu0 %v14578_v29 }
 0x92a   : >> { %v5540_v10 = vpop.f32.mrf.mxu3  ;;  %5909 = vmatpush.bf16.msra.mxu0 %v14577_v24  ;;  %v5879_v0 = vld [vmem:[#allocation3 + $0x50] sm:$0xff]  ;;  %v14591_v24 = vld [vmem:[%s21301_s9 + $0xc0] sm:$0xff] }
 0x92b   : >> { %5650 = vst.msk [vmem:[#allocation3 + $0x58] sm:$0xff] %vm5638_vm0, %v5540_v10 }
 0x92f   : >> { %12280 = vmatmul.msk.bf16.gmra.mxu3 %vm5425_vm8, %v14556_v21 }
 0x932   : >> { %v5543_v50 = vpop.f32.mrf.mxu3  ;;  %v5880_v8 = vld [vmem:[#allocation3 + $0x58] sm:$0xff] }
 0x933   : >> { %5651 = vst.msk [vmem:[#allocation3 + $0x60] sm:$0xff] %vm5638_vm0, %v5543_v50  ;;  %v5881_v2 = vpack.c.bf16 %v5880_v8, %v5879_v0  ;;  %v14563_v50 = vld [vmem:[%s21300_s8 + $0xa8] sm:$0xff] }
 0x935   : >> { %12351 = vmatmul.msk.bf16.vlgmr.msrb.gmra.mxu0 %vm5638_vm0, %v5842_v42 }
 0x936   : >> { %5947 = vmatpush.bf16.msrb.mxu0 %v14580_v40 }
 0x93a   : >> { %v5545_v20 = vpop.f32.mrf.mxu3  ;;  %5948 = vmatpush.bf16.msrb.mxu0 %v14579_v3  ;;  %v5918_v44 = vld [vmem:[#allocation3 + $0x60] sm:$0xff] }
 0x93b   : >> { %5652 = vst.msk [vmem:[#allocation3 + $0x68] sm:$0xff] %vm5638_vm0, %v5545_v20  ;;  %v14594_v20 = vld [vmem:[%s21301_s9 + $0xd8] sm:$0xff] }
 0x93f   : >> { %12281 = vmatmul.msk.bf16.gmra.mxu3 %vm5425_vm8, %v14557_v60 }
 0x942   : >> { %v5548_v35 = vpop.f32.mrf.mxu3  ;;  %v5919_v7 = vld [vmem:[#allocation3 + $0x68] sm:$0xff] }
 0x943   : >> { %5653 = vst.msk [vmem:[#allocation3 + $0x70] sm:$0xff] %vm5638_vm0, %v5548_v35  ;;  %v5920_v23 = vpack.c.bf16 %v5919_v7, %v5918_v44  ;;  %v14593_v35 = vld [vmem:[%s21301_s9 + $0xd0] sm:$0xff] }
 0x945   : >> { %12364 = vmatmul.msk.bf16.vlgmr.msra.gmra.mxu0 %vm5638_vm0, %v5881_v2 }
 0x946   : >> { %5994 = vmatpush.bf16.msra.mxu0 %v14584_v22 }
 0x94a   : >> { %v5550_v27 = vpop.f32.mrf.mxu3  ;;  %5995 = vmatpush.bf16.msra.mxu0 %v14583_v55  ;;  %v5957_v48 = vld [vmem:[#allocation3 + $0x70] sm:$0xff]  ;;  %v14564_v55 = vld [vmem:[%s21300_s8 + $0xb0] sm:$0xff] }
 0x94b   : >> { %5654 = vst.msk [vmem:[#allocation3 + $0x78] sm:$0xff] %vm5638_vm0, %v5550_v27  ;;  %v14615_v27 = vld [vmem:[%s21301_s9 + $0x180] sm:$0xff] }
 0x94c   : >> { %6638 = vmatpush.bf16.msra.mxu3 %v14615_v27 }
 0x94f   : >> { %12282 = vmatmul.msk.bf16.gmra.mxu3 %vm5425_vm8, %v14558_v1 }
 0x952   : >> { %v5553_v19 = vpop.f32.mrf.mxu3  ;;  %v5958_v45 = vld [vmem:[#allocation3 + $0x78] sm:$0xff] }
 0x953   : >> { %5655 = vst.msk [vmem:[#allocation3 + $0x80] sm:$0xff] %vm5638_vm0, %v5553_v19  ;;  %v5959_v33 = vpack.c.bf16 %v5958_v45, %v5957_v48 }
 0x955   : >> { %12377 = vmatmul.msk.bf16.vlgmr.msrb.gmra.mxu0 %vm5638_vm0, %v5920_v23 }
 0x956   : >> { %6023 = vmatpush.bf16.msrb.mxu0 %v14582_v47  ;;  %v14598_v47 = vld [vmem:[%s21301_s9 + $0xf8] sm:$0xff] }
 0x95a   : >> { %v5555_v51 = vpop.f32.mrf.mxu3  ;;  %6024 = vmatpush.bf16.msrb.mxu0 %v14581_v16  ;;  %v5965_v46 = vld [vmem:[#allocation3 + $0x80] sm:$0xff] }
 0x95b   : >> { %5656 = vst.msk [vmem:[#allocation3 + $0x88] sm:$0xff] %vm5638_vm0, %v5555_v51  ;;  %v14597_v51 = vld [vmem:[%s21301_s9 + $0xf0] sm:$0xff] }
 0x95f   : >> { %12283 = vmatmul.msk.bf16.gmra.mxu3 %vm5425_vm8, %v14559_v59 }
 0x962   : >> { %v5558_v41 = vpop.f32.mrf.mxu3  ;;  %v5966_v34 = vld [vmem:[#allocation3 + $0x88] sm:$0xff] }
 0x963   : >> { %5657 = vst.msk [vmem:[#allocation3 + $0x90] sm:$0xff] %vm5638_vm0, %v5558_v41  ;;  %v5967_v4 = vpack.c.bf16 %v5966_v34, %v5965_v46  ;;  %v14565_v34 = vld [vmem:[%s21300_s8 + $0xb8] sm:$0xff] }
 0x965   : >> { %12394 = vmatmul.msk.bf16.vlgmr.msra.gmra.mxu0 %vm5638_vm0, %v5967_v4 }
 0x966   : >> { %6060 = vmatpush.bf16.msra.mxu0 %v14586_v18 }
 0x96a   : >> { %v5560_v36 = vpop.f32.mrf.mxu3  ;;  %6061 = vmatpush.bf16.msra.mxu0 %v14585_v52  ;;  %v6031_v54 = vld [vmem:[#allocation3 + $0x90] sm:$0xff] }
 0x96b   : >> { %5658 = vst.msk [vmem:[#allocation3 + $0x98] sm:$0xff] %vm5638_vm0, %v5560_v36 }
 0x96f   : >> { %12284 = vmatmul.msk.bf16.gmra.mxu3 %vm5425_vm8, %v14560_v38  ;;  %v14596_v38 = vld [vmem:[%s21301_s9 + $0xe8] sm:$0xff] }
 0x972   : >> { %v5563_v39 = vpop.f32.mrf.mxu3  ;;  %v5728_v14 = vpop.f32.mrf.mxu0  ;;  %v6032_v15 = vld [vmem:[#allocation3 + $0x98] sm:$0xff] }
 0x973   : >> { %5659 = vst.msk [vmem:[#allocation3 + $0xa0] sm:$0xff] %vm5638_vm0, %v5563_v39  ;;  %v6033_v9 = vpack.c.bf16 %v6032_v15, %v6031_v54 }
 0x975   : >> { %12403 = vmatmul.msk.bf16.vlgmr.msrb.gmra.mxu0 %vm5638_vm0, %v5959_v33 }
 0x976   : >> { %6099 = vmatpush.bf16.msrb.mxu0 %v14588_v6 }
 0x97a   : >> { %v5565_v63 = vpop.f32.mrf.mxu3  ;;  %v5730_v32 = vpop.f32.mrf.mxu0  ;;  %6100 = vmatpush.bf16.msrb.mxu0 %v14587_v43  ;;  %v6070_v12 = vld [vmem:[#allocation3 + $0xa0] sm:$0xff]  ;;  %v14566_v43 = vld [vmem:[%s21300_s8 + $0xc0] sm:$0xff] }
 0x97b   : >> { %5660 = vst.msk [vmem:[#allocation3 + $0xa8] sm:$0xff] %vm5638_vm0, %v5565_v63 }
 0x97f   : >> { %12285 = vmatmul.msk.bf16.gmra.mxu3 %vm5425_vm8, %v14561_v13 }
 0x982   : >> { %v5568_v53 = vpop.f32.mrf.mxu3  ;;  %v5757_v28 = vpop.f32.mrf.mxu0  ;;  %v6071_v37 = vld [vmem:[#allocation3 + $0xa8] sm:$0xff] }
 0x983   : >> { %5661 = vst.msk [vmem:[#allocation3 + $0xb0] sm:$0xff] %vm5638_vm0, %v5568_v53  ;;  %v5758_v61 = vadd.f32 %v5757_v28, %v5728_v14  ;;  %v6072_v26 = vpack.c.bf16 %v6071_v37, %v6070_v12  ;;  %v14595_v14 = vld [vmem:[%s21301_s9 + $0xe0] sm:$0xff]  ;;  %v14600_v53 = vld [vmem:[%s21301_s9 + $0x108] sm:$0xff]  ;;  %v14602_v37 = vld [vmem:[%s21301_s9 + $0x118] sm:$0xff] }
 0x985   : >> { %12416 = vmatmul.msk.bf16.vlgmr.msra.gmra.mxu0 %vm5638_vm0, %v6033_v9 }
 0x986   : >> { %6138 = vmatpush.bf16.msra.mxu0 %v14590_v62  ;;  %v14599_v62 = vld [vmem:[%s21301_s9 + $0x100] sm:$0xff] }
 0x98a   : >> { %v5570_v56 = vpop.f32.mrf.mxu3  ;;  %v5759_v58 = vpop.f32.mrf.mxu0  ;;  %6139 = vmatpush.bf16.msra.mxu0 %v14589_v5  ;;  %v6109_v3 = vld [vmem:[#allocation3 + $0xb0] sm:$0xff] }
 0x98b   : >> { %5662 = vst.msk [vmem:[#allocation3 + $0xb8] sm:$0xff] %vm5638_vm0, %v5570_v56  ;;  %v5760_v30 = vadd.f32 %v5759_v58, %v5730_v32 }
 0x98f   : >> { %12286 = vmatmul.msk.bf16.gmra.mxu3 %vm5425_vm8, %v14562_v11 }
 0x992   : >> { %v5573_v31 = vpop.f32.mrf.mxu3  ;;  %v5794_v25 = vpop.f32.mrf.mxu0  ;;  %v6110_v49 = vld [vmem:[#allocation3 + $0xb8] sm:$0xff] }
 0x993   : >> { %5663 = vst.msk [vmem:[#allocation3 + $0xc0] sm:$0xff] %vm5638_vm0, %v5573_v31  ;;  %v5799_v29 = vadd.f32 %v5794_v25, %v5758_v61  ;;  %v6111_v8 = vpack.c.bf16 %v6110_v49, %v6109_v3  ;;  %v14601_v25 = vld [vmem:[%s21301_s9 + $0x110] sm:$0xff]  ;;  %v14603_v49 = vld [vmem:[%s21301_s9 + $0x120] sm:$0xff] }
 0x995   : >> { %12429 = vmatmul.msk.bf16.vlgmr.msrb.gmra.mxu0 %vm5638_vm0, %v6072_v26 }
 0x996   : >> { %6177 = vmatpush.bf16.msrb.mxu0 %v14592_v17 }
 0x99a   : >> { %v5575_v10 = vpop.f32.mrf.mxu3  ;;  %v5796_v21 = vpop.f32.mrf.mxu0  ;;  %6178 = vmatpush.bf16.msrb.mxu0 %v14591_v24  ;;  %v6148_v44 = vld [vmem:[#allocation3 + $0xc0] sm:$0xff] }
 0x99b   : >> { %5664 = vst.msk [vmem:[#allocation3 + $0xc8] sm:$0xff] %vm5638_vm0, %v5575_v10  ;;  %v5800_v57 = vadd.f32 %v5796_v21, %v5760_v30  ;;  %v14604_v21 = vld [vmem:[%s21301_s9 + $0x128] sm:$0xff] }
 0x99f   : >> { %12287 = vmatmul.msk.bf16.gmra.mxu3 %vm5425_vm8, %v14563_v50 }
 0x9a2   : >> { %v5578_v40 = vpop.f32.mrf.mxu3  ;;  %v5833_v42 = vpop.f32.mrf.mxu0  ;;  %v6149_v1 = vld [vmem:[#allocation3 + $0xc8] sm:$0xff] }
 0x9a3   : >> { %5665 = vst.msk [vmem:[#allocation3 + $0xd0] sm:$0xff] %vm5638_vm0, %v5578_v40  ;;  %v5838_v60 = vadd.f32 %v5833_v42, %v5799_v29  ;;  %v6150_v16 = vpack.c.bf16 %v6149_v1, %v6148_v44 }
 0x9a5   : >> { %12442 = vmatmul.msk.bf16.vlgmr.msra.gmra.mxu0 %vm5638_vm0, %v6111_v8 }
 0x9a6   : >> { %6216 = vmatpush.bf16.msra.mxu0 %v14594_v20 }
 0x9aa   : >> { %v5580_v0 = vpop.f32.mrf.mxu3  ;;  %v5835_v22 = vpop.f32.mrf.mxu0  ;;  %6217 = vmatpush.bf16.msra.mxu0 %v14593_v35  ;;  %v6187_v36 = vld [vmem:[#allocation3 + $0xd0] sm:$0xff] }
 0x9ab   : >> { %5666 = vst.msk [vmem:[#allocation3 + $0xd8] sm:$0xff] %vm5638_vm0, %v5580_v0  ;;  %v5839_v2 = vadd.f32 %v5835_v22, %v5800_v57  ;;  %v14606_v0 = vld [vmem:[%s21301_s9 + $0x138] sm:$0xff] }
 0x9af   : >> { %12288 = vmatmul.msk.bf16.gmra.mxu3 %vm5425_vm8, %v14564_v55  ;;  %v14605_v55 = vld [vmem:[%s21301_s9 + $0x130] sm:$0xff] }
 0x9b2   : >> { %v5583_v7 = vpop.f32.mrf.mxu3  ;;  %v5872_v19 = vpop.f32.mrf.mxu0  ;;  %v6188_v18 = vld [vmem:[#allocation3 + $0xd8] sm:$0xff] }
 0x9b3   : >> { %5667 = vst.msk [vmem:[#allocation3 + $0xe0] sm:$0xff] %vm5638_vm0, %v5583_v7  ;;  %v5877_v23 = vadd.f32 %v5872_v19, %v5838_v60  ;;  %v6189_v39 = vpack.c.bf16 %v6188_v18, %v6187_v36 }
 0x9b5   : >> { %12455 = vmatmul.msk.bf16.vlgmr.msrb.gmra.mxu0 %vm5638_vm0, %v6150_v16  ;;  %v14608_v16 = vld [vmem:[%s21301_s9 + $0x148] sm:$0xff] }
 0x9b6   : >> { %6263 = vmatpush.bf16.msrb.mxu0 %v14598_v47 }
 0x9ba   : >> { %v5585_v59 = vpop.f32.mrf.mxu3  ;;  %v5874_v41 = vpop.f32.mrf.mxu0  ;;  %6264 = vmatpush.bf16.msrb.mxu0 %v14597_v51  ;;  %v6226_v11 = vld [vmem:[#allocation3 + $0xe0] sm:$0xff] }
 0x9bb   : >> { %5668 = vst.msk [vmem:[#allocation3 + $0xe8] sm:$0xff] %vm5638_vm0, %v5585_v59  ;;  %v5878_v46 = vadd.f32 %v5874_v41, %v5839_v2  ;;  %v14607_v41 = vld [vmem:[%s21301_s9 + $0x140] sm:$0xff] }
 0x9bf   : >> { %12289 = vmatmul.msk.bf16.gmra.mxu3 %vm5425_vm8, %v14565_v34 }
 0x9c2   : >> { %v5588_v4 = vpop.f32.mrf.mxu3  ;;  %v5911_v52 = vpop.f32.mrf.mxu0  ;;  %v6227_v56 = vld [vmem:[#allocation3 + $0xe8] sm:$0xff] }
 0x9c3   : >> { %5669 = vst.msk [vmem:[#allocation3 + $0xf0] sm:$0xff] %vm5638_vm0, %v5588_v4  ;;  %v5916_v45 = vadd.f32 %v5911_v52, %v5877_v23  ;;  %v6228_v31 = vpack.c.bf16 %v6227_v56, %v6226_v11 }
 0x9c5   : >> { %12468 = vmatmul.msk.bf16.vlgmr.msra.gmra.mxu0 %vm5638_vm0, %v6189_v39 }
 0x9c6   : >> { %6292 = vmatpush.bf16.msra.mxu0 %v14596_v38 }
 0x9ca   : >> { %v5590_v48 = vpop.f32.mrf.mxu3  ;;  %v5913_v6 = vpop.f32.mrf.mxu0  ;;  %6293 = vmatpush.bf16.msra.mxu0 %v14595_v14  ;;  %v6234_v13 = vld [vmem:[#allocation3 + $0xf0] sm:$0xff] }
 0x9cb   : >> { %5670 = vst.msk [vmem:[#allocation3 + $0xf8] sm:$0xff] %vm5638_vm0, %v5590_v48  ;;  %v5917_v33 = vadd.f32 %v5913_v6, %v5878_v46  ;;  %v14611_v48 = vld [vmem:[%s21301_s9 + $0x160] sm:$0xff] }
 0x9cf   : >> { %12290 = vmatmul.msk.bf16.gmra.mxu3 %vm5425_vm8, %v14566_v43 }
 0x9d2   : >> { %v5593_v63 = vpop.f32.mrf.mxu3  ;;  %v5950_v32 = vpop.f32.mrf.mxu0  ;;  %v6235_v15 = vld [vmem:[#allocation3 + $0xf8] sm:$0xff] }
 0x9d3   : >> { %5671 = vst.msk [vmem:[#allocation3 + $0x100] sm:$0xff] %vm5638_vm0, %v5593_v63  ;;  %v18495_v28 = vadd.f32 %v5950_v32, %v5916_v45  ;;  %v6236_v54 = vpack.c.bf16 %v6235_v15, %v6234_v13  ;;  %v14612_v45 = vld [vmem:[%s21301_s9 + $0x168] sm:$0xff] }
 0x9d5   : >> { %12485 = vmatmul.msk.bf16.vlgmr.msrb.gmra.mxu0 %vm5638_vm0, %v6236_v54 }
 0x9d6   : >> { %6329 = vmatpush.bf16.msrb.mxu0 %v14600_v53  ;;  %v14610_v53 = vld [vmem:[%s21301_s9 + $0x158] sm:$0xff] }
 0x9da   : >> { %v5595_v61 = vpop.f32.mrf.mxu3  ;;  %v5952_v9 = vpop.f32.mrf.mxu0  ;;  %6330 = vmatpush.bf16.msrb.mxu0 %v14599_v62  ;;  %v6300_v10 = vld [vmem:[#allocation3 + $0x100] sm:$0xff] }
 0x9db   : >> { %5672 = vst.msk [vmem:[#allocation3 + $0x108] sm:$0xff] %vm5638_vm0, %v5595_v61  ;;  %v18502_v5 = vadd.f32 %v5952_v9, %v5917_v33  ;;  %v14609_v61 = vld [vmem:[%s21301_s9 + $0x150] sm:$0xff] }
 0x9e2   : >> { %v5598_v58 = vpop.f32.mrf.mxu3  ;;  %v5997_v30 = vpop.f32.mrf.mxu0  ;;  %v6301_v29 = vld [vmem:[#allocation3 + $0x108] sm:$0xff] }
 0x9e3   : >> { %5673 = vst.msk [vmem:[#allocation3 + $0x110] sm:$0xff] %vm5638_vm0, %v5598_v58  ;;  %v6302_v50 = vpack.c.bf16 %v6301_v29, %v6300_v10 }
 0x9e5   : >> { %12494 = vmatmul.msk.bf16.vlgmr.msra.gmra.mxu0 %vm5638_vm0, %v6228_v31 }
 0x9e6   : >> { %6368 = vmatpush.bf16.msra.mxu0 %v14602_v37 }
 0x9ea   : >> { %v5600_v12 = vpop.f32.mrf.mxu3  ;;  %v5999_v17 = vpop.f32.mrf.mxu0  ;;  %6369 = vmatpush.bf16.msra.mxu0 %v14601_v25  ;;  %v6339_v35 = vld [vmem:[#allocation3 + $0x110] sm:$0xff]  ;;  %v14614_v25 = vld [vmem:[%s21301_s9 + $0x178] sm:$0xff] }
 0x9eb   : >> { %5674 = vst.msk [vmem:[#allocation3 + $0x118] sm:$0xff] %vm5638_vm0, %v5600_v12 }
 0x9f2   : >> { %v5603_v26 = vpop.f32.mrf.mxu3  ;;  %v6026_v24 = vpop.f32.mrf.mxu0  ;;  %v6340_v20 = vld [vmem:[#allocation3 + $0x118] sm:$0xff] }
 0x9f3   : >> { %5675 = vst.msk [vmem:[#allocation3 + $0x120] sm:$0xff] %vm5638_vm0, %v5603_v26  ;;  %v6027_v57 = vadd.f32 %v6026_v24, %v5997_v30  ;;  %v6341_v2 = vpack.c.bf16 %v6340_v20, %v6339_v35  ;;  %v14613_v26 = vld [vmem:[%s21301_s9 + $0x170] sm:$0xff] }
 0x9f5   : >> { %12507 = vmatmul.msk.bf16.vlgmr.msrb.gmra.mxu0 %vm5638_vm0, %v6302_v50 }
 0x9f6   : >> { %6407 = vmatpush.bf16.msrb.mxu0 %v14604_v21 }
 0x9fa   : >> { %v5605_v40 = vpop.f32.mrf.mxu3  ;;  %v6028_v42 = vpop.f32.mrf.mxu0  ;;  %6408 = vmatpush.bf16.msrb.mxu0 %v14603_v49  ;;  %v6378_v23 = vld [vmem:[#allocation3 + $0x120] sm:$0xff] }
 0x9fb   : >> { %5676 = vst.msk [vmem:[#allocation3 + $0x128] sm:$0xff] %vm5638_vm0, %v5605_v40  ;;  %v6029_v3 = vadd.f32 %v6028_v42, %v5999_v17 }
 0xa02   : >> { %v5608_v60 = vpop.f32.mrf.mxu3  ;;  %v6063_v8 = vpop.f32.mrf.mxu0  ;;  %v6379_v19 = vld [vmem:[#allocation3 + $0x128] sm:$0xff] }
 0xa03   : >> { %5677 = vst.msk [vmem:[#allocation3 + $0x130] sm:$0xff] %vm5638_vm0, %v5608_v60  ;;  %v6068_v22 = vadd.f32 %v6063_v8, %v6027_v57  ;;  %v6380_v59 = vpack.c.bf16 %v6379_v19, %v6378_v23 }
 0xa05   : >> { %12520 = vmatmul.msk.bf16.vlgmr.msra.gmra.mxu0 %vm5638_vm0, %v6341_v2 }
 0xa06   : >> { %6446 = vmatpush.bf16.msra.mxu0 %v14606_v0 }
 0xa0a   : >> { %v5610_v27 = vpop.f32.mrf.mxu3  ;;  %v6065_v1 = vpop.f32.mrf.mxu0  ;;  %6447 = vmatpush.bf16.msra.mxu0 %v14605_v55  ;;  %v6417_v38 = vld [vmem:[#allocation3 + $0x130] sm:$0xff] }
 0xa0b   : >> { %5678 = vst.msk [vmem:[#allocation3 + $0x138] sm:$0xff] %vm5638_vm0, %v5610_v27  ;;  %v6069_v7 = vadd.f32 %v6065_v1, %v6029_v3 }
 0xa12   : >> { %v5613_v44 = vpop.f32.mrf.mxu3  ;;  %v6102_v47 = vpop.f32.mrf.mxu0  ;;  %v6418_v4 = vld [vmem:[#allocation3 + $0x138] sm:$0xff] }
 0xa13   : >> { %5679 = vst.msk [vmem:[#allocation3 + $0x140] sm:$0xff] %vm5638_vm0, %v5613_v44  ;;  %v6107_v51 = vadd.f32 %v6102_v47, %v6068_v22  ;;  %v6419_v14 = vpack.c.bf16 %v6418_v4, %v6417_v38 }
 0xa15   : >> { %12533 = vmatmul.msk.bf16.vlgmr.msrb.gmra.mxu0 %vm5638_vm0, %v6380_v59 }
 0xa16   : >> { %6485 = vmatpush.bf16.msrb.mxu0 %v14608_v16 }
 0xa1a   : >> { %v5615_v46 = vpop.f32.mrf.mxu3  ;;  %v6104_v34 = vpop.f32.mrf.mxu0  ;;  %6486 = vmatpush.bf16.msrb.mxu0 %v14607_v41  ;;  %v6456_v15 = vld [vmem:[#allocation3 + $0x140] sm:$0xff] }
 0xa1b   : >> { %5680 = vst.msk [vmem:[#allocation3 + $0x148] sm:$0xff] %vm5638_vm0, %v5615_v46  ;;  %v6108_v18 = vadd.f32 %v6104_v34, %v6069_v7 }
 0xa22   : >> { %v5618_v52 = vpop.f32.mrf.mxu3  ;;  %v6141_v36 = vpop.f32.mrf.mxu0  ;;  %v6457_v63 = vld [vmem:[#allocation3 + $0x148] sm:$0xff] }
 0xa23   : >> { %5681 = vst.msk [vmem:[#allocation3 + $0x150] sm:$0xff] %vm5638_vm0, %v5618_v52  ;;  %v6146_v39 = vadd.f32 %v6141_v36, %v6107_v51  ;;  %v6458_v62 = vpack.c.bf16 %v6457_v63, %v6456_v15 }
 0xa25   : >> { %12546 = vmatmul.msk.bf16.vlgmr.msra.gmra.mxu0 %vm5638_vm0, %v6419_v14 }
 0xa26   : >> { %6532 = vmatpush.bf16.msra.mxu0 %v14612_v45 }
 0xa2a   : >> { %v5620_v6 = vpop.f32.mrf.mxu3  ;;  %v6143_v33 = vpop.f32.mrf.mxu0  ;;  %6533 = vmatpush.bf16.msra.mxu0 %v14611_v48  ;;  %v6495_v40 = vld [vmem:[#allocation3 + $0x150] sm:$0xff] }
 0xa2b   : >> { %5682 = vst.msk [vmem:[#allocation3 + $0x158] sm:$0xff] %vm5638_vm0, %v5620_v6  ;;  %v6147_v43 = vadd.f32 %v6143_v33, %v6108_v18 }
 0xa32   : >> { %v5623_v32 = vpop.f32.mrf.mxu3  ;;  %v6180_v13 = vpop.f32.mrf.mxu0  ;;  %v6496_v50 = vld [vmem:[#allocation3 + $0x158] sm:$0xff] }
 0xa33   : >> { %5683 = vst.msk [vmem:[#allocation3 + $0x160] sm:$0xff] %vm5638_vm0, %v5623_v32  ;;  %v6185_v54 = vadd.f32 %v6180_v13, %v6146_v39  ;;  %v6497_v42 = vpack.c.bf16 %v6496_v50, %v6495_v40 }
 0xa35   : >> { %12559 = vmatmul.msk.bf16.vlgmr.msrb.gmra.mxu0 %vm5638_vm0, %v6458_v62  ;;  %v14989_v62 = vld [vmem:[%s21302_s10] ss:$0 sm:$0xff] }
 0xa36   : >> { %6561 = vmatpush.bf16.msrb.mxu0 %v14610_v53 }
 0xa3a   : >> { %v5625_v9 = vpop.f32.mrf.mxu3  ;;  %v6182_v56 = vpop.f32.mrf.mxu0  ;;  %6562 = vmatpush.bf16.msrb.mxu0 %v14609_v61  ;;  %v6503_v37 = vld [vmem:[#allocation3 + $0x160] sm:$0xff] }
 0xa3b   : >> { %5684 = vst.msk [vmem:[#allocation3 + $0x168] sm:$0xff] %vm5638_vm0, %v5625_v9  ;;  %v6186_v58 = vadd.f32 %v6182_v56, %v6147_v43 }
 0xa42   : >> { %v5628_v30 = vpop.f32.mrf.mxu3  ;;  %v6219_v11 = vpop.f32.mrf.mxu0  ;;  %v6504_v31 = vld [vmem:[#allocation3 + $0x168] sm:$0xff] }
 0xa43   : >> { %5685 = vst.msk [vmem:[#allocation3 + $0x170] sm:$0xff] %vm5638_vm0, %v5628_v30  ;;  %v6224_v12 = vadd.f32 %v6219_v11, %v6185_v54  ;;  %v6505_v17 = vpack.c.bf16 %v6504_v31, %v6503_v37 }
 0xa45   : >> { %v18563_v29 = vadd.f32 %v6224_v12, %v18495_v28  ;;  %12576 = vmatmul.msk.bf16.vlgmr.msra.gmra.mxu0 %vm5638_vm0, %v6505_v17 }
 0xa46   : >> { %6598 = vmatpush.bf16.msra.mxu0 %v14614_v25 }
 0xa4a   : >> { %v5630_v24 = vpop.f32.mrf.mxu3  ;;  %v6221_v10 = vpop.f32.mrf.mxu0  ;;  %6599 = vmatpush.bf16.msra.mxu0 %v14613_v26  ;;  %v6569_v35 = vld [vmem:[#allocation3 + $0x170] sm:$0xff] }
 0xa4b   : >> { %5686 = vst.msk [vmem:[#allocation3 + $0x178] sm:$0xff] %vm5638_vm0, %v5630_v24  ;;  %v6225_v21 = vadd.f32 %v6221_v10, %v6186_v58 }
 0xa4d   : >> { %v18571_v57 = vadd.f32 %v6225_v21, %v18502_v5 }
 0xa52   : >> { %v5633_v49 = vpop.f32.mrf.mxu3  ;;  %v6266_v28 = vpop.f32.mrf.mxu0  ;;  %v6570_v60 = vld [vmem:[#allocation3 + $0x178] sm:$0xff] }
 0xa53   : >> { %5687 = vst.msk [vmem:[#allocation3 + $0x180] sm:$0xff] %vm5638_vm0, %v5633_v49  ;;  %v6571_v2 = vpack.c.bf16 %v6570_v60, %v6569_v35 }
 0xa55   : >> { %12585 = vmatmul.msk.bf16.vlgmr.msrb.gmra.mxu0 %vm5638_vm0, %v6497_v42 }
 0xa5a   : >> { %v5635_v3 = vpop.f32.mrf.mxu3  ;;  %v6268_v20 = vpop.f32.mrf.mxu0  ;;  %v6608_v0 = vld [vmem:[#allocation3 + $0x180] sm:$0xff] }
 0xa5b   : >> { %5688 = vst.msk [vmem:[#allocation3 + $0x188] sm:$0xff] %vm5638_vm0, %v5635_v3 }
 0xa62   : >> { %v6295_v8 = vpop.f32.mrf.mxu0  ;;  %v6609_v22 = vld [vmem:[#allocation3 + $0x188] sm:$0xff] }
 0xa63   : >> { %v6296_v5 = vadd.f32 %v6295_v8, %v6266_v28  ;;  %v6610_v55 = vpack.c.bf16 %v6609_v22, %v6608_v0 }
 0xa65   : >> { %12598 = vmatmul.msk.bf16.vlgmr.msra.gmra.mxu0 %vm5638_vm0, %v6571_v2  ;;  %12611 = vmatmul.msk.bf16.vlgmr.msra.gmra.mxu3 %vm5638_vm0, %v6610_v55 }
 0xa6a   : >> { %v6297_v27 = vpop.f32.mrf.mxu0 }
 0xa6b   : >> { %v6298_v1 = vadd.f32 %v6297_v27, %v6268_v20 }
 0xa72   : >> { %v6332_v7 = vpop.f32.mrf.mxu0 }
 0xa73   : >> { %v6337_v19 = vadd.f32 %v6332_v7, %v6296_v5 }
 0xa7a   : >> { %v6334_v44 = vpop.f32.mrf.mxu0 }
 0xa7b   : >> { %v6338_v47 = vadd.f32 %v6334_v44, %v6298_v1 }
 0xa82   : >> { %v6371_v23 = vpop.f32.mrf.mxu0 }
 0xa83   : >> { %v6376_v16 = vadd.f32 %v6371_v23, %v6337_v19 }
 0xa8a   : >> { %v6373_v51 = vpop.f32.mrf.mxu0 }
 0xa8b   : >> { %v6377_v59 = vadd.f32 %v6373_v51, %v6338_v47  ;;  %v14641_v51 = vld [vmem:[%s21303_s11 + $0xc0] sm:$0xf0] (%p564_p5) }
 0xa92   : >> { %v6410_v41 = vpop.f32.mrf.mxu0 }
 0xa93   : >> { %v6415_v46 = vadd.f32 %v6410_v41, %v6376_v16  ;;  %v12659_v16 = vld [vmem:[%s21303_s11 + $0xa8] sm:$0xf] (%p564_p5) }
 0xa94   : > { %v12660_v41 = vor.u32 (%p564_p5), %v14641_v51, %v12659_v16  ;;  %v14628_v16 = vld [vmem:[%s21303_s11 + $0x58] sm:$0xf0] (%p564_p5)  ;;  %v14625_v51 = vld [vmem:[%s21303_s11 + $0x44] sm:$0xf] (%p564_p5) }
 0xa96   : > { %6825 = vmatpush.bf16.msra.mxu0 (%p564_p5), %v12660_v41 }
 0xa9a   : >> { %v6412_v34 = vpop.f32.mrf.mxu0 }
 0xa9b   : >> { %v6416_v18 = vadd.f32 %v6412_v34, %v6377_v59  ;;  %v14638_v59 = vld [vmem:[%s21303_s11 + $0xac] sm:$0xf] (%p564_p5)  ;;  %v12667_v34 = vld [vmem:[%s21303_s11 + $0xb0] sm:$0xf] (%p564_p5) }
 0xaa2   : >> { %v6449_v4 = vpop.f32.mrf.mxu0 }
 0xaa3   : >> { %v6454_v52 = vadd.f32 %v6449_v4, %v6415_v46  ;;  %v12661_v46 = vld [vmem:[%s21303_s11 + $0xc4] sm:$0xf0] (%p564_p5) }
 0xaa4   : > { %v12664_v4 = vor.u32 (%p564_p5), %v14638_v59, %v12661_v46  ;;  %v12732_v59 = vld [vmem:[%s21303_s11 + $0x5c] sm:$0xf0] (%p564_p5) }
 0xaa5   : > { %v12735_v46 = vor.u32 (%p564_p5), %v14625_v51, %v12732_v59  ;;  %v12783_v51 = vld [vmem:[%s21303_s11 + $0x104] sm:$0xf0] (%p564_p5)  ;;  %v12789_v59 = vld [vmem:[%s21303_s11 + $0xf0] sm:$0xf] (%p564_p5) }
 0xaa6   : > { %6838 = vmatpush.bf16.msra.mxu1 (%p564_p5), %v12664_v4  ;;  %v14617_v4 = vld [vmem:[%s21303_s11 + $0x4] sm:$0xf] (%p564_p5) }
 0xaaa   : >> { %v6451_v36 = vpop.f32.mrf.mxu0 }
 0xaab   : >> { %v6455_v38 = vadd.f32 %v6451_v36, %v6416_v18  ;;  %v14642_v18 = vld [vmem:[%s21303_s11 + $0xc8] sm:$0xf0] (%p564_p5)  ;;  %v14639_v36 = vld [vmem:[%s21303_s11 + $0xb4] sm:$0xf] (%p564_p5) }
 0xab2   : >> { %v6488_v45 = vpop.f32.mrf.mxu0 }
 0xab3   : >> { %v6493_v15 = vadd.f32 %v6488_v45, %v6454_v52  ;;  %v12668_v52 = vor.u32 (%p564_p5), %v14642_v18, %v12667_v34  ;;  %v12631_v45 = vld [vmem:[%s21303_s11 + $0x70] sm:$0xf] (%p564_p5)  ;;  %v12738_v34 = vld [vmem:[%s21303_s11 + $0x48] sm:$0xf] (%p564_p5)  ;;  %v14629_v18 = vld [vmem:[%s21303_s11 + $0x60] sm:$0xf0] (%p564_p5) }
 0xab5   : > { %6851 = vmatpush.bf16.msra.mxu2 (%p564_p5), %v12668_v52  ;;  %v12739_v52 = vor.u32 (%p564_p5), %v14629_v18, %v12738_v34  ;;  %v12791_v34 = vld [vmem:[%s21303_s11 + $0x10c] sm:$0xf0] (%p564_p5) }
 0xaba   : >> { %v6490_v39 = vpop.f32.mrf.mxu0 }
 0xabb   : >> { %v6494_v37 = vadd.f32 %v6490_v39, %v6455_v38  ;;  %v12669_v38 = vld [vmem:[%s21303_s11 + $0xcc] sm:$0xf0] (%p564_p5) }
 0xabc   : > { %v12672_v39 = vor.u32 (%p564_p5), %v14639_v36, %v12669_v38  ;;  %v12696_v36 = vld [vmem:[%s21303_s11 + $0x1c] sm:$0xf0] (%p564_p5)  ;;  %v12702_v38 = vld [vmem:[%s21303_s11 + $0x8] sm:$0xf] (%p564_p5) }
 0xabe   : > { %6864 = vmatpush.bf16.msra.mxu3 (%p564_p5), %v12672_v39  ;;  %v12699_v39 = vor.u32 (%p564_p5), %v14617_v4, %v12696_v36 }
 0xac2   : >> { %v6535_v14 = vpop.f32.mrf.mxu0 }
 0xaca   : >> { %v6537_v48 = vpop.f32.mrf.mxu0 }
 0xad2   : >> { %v6564_v6 = vpop.f32.mrf.mxu0 }
 0xad3   : >> { %v6565_v63 = vadd.f32 %v6564_v6, %v6535_v14  ;;  %v14634_v14 = vld [vmem:[%s21303_s11 + $0x88] sm:$0xf0] (%p564_p5)  ;;  %v12633_v6 = vld [vmem:[%s21303_s11 + $0x8c] sm:$0xf0] (%p564_p5) }
 0xada   : >> { %v6566_v33 = vpop.f32.mrf.mxu0 }
 0xadb   : >> { %v6567_v9 = vadd.f32 %v6566_v33, %v6537_v48  ;;  %v14631_v48 = vld [vmem:[%s21303_s11 + $0x74] sm:$0xf] (%p564_p5)  ;;  %v12632_v33 = vor.u32 (%p564_p5), %v14634_v14, %v12631_v45  ;;  %v14621_v45 = vld [vmem:[%s21303_s11 + $0x20] sm:$0xf0] (%p564_p5) }
 0xadc   : > { %v12703_v14 = vor.u32 (%p564_p5), %v14621_v45, %v12702_v38 }
 0xadd   : > { %6826 = vmatpush.bf16.msra.mxu0 (%p564_p5), %v12632_v33  ;;  %v12710_v33 = vld [vmem:[%s21303_s11 + $0x10] sm:$0xf] (%p564_p5) }
 0xae2   : >> { %v6601_v43 = vpop.f32.mrf.mxu0 }
 0xae3   : >> { %v6606_v32 = vadd.f32 %v6601_v43, %v6565_v63  ;;  %v12636_v43 = vor.u32 (%p564_p5), %v14631_v48, %v12633_v6  ;;  %v12639_v63 = vld [vmem:[%s21303_s11 + $0x78] sm:$0xf] (%p564_p5)  ;;  %v14618_v48 = vld [vmem:[%s21303_s11 + $0xc] sm:$0xf] (%p564_p5)  ;;  %v12704_v6 = vld [vmem:[%s21303_s11 + $0x24] sm:$0xf0] (%p564_p5) }
 0xae5   : > { %6839 = vmatpush.bf16.msra.mxu1 (%p564_p5), %v12636_v43 }
 0xae8   : >> { %v6640_v13 = vpop.f32.mrf.mxu3 }
 0xae9   : >> { %v6645_v53 = vadd.f32 %v6640_v13, %v6606_v32  ;;  %v14635_v32 = vld [vmem:[%s21303_s11 + $0x90] sm:$0xf0] (%p564_p5)  ;;  %v14632_v13 = vld [vmem:[%s21303_s11 + $0x7c] sm:$0xf] (%p564_p5) }
 0xaea   : >> { %v6603_v61 = vpop.f32.mrf.mxu0 }
 0xaeb   : >> { %v6649_v54 = vadd.f32 %v6645_v53, %v6493_v15  ;;  %v6607_v30 = vadd.f32 %v6603_v61, %v6567_v9  ;;  %v12640_v15 = vor.u32 (%p564_p5), %v14635_v32, %v12639_v63  ;;  %v12641_v53 = vld [vmem:[%s21303_s11 + $0x94] sm:$0xf0] (%p564_p5)  ;;  %v12707_v63 = vor.u32 (%p564_p5), %v14618_v48, %v12704_v6  ;;  %v14622_v32 = vld [vmem:[%s21303_s11 + $0x28] sm:$0xf0] (%p564_p5)  ;;  %v12825_v6 = vld [vmem:[%s21303_s11 + $0x130] sm:$0xf] (%p564_p5) }
 0xaed   : >> { %v6651_v56 = vadd.f32 %v6649_v54, %v18563_v29  ;;  %6852 = vmatpush.bf16.msra.mxu2 (%p564_p5), %v12640_v15  ;;  %v12711_v15 = vor.u32 (%p564_p5), %v14622_v32, %v12710_v33  ;;  %v14658_v33 = vld [vmem:[%s21303_s11 + $0x148] sm:$0xf0] (%p564_p5) }
 0xaee   : > { %v14666_v32 = vld [vmem:[%s21303_s11 + $0x18c] sm:$0xf] (%p564_p5) }
 0xaef   : >> { %v6657_v58 = vadd.f32 %v14989_v62, %v6651_v56 }
 0xaf0   : >> { %v6642_v11 = vpop.f32.mrf.mxu3 }
 0xaf1   : >> { %v6661_v31 = vand.u32 2147483647, %v6657_v58  ;;  %v6646_v25 = vadd.f32 %v6642_v11, %v6607_v30  ;;  %v12675_v30 = vld [vmem:[%s21303_s11 + $0xb8] sm:$0xf] (%p564_p5)  ;;  %v14643_v11 = vld [vmem:[%s21303_s11 + $0xd0] sm:$0xf0] (%p564_p5) }
 0xaf3   : >> { %v6663_v12 = vsub.f32 0.0, %v6661_v31  ;;  %v6650_v17 = vadd.f32 %v6646_v25, %v6494_v37  ;;  %v14640_v37 = vld [vmem:[%s21303_s11 + $0xbc] sm:$0xf] (%p564_p5)  ;;  %v12677_v31 = vld [vmem:[%s21303_s11 + $0xd4] sm:$0xf0] (%p564_p5) }
 0xaf5   : >> { %v6665_v26 = vmul.f32 1.442695, %v6663_v12  ;;  %v6652_v24 = vadd.f32 %v6650_v17, %v18571_v57  ;;  %v6659_v57 = vmax.f32 %v6657_v58, 0.0  ;;  %v12676_v12 = vor.u32 (%p564_p5), %v14643_v11, %v12675_v30  ;;  %v14652_v30 = vld [vmem:[%s21303_s11 + $0x11c] sm:$0xf] (%p564_p5) }
 0xaf6   : > { %v12680_v17 = vor.u32 (%p564_p5), %v14640_v37, %v12677_v31  ;;  %v12803_v11 = vld [vmem:[%s21303_s11 + $0x134] sm:$0xf0] (%p564_p5) }
 0xaf7   : >> { %15118 = vpow2.f32 %v6665_v26  ;;  %v6658_v10 = vadd.f32 %v14989_v62, %v6652_v24  ;;  %v12644_v62 = vor.u32 (%p564_p5), %v14632_v13, %v12641_v53  ;;  %v12683_v26 = vld [vmem:[%s21303_s11 + $0xc0] sm:$0xf] (%p564_p5)  ;;  %v14644_v24 = vld [vmem:[%s21303_s11 + $0xd8] sm:$0xf0] (%p564_p5)  ;;  %6877 = vmatpush.bf16.msrb.mxu0 (%p564_p5), %v12676_v12  ;;  %v14619_v12 = vld [vmem:[%s21303_s11 + $0x14] sm:$0xf] (%p564_p5) }
 0xaf8   : > { %6890 = vmatpush.bf16.msrb.mxu1 (%p564_p5), %v12680_v17  ;;  %v12712_v17 = vld [vmem:[%s21303_s11 + $0x2c] sm:$0xf0] (%p564_p5) }
 0xaf9   : >> { %v6662_v21 = vand.u32 2147483647, %v6658_v10  ;;  %v6660_v44 = vmax.f32 %v6658_v10, 0.0  ;;  %6865 = vmatpush.bf16.msra.mxu3 (%p564_p5), %v12644_v62  ;;  %v12722_v10 = vld [vmem:[%s21303_s11 + $0x38] sm:$0xf] (%p564_p5) }
 0xafa   : > { %v12740_v62 = vld [vmem:[%s21303_s11 + $0x64] sm:$0xf0] (%p564_p5) }
 0xafb   : >> { %v6664_v50 = vsub.f32 0.0, %v6662_v21  ;;  %v12684_v21 = vor.u32 (%p564_p5), %v14644_v24, %v12683_v26  ;;  %v12806_v24 = vor.u32 (%p564_p5), %v14652_v30, %v12803_v11  ;;  %v12852_v11 = vld [vmem:[%s21303_s11 + $0x150] sm:$0xf] (%p564_p5) }
 0xafd   : >> { %v15119_v49 = vpop.eup %15118  ;;  %v6667_v28 = vmul.f32 1.442695, %v6664_v50  ;;  %v14627_v50 = vld [vmem:[%s21303_s11 + $0x50] sm:$0xf0] (%p564_p5)  ;;  %6903 = vmatpush.bf16.msrb.mxu2 (%p564_p5), %v12684_v21 }
 0xafe   : >> { %v6669_v40 = vadd.f32 1.0, %v15119_v49  ;;  %v6672_v29 = vmul.f32 -0.5, %v15119_v49  ;;  %v6675_v3 = vand.u32 2147483647, %v15119_v49  ;;  %v14623_v21 = vld [vmem:[%s21303_s11 + $0x30] sm:$0xf0] (%p564_p5) }
 0xaff   : >> { %15120 = vpow2.f32 %v6667_v28  ;;  %v14636_v28 = vld [vmem:[%s21303_s11 + $0x98] sm:$0xf0] (%p564_p5) }
 0xb00   : >> { %15122 = vlog2.f32 %v6669_v40  ;;  %v6673_v42 = vadd.f32 1.0, %v6672_v29  ;;  %vm6676_vm9 = vcmp.lt.f32.partialorder %v6675_v3, 0.0004427343  ;;  %v12723_v29 = vor.u32 (%p564_p5), %v14627_v50, %v12722_v10  ;;  %v12649_v3 = vld [vmem:[%s21303_s11 + $0x9c] sm:$0xf0] (%p564_p5) }
 0xb01   : > { %v12718_v10 = vld [vmem:[%s21303_s11 + $0x18] sm:$0xf] (%p564_p5)  ;;  %v12773_v50 = vld [vmem:[%s21303_s11 + $0xe0] sm:$0xf] (%p564_p5) }
 0xb02   : >> { %v6674_v0 = vmul.f32 %v15119_v49, %v6673_v42  ;;  %v12647_v49 = vld [vmem:[%s21303_s11 + $0x80] sm:$0xf] (%p564_p5)  ;;  %v14633_v42 = vld [vmem:[%s21303_s11 + $0x84] sm:$0xf] (%p564_p5)  ;;  %6991 = vmatpush.bf16.msrb.mxu3 (%p564_p5), %v12723_v29  ;;  %v12715_v29 = vor.u32 (%p564_p5), %v14619_v12, %v12712_v17  ;;  %v12854_v12 = vld [vmem:[%s21303_s11 + $0x16c] sm:$0xf0] (%p564_p5) }
 0xb03   : > { %v12860_v17 = vld [vmem:[%s21303_s11 + $0x158] sm:$0xf] (%p564_p5) }
 0xb05   : >> { %v15121_v20 = vpop.eup %15120 }
 0xb06   : >> { %v15123_v60 = vpop.eup %15122  ;;  %v6678_v8 = vadd.f32 1.0, %v15121_v20  ;;  %v6681_v22 = vmul.f32 -0.5, %v15121_v20  ;;  %v6684_v27 = vand.u32 2147483647, %v15121_v20 }
 0xb07   : >> { %v6671_v35 = vmul.f32 0.6931472, %v15123_v60  ;;  %v14637_v60 = vld [vmem:[%s21303_s11 + $0xa0] sm:$0xf0] (%p564_p5) }
 0xb08   : >> { %15124 = vlog2.f32 %v6678_v8  ;;  %v6682_v55 = vadd.f32 1.0, %v6681_v22  ;;  %vm6685_vm10 = vcmp.lt.f32.partialorder %v6684_v27, 0.0004427343  ;;  %v12694_v8 = vld [vmem:[%s21303_s11] sm:$0xf] (%p564_p5)  ;;  %v12648_v22 = vor.u32 (%p564_p5), %v14636_v28, %v12647_v49 }
 0xb09   : >> { %v6677_v5 = vsel %vm6676_vm9, %v6674_v0, %v6671_v35  ;;  %v14620_v35 = vld [vmem:[%s21303_s11 + $0x18] sm:$0xf0] (%p564_p5)  ;;  %v14645_v28 = vld [vmem:[%s21303_s11 + $0xe4] sm:$0xf] (%p564_p5) }
 0xb0a   : >> { %v6687_v2 = vadd.f32 %v6677_v5, %v6659_v57  ;;  %v6683_v19 = vmul.f32 %v15121_v20, %v6682_v55  ;;  %v12655_v20 = vld [vmem:[%s21303_s11 + $0x88] sm:$0xf] (%p564_p5)  ;;  %v12652_v57 = vor.u32 (%p564_p5), %v14633_v42, %v12649_v3  ;;  %v12695_v27 = vor.u32 (%p564_p5), %v14620_v35, %v12694_v8  ;;  %6878 = vmatpush.bf16.msrb.mxu0 (%p564_p5), %v12648_v22  ;;  %v14648_v49 = vld [vmem:[%s21303_s11 + $0xf8] sm:$0xf0] (%p564_p5)  ;;  %v14653_v35 = vld [vmem:[%s21303_s11 + $0x124] sm:$0xf] (%p564_p5) }
 0xb0b   : > { %v12656_v55 = vor.u32 (%p564_p5), %v14637_v60, %v12655_v20  ;;  %v12719_v42 = vor.u32 (%p564_p5), %v14623_v21, %v12718_v10  ;;  %v12774_v3 = vor.u32 (%p564_p5), %v14648_v49, %v12773_v50  ;;  %v12809_v60 = vld [vmem:[%s21303_s11 + $0x120] sm:$0xf] (%p564_p5)  ;;  %v14656_v8 = vld [vmem:[%s21303_s11 + $0x138] sm:$0xf0] (%p564_p5)  ;;  %v12817_v22 = vld [vmem:[%s21303_s11 + $0x128] sm:$0xf] (%p564_p5) }
 0xb0c   : >> { %6691 = vst.msk [vmem:[%s6690_s14] sm:$0xff] %vm5638_vm0, %v6687_v2  ;;  %6891 = vmatpush.bf16.msrb.mxu1 (%p564_p5), %v12652_v57  ;;  %6992 = vmatpush.bf16.msrb.mxu3 (%p564_p5), %v12695_v27  ;;  %v14657_v57 = vld [vmem:[%s21303_s11 + $0x140] sm:$0xf0] (%p564_p5)  ;;  %v14667_v50 = vld [vmem:[%s21303_s11 + $0x194] sm:$0xf] (%p564_p5) }
 0xb0d   : > { %6904 = vmatpush.bf16.msrb.mxu2 (%p564_p5), %v12656_v55  ;;  %v12890_v49 = vld [vmem:[%s21303_s11 + $0x1ac] sm:$0xf0] (%p564_p5) }
 0xb0e   : >> { %v15125_v1 = vpop.eup %15124 }
 0xb0f   : >> { %v6680_v7 = vmul.f32 0.6931472, %v15125_v1 }
 0xb10   : > { %566 = sbr.rel (!%p564_p5) target bundleno = 22 (0x16), region = 207 }
 0xb11   : >> { %v6686_v47 = vsel %vm6685_vm10, %v6683_v19, %v6680_v7  ;;  %v14624_v7 = vld [vmem:[%s21303_s11 + $0x3c] sm:$0xf] (%p564_p5)  ;;  %v12724_v19 = vld [vmem:[%s21303_s11 + $0x54] sm:$0xf0] (%p564_p5) }
 0xb12   : >> { %v6688_v23 = vadd.f32 %v6686_v47, %v6660_v44  ;;  %v12730_v44 = vld [vmem:[%s21303_s11 + $0x40] sm:$0xf] (%p564_p5) }
 0xb13   : > { %v12731_v41 = vor.u32 (%p564_p5), %v14628_v16, %v12730_v44  ;;  %v14649_v44 = vld [vmem:[%s21303_s11 + $0x100] sm:$0xf0] (%p564_p5)  ;;  %v14646_v16 = vld [vmem:[%s21303_s11 + $0xec] sm:$0xf] (%p564_p5) }
 0xb14   : >> { %6692 = vst.msk [vmem:[%s6690_s14 + $0x8] sm:$0xff] %vm5638_vm0, %v6688_v23  ;;  %v12727_v23 = vor.u32 (%p564_p5), %v14624_v7, %v12724_v19  ;;  %v12781_v19 = vld [vmem:[%s21303_s11 + $0xe8] sm:$0xf] (%p564_p5)  ;;  %v12786_v36 = vor.u32 (%p564_p5), %v14646_v16, %v12783_v51 }
 0xb1b   : > { %v6718_v54 = vld [vmem:[#allocation4 + $0x1] ss:$16 sm:$0x3]  ;;  %v6693_v5 = vld [vmem:[#allocation4] ss:$16 sm:$0x3] }
 0xb1c   : > { %v6719_v61 = vld [vmem:[#allocation4 + $0x1] ss:$16 sm:$0xc]  ;;  %v6694_v2 = vld [vmem:[#allocation4] ss:$16 sm:$0xc] }
 0xb1d   : > { %v6721_v9 = vld [vmem:[#allocation4 + $0x1] ss:$16 sm:$0x30]  ;;  %v6720_v56 = vor.u32 %v6719_v61, %v6718_v54  ;;  %v6696_v1 = vld [vmem:[#allocation4] ss:$16 sm:$0x30]  ;;  %v6695_v47 = vor.u32 %v6694_v2, %v6693_v5 }
 0xb1e   : > { %v6723_v58 = vld [vmem:[#allocation4 + $0x1] ss:$16 sm:$0xc0]  ;;  %v6698_v13 = vld [vmem:[#allocation4] ss:$16 sm:$0xc0] }
 0xb1f   : > { %v6722_v25 = vor.u32 %v6721_v9, %v6720_v56  ;;  %v6697_v43 = vor.u32 %v6696_v1, %v6695_v47  ;;  %v14626_v54 = vld [vmem:[%s21303_s11 + $0x4c] sm:$0xf]  ;;  %v12746_v61 = vld [vmem:[%s21303_s11 + $0x50] sm:$0xf]  ;;  %v12801_v56 = vld [vmem:[%s21303_s11 + $0x118] sm:$0xf]  ;;  %v12810_v1 = vor.u32 %v14656_v8, %v12809_v60  ;;  %v12818_v47 = vor.u32 %v14657_v57, %v12817_v22 }
 0xb20   : > { %v14630_v9 = vld [vmem:[%s21303_s11 + $0x68] sm:$0xf0]  ;;  %v12743_v31 = vor.u32 %v14626_v54, %v12740_v62  ;;  %v12819_v2 = vld [vmem:[%s21303_s11 + $0x144] sm:$0xf0]  ;;  %v12826_v62 = vor.u32 %v14658_v33, %v12825_v6  ;;  %v14660_v22 = vld [vmem:[%s21303_s11 + $0x15c] sm:$0xf] }
 0xb21   : > { %v6724_v40 = vor.u32 %v6723_v58, %v6722_v25  ;;  %v6699_v53 = vor.u32 %v6698_v13, %v6697_v43  ;;  %v14655_v58 = vld [vmem:[%s21303_s11 + $0x130] sm:$0xf0]  ;;  %v12747_v25 = vor.u32 %v14630_v9, %v12746_v61  ;;  %v14654_v5 = vld [vmem:[%s21303_s11 + $0x12c] sm:$0xf]  ;;  %v12880_v43 = vld [vmem:[%s21303_s11 + $0x188] sm:$0xf] }
 0xb22   : > { %v12802_v26 = vor.u32 %v14655_v58, %v12801_v56  ;;  %v7077_v55 = vld [vmem:[#allocation4 + $0x2] ss:$16 sm:$0x3]  ;;  %v14651_v56 = vld [vmem:[%s21303_s11 + $0x110] sm:$0xf0] }
 0xb23   : > { %v18685_v0 = vpack.c.bf16 %v6724_v40, %v6724_v40  ;;  %v18767_v37 = vpack.c.bf16 %v6699_v53, %v6699_v53  ;;  %v12775_v40 = vld [vmem:[%s21303_s11 + $0xfc] sm:$0xf0]  ;;  %v7078_v27 = vld [vmem:[#allocation4 + $0x2] ss:$16 sm:$0xc] }
 0xb24   : > { %v12778_v20 = vor.u32 %v14645_v28, %v12775_v40  ;;  %v7079_v18 = vor.u32 %v7078_v27, %v7077_v55  ;;  %v7080_v4 = vld [vmem:[#allocation4 + $0x2] ss:$16 sm:$0x30]  ;;  %v14670_v53 = vld [vmem:[%s21303_s11 + $0x1a8] sm:$0xf0] }
 0xb25   : > { %12685 = vmatmul.msk.bf16.vlgmr.msra.gmra.mxu0 %vm5638_vm0, %v18685_v0  ;;  %12686 = vmatmul.msk.bf16.vlgmr.msra.gmra.mxu1 %vm5638_vm0, %v18685_v0  ;;  %v12882_v13 = vld [vmem:[%s21303_s11 + $0x1a4] sm:$0xf0]  ;;  %v12797_v9 = vld [vmem:[%s21303_s11 + $0xf8] sm:$0xf]  ;;  %v14671_v40 = vld [vmem:[%s21303_s11 + $0x1b0] sm:$0xf0] }
 0xb26   : > { %12687 = vmatmul.msk.bf16.vlgmr.msra.gmra.mxu2 %vm5638_vm0, %v18685_v0  ;;  %12688 = vmatmul.msk.bf16.vlgmr.msra.gmra.mxu3 %vm5638_vm0, %v18685_v0  ;;  %v12885_v58 = vor.u32 %v14666_v32, %v12882_v13  ;;  %v12896_v28 = vld [vmem:[%s21303_s11 + $0x198] sm:$0xf]  ;;  %v12868_v55 = vld [vmem:[%s21303_s11 + $0x160] sm:$0xf]  ;;  %v14664_v27 = vld [vmem:[%s21303_s11 + $0x178] sm:$0xf0] }
 0xb27   : > { %7004 = vmatpush.bf16.msra.mxu0 %v12727_v23  ;;  %7017 = vmatpush.bf16.msra.mxu1 %v12731_v41  ;;  %v12822_v23 = vor.u32 %v14654_v5, %v12819_v2  ;;  %v14650_v41 = vld [vmem:[%s21303_s11 + $0x108] sm:$0xf0]  ;;  %v7276_v60 = vld [vmem:[#allocation4 + $0x3] ss:$16 sm:$0x3]  ;;  %v12869_v51 = vor.u32 %v14664_v27, %v12868_v55 }
 0xb28   : > { %7030 = vmatpush.bf16.msra.mxu2 %v12735_v46  ;;  %7043 = vmatpush.bf16.msra.mxu3 %v12739_v52  ;;  %v14647_v46 = vld [vmem:[%s21303_s11 + $0xf4] sm:$0xf]  ;;  %v12782_v52 = vor.u32 %v14649_v44, %v12781_v19  ;;  %v12790_v38 = vor.u32 %v14650_v41, %v12789_v59  ;;  %v7277_v8 = vld [vmem:[#allocation4 + $0x3] ss:$16 sm:$0xc] }
 0xb29   : > { %v12794_v45 = vor.u32 %v14647_v46, %v12791_v34  ;;  %v12862_v57 = vld [vmem:[%s21303_s11 + $0x174] sm:$0xf0]  ;;  %v12870_v19 = vld [vmem:[%s21303_s11 + $0x17c] sm:$0xf0]  ;;  %v12876_v44 = vld [vmem:[%s21303_s11 + $0x168] sm:$0xf] }
 0xb2a   : > { %v12865_v16 = vor.u32 %v14660_v22, %v12862_v57  ;;  %v7281_v34 = vld [vmem:[#allocation4 + $0x3] ss:$16 sm:$0xc0]  ;;  %v12985_v6 = vld [vmem:[%s21303_s11 + $0x28c] sm:$0xf0] }
 0xb2b   : > { %7005 = vmatpush.bf16.msra.mxu0 %v12699_v39  ;;  %7018 = vmatpush.bf16.msra.mxu1 %v12703_v14  ;;  %v7081_v39 = vor.u32 %v7080_v4, %v7079_v18  ;;  %v7082_v14 = vld [vmem:[#allocation4 + $0x2] ss:$16 sm:$0xc0]  ;;  %v14690_v32 = vld [vmem:[%s21303_s11 + $0x248] sm:$0xf0] }
 0xb2c   : > { %7031 = vmatpush.bf16.msra.mxu2 %v12707_v63  ;;  %7044 = vmatpush.bf16.msra.mxu3 %v12711_v15  ;;  %v14669_v63 = vld [vmem:[%s21303_s11 + $0x1a0] sm:$0xf0]  ;;  %v12888_v15 = vld [vmem:[%s21303_s11 + $0x190] sm:$0xf]  ;;  %v12975_v4 = vld [vmem:[%s21303_s11 + $0x268] sm:$0xf] }
 0xb2d   : > { %v7083_v48 = vor.u32 %v7082_v14, %v7081_v39  ;;  %v12881_v61 = vor.u32 %v14669_v63, %v12880_v43  ;;  %v12889_v30 = vor.u32 %v14670_v53, %v12888_v15  ;;  %v14698_v14 = vld [vmem:[%s21303_s11 + $0x288] sm:$0xf0]  ;;  %v12947_v63 = vld [vmem:[%s21303_s11 + $0x230] sm:$0xf]  ;;  %v14687_v53 = vld [vmem:[%s21303_s11 + $0x234] sm:$0xf] }
 0xb2e   : > { %v14693_v22 = vld [vmem:[%s21303_s11 + $0x260] sm:$0xf0]  ;;  %v13010_v57 = vld [vmem:[%s21303_s11 + $0x1c0] sm:$0xf] }
 0xb2f   : > { %v18881_v54 = vpack.c.bf16 %v7083_v48, %v7083_v48  ;;  %v14695_v48 = vld [vmem:[%s21303_s11 + $0x274] sm:$0xf] }
 0xb30   : > { %v12988_v15 = vor.u32 %v14695_v48, %v12985_v6 }
 0xb35   : > { %12689 = vmatmul.msk.bf16.vlgmr.msrb.gmra.mxu0 %vm5638_vm0, %v18685_v0  ;;  %12690 = vmatmul.msk.bf16.vlgmr.msrb.gmra.mxu1 %vm5638_vm0, %v18685_v0 }
 0xb36   : > { %12691 = vmatmul.msk.bf16.vlgmr.msrb.gmra.mxu2 %vm5638_vm0, %v18685_v0  ;;  %12748 = vmatmul.msk.bf16.vlgmr.msrb.gmra.mxu3 %vm5638_vm0, %v18767_v37  ;;  %v12811_v0 = vld [vmem:[%s21303_s11 + $0x13c] sm:$0xf0] }
 0xb37   : > { %7056 = vmatpush.bf16.msrb.mxu0 %v12743_v31  ;;  %7069 = vmatpush.bf16.msrb.mxu1 %v12747_v25  ;;  %v12814_v7 = vor.u32 %v14653_v35, %v12811_v0  ;;  %v14662_v31 = vld [vmem:[%s21303_s11 + $0x168] sm:$0xf0]  ;;  %v14659_v25 = vld [vmem:[%s21303_s11 + $0x154] sm:$0xf]  ;;  %v12893_v35 = vor.u32 %v14667_v50, %v12890_v49  ;;  %v12897_v0 = vor.u32 %v14671_v40, %v12896_v28 }
 0xb38   : > { %7183 = vmatpush.bf16.msrb.mxu2 %v12802_v26  ;;  %7196 = vmatpush.bf16.msrb.mxu3 %v12806_v24  ;;  %v14663_v26 = vld [vmem:[%s21303_s11 + $0x170] sm:$0xf0]  ;;  %v12853_v24 = vor.u32 %v14662_v31, %v12852_v11  ;;  %v12857_v10 = vor.u32 %v14659_v25, %v12854_v12  ;;  %v12991_v25 = vld [vmem:[%s21303_s11 + $0x278] sm:$0xf] }
 0xb39   : > { %v12861_v21 = vor.u32 %v14663_v26, %v12860_v17  ;;  %v14699_v12 = vld [vmem:[%s21303_s11 + $0x290] sm:$0xf0]  ;;  %v14696_v17 = vld [vmem:[%s21303_s11 + $0x27c] sm:$0xf]  ;;  %v12993_v26 = vld [vmem:[%s21303_s11 + $0x294] sm:$0xf0] }
 0xb3a   : > { %v7501_v50 = vld [vmem:[#allocation4 + $0x5] ss:$16 sm:$0x3]  ;;  %v12992_v28 = vor.u32 %v14699_v12, %v12991_v25  ;;  %v12996_v40 = vor.u32 %v14696_v17, %v12993_v26  ;;  %v13056_v25 = vld [vmem:[%s21303_s11 + $0x224] sm:$0xf0] }
 0xb3b   : > { %7057 = vmatpush.bf16.msrb.mxu0 %v12715_v29  ;;  %7070 = vmatpush.bf16.msrb.mxu1 %v12719_v42  ;;  %v14668_v29 = vld [vmem:[%s21303_s11 + $0x19c] sm:$0xf]  ;;  %v12898_v42 = vld [vmem:[%s21303_s11 + $0x1b4] sm:$0xf0]  ;;  %v13062_v12 = vld [vmem:[%s21303_s11 + $0x210] sm:$0xf] }
 0xb3c   : > { %7184 = vmatpush.bf16.msrb.mxu2 %v12774_v3  ;;  %7197 = vmatpush.bf16.msrb.mxu3 %v12778_v20  ;;  %v12904_v3 = vld [vmem:[%s21303_s11 + $0x1a0] sm:$0xf]  ;;  %v14672_v20 = vld [vmem:[%s21303_s11 + $0x1b8] sm:$0xf0]  ;;  %v12901_v5 = vor.u32 %v14668_v29, %v12898_v42  ;;  %v14686_v17 = vld [vmem:[%s21303_s11 + $0x228] sm:$0xf0] }
 0xb3d   : > { %v12905_v2 = vor.u32 %v14672_v20, %v12904_v3  ;;  %v7502_v49 = vld [vmem:[#allocation4 + $0x5] ss:$16 sm:$0xc]  ;;  %v12963_v29 = vld [vmem:[%s21303_s11 + $0x240] sm:$0xf] }
 0xb3e   : > { %v14692_v42 = vld [vmem:[%s21303_s11 + $0x258] sm:$0xf0]  ;;  %v13117_v26 = vld [vmem:[%s21303_s11 + $0x2d8] sm:$0xf] }
 0xb3f   : > { %v12964_v55 = vor.u32 %v14692_v42, %v12963_v29  ;;  %v14675_v29 = vld [vmem:[%s21303_s11 + $0x1d4] sm:$0xf]  ;;  %v13028_v42 = vld [vmem:[%s21303_s11 + $0x1ec] sm:$0xf0] }
 0xb45   : > { %12749 = vmatmul.msk.bf16.vlgmr.msra.gmra.mxu0 %vm5638_vm0, %v18767_v37  ;;  %12750 = vmatmul.msk.bf16.vlgmr.msra.gmra.mxu1 %vm5638_vm0, %v18767_v37 }
 0xb46   : > { %12751 = vmatmul.msk.bf16.vlgmr.msra.gmra.mxu2 %vm5638_vm0, %v18767_v37  ;;  %12752 = vmatmul.msk.bf16.vlgmr.msra.gmra.mxu3 %vm5638_vm0, %v18767_v37 }
 0xb47   : > { %7209 = vmatpush.bf16.msra.mxu0 %v12810_v1  ;;  %7222 = vmatpush.bf16.msra.mxu1 %v12814_v7  ;;  %v14661_v1 = vld [vmem:[%s21303_s11 + $0x164] sm:$0xf]  ;;  %v7278_v7 = vor.u32 %v7277_v8, %v7276_v60  ;;  %v12965_v8 = vld [vmem:[%s21303_s11 + $0x25c] sm:$0xf0] }
 0xb48   : > { %7235 = vmatpush.bf16.msra.mxu2 %v12818_v47  ;;  %7248 = vmatpush.bf16.msra.mxu3 %v12822_v23  ;;  %v14665_v47 = vld [vmem:[%s21303_s11 + $0x180] sm:$0xf0]  ;;  %v7279_v23 = vld [vmem:[#allocation4 + $0x3] ss:$16 sm:$0x30]  ;;  %v12873_v59 = vor.u32 %v14661_v1, %v12870_v19 }
 0xb49   : > { %v12877_v41 = vor.u32 %v14665_v47, %v12876_v44  ;;  %v7280_v46 = vor.u32 %v7279_v23, %v7278_v7  ;;  %v14689_v60 = vld [vmem:[%s21303_s11 + $0x244] sm:$0xf]  ;;  %v7506_v44 = vld [vmem:[#allocation4 + $0x5] ss:$16 sm:$0xc0] }
 0xb4a   : > { %v12968_v27 = vor.u32 %v14689_v60, %v12965_v8  ;;  %v14680_v23 = vld [vmem:[%s21303_s11 + $0x1fc] sm:$0xf]  ;;  %v13034_v60 = vld [vmem:[%s21303_s11 + $0x1d8] sm:$0xf]  ;;  %v14679_v8 = vld [vmem:[%s21303_s11 + $0x1f0] sm:$0xf0] }
 0xb4b   : > { %7210 = vmatpush.bf16.msra.mxu0 %v12782_v52  ;;  %7223 = vmatpush.bf16.msra.mxu1 %v12786_v36  ;;  %v7282_v18 = vor.u32 %v7281_v34, %v7280_v46  ;;  %v14697_v52 = vld [vmem:[%s21303_s11 + $0x280] sm:$0xf0]  ;;  %v14694_v36 = vld [vmem:[%s21303_s11 + $0x26c] sm:$0xf]  ;;  %v13048_v34 = vld [vmem:[%s21303_s11 + $0x21c] sm:$0xf0] }
 0xb4c   : > { %7236 = vmatpush.bf16.msra.mxu2 %v12790_v38  ;;  %7249 = vmatpush.bf16.msra.mxu3 %v12794_v45  ;;  %v12977_v38 = vld [vmem:[%s21303_s11 + $0x284] sm:$0xf0]  ;;  %v12983_v45 = vld [vmem:[%s21303_s11 + $0x270] sm:$0xf]  ;;  %v12976_v33 = vor.u32 %v14697_v52, %v12975_v4  ;;  %v14685_v4 = vld [vmem:[%s21303_s11 + $0x220] sm:$0xf0] }
 0xb4d   : > { %v7283_v39 = vpack.c.bf16 %v7282_v18, %v7282_v18  ;;  %v12980_v43 = vor.u32 %v14694_v36, %v12977_v38  ;;  %v12984_v13 = vor.u32 %v14698_v14, %v12983_v45  ;;  %v13054_v18 = vld [vmem:[%s21303_s11 + $0x208] sm:$0xf]  ;;  %v7475_v52 = vld [vmem:[#allocation4 + $0x4] ss:$16 sm:$0x3] }
 0xb4e   : > { %v7476_v36 = vld [vmem:[#allocation4 + $0x4] ss:$16 sm:$0xc]  ;;  %v13012_v14 = vld [vmem:[%s21303_s11 + $0x1dc] sm:$0xf0]  ;;  %v13055_v6 = vor.u32 %v14685_v4, %v13054_v18 }
 0xb4f   : > { %v14710_v18 = vld [vmem:[%s21303_s11 + $0x2ec] sm:$0xf]  ;;  %v13135_v4 = vld [vmem:[%s21303_s11 + $0x304] sm:$0xf0] }
 0xb55   : > { %12753 = vmatmul.msk.bf16.vlgmr.msrb.gmra.mxu0 %vm5638_vm0, %v18767_v37  ;;  %12754 = vmatmul.msk.bf16.vlgmr.msrb.gmra.mxu1 %vm5638_vm0, %v18767_v37  ;;  %v12798_v37 = vor.u32 %v14651_v56, %v12797_v9  ;;  %v14691_v9 = vld [vmem:[%s21303_s11 + $0x250] sm:$0xf0]  ;;  %v14688_v56 = vld [vmem:[%s21303_s11 + $0x23c] sm:$0xf] }
 0xb56   : > { %12827 = vmatmul.msk.bf16.vlgmr.msrb.gmra.mxu2 %vm5638_vm0, %v18881_v54  ;;  %12828 = vmatmul.msk.bf16.vlgmr.msrb.gmra.mxu3 %vm5638_vm0, %v18881_v54 }
 0xb57   : > { %7261 = vmatpush.bf16.msrb.mxu0 %v12826_v62  ;;  %7382 = vmatpush.bf16.msrb.mxu1 %v12881_v61  ;;  %v12949_v62 = vld [vmem:[%s21303_s11 + $0x24c] sm:$0xf0]  ;;  %v12955_v61 = vld [vmem:[%s21303_s11 + $0x238] sm:$0xf] }
 0xb58   : > { %7395 = vmatpush.bf16.msrb.mxu2 %v12885_v58  ;;  %7408 = vmatpush.bf16.msrb.mxu3 %v12889_v30  ;;  %v12957_v58 = vld [vmem:[%s21303_s11 + $0x254] sm:$0xf0]  ;;  %v12952_v30 = vor.u32 %v14687_v53, %v12949_v62  ;;  %v12956_v11 = vor.u32 %v14691_v9, %v12955_v61  ;;  %v7477_v53 = vor.u32 %v7476_v36, %v7475_v52  ;;  %v7478_v62 = vld [vmem:[#allocation4 + $0x4] ss:$16 sm:$0x30] }
 0xb59   : > { %v12960_v31 = vor.u32 %v14688_v56, %v12957_v58 }
 0xb5b   : > { %7262 = vmatpush.bf16.msrb.mxu0 %v12798_v37  ;;  %7383 = vmatpush.bf16.msrb.mxu1 %v12853_v24  ;;  %v12999_v37 = vld [vmem:[%s21303_s11 + $0x280] sm:$0xf]  ;;  %v14700_v24 = vld [vmem:[%s21303_s11 + $0x298] sm:$0xf0] }
 0xb5c   : > { %7396 = vmatpush.bf16.msrb.mxu2 %v12857_v10  ;;  %7409 = vmatpush.bf16.msrb.mxu3 %v12861_v21  ;;  %v13038_v10 = vld [vmem:[%s21303_s11 + $0x1f8] sm:$0xf]  ;;  %v14683_v21 = vld [vmem:[%s21303_s11 + $0x210] sm:$0xf0]  ;;  %v13000_v3 = vor.u32 %v14700_v24, %v12999_v37  ;;  %v14708_v24 = vld [vmem:[%s21303_s11 + $0x2dc] sm:$0xf] }
 0xb5d   : > { %v13039_v20 = vor.u32 %v14683_v21, %v13038_v10  ;;  %v14711_v37 = vld [vmem:[%s21303_s11 + $0x2f0] sm:$0xf0]  ;;  %v13119_v10 = vld [vmem:[%s21303_s11 + $0x2f4] sm:$0xf0] }
 0xb65   : > { %12829 = vmatmul.msk.bf16.vlgmr.msra.gmra.mxu0 %vm5638_vm0, %v18881_v54  ;;  %12830 = vmatmul.msk.bf16.vlgmr.msra.gmra.mxu1 %vm5638_vm0, %v18881_v54 }
 0xb66   : > { %12831 = vmatmul.msk.bf16.vlgmr.msra.gmra.mxu2 %vm5638_vm0, %v18881_v54  ;;  %12832 = vmatmul.msk.bf16.vlgmr.msra.gmra.mxu3 %vm5638_vm0, %v18881_v54 }
 0xb67   : > { %7421 = vmatpush.bf16.msra.mxu0 %v12893_v35  ;;  %7434 = vmatpush.bf16.msra.mxu1 %v12897_v0  ;;  %v12971_v35 = vld [vmem:[%s21303_s11 + $0x248] sm:$0xf]  ;;  %v7503_v0 = vor.u32 %v7502_v49, %v7501_v50 }
 0xb68   : > { %7447 = vmatpush.bf16.msra.mxu2 %v12901_v5  ;;  %7460 = vmatpush.bf16.msra.mxu3 %v12905_v2  ;;  %v14676_v5 = vld [vmem:[%s21303_s11 + $0x1d8] sm:$0xf0]  ;;  %v12972_v1 = vor.u32 %v14693_v22, %v12971_v35  ;;  %v13089_v35 = vld [vmem:[%s21303_s11 + $0x2a0] sm:$0xf]  ;;  %v14701_v22 = vld [vmem:[%s21303_s11 + $0x2a4] sm:$0xf] }
 0xb69   : > { %v7504_v2 = vld [vmem:[#allocation4 + $0x5] ss:$16 sm:$0x30]  ;;  %v13011_v7 = vor.u32 %v14676_v5, %v13010_v57  ;;  %v13091_v57 = vld [vmem:[%s21303_s11 + $0x2bc] sm:$0xf0]  ;;  %v13031_v5 = vor.u32 %v14675_v29, %v13028_v42 }
 0xb6a   : > { %v7505_v19 = vor.u32 %v7504_v2, %v7503_v0  ;;  %v14704_v0 = vld [vmem:[%s21303_s11 + $0x2b8] sm:$0xf0]  ;;  %v13035_v2 = vor.u32 %v14679_v8, %v13034_v60  ;;  %v14722_v29 = vld [vmem:[%s21303_s11 + $0x34c] sm:$0xf]  ;;  %v13204_v60 = vld [vmem:[%s21303_s11 + $0x350] sm:$0xf] }
 0xb6b   : > { %7422 = vmatpush.bf16.msra.mxu0 %v12865_v16  ;;  %7435 = vmatpush.bf16.msra.mxu1 %v12869_v51  ;;  %v13040_v16 = vld [vmem:[%s21303_s11 + $0x214] sm:$0xf0]  ;;  %v13046_v51 = vld [vmem:[%s21303_s11 + $0x200] sm:$0xf]  ;;  %v14726_v8 = vld [vmem:[%s21303_s11 + $0x368] sm:$0xf0] }
 0xb6c   : > { %7448 = vmatpush.bf16.msra.mxu2 %v12873_v59  ;;  %7461 = vmatpush.bf16.msra.mxu3 %v12877_v41  ;;  %v7507_v47 = vor.u32 %v7506_v44, %v7505_v19  ;;  %v14684_v59 = vld [vmem:[%s21303_s11 + $0x218] sm:$0xf0]  ;;  %v14681_v41 = vld [vmem:[%s21303_s11 + $0x204] sm:$0xf]  ;;  %v13043_v38 = vor.u32 %v14680_v23, %v13040_v16 }
 0xb6d   : > { %v13047_v45 = vor.u32 %v14684_v59, %v13046_v51  ;;  %v13051_v48 = vor.u32 %v14681_v41, %v13048_v34  ;;  %v14712_v23 = vld [vmem:[%s21303_s11 + $0x2f8] sm:$0xf0]  ;;  %v14709_v16 = vld [vmem:[%s21303_s11 + $0x2e4] sm:$0xf]  ;;  %v13127_v51 = vld [vmem:[%s21303_s11 + $0x2fc] sm:$0xf0] }
 0xb6e   : > { %v19091_v46 = vpack.c.bf16 %v7507_v47, %v7507_v47  ;;  %v13125_v47 = vld [vmem:[%s21303_s11 + $0x2e0] sm:$0xf]  ;;  %v13133_v59 = vld [vmem:[%s21303_s11 + $0x2e8] sm:$0xf]  ;;  %v14713_v34 = vld [vmem:[%s21303_s11 + $0x300] sm:$0xf0] }
 0xb75   : > { %12833 = vmatmul.msk.bf16.vlgmr.msrb.gmra.mxu0 %vm5638_vm0, %v18881_v54  ;;  %12906 = vmatmul.msk.bf16.vlgmr.msrb.gmra.mxu1 %vm5638_vm0, %v7283_v39  ;;  %v12948_v54 = vor.u32 %v14690_v32, %v12947_v63  ;;  %v14674_v63 = vld [vmem:[%s21303_s11 + $0x1cc] sm:$0xf]  ;;  %v13020_v32 = vld [vmem:[%s21303_s11 + $0x1e4] sm:$0xf0] }
 0xb76   : > { %12907 = vmatmul.msk.bf16.vlgmr.msrb.gmra.mxu2 %vm5638_vm0, %v7283_v39  ;;  %12908 = vmatmul.msk.bf16.vlgmr.msrb.gmra.mxu3 %vm5638_vm0, %v7283_v39  ;;  %v13023_v56 = vor.u32 %v14674_v63, %v13020_v32  ;;  %v14702_v63 = vld [vmem:[%s21303_s11 + $0x2ac] sm:$0xf]  ;;  %v13099_v32 = vld [vmem:[%s21303_s11 + $0x2c4] sm:$0xf0] }
 0xb77   : > { %7607 = vmatpush.bf16.msrb.mxu0 %v12976_v33  ;;  %7620 = vmatpush.bf16.msrb.mxu1 %v12980_v43  ;;  %v13018_v33 = vld [vmem:[%s21303_s11 + $0x1c8] sm:$0xf]  ;;  %v14677_v43 = vld [vmem:[%s21303_s11 + $0x1e0] sm:$0xf0] }
 0xb78   : > { %7633 = vmatpush.bf16.msrb.mxu2 %v12984_v13  ;;  %7646 = vmatpush.bf16.msrb.mxu3 %v12988_v15  ;;  %v13026_v13 = vld [vmem:[%s21303_s11 + $0x1d0] sm:$0xf]  ;;  %v14678_v15 = vld [vmem:[%s21303_s11 + $0x1e8] sm:$0xf0]  ;;  %v13019_v9 = vor.u32 %v14677_v43, %v13018_v33  ;;  %v13134_v33 = vor.u32 %v14713_v34, %v13133_v59  ;;  %v13138_v43 = vor.u32 %v14710_v18, %v13135_v4  ;;  %v14719_v59 = vld [vmem:[%s21303_s11 + $0x330] sm:$0xf0] }
 0xb79   : > { %v13027_v58 = vor.u32 %v14678_v15, %v13026_v13  ;;  %v13105_v13 = vld [vmem:[%s21303_s11 + $0x2b0] sm:$0xf]  ;;  %v14706_v15 = vld [vmem:[%s21303_s11 + $0x2c8] sm:$0xf0] }
 0xb7b   : > { %7608 = vmatpush.bf16.msrb.mxu0 %v12948_v54  ;;  %7621 = vmatpush.bf16.msrb.mxu1 %v12952_v30  ;;  %v7479_v54 = vor.u32 %v7478_v62, %v7477_v53  ;;  %v7480_v30 = vld [vmem:[#allocation4 + $0x4] ss:$16 sm:$0xc0]  ;;  %v14703_v53 = vld [vmem:[%s21303_s11 + $0x2b4] sm:$0xf] }
 0xb7c   : > { %7634 = vmatpush.bf16.msrb.mxu2 %v12956_v11  ;;  %7647 = vmatpush.bf16.msrb.mxu3 %v12960_v31  ;;  %v14682_v31 = vld [vmem:[%s21303_s11 + $0x20c] sm:$0xf]  ;;  %v13107_v62 = vld [vmem:[%s21303_s11 + $0x2cc] sm:$0xf0] }
 0xb7d   : > { %v7481_v11 = vor.u32 %v7480_v30, %v7479_v54  ;;  %v13106_v54 = vor.u32 %v14706_v15, %v13105_v13  ;;  %v13110_v30 = vor.u32 %v14703_v53, %v13107_v62  ;;  %v13220_v13 = vld [vmem:[%s21303_s11 + $0x360] sm:$0xf]  ;;  %v14728_v15 = vld [vmem:[%s21303_s11 + $0x378] sm:$0xf0] }
 0xb7f   : > { %v19162_v49 = vpack.c.bf16 %v7481_v11, %v7481_v11 }
 0xb85   : > { %12909 = vmatmul.msk.bf16.vlgmr.msra.gmra.mxu0 %vm5638_vm0, %v7283_v39  ;;  %12910 = vmatmul.msk.bf16.vlgmr.msra.gmra.mxu1 %vm5638_vm0, %v7283_v39 }
 0xb86   : > { %12911 = vmatmul.msk.bf16.vlgmr.msra.gmra.mxu2 %vm5638_vm0, %v7283_v39  ;;  %12912 = vmatmul.msk.bf16.vlgmr.msra.gmra.mxu3 %vm5638_vm0, %v7283_v39  ;;  %v14673_v39 = vld [vmem:[%s21303_s11 + $0x1c4] sm:$0xf] }
 0xb87   : > { %7659 = vmatpush.bf16.msra.mxu0 %v12992_v28  ;;  %7672 = vmatpush.bf16.msra.mxu1 %v12996_v40  ;;  %v13015_v61 = vor.u32 %v14673_v39, %v13012_v14  ;;  %v13059_v28 = vor.u32 %v14682_v31, %v13056_v25  ;;  %v13063_v40 = vor.u32 %v14686_v17, %v13062_v12 }
 0xb88   : > { %7685 = vmatpush.bf16.msra.mxu2 %v13000_v3  ;;  %7773 = vmatpush.bf16.msra.mxu3 %v13039_v20  ;;  %v13118_v3 = vor.u32 %v14711_v37, %v13117_v26  ;;  %v13122_v20 = vor.u32 %v14708_v24, %v13119_v10  ;;  %v13126_v39 = vor.u32 %v14712_v23, %v13125_v47  ;;  %v7864_v37 = vld [vmem:[#allocation4 + $0x6] ss:$16 sm:$0xc0]  ;;  %v13141_v10 = vld [vmem:[%s21303_s11 + $0x2f0] sm:$0xf] }
 0xb89   : > { %v13130_v14 = vor.u32 %v14709_v16, %v13127_v51  ;;  %v13205_v47 = vor.u32 %v14726_v8, %v13204_v60  ;;  %v14715_v23 = vld [vmem:[%s21303_s11 + $0x314] sm:$0xf]  ;;  %v13170_v16 = vld [vmem:[%s21303_s11 + $0x32c] sm:$0xf0]  ;;  %v13176_v51 = vld [vmem:[%s21303_s11 + $0x318] sm:$0xf] }
 0xb8a   : > { %v13177_v34 = vor.u32 %v14719_v59, %v13176_v51  ;;  %v14754_v59 = vld [vmem:[%s21303_s11 + $0x448] sm:$0xf0] }
 0xb8b   : > { %7660 = vmatpush.bf16.msra.mxu0 %v12964_v55  ;;  %7673 = vmatpush.bf16.msra.mxu1 %v12968_v27  ;;  %v13090_v55 = vor.u32 %v14704_v0, %v13089_v35  ;;  %v13094_v27 = vor.u32 %v14701_v22, %v13091_v57 }
 0xb8c   : > { %7686 = vmatpush.bf16.msra.mxu2 %v12972_v1  ;;  %7774 = vmatpush.bf16.msra.mxu3 %v13011_v7 }
 0xb95   : > { %13001 = vmatmul.msk.bf16.vlgmr.msrb.gmra.mxu0 %vm5638_vm0, %v19091_v46  ;;  %13002 = vmatmul.msk.bf16.vlgmr.msrb.gmra.mxu1 %vm5638_vm0, %v19091_v46 }
 0xb96   : > { %13003 = vmatmul.msk.bf16.vlgmr.msrb.gmra.mxu2 %vm5638_vm0, %v19091_v46  ;;  %13004 = vmatmul.msk.bf16.vlgmr.msrb.gmra.mxu3 %vm5638_vm0, %v19091_v46 }
 0xb97   : > { %7786 = vmatpush.bf16.msrb.mxu0 %v13043_v38  ;;  %7799 = vmatpush.bf16.msrb.mxu1 %v13047_v45  ;;  %v7859_v38 = vld [vmem:[#allocation4 + $0x6] ss:$16 sm:$0x3] }
 0xb98   : > { %7812 = vmatpush.bf16.msrb.mxu2 %v13051_v48  ;;  %7825 = vmatpush.bf16.msrb.mxu3 %v13055_v6  ;;  %v7860_v45 = vld [vmem:[#allocation4 + $0x6] ss:$16 sm:$0xc]  ;;  %v13097_v48 = vld [vmem:[%s21303_s11 + $0x2a8] sm:$0xf] }
 0xb99   : > { %v14705_v6 = vld [vmem:[%s21303_s11 + $0x2c0] sm:$0xf0] }
 0xb9b   : > { %7787 = vmatpush.bf16.msrb.mxu0 %v13015_v61  ;;  %7800 = vmatpush.bf16.msrb.mxu1 %v13019_v9  ;;  %v7861_v61 = vor.u32 %v7860_v45, %v7859_v38  ;;  %v7862_v9 = vld [vmem:[#allocation4 + $0x6] ss:$16 sm:$0x30] }
 0xb9c   : > { %7813 = vmatpush.bf16.msrb.mxu2 %v13023_v56  ;;  %7826 = vmatpush.bf16.msrb.mxu3 %v13027_v58  ;;  %v13098_v56 = vor.u32 %v14705_v6, %v13097_v48  ;;  %v13102_v58 = vor.u32 %v14702_v63, %v13099_v32  ;;  %v14723_v48 = vld [vmem:[%s21303_s11 + $0x354] sm:$0xf]  ;;  %v13206_v6 = vld [vmem:[%s21303_s11 + $0x36c] sm:$0xf0]  ;;  %v13214_v32 = vld [vmem:[%s21303_s11 + $0x374] sm:$0xf0] }
 0xb9d   : > { %v7863_v26 = vor.u32 %v7862_v9, %v7861_v61  ;;  %v8058_v61 = vld [vmem:[#allocation4 + $0x7] ss:$16 sm:$0x3] }
 0xb9e   : > { %v8059_v9 = vld [vmem:[#allocation4 + $0x7] ss:$16 sm:$0xc] }
 0xb9f   : > { %v7865_v24 = vor.u32 %v7864_v37, %v7863_v26  ;;  %v13221_v26 = vor.u32 %v14728_v15, %v13220_v13  ;;  %v14717_v37 = vld [vmem:[%s21303_s11 + $0x324] sm:$0xf] }
 0xba1   : > { %v19289_v22 = vpack.c.bf16 %v7865_v24, %v7865_v24  ;;  %v8060_v24 = vor.u32 %v8059_v9, %v8058_v61 }
 0xba2   : > { %v19158_v21 = vpop.f32.mrf.mxu0  ;;  %v19160_v50 = vpop.f32.mrf.mxu1 }
 0xba5   : > { %13005 = vmatmul.msk.bf16.vlgmr.msra.gmra.mxu0 %vm5638_vm0, %v19091_v46  ;;  %13006 = vmatmul.msk.bf16.vlgmr.msra.gmra.mxu1 %vm5638_vm0, %v19091_v46 }
 0xba6   : > { %13007 = vmatmul.msk.bf16.vlgmr.msra.gmra.mxu2 %vm5638_vm0, %v19091_v46  ;;  %13064 = vmatmul.msk.bf16.vlgmr.msra.gmra.mxu3 %vm5638_vm0, %v19162_v49 }
 0xba7   : > { %7838 = vmatpush.bf16.msra.mxu0 %v13059_v28  ;;  %7851 = vmatpush.bf16.msra.mxu1 %v13063_v40  ;;  %v14714_v28 = vld [vmem:[%s21303_s11 + $0x308] sm:$0xf0]  ;;  %v14725_v40 = vld [vmem:[%s21303_s11 + $0x360] sm:$0xf0] }
 0xba8   : > { %7965 = vmatpush.bf16.msra.mxu2 %v13118_v3  ;;  %7978 = vmatpush.bf16.msra.mxu3 %v13122_v20  ;;  %v13198_v20 = vld [vmem:[%s21303_s11 + $0x364] sm:$0xf0] }
 0xba9   : > { %v19196_v1 = vpop.f32.mrf.mxu2  ;;  %v19198_v7 = vpop.f32.mrf.mxu3 }
 0xbaa   : > { %v6830_v19 = vpop.f32.mrf.mxu0  ;;  %v6843_v44 = vpop.f32.mrf.mxu1 }
 0xbab   : > { %7839 = vmatpush.bf16.msra.mxu0 %v13031_v5  ;;  %7852 = vmatpush.bf16.msra.mxu1 %v13035_v2  ;;  %v13142_v2 = vor.u32 %v14714_v28, %v13141_v10  ;;  %v14707_v19 = vld [vmem:[%s21303_s11 + $0x2d0] sm:$0xf0]  ;;  %v13201_v44 = vor.u32 %v14722_v29, %v13198_v20  ;;  %v13186_v10 = vld [vmem:[%s21303_s11 + $0x33c] sm:$0xf0]  ;;  %v13192_v28 = vld [vmem:[%s21303_s11 + $0x328] sm:$0xf] }
 0xbac   : > { %7966 = vmatpush.bf16.msra.mxu2 %v13090_v55  ;;  %7979 = vmatpush.bf16.msra.mxu3 %v13094_v27  ;;  %v13113_v27 = vld [vmem:[%s21303_s11 + $0x2b8] sm:$0xf] }
 0xbb1   : > { %v6856_v41 = vpop.f32.mrf.mxu2  ;;  %v6869_v46 = vpop.f32.mrf.mxu3 }
 0xbb2   : > { %v19224_v52 = vpop.f32.mrf.mxu0  ;;  %v19226_v36 = vpop.f32.mrf.mxu1  ;;  %v13173_v46 = vor.u32 %v14715_v23, %v13170_v16 }
 0xbb5   : > { %13065 = vmatmul.msk.bf16.vlgmr.msrb.gmra.mxu0 %vm5638_vm0, %v19162_v49  ;;  %13066 = vmatmul.msk.bf16.vlgmr.msrb.gmra.mxu1 %vm5638_vm0, %v19162_v49 }
 0xbb6   : > { %13067 = vmatmul.msk.bf16.vlgmr.msrb.gmra.mxu2 %vm5638_vm0, %v19162_v49  ;;  %13068 = vmatmul.msk.bf16.vlgmr.msrb.gmra.mxu3 %vm5638_vm0, %v19162_v49 }
 0xbb7   : > { %7991 = vmatpush.bf16.msrb.mxu0 %v13126_v39  ;;  %8004 = vmatpush.bf16.msrb.mxu1 %v13130_v14 }
 0xbb8   : > { %8017 = vmatpush.bf16.msrb.mxu2 %v13134_v33  ;;  %8030 = vmatpush.bf16.msrb.mxu3 %v13138_v43  ;;  %v14724_v33 = vld [vmem:[%s21303_s11 + $0x35c] sm:$0xf] }
 0xbb9   : > { %v19260_v11 = vpop.f32.mrf.mxu2  ;;  %v6994_v31 = vpop.f32.mrf.mxu3 }
 0xbba   : > { %v19263_v25 = vadd.f32 %v6994_v31, %v19158_v21  ;;  %v6882_v12 = vpop.f32.mrf.mxu0  ;;  %v6895_v17 = vpop.f32.mrf.mxu1  ;;  %v13196_v21 = vld [vmem:[%s21303_s11 + $0x348] sm:$0xf]  ;;  %v14716_v31 = vld [vmem:[%s21303_s11 + $0x31c] sm:$0xf] }
 0xbbb   : > { %7992 = vmatpush.bf16.msrb.mxu0 %v13098_v56  ;;  %8005 = vmatpush.bf16.msrb.mxu1 %v13102_v58  ;;  %v13197_v55 = vor.u32 %v14725_v40, %v13196_v21  ;;  %v13178_v12 = vld [vmem:[%s21303_s11 + $0x334] sm:$0xf0]  ;;  %v13217_v17 = vor.u32 %v14724_v33, %v13214_v32  ;;  %v14721_v21 = vld [vmem:[%s21303_s11 + $0x340] sm:$0xf0] }
 0xbbc   : > { %8018 = vmatpush.bf16.msrb.mxu2 %v13106_v54  ;;  %8031 = vmatpush.bf16.msrb.mxu3 %v13110_v30  ;;  %v13209_v54 = vor.u32 %v14723_v48, %v13206_v6  ;;  %v8061_v40 = vld [vmem:[#allocation4 + $0x7] ss:$16 sm:$0x30]  ;;  %v13181_v29 = vor.u32 %v14716_v31, %v13178_v12  ;;  %v13193_v20 = vor.u32 %v14721_v21, %v13192_v28  ;;  %v13263_v48 = vld [vmem:[%s21303_s11 + $0x3f0] sm:$0xf] }
 0xbbd   : > { %v14746_v6 = vld [vmem:[%s21303_s11 + $0x408] sm:$0xf0]  ;;  %v13271_v33 = vld [vmem:[%s21303_s11 + $0x3f8] sm:$0xf] }
 0xbbe   : > { %v13273_v32 = vld [vmem:[%s21303_s11 + $0x414] sm:$0xf0] }
 0xbbf   : > { %v13307_v12 = vld [vmem:[%s21303_s11 + $0x438] sm:$0xf] }
 0xbc1   : > { %v6908_v42 = vpop.f32.mrf.mxu2  ;;  %v6996_v3 = vpop.f32.mrf.mxu3 }
 0xbc2   : > { %v7007_v35 = vpop.f32.mrf.mxu0  ;;  %v7020_v0 = vpop.f32.mrf.mxu1  ;;  %v13189_v3 = vor.u32 %v14717_v37, %v13186_v10  ;;  %v14756_v37 = vld [vmem:[%s21303_s11 + $0x458] sm:$0xf0]  ;;  %v14739_v10 = vld [vmem:[%s21303_s11 + $0x3d0] sm:$0xf0] }
 0xbc3   : > { %v19292_v57 = vadd.f32 %v7007_v35, %v19160_v50  ;;  %v19295_v5 = vadd.f32 %v7020_v0, %v19196_v1  ;;  %v13168_v50 = vld [vmem:[%s21303_s11 + $0x310] sm:$0xf]  ;;  %v14718_v1 = vld [vmem:[%s21303_s11 + $0x328] sm:$0xf0]  ;;  %v8062_v35 = vor.u32 %v8061_v40, %v8060_v24  ;;  %v13354_v24 = vld [vmem:[%s21303_s11 + $0x3b8] sm:$0xf] }
 0xbc4   : > { %v13169_v41 = vor.u32 %v14718_v1, %v13168_v50  ;;  %v13293_v50 = vld [vmem:[%s21303_s11 + $0x444] sm:$0xf0]  ;;  %v13299_v1 = vld [vmem:[%s21303_s11 + $0x430] sm:$0xf] }
 0xbc5   : > { %13069 = vmatmul.msk.bf16.vlgmr.msra.gmra.mxu0 %vm5638_vm0, %v19162_v49  ;;  %13070 = vmatmul.msk.bf16.vlgmr.msra.gmra.mxu1 %vm5638_vm0, %v19162_v49  ;;  %v13114_v49 = vor.u32 %v14707_v19, %v13113_v27  ;;  %v8063_v19 = vld [vmem:[#allocation4 + $0x7] ss:$16 sm:$0xc0]  ;;  %v8283_v40 = vld [vmem:[#allocation4 + $0x9] ss:$16 sm:$0x3] }
 0xbc6   : > { %13143 = vmatmul.msk.bf16.vlgmr.msra.gmra.mxu2 %vm5638_vm0, %v19289_v22  ;;  %13144 = vmatmul.msk.bf16.vlgmr.msra.gmra.mxu3 %vm5638_vm0, %v19289_v22 }
 0xbc7   : > { %8043 = vmatpush.bf16.msra.mxu0 %v13142_v2  ;;  %8164 = vmatpush.bf16.msra.mxu1 %v13197_v55 }
 0xbc8   : > { %8177 = vmatpush.bf16.msra.mxu2 %v13201_v44  ;;  %8190 = vmatpush.bf16.msra.mxu3 %v13205_v47  ;;  %v8064_v44 = vor.u32 %v8063_v19, %v8062_v35  ;;  %v13291_v47 = vld [vmem:[%s21303_s11 + $0x428] sm:$0xf]  ;;  %v14748_v35 = vld [vmem:[%s21303_s11 + $0x418] sm:$0xf0] }
 0xbc9   : > { %v7033_v18 = vpop.f32.mrf.mxu2  ;;  %v7046_v4 = vpop.f32.mrf.mxu3  ;;  %v13287_v19 = vld [vmem:[%s21303_s11 + $0x408] sm:$0xf] }
 0xbca   : > { %v19330_v38 = vadd.f32 %v7033_v18, %v19198_v7  ;;  %v19333_v45 = vadd.f32 %v7046_v4, %v19224_v52  ;;  %v7009_v39 = vpop.f32.mrf.mxu0  ;;  %v7022_v14 = vpop.f32.mrf.mxu1  ;;  %v13212_v7 = vld [vmem:[%s21303_s11 + $0x358] sm:$0xf]  ;;  %v14727_v52 = vld [vmem:[%s21303_s11 + $0x370] sm:$0xf0]  ;;  %v19418_v51 = vpack.c.bf16 %v8064_v44, %v8064_v44 }
 0xbcb   : > { %8044 = vmatpush.bf16.msra.mxu0 %v13114_v49  ;;  %8165 = vmatpush.bf16.msra.mxu1 %v13169_v41  ;;  %v13213_v30 = vor.u32 %v14727_v52, %v13212_v7  ;;  %v14751_v49 = vld [vmem:[%s21303_s11 + $0x434] sm:$0xf]  ;;  %v13301_v41 = vld [vmem:[%s21303_s11 + $0x44c] sm:$0xf0]  ;;  %v13300_v7 = vor.u32 %v14754_v59, %v13299_v1 }
 0xbcc   : > { %8178 = vmatpush.bf16.msra.mxu2 %v13173_v46  ;;  %8191 = vmatpush.bf16.msra.mxu3 %v13177_v34  ;;  %v13304_v52 = vor.u32 %v14751_v49, %v13301_v41 }
 0xbd1   : > { %v7035_v43 = vpop.f32.mrf.mxu2  ;;  %v7048_v63 = vpop.f32.mrf.mxu3 }
 0xbd2   : > { %v7059_v53 = vpop.f32.mrf.mxu0  ;;  %v7072_v62 = vpop.f32.mrf.mxu1  ;;  %v14747_v43 = vld [vmem:[%s21303_s11 + $0x410] sm:$0xf0]  ;;  %v14744_v63 = vld [vmem:[%s21303_s11 + $0x3fc] sm:$0xf] }
 0xbd3   : > { %v19360_v56 = vadd.f32 %v7059_v53, %v19226_v36  ;;  %v19363_v58 = vadd.f32 %v7072_v62, %v19260_v11  ;;  %v13184_v36 = vld [vmem:[%s21303_s11 + $0x320] sm:$0xf]  ;;  %v14720_v11 = vld [vmem:[%s21303_s11 + $0x338] sm:$0xf0]  ;;  %v13272_v15 = vor.u32 %v14747_v43, %v13271_v33  ;;  %v13276_v53 = vor.u32 %v14744_v63, %v13273_v32  ;;  %v13370_v32 = vld [vmem:[%s21303_s11 + $0x3c8] sm:$0xf] }
 0xbd4   : > { %v13185_v42 = vor.u32 %v14720_v11, %v13184_v36  ;;  %v13364_v63 = vld [vmem:[%s21303_s11 + $0x3dc] sm:$0xf0] }
 0xbd5   : > { %13145 = vmatmul.msk.bf16.vlgmr.msrb.gmra.mxu0 %vm5638_vm0, %v19289_v22  ;;  %13146 = vmatmul.msk.bf16.vlgmr.msrb.gmra.mxu1 %vm5638_vm0, %v19289_v22 }
 0xbd6   : > { %13147 = vmatmul.msk.bf16.vlgmr.msrb.gmra.mxu2 %vm5638_vm0, %v19289_v22  ;;  %13148 = vmatmul.msk.bf16.vlgmr.msrb.gmra.mxu3 %vm5638_vm0, %v19289_v22 }
 0xbd7   : > { %8203 = vmatpush.bf16.msrb.mxu0 %v13209_v54  ;;  %8216 = vmatpush.bf16.msrb.mxu1 %v13213_v30 }
 0xbd8   : > { %8229 = vmatpush.bf16.msrb.mxu2 %v13217_v17  ;;  %8242 = vmatpush.bf16.msrb.mxu3 %v13221_v26  ;;  %v14755_v17 = vld [vmem:[%s21303_s11 + $0x450] sm:$0xf0]  ;;  %v13315_v26 = vld [vmem:[%s21303_s11 + $0x440] sm:$0xf] }
 0xbd9   : > { %v7186_v60 = vpop.f32.mrf.mxu2  ;;  %v7199_v8 = vpop.f32.mrf.mxu3 }
 0xbda   : > { %v19398_v0 = vadd.f32 %v7186_v60, %v19263_v25  ;;  %v19401_v2 = vadd.f32 %v7199_v8, %v19292_v57  ;;  %v7061_v55 = vpop.f32.mrf.mxu0  ;;  %v7074_v27 = vpop.f32.mrf.mxu1  ;;  %v14753_v25 = vld [vmem:[%s21303_s11 + $0x440] sm:$0xf0]  ;;  %v14750_v57 = vld [vmem:[%s21303_s11 + $0x42c] sm:$0xf]  ;;  %v13279_v8 = vld [vmem:[%s21303_s11 + $0x400] sm:$0xf] }
 0xbdb   : > { %8204 = vmatpush.bf16.msrb.mxu0 %v13181_v29  ;;  %8217 = vmatpush.bf16.msrb.mxu1 %v13185_v42  ;;  %v13292_v39 = vor.u32 %v14753_v25, %v13291_v47  ;;  %v13296_v14 = vor.u32 %v14750_v57, %v13293_v50  ;;  %v8284_v29 = vld [vmem:[#allocation4 + $0x9] ss:$16 sm:$0xc]  ;;  %v13316_v55 = vor.u32 %v14756_v37, %v13315_v26  ;;  %v14749_v47 = vld [vmem:[%s21303_s11 + $0x420] sm:$0xf0] }
 0xbdc   : > { %8230 = vmatpush.bf16.msrb.mxu2 %v13189_v3  ;;  %8243 = vmatpush.bf16.msrb.mxu3 %v13193_v20  ;;  %v13308_v20 = vor.u32 %v14755_v17, %v13307_v12  ;;  %v13355_v27 = vor.u32 %v14739_v10, %v13354_v24  ;;  %v8285_v44 = vor.u32 %v8284_v29, %v8283_v40  ;;  %v13326_v25 = vld [vmem:[%s21303_s11 + $0x380] sm:$0xf]  ;;  %v14732_v57 = vld [vmem:[%s21303_s11 + $0x398] sm:$0xf0]  ;;  %v14729_v17 = vld [vmem:[%s21303_s11 + $0x384] sm:$0xf] }
 0xbdd   : > { %v8286_v50 = vld [vmem:[#allocation4 + $0x9] ss:$16 sm:$0x30]  ;;  %v13280_v1 = vor.u32 %v14748_v35, %v13279_v8  ;;  %v13327_v59 = vor.u32 %v14732_v57, %v13326_v25  ;;  %v14734_v24 = vld [vmem:[%s21303_s11 + $0x3a8] sm:$0xf0] }
 0xbde   : > { %v13342_v37 = vld [vmem:[%s21303_s11 + $0x390] sm:$0xf]  ;;  %v14742_v25 = vld [vmem:[%s21303_s11 + $0x3e8] sm:$0xf0]  ;;  %v13433_v57 = vld [vmem:[%s21303_s11 + $0x498] sm:$0xf] }
 0xbe1   : > { %v7188_v23 = vpop.f32.mrf.mxu2  ;;  %v7201_v16 = vpop.f32.mrf.mxu3 }
 0xbe2   : > { %v7212_v46 = vpop.f32.mrf.mxu0  ;;  %v7225_v34 = vpop.f32.mrf.mxu1  ;;  %v13288_v16 = vor.u32 %v14749_v47, %v13287_v19  ;;  %v8262_v19 = vld [vmem:[#allocation4 + $0x8] ss:$16 sm:$0xc0]  ;;  %v14738_v47 = vld [vmem:[%s21303_s11 + $0x3cc] sm:$0xf] }
 0xbe3   : > { %v19430_v18 = vadd.f32 %v7212_v46, %v19295_v5  ;;  %v19433_v4 = vadd.f32 %v7225_v34, %v19330_v38  ;;  %v14743_v5 = vld [vmem:[%s21303_s11 + $0x3f4] sm:$0xf]  ;;  %v13265_v38 = vld [vmem:[%s21303_s11 + $0x40c] sm:$0xf0]  ;;  %v8287_v46 = vor.u32 %v8286_v50, %v8285_v44 }
 0xbe4   : > { %v13268_v13 = vor.u32 %v14743_v5, %v13265_v38  ;;  %v14737_v5 = vld [vmem:[%s21303_s11 + $0x3c4] sm:$0xf] }
 0xbe5   : > { %13149 = vmatmul.msk.bf16.vlgmr.msra.gmra.mxu0 %vm5638_vm0, %v19289_v22  ;;  %13222 = vmatmul.msk.bf16.vlgmr.msra.gmra.mxu1 %vm5638_vm0, %v19418_v51  ;;  %v13264_v22 = vor.u32 %v14746_v6, %v13263_v48  ;;  %v8288_v48 = vld [vmem:[#allocation4 + $0x9] ss:$16 sm:$0xc0] }
 0xbe6   : > { %13223 = vmatmul.msk.bf16.vlgmr.msra.gmra.mxu2 %vm5638_vm0, %v19418_v51  ;;  %13224 = vmatmul.msk.bf16.vlgmr.msra.gmra.mxu3 %vm5638_vm0, %v19418_v51  ;;  %v8289_v6 = vor.u32 %v8288_v48, %v8287_v46  ;;  %v14731_v48 = vld [vmem:[%s21303_s11 + $0x394] sm:$0xf] }
 0xbe7   : > { %8389 = vmatpush.bf16.msra.mxu0 %v13292_v39  ;;  %8402 = vmatpush.bf16.msra.mxu1 %v13296_v14 }
 0xbe8   : > { %8415 = vmatpush.bf16.msra.mxu2 %v13300_v7  ;;  %8428 = vmatpush.bf16.msra.mxu3 %v13304_v52  ;;  %v14736_v7 = vld [vmem:[%s21303_s11 + $0x3bc] sm:$0xf]  ;;  %v19556_v43 = vpack.c.bf16 %v8289_v6, %v8289_v6  ;;  %v13344_v6 = vld [vmem:[%s21303_s11 + $0x3ac] sm:$0xf0] }
 0xbe9   : > { %v7238_v62 = vpop.f32.mrf.mxu2  ;;  %v7251_v61 = vpop.f32.mrf.mxu3  ;;  %v14740_v52 = vld [vmem:[%s21303_s11 + $0x3d8] sm:$0xf0] }
 0xbea   : > { %v19468_v9 = vadd.f32 %v7238_v62, %v19333_v45  ;;  %v19471_v54 = vadd.f32 %v7251_v61, %v19360_v56  ;;  %v7214_v30 = vpop.f32.mrf.mxu0  ;;  %v7227_v31 = vpop.f32.mrf.mxu1  ;;  %v14752_v45 = vld [vmem:[%s21303_s11 + $0x43c] sm:$0xf]  ;;  %v13309_v56 = vld [vmem:[%s21303_s11 + $0x454] sm:$0xf0] }
 0xbeb   : > { %8390 = vmatpush.bf16.msra.mxu0 %v13264_v22  ;;  %8403 = vmatpush.bf16.msra.mxu1 %v13268_v13  ;;  %v13312_v60 = vor.u32 %v14752_v45, %v13309_v56  ;;  %v14741_v22 = vld [vmem:[%s21303_s11 + $0x3e0] sm:$0xf0]  ;;  %v8258_v62 = vld [vmem:[#allocation4 + $0x8] ss:$16 sm:$0xc]  ;;  %v13367_v56 = vor.u32 %v14737_v5, %v13364_v63 }
 0xbec   : > { %8416 = vmatpush.bf16.msra.mxu2 %v13272_v15  ;;  %8429 = vmatpush.bf16.msra.mxu3 %v13276_v53  ;;  %v8257_v53 = vld [vmem:[#allocation4 + $0x8] ss:$16 sm:$0x3]  ;;  %v13371_v26 = vor.u32 %v14741_v22, %v13370_v32  ;;  %v13347_v32 = vor.u32 %v14731_v48, %v13344_v6 }
 0xbed   : > { %v13328_v45 = vld [vmem:[%s21303_s11 + $0x39c] sm:$0xf0]  ;;  %v8259_v10 = vor.u32 %v8258_v62, %v8257_v53 }
 0xbee   : > { %v13405_v5 = vld [vmem:[%s21303_s11 + $0x460] sm:$0xf] }
 0xbef   : > { %v13407_v63 = vld [vmem:[%s21303_s11 + $0x47c] sm:$0xf0] }
 0xbf1   : > { %v7240_v36 = vpop.f32.mrf.mxu2  ;;  %v7253_v11 = vpop.f32.mrf.mxu3 }
 0xbf2   : > { %v7264_v28 = vpop.f32.mrf.mxu0  ;;  %v7385_v21 = vpop.f32.mrf.mxu1  ;;  %v14730_v36 = vld [vmem:[%s21303_s11 + $0x38c] sm:$0xf]  ;;  %v13336_v11 = vld [vmem:[%s21303_s11 + $0x3a4] sm:$0xf0] }
 0xbf3   : > { %v19498_v42 = vadd.f32 %v7264_v28, %v19363_v58  ;;  %v19501_v3 = vadd.f32 %v7385_v21, %v19398_v0  ;;  %v14745_v58 = vld [vmem:[%s21303_s11 + $0x404] sm:$0xf]  ;;  %v13281_v0 = vld [vmem:[%s21303_s11 + $0x41c] sm:$0xf0]  ;;  %v13331_v21 = vor.u32 %v14729_v17, %v13328_v45  ;;  %v13339_v29 = vor.u32 %v14730_v36, %v13336_v11  ;;  %v14768_v17 = vld [vmem:[%s21303_s11 + $0x4b8] sm:$0xf0] }
 0xbf4   : > { %v13284_v23 = vor.u32 %v14745_v58, %v13281_v0  ;;  %v8260_v28 = vld [vmem:[#allocation4 + $0x8] ss:$16 sm:$0x30]  ;;  %v14765_v45 = vld [vmem:[%s21303_s11 + $0x4a4] sm:$0xf] }
 0xbf5   : > { %13225 = vmatmul.msk.bf16.vlgmr.msrb.gmra.mxu0 %vm5638_vm0, %v19418_v51  ;;  %13226 = vmatmul.msk.bf16.vlgmr.msrb.gmra.mxu1 %vm5638_vm0, %v19418_v51  ;;  %v8261_v0 = vor.u32 %v8260_v28, %v8259_v10  ;;  %v14769_v36 = vld [vmem:[%s21303_s11 + $0x4c0] sm:$0xf0]  ;;  %v14766_v11 = vld [vmem:[%s21303_s11 + $0x4ac] sm:$0xf] }
 0xbf6   : > { %13227 = vmatmul.msk.bf16.vlgmr.msrb.gmra.mxu2 %vm5638_vm0, %v19418_v51  ;;  %13228 = vmatmul.msk.bf16.vlgmr.msrb.gmra.mxu3 %vm5638_vm0, %v19418_v51  ;;  %v8641_v28 = vld [vmem:[#allocation4 + $0xa] ss:$16 sm:$0x3] }
 0xbf7   : > { %8441 = vmatpush.bf16.msrb.mxu0 %v13308_v20  ;;  %8454 = vmatpush.bf16.msrb.mxu1 %v13312_v60  ;;  %v13343_v20 = vor.u32 %v14734_v24, %v13342_v37  ;;  %v8263_v44 = vor.u32 %v8262_v19, %v8261_v0  ;;  %v13451_v37 = vld [vmem:[%s21303_s11 + $0x4c4] sm:$0xf0]  ;;  %v13421_v19 = vld [vmem:[%s21303_s11 + $0x470] sm:$0xf] }
 0xbf8   : > { %8467 = vmatpush.bf16.msrb.mxu2 %v13316_v55  ;;  %8555 = vmatpush.bf16.msrb.mxu3 %v13355_v27  ;;  %v13415_v0 = vld [vmem:[%s21303_s11 + $0x484] sm:$0xf0] }
 0xbf9   : > { %v7398_v49 = vpop.f32.mrf.mxu2  ;;  %v7411_v41 = vpop.f32.mrf.mxu3  ;;  %v19639_v46 = vpack.c.bf16 %v8263_v44, %v8263_v44  ;;  %v14762_v44 = vld [vmem:[%s21303_s11 + $0x488] sm:$0xf0] }
 0xbfa   : > { %v19536_v34 = vadd.f32 %v7398_v49, %v19401_v2  ;;  %v19539_v39 = vadd.f32 %v7411_v41, %v19430_v18  ;;  %v7266_v14 = vpop.f32.mrf.mxu0  ;;  %v7387_v51 = vpop.f32.mrf.mxu1  ;;  %v13356_v2 = vld [vmem:[%s21303_s11 + $0x3d4] sm:$0xf0]  ;;  %v13362_v18 = vld [vmem:[%s21303_s11 + $0x3c0] sm:$0xf] }
 0xbfb   : > { %8442 = vmatpush.bf16.msrb.mxu0 %v13280_v1  ;;  %8455 = vmatpush.bf16.msrb.mxu1 %v13284_v23  ;;  %v13359_v31 = vor.u32 %v14736_v7, %v13356_v2  ;;  %v13363_v12 = vor.u32 %v14740_v52, %v13362_v18  ;;  %v14767_v23 = vld [vmem:[%s21303_s11 + $0x4b0] sm:$0xf0]  ;;  %v13350_v18 = vld [vmem:[%s21303_s11 + $0x398] sm:$0xf] }
 0xbfc   : > { %8468 = vmatpush.bf16.msrb.mxu2 %v13288_v16  ;;  %8556 = vmatpush.bf16.msrb.mxu3 %v13327_v59  ;;  %v14764_v16 = vld [vmem:[%s21303_s11 + $0x49c] sm:$0xf]  ;;  %v13435_v59 = vld [vmem:[%s21303_s11 + $0x4b4] sm:$0xf0]  ;;  %v13434_v7 = vor.u32 %v14767_v23, %v13433_v57  ;;  %v14735_v52 = vld [vmem:[%s21303_s11 + $0x3b0] sm:$0xf0] }
 0xbfd   : > { %v13438_v2 = vor.u32 %v14764_v16, %v13435_v59  ;;  %v13351_v22 = vor.u32 %v14735_v52, %v13350_v18  ;;  %v13457_v18 = vld [vmem:[%s21303_s11 + $0x4b0] sm:$0xf]  ;;  %v14770_v52 = vld [vmem:[%s21303_s11 + $0x4c8] sm:$0xf0] }
 0xc01   : > { %v7400_v38 = vpop.f32.mrf.mxu2  ;;  %v7413_v33 = vpop.f32.mrf.mxu3 }
 0xc02   : > { %v7424_v13 = vpop.f32.mrf.mxu0  ;;  %v7437_v15 = vpop.f32.mrf.mxu1  ;;  %v14760_v38 = vld [vmem:[%s21303_s11 + $0x478] sm:$0xf0]  ;;  %v14757_v33 = vld [vmem:[%s21303_s11 + $0x464] sm:$0xf] }
 0xc03   : > { %v19568_v61 = vadd.f32 %v7424_v13, %v19433_v4  ;;  %v19571_v30 = vadd.f32 %v7437_v15, %v19468_v9  ;;  %v13334_v4 = vld [vmem:[%s21303_s11 + $0x388] sm:$0xf]  ;;  %v14733_v9 = vld [vmem:[%s21303_s11 + $0x3a0] sm:$0xf0]  ;;  %v13406_v13 = vor.u32 %v14760_v38, %v13405_v5  ;;  %v13410_v15 = vor.u32 %v14757_v33, %v13407_v63  ;;  %v14778_v38 = vld [vmem:[%s21303_s11 + $0x50c] sm:$0xf] }
 0xc04   : > { %v13335_v40 = vor.u32 %v14733_v9, %v13334_v4  ;;  %v14781_v5 = vld [vmem:[%s21303_s11 + $0x520] sm:$0xf0] }
 0xc05   : > { %13317 = vmatmul.msk.bf16.vlgmr.msra.gmra.mxu0 %vm5638_vm0, %v19556_v43  ;;  %13318 = vmatmul.msk.bf16.vlgmr.msra.gmra.mxu1 %vm5638_vm0, %v19556_v43 }
 0xc06   : > { %13319 = vmatmul.msk.bf16.vlgmr.msra.gmra.mxu2 %vm5638_vm0, %v19556_v43  ;;  %13320 = vmatmul.msk.bf16.vlgmr.msra.gmra.mxu3 %vm5638_vm0, %v19556_v43 }
 0xc07   : > { %8568 = vmatpush.bf16.msra.mxu0 %v13359_v31  ;;  %8581 = vmatpush.bf16.msra.mxu1 %v13363_v12 }
 0xc08   : > { %8594 = vmatpush.bf16.msra.mxu2 %v13367_v56  ;;  %8607 = vmatpush.bf16.msra.mxu3 %v13371_v26  ;;  %v13443_v56 = vld [vmem:[%s21303_s11 + $0x4bc] sm:$0xf0]  ;;  %v13449_v26 = vld [vmem:[%s21303_s11 + $0x4a8] sm:$0xf] }
 0xc09   : > { %v7450_v60 = vpop.f32.mrf.mxu2  ;;  %v7463_v8 = vpop.f32.mrf.mxu3 }
 0xc0a   : > { %v19606_v35 = vadd.f32 %v7450_v60, %v19471_v54  ;;  %v19609_v55 = vadd.f32 %v7463_v8, %v19498_v42  ;;  %v7426_v27 = vpop.f32.mrf.mxu0  ;;  %v7439_v58 = vpop.f32.mrf.mxu1  ;;  %v13372_v54 = vld [vmem:[%s21303_s11 + $0x3e4] sm:$0xf0]  ;;  %v13378_v42 = vld [vmem:[%s21303_s11 + $0x3d0] sm:$0xf]  ;;  %v14761_v60 = vld [vmem:[%s21303_s11 + $0x480] sm:$0xf0]  ;;  %v13450_v8 = vor.u32 %v14769_v36, %v13449_v26 }
 0xc0b   : > { %8569 = vmatpush.bf16.msra.mxu0 %v13331_v21  ;;  %8582 = vmatpush.bf16.msra.mxu1 %v13335_v40  ;;  %v13375_v14 = vor.u32 %v14738_v47, %v13372_v54  ;;  %v13379_v51 = vor.u32 %v14742_v25, %v13378_v42  ;;  %v8642_v21 = vld [vmem:[#allocation4 + $0xa] ss:$16 sm:$0xc]  ;;  %v13454_v27 = vor.u32 %v14766_v11, %v13451_v37  ;;  %v14758_v58 = vld [vmem:[%s21303_s11 + $0x46c] sm:$0xf] }
 0xc0c   : > { %8595 = vmatpush.bf16.msra.mxu2 %v13339_v29  ;;  %8608 = vmatpush.bf16.msra.mxu3 %v13343_v20  ;;  %v13446_v29 = vor.u32 %v14765_v45, %v13443_v56  ;;  %v13413_v20 = vld [vmem:[%s21303_s11 + $0x468] sm:$0xf]  ;;  %v14759_v47 = vld [vmem:[%s21303_s11 + $0x474] sm:$0xf]  ;;  %v13423_v54 = vld [vmem:[%s21303_s11 + $0x48c] sm:$0xf0]  ;;  %v8643_v42 = vor.u32 %v8642_v21, %v8641_v28  ;;  %v13458_v45 = vor.u32 %v14770_v52, %v13457_v18 }
 0xc0d   : > { %v8644_v25 = vld [vmem:[#allocation4 + $0xa] ss:$16 sm:$0x30]  ;;  %v13414_v57 = vor.u32 %v14761_v60, %v13413_v20  ;;  %v13426_v23 = vor.u32 %v14759_v47, %v13423_v54  ;;  %v13429_v26 = vld [vmem:[%s21303_s11 + $0x478] sm:$0xf] }
 0xc0e   : > { %v8645_v6 = vor.u32 %v8644_v25, %v8643_v42  ;;  %v14771_v11 = vld [vmem:[%s21303_s11 + $0x4d4] sm:$0xf]  ;;  %v13486_v37 = vld [vmem:[%s21303_s11 + $0x4ec] sm:$0xf0]  ;;  %v13492_v28 = vld [vmem:[%s21303_s11 + $0x4d8] sm:$0xf] }
 0xc0f   : > { %v14775_v21 = vld [vmem:[%s21303_s11 + $0x4f0] sm:$0xf0]  ;;  %v13522_v47 = vld [vmem:[%s21303_s11 + $0x52c] sm:$0xf0]  ;;  %v14780_v54 = vld [vmem:[%s21303_s11 + $0x51c] sm:$0xf] }
 0xc10   : > { %v13493_v20 = vor.u32 %v14775_v21, %v13492_v28  ;;  %v14772_v52 = vld [vmem:[%s21303_s11 + $0x4dc] sm:$0xf]  ;;  %v8845_v28 = vld [vmem:[#allocation4 + $0xb] ss:$16 sm:$0xc0] }
 0xc11   : > { %v7452_v50 = vpop.f32.mrf.mxu2  ;;  %v7465_v1 = vpop.f32.mrf.mxu3 }
 0xc12   : > { %v19635_v49 = vpop.f32.mrf.mxu0  ;;  %v19637_v41 = vpop.f32.mrf.mxu1  ;;  %v13418_v50 = vor.u32 %v14758_v58, %v13415_v0  ;;  %v13422_v1 = vor.u32 %v14762_v44, %v13421_v19  ;;  %v14779_v44 = vld [vmem:[%s21303_s11 + $0x514] sm:$0xf] }
 0xc15   : > { %13321 = vmatmul.msk.bf16.vlgmr.msrb.gmra.mxu0 %vm5638_vm0, %v19556_v43  ;;  %13322 = vmatmul.msk.bf16.vlgmr.msrb.gmra.mxu1 %vm5638_vm0, %v19556_v43 }
 0xc16   : > { %13323 = vmatmul.msk.bf16.vlgmr.msrb.gmra.mxu2 %vm5638_vm0, %v19556_v43  ;;  %13380 = vmatmul.msk.bf16.vlgmr.msrb.gmra.mxu3 %vm5638_vm0, %v19639_v46  ;;  %v13441_v43 = vld [vmem:[%s21303_s11 + $0x4a0] sm:$0xf] }
 0xc17   : > { %8620 = vmatpush.bf16.msrb.mxu0 %v13375_v14  ;;  %8633 = vmatpush.bf16.msrb.mxu1 %v13379_v51  ;;  %v13442_v40 = vor.u32 %v14768_v17, %v13441_v43 }
 0xc18   : > { %8747 = vmatpush.bf16.msrb.mxu2 %v13434_v7  ;;  %8760 = vmatpush.bf16.msrb.mxu3 %v13438_v2  ;;  %v8646_v7 = vld [vmem:[#allocation4 + $0xa] ss:$16 sm:$0xc0] }
 0xc19   : > { %v19673_v53 = vpop.f32.mrf.mxu2  ;;  %v19675_v62 = vpop.f32.mrf.mxu3  ;;  %v8647_v2 = vor.u32 %v8646_v7, %v8645_v6 }
 0xc1a   : > { %v7612_v31 = vpop.f32.mrf.mxu0  ;;  %v7625_v12 = vpop.f32.mrf.mxu1 }
 0xc1b   : > { %8621 = vmatpush.bf16.msrb.mxu0 %v13347_v32  ;;  %8634 = vmatpush.bf16.msrb.mxu1 %v13351_v22  ;;  %v13514_v32 = vld [vmem:[%s21303_s11 + $0x524] sm:$0xf0]  ;;  %v13520_v22 = vld [vmem:[%s21303_s11 + $0x510] sm:$0xf]  ;;  %v19766_v12 = vpack.c.bf16 %v8647_v2, %v8647_v2  ;;  %v13525_v2 = vor.u32 %v14779_v44, %v13522_v47 }
 0xc1c   : > { %8748 = vmatpush.bf16.msrb.mxu2 %v13406_v13  ;;  %8761 = vmatpush.bf16.msrb.mxu3 %v13410_v15  ;;  %v14782_v13 = vld [vmem:[%s21303_s11 + $0x528] sm:$0xf0]  ;;  %v13617_v44 = vld [vmem:[%s21303_s11 + $0x60c] sm:$0xf0] }
 0xc1d   : > { %v13521_v36 = vor.u32 %v14782_v13, %v13520_v22  ;;  %v13508_v22 = vld [vmem:[%s21303_s11 + $0x4e8] sm:$0xf]  ;;  %v14777_v13 = vld [vmem:[%s21303_s11 + $0x500] sm:$0xf0] }
 0xc21   : > { %v7638_v4 = vpop.f32.mrf.mxu2  ;;  %v7651_v9 = vpop.f32.mrf.mxu3 }
 0xc22   : > { %v19701_v24 = vpop.f32.mrf.mxu0  ;;  %v19703_v10 = vpop.f32.mrf.mxu1  ;;  %v14763_v4 = vld [vmem:[%s21303_s11 + $0x490] sm:$0xf0]  ;;  %v13517_v9 = vor.u32 %v14778_v38, %v13514_v32  ;;  %v13502_v32 = vld [vmem:[%s21303_s11 + $0x4fc] sm:$0xf0] }
 0xc25   : > { %13381 = vmatmul.msk.bf16.vlgmr.msra.gmra.mxu0 %vm5638_vm0, %v19639_v46  ;;  %13382 = vmatmul.msk.bf16.vlgmr.msra.gmra.mxu1 %vm5638_vm0, %v19639_v46 }
 0xc26   : > { %13383 = vmatmul.msk.bf16.vlgmr.msra.gmra.mxu2 %vm5638_vm0, %v19639_v46  ;;  %13384 = vmatmul.msk.bf16.vlgmr.msra.gmra.mxu3 %vm5638_vm0, %v19639_v46 }
 0xc27   : > { %8773 = vmatpush.bf16.msra.mxu0 %v13442_v40  ;;  %8786 = vmatpush.bf16.msra.mxu1 %v13446_v29  ;;  %v13489_v29 = vor.u32 %v14771_v11, %v13486_v37 }
 0xc28   : > { %8799 = vmatpush.bf16.msra.mxu2 %v13450_v8  ;;  %8812 = vmatpush.bf16.msra.mxu3 %v13454_v27 }
 0xc29   : > { %v19737_v16 = vpop.f32.mrf.mxu2  ;;  %v7776_v59 = vpop.f32.mrf.mxu3 }
 0xc2a   : > { %v19740_v14 = vadd.f32 %v7776_v59, %v19635_v49  ;;  %v7664_v51 = vpop.f32.mrf.mxu0  ;;  %v7677_v48 = vpop.f32.mrf.mxu1  ;;  %v13512_v49 = vld [vmem:[%s21303_s11 + $0x508] sm:$0xf] }
 0xc2b   : > { %8774 = vmatpush.bf16.msra.mxu0 %v13414_v57  ;;  %8787 = vmatpush.bf16.msra.mxu1 %v13418_v50  ;;  %v13513_v56 = vor.u32 %v14781_v5, %v13512_v49  ;;  %v13530_v57 = vld [vmem:[%s21303_s11 + $0x534] sm:$0xf0]  ;;  %v13536_v50 = vld [vmem:[%s21303_s11 + $0x520] sm:$0xf] }
 0xc2c   : > { %8800 = vmatpush.bf16.msra.mxu2 %v13422_v1  ;;  %8813 = vmatpush.bf16.msra.mxu3 %v13426_v23  ;;  %v14784_v1 = vld [vmem:[%s21303_s11 + $0x538] sm:$0xf0]  ;;  %v8840_v51 = vld [vmem:[#allocation4 + $0xb] ss:$16 sm:$0x3]  ;;  %v13533_v5 = vor.u32 %v14780_v54, %v13530_v57 }
 0xc2d   : > { %v8841_v48 = vld [vmem:[#allocation4 + $0xb] ss:$16 sm:$0xc]  ;;  %v13494_v49 = vld [vmem:[%s21303_s11 + $0x4f4] sm:$0xf0]  ;;  %v13537_v38 = vor.u32 %v14784_v1, %v13536_v50 }
 0xc2e   : > { %v13579_v57 = vld [vmem:[%s21303_s11 + $0x5b0] sm:$0xf]  ;;  %v14802_v50 = vld [vmem:[%s21303_s11 + $0x5c8] sm:$0xf0] }
 0xc31   : > { %v7690_v33 = vpop.f32.mrf.mxu2  ;;  %v7778_v63 = vpop.f32.mrf.mxu3 }
 0xc32   : > { %v7789_v15 = vpop.f32.mrf.mxu0  ;;  %v7802_v31 = vpop.f32.mrf.mxu1  ;;  %v14773_v33 = vld [vmem:[%s21303_s11 + $0x4e4] sm:$0xf]  ;;  %v8842_v63 = vor.u32 %v8841_v48, %v8840_v51  ;;  %v14803_v51 = vld [vmem:[%s21303_s11 + $0x5d0] sm:$0xf0]  ;;  %v14800_v48 = vld [vmem:[%s21303_s11 + $0x5bc] sm:$0xf] }
 0xc33   : > { %v19769_v43 = vadd.f32 %v7789_v15, %v19637_v41  ;;  %v19772_v17 = vadd.f32 %v7802_v31, %v19673_v53  ;;  %v13484_v41 = vld [vmem:[%s21303_s11 + $0x4d0] sm:$0xf]  ;;  %v14774_v53 = vld [vmem:[%s21303_s11 + $0x4e8] sm:$0xf0]  ;;  %v13497_v31 = vor.u32 %v14772_v52, %v13494_v49 }
 0xc34   : > { %v13485_v40 = vor.u32 %v14774_v53, %v13484_v41  ;;  %v8843_v15 = vld [vmem:[#allocation4 + $0xb] ss:$16 sm:$0x30] }
 0xc35   : > { %13385 = vmatmul.msk.bf16.vlgmr.msrb.gmra.mxu0 %vm5638_vm0, %v19639_v46  ;;  %13386 = vmatmul.msk.bf16.vlgmr.msrb.gmra.mxu1 %vm5638_vm0, %v19639_v46  ;;  %v13430_v46 = vor.u32 %v14763_v4, %v13429_v26  ;;  %v13509_v26 = vor.u32 %v14777_v13, %v13508_v22  ;;  %v14811_v22 = vld [vmem:[%s21303_s11 + $0x610] sm:$0xf0]  ;;  %v13631_v13 = vld [vmem:[%s21303_s11 + $0x600] sm:$0xf] }
 0xc36   : > { %13459 = vmatmul.msk.bf16.vlgmr.msrb.gmra.mxu2 %vm5638_vm0, %v19766_v12  ;;  %13460 = vmatmul.msk.bf16.vlgmr.msrb.gmra.mxu3 %vm5638_vm0, %v19766_v12 }
 0xc37   : > { %8825 = vmatpush.bf16.msrb.mxu0 %v13458_v45  ;;  %8946 = vmatpush.bf16.msrb.mxu1 %v13513_v56  ;;  %v13505_v56 = vor.u32 %v14773_v33, %v13502_v32  ;;  %v13623_v32 = vld [vmem:[%s21303_s11 + $0x5f8] sm:$0xf] }
 0xc38   : > { %8959 = vmatpush.bf16.msrb.mxu2 %v13517_v9  ;;  %8972 = vmatpush.bf16.msrb.mxu3 %v13521_v36  ;;  %v8844_v36 = vor.u32 %v8843_v15, %v8842_v63 }
 0xc39   : > { %v7815_v60 = vpop.f32.mrf.mxu2  ;;  %v7828_v8 = vpop.f32.mrf.mxu3 }
 0xc3a   : > { %v19807_v27 = vadd.f32 %v7815_v60, %v19675_v62  ;;  %v19810_v58 = vadd.f32 %v7828_v8, %v19701_v24  ;;  %v7791_v0 = vpop.f32.mrf.mxu0  ;;  %v7804_v19 = vpop.f32.mrf.mxu1  ;;  %v13528_v62 = vld [vmem:[%s21303_s11 + $0x518] sm:$0xf]  ;;  %v14783_v24 = vld [vmem:[%s21303_s11 + $0x530] sm:$0xf0]  ;;  %v8846_v21 = vor.u32 %v8845_v28, %v8844_v36 }
 0xc3b   : > { %8826 = vmatpush.bf16.msrb.mxu0 %v13430_v46  ;;  %8947 = vmatpush.bf16.msrb.mxu1 %v13485_v40  ;;  %v13529_v18 = vor.u32 %v14783_v24, %v13528_v62  ;;  %v13607_v46 = vld [vmem:[%s21303_s11 + $0x5e8] sm:$0xf]  ;;  %v14810_v0 = vld [vmem:[%s21303_s11 + $0x608] sm:$0xf0]  ;;  %v14807_v19 = vld [vmem:[%s21303_s11 + $0x5f4] sm:$0xf] }
 0xc3c   : > { %8960 = vmatpush.bf16.msrb.mxu2 %v13489_v29  ;;  %8973 = vmatpush.bf16.msrb.mxu3 %v13493_v20  ;;  %v13609_v40 = vld [vmem:[%s21303_s11 + $0x604] sm:$0xf0]  ;;  %v13615_v29 = vld [vmem:[%s21303_s11 + $0x5f0] sm:$0xf]  ;;  %v19895_v8 = vpack.c.bf16 %v8846_v21, %v8846_v21  ;;  %v13624_v21 = vor.u32 %v14811_v22, %v13623_v32 }
 0xc3d   : > { %v13616_v1 = vor.u32 %v14810_v0, %v13615_v29  ;;  %v9065_v36 = vld [vmem:[#allocation4 + $0xd] ss:$16 sm:$0x3] }
 0xc41   : > { %v7817_v42 = vpop.f32.mrf.mxu2  ;;  %v7830_v25 = vpop.f32.mrf.mxu3 }
 0xc42   : > { %v7841_v23 = vpop.f32.mrf.mxu0  ;;  %v7854_v59 = vpop.f32.mrf.mxu1 }
 0xc43   : > { %v19837_v6 = vadd.f32 %v7841_v23, %v19703_v10  ;;  %v19840_v7 = vadd.f32 %v7854_v59, %v19737_v16  ;;  %v13500_v10 = vld [vmem:[%s21303_s11 + $0x4e0] sm:$0xf]  ;;  %v14776_v16 = vld [vmem:[%s21303_s11 + $0x4f8] sm:$0xf0]  ;;  %v13620_v23 = vor.u32 %v14807_v19, %v13617_v44  ;;  %v13587_v59 = vld [vmem:[%s21303_s11 + $0x5b8] sm:$0xf] }
 0xc44   : > { %v13501_v45 = vor.u32 %v14776_v16, %v13500_v10  ;;  %v13588_v52 = vor.u32 %v14803_v51, %v13587_v59  ;;  %v14805_v19 = vld [vmem:[%s21303_s11 + $0x5e0] sm:$0xf0]  ;;  %v13642_v44 = vld [vmem:[%s21303_s11 + $0x540] sm:$0xf] }
 0xc45   : > { %13461 = vmatmul.msk.bf16.vlgmr.msra.gmra.mxu0 %vm5638_vm0, %v19766_v12  ;;  %13462 = vmatmul.msk.bf16.vlgmr.msra.gmra.mxu1 %vm5638_vm0, %v19766_v12 }
 0xc46   : > { %13463 = vmatmul.msk.bf16.vlgmr.msra.gmra.mxu2 %vm5638_vm0, %v19766_v12  ;;  %13464 = vmatmul.msk.bf16.vlgmr.msra.gmra.mxu3 %vm5638_vm0, %v19766_v12 }
 0xc47   : > { %8985 = vmatpush.bf16.msra.mxu0 %v13525_v2  ;;  %8998 = vmatpush.bf16.msra.mxu1 %v13529_v18  ;;  %v13589_v2 = vld [vmem:[%s21303_s11 + $0x5d4] sm:$0xf0] }
 0xc48   : > { %9011 = vmatpush.bf16.msra.mxu2 %v13533_v5  ;;  %9024 = vmatpush.bf16.msra.mxu3 %v13537_v38  ;;  %v13592_v49 = vor.u32 %v14800_v48, %v13589_v2  ;;  %v9070_v48 = vld [vmem:[#allocation4 + $0xd] ss:$16 sm:$0xc0] }
 0xc49   : > { %v7968_v4 = vpop.f32.mrf.mxu2  ;;  %v7981_v9 = vpop.f32.mrf.mxu3 }
 0xc4a   : > { %v19875_v41 = vadd.f32 %v7968_v4, %v19740_v14  ;;  %v19878_v53 = vadd.f32 %v7981_v9, %v19769_v43  ;;  %v7843_v11 = vpop.f32.mrf.mxu0  ;;  %v7856_v37 = vpop.f32.mrf.mxu1  ;;  %v14809_v14 = vld [vmem:[%s21303_s11 + $0x600] sm:$0xf0]  ;;  %v14806_v43 = vld [vmem:[%s21303_s11 + $0x5ec] sm:$0xf] }
 0xc4b   : > { %8986 = vmatpush.bf16.msra.mxu0 %v13497_v31  ;;  %8999 = vmatpush.bf16.msra.mxu1 %v13501_v45  ;;  %v13608_v42 = vor.u32 %v14809_v14, %v13607_v46  ;;  %v13612_v25 = vor.u32 %v14806_v43, %v13609_v40  ;;  %v14812_v45 = vld [vmem:[%s21303_s11 + $0x618] sm:$0xf0]  ;;  %v9066_v11 = vld [vmem:[#allocation4 + $0xd] ss:$16 sm:$0xc] }
 0xc4c   : > { %9012 = vmatpush.bf16.msra.mxu2 %v13505_v56  ;;  %9025 = vmatpush.bf16.msra.mxu3 %v13509_v26  ;;  %v13670_v56 = vld [vmem:[%s21303_s11 + $0x578] sm:$0xf]  ;;  %v14795_v26 = vld [vmem:[%s21303_s11 + $0x590] sm:$0xf0]  ;;  %v13595_v14 = vld [vmem:[%s21303_s11 + $0x5c0] sm:$0xf]  ;;  %v13632_v40 = vor.u32 %v14812_v45, %v13631_v13  ;;  %v9067_v0 = vor.u32 %v9066_v11, %v9065_v36 }
 0xc4d   : > { %v14804_v43 = vld [vmem:[%s21303_s11 + $0x5d8] sm:$0xf0]  ;;  %v13671_v29 = vor.u32 %v14795_v26, %v13670_v56  ;;  %v14785_v56 = vld [vmem:[%s21303_s11 + $0x544] sm:$0xf]  ;;  %v13644_v26 = vld [vmem:[%s21303_s11 + $0x55c] sm:$0xf0] }
 0xc4e   : > { %v13650_v36 = vld [vmem:[%s21303_s11 + $0x548] sm:$0xf] }
 0xc51   : > { %v7970_v20 = vpop.f32.mrf.mxu2  ;;  %v7983_v60 = vpop.f32.mrf.mxu3 }
 0xc52   : > { %v7994_v47 = vpop.f32.mrf.mxu0  ;;  %v8007_v62 = vpop.f32.mrf.mxu1  ;;  %v14801_v20 = vld [vmem:[%s21303_s11 + $0x5c4] sm:$0xf] }
 0xc53   : > { %v19907_v24 = vadd.f32 %v7994_v47, %v19772_v17  ;;  %v19910_v54 = vadd.f32 %v8007_v62, %v19807_v27  ;;  %v14799_v17 = vld [vmem:[%s21303_s11 + $0x5b4] sm:$0xf]  ;;  %v13581_v27 = vld [vmem:[%s21303_s11 + $0x5cc] sm:$0xf0]  ;;  %v13596_v62 = vor.u32 %v14804_v43, %v13595_v14  ;;  %v13647_v43 = vor.u32 %v14785_v56, %v13644_v26 }
 0xc54   : > { %v13584_v18 = vor.u32 %v14799_v17, %v13581_v27  ;;  %v9068_v47 = vld [vmem:[#allocation4 + $0xd] ss:$16 sm:$0x30]  ;;  %v9042_v14 = vld [vmem:[#allocation4 + $0xc] ss:$16 sm:$0x30] }
 0xc55   : > { %13465 = vmatmul.msk.bf16.vlgmr.msrb.gmra.mxu0 %vm5638_vm0, %v19766_v12  ;;  %13538 = vmatmul.msk.bf16.vlgmr.msrb.gmra.mxu1 %vm5638_vm0, %v19895_v8  ;;  %v13580_v12 = vor.u32 %v14802_v50, %v13579_v57 }
 0xc56   : > { %13539 = vmatmul.msk.bf16.vlgmr.msrb.gmra.mxu2 %vm5638_vm0, %v19895_v8  ;;  %13540 = vmatmul.msk.bf16.vlgmr.msrb.gmra.mxu3 %vm5638_vm0, %v19895_v8 }
 0xc57   : > { %9171 = vmatpush.bf16.msrb.mxu0 %v13608_v42  ;;  %9184 = vmatpush.bf16.msrb.mxu1 %v13612_v25 }
 0xc58   : > { %9197 = vmatpush.bf16.msrb.mxu2 %v13616_v1  ;;  %9210 = vmatpush.bf16.msrb.mxu3 %v13620_v23  ;;  %v9069_v23 = vor.u32 %v9068_v47, %v9067_v0 }
 0xc59   : > { %v8020_v5 = vpop.f32.mrf.mxu2  ;;  %v8033_v38 = vpop.f32.mrf.mxu3 }
 0xc5a   : > { %v19945_v10 = vadd.f32 %v8020_v5, %v19810_v58  ;;  %v19948_v16 = vadd.f32 %v8033_v38, %v19837_v6  ;;  %v7996_v33 = vpop.f32.mrf.mxu0  ;;  %v8009_v63 = vpop.f32.mrf.mxu1  ;;  %v14808_v58 = vld [vmem:[%s21303_s11 + $0x5fc] sm:$0xf]  ;;  %v13625_v6 = vld [vmem:[%s21303_s11 + $0x614] sm:$0xf0]  ;;  %v13680_v38 = vld [vmem:[%s21303_s11 + $0x59c] sm:$0xf0] }
 0xc5b   : > { %9172 = vmatpush.bf16.msrb.mxu0 %v13580_v12  ;;  %9185 = vmatpush.bf16.msrb.mxu1 %v13584_v18  ;;  %v13628_v46 = vor.u32 %v14808_v58, %v13625_v6  ;;  %v9071_v12 = vor.u32 %v9070_v48, %v9069_v23  ;;  %v13678_v18 = vld [vmem:[%s21303_s11 + $0x580] sm:$0xf]  ;;  %v13686_v33 = vld [vmem:[%s21303_s11 + $0x588] sm:$0xf]  ;;  %v14797_v63 = vld [vmem:[%s21303_s11 + $0x5a0] sm:$0xf0] }
 0xc5c   : > { %9198 = vmatpush.bf16.msrb.mxu2 %v13588_v52  ;;  %9211 = vmatpush.bf16.msrb.mxu3 %v13592_v49  ;;  %v9039_v58 = vld [vmem:[#allocation4 + $0xc] ss:$16 sm:$0x3] }
 0xc5d   : > { %v20036_v5 = vpack.c.bf16 %v9071_v12, %v9071_v12  ;;  %v9040_v6 = vld [vmem:[#allocation4 + $0xc] ss:$16 sm:$0xc] }
 0xc61   : > { %v8022_v15 = vpop.f32.mrf.mxu2  ;;  %v8035_v31 = vpop.f32.mrf.mxu3 }
 0xc62   : > { %v8046_v4 = vpop.f32.mrf.mxu0  ;;  %v8167_v9 = vpop.f32.mrf.mxu1 }
 0xc63   : > { %v19975_v37 = vadd.f32 %v8046_v4, %v19840_v7  ;;  %v8249_v28 = vadd.f32 %v8167_v9, %v19875_v41  ;;  %v13597_v7 = vld [vmem:[%s21303_s11 + $0x5dc] sm:$0xf0]  ;;  %v13603_v41 = vld [vmem:[%s21303_s11 + $0x5c8] sm:$0xf]  ;;  %v13687_v9 = vor.u32 %v14797_v63, %v13686_v33  ;;  %v14816_v63 = vld [vmem:[%s21303_s11 + $0x638] sm:$0xf0] }
 0xc64   : > { %v13600_v42 = vor.u32 %v14801_v20, %v13597_v7  ;;  %v13604_v25 = vor.u32 %v14805_v19, %v13603_v41  ;;  %v13721_v33 = vld [vmem:[%s21303_s11 + $0x620] sm:$0xf] }
 0xc65   : > { %v19994_v60 = vadd.f32 %v8249_v28, %v19501_v3  ;;  %13541 = vmatmul.msk.bf16.vlgmr.msra.gmra.mxu0 %vm5638_vm0, %v19895_v8  ;;  %13542 = vmatmul.msk.bf16.vlgmr.msra.gmra.mxu1 %vm5638_vm0, %v19895_v8  ;;  %v14788_v3 = vld [vmem:[%s21303_s11 + $0x558] sm:$0xf0] }
 0xc66   : > { %13543 = vmatmul.msk.bf16.vlgmr.msra.gmra.mxu2 %vm5638_vm0, %v19895_v8  ;;  %13544 = vmatmul.msk.bf16.vlgmr.msra.gmra.mxu3 %vm5638_vm0, %v19895_v8  ;;  %v13643_v57 = vor.u32 %v14788_v3, %v13642_v44 }
 0xc67   : > { %9223 = vmatpush.bf16.msra.mxu0 %v13624_v21  ;;  %9236 = vmatpush.bf16.msra.mxu1 %v13628_v46  ;;  %v13652_v21 = vld [vmem:[%s21303_s11 + $0x564] sm:$0xf0]  ;;  %v13658_v46 = vld [vmem:[%s21303_s11 + $0x550] sm:$0xf] }
 0xc68   : > { %9249 = vmatpush.bf16.msra.mxu2 %v13632_v40  ;;  %9337 = vmatpush.bf16.msra.mxu3 %v13671_v29 }
 0xc69   : > { %v8180_v50 = vpop.f32.mrf.mxu2  ;;  %v8193_v1 = vpop.f32.mrf.mxu3 }
 0xc6a   : > { %v8250_v17 = vadd.f32 %v8180_v50, %v19878_v53  ;;  %v8251_v27 = vadd.f32 %v8193_v1, %v19907_v24  ;;  %v8048_v59 = vpop.f32.mrf.mxu0  ;;  %v8169_v51 = vpop.f32.mrf.mxu1  ;;  %v14792_v53 = vld [vmem:[%s21303_s11 + $0x57c] sm:$0xf]  ;;  %v13672_v24 = vld [vmem:[%s21303_s11 + $0x594] sm:$0xf0]  ;;  %v13694_v50 = vld [vmem:[%s21303_s11 + $0x590] sm:$0xf] }
 0xc6b   : > { %9224 = vmatpush.bf16.msra.mxu0 %v13596_v62  ;;  %9237 = vmatpush.bf16.msra.mxu1 %v13600_v42  ;;  %v13675_v31 = vor.u32 %v14792_v53, %v13672_v24  ;;  %v9044_v62 = vld [vmem:[#allocation4 + $0xc] ss:$16 sm:$0xc0]  ;;  %v13751_v59 = vld [vmem:[%s21303_s11 + $0x674] sm:$0xf0] }
 0xc6c   : > { %v20016_v8 = vadd.f32 %v8250_v17, %v19536_v34  ;;  %v20019_v2 = vadd.f32 %v8251_v27, %v19539_v39  ;;  %9250 = vmatpush.bf16.msra.mxu2 %v13604_v25  ;;  %9338 = vmatpush.bf16.msra.mxu3 %v13643_v57  ;;  %v14796_v34 = vld [vmem:[%s21303_s11 + $0x598] sm:$0xf0]  ;;  %v14793_v39 = vld [vmem:[%s21303_s11 + $0x584] sm:$0xf]  ;;  %v14823_v17 = vld [vmem:[%s21303_s11 + $0x670] sm:$0xf0] }
 0xc6d   : > { %v13679_v45 = vor.u32 %v14796_v34, %v13678_v18  ;;  %v13683_v4 = vor.u32 %v14793_v39, %v13680_v38  ;;  %v14820_v27 = vld [vmem:[%s21303_s11 + $0x65c] sm:$0xf]  ;;  %v14787_v18 = vld [vmem:[%s21303_s11 + $0x554] sm:$0xf]  ;;  %v13660_v34 = vld [vmem:[%s21303_s11 + $0x56c] sm:$0xf0] }
 0xc6e   : > { %v14791_v38 = vld [vmem:[%s21303_s11 + $0x570] sm:$0xf0] }
 0xc71   : > { %v8182_v52 = vpop.f32.mrf.mxu2  ;;  %v8195_v49 = vpop.f32.mrf.mxu3 }
 0xc72   : > { %v8206_v32 = vpop.f32.mrf.mxu0  ;;  %v8219_v22 = vpop.f32.mrf.mxu1  ;;  %v13754_v52 = vor.u32 %v14820_v27, %v13751_v59  ;;  %v13666_v49 = vld [vmem:[%s21303_s11 + $0x558] sm:$0xf] }
 0xc73   : > { %v8252_v13 = vadd.f32 %v8206_v32, %v19910_v54  ;;  %v8253_v15 = vadd.f32 %v8219_v22, %v19945_v10  ;;  %v14789_v54 = vld [vmem:[%s21303_s11 + $0x560] sm:$0xf0]  ;;  %v14786_v10 = vld [vmem:[%s21303_s11 + $0x54c] sm:$0xf]  ;;  %v13723_v22 = vld [vmem:[%s21303_s11 + $0x63c] sm:$0xf0] }
 0xc74   : > { %v13651_v40 = vor.u32 %v14789_v54, %v13650_v36  ;;  %v13655_v29 = vor.u32 %v14786_v10, %v13652_v21  ;;  %v14813_v32 = vld [vmem:[%s21303_s11 + $0x624] sm:$0xf]  ;;  %v13759_v36 = vld [vmem:[%s21303_s11 + $0x67c] sm:$0xf0]  ;;  %v13765_v54 = vld [vmem:[%s21303_s11 + $0x668] sm:$0xf] }
 0xc75   : > { %v20065_v11 = vadd.f32 %v8252_v13, %v19568_v61  ;;  %v20068_v28 = vadd.f32 %v8253_v15, %v19571_v30  ;;  %13633 = vmatmul.msk.bf16.vlgmr.msrb.gmra.mxu0 %vm5638_vm0, %v20036_v5  ;;  %13634 = vmatmul.msk.bf16.vlgmr.msrb.gmra.mxu1 %vm5638_vm0, %v20036_v5  ;;  %v14790_v61 = vld [vmem:[%s21303_s11 + $0x568] sm:$0xf0]  ;;  %v9041_v30 = vor.u32 %v9040_v6, %v9039_v58 }
 0xc76   : > { %13635 = vmatmul.msk.bf16.vlgmr.msrb.gmra.mxu2 %vm5638_vm0, %v20036_v5  ;;  %13636 = vmatmul.msk.bf16.vlgmr.msrb.gmra.mxu3 %vm5638_vm0, %v20036_v5  ;;  %v13659_v20 = vor.u32 %v14790_v61, %v13658_v46  ;;  %v13663_v58 = vor.u32 %v14787_v18, %v13660_v34  ;;  %v13667_v6 = vor.u32 %v14791_v38, %v13666_v49  ;;  %v14825_v46 = vld [vmem:[%s21303_s11 + $0x680] sm:$0xf0]  ;;  %v14822_v61 = vld [vmem:[%s21303_s11 + $0x66c] sm:$0xf]  ;;  %v13773_v49 = vld [vmem:[%s21303_s11 + $0x670] sm:$0xf] }
 0xc77   : > { %9350 = vmatpush.bf16.msrb.mxu0 %v13675_v31  ;;  %9363 = vmatpush.bf16.msrb.mxu1 %v13679_v45  ;;  %v9043_v47 = vor.u32 %v9042_v14, %v9041_v30  ;;  %v13722_v13 = vor.u32 %v14816_v63, %v13721_v33  ;;  %v13726_v15 = vor.u32 %v14813_v32, %v13723_v22  ;;  %v13767_v30 = vld [vmem:[%s21303_s11 + $0x684] sm:$0xf0]  ;;  %v14826_v38 = vld [vmem:[%s21303_s11 + $0x688] sm:$0xf0]  ;;  %v14837_v33 = vld [vmem:[%s21303_s11 + $0x6e0] sm:$0xf0] }
 0xc78   : > { %9376 = vmatpush.bf16.msrb.mxu2 %v13683_v4  ;;  %9389 = vmatpush.bf16.msrb.mxu3 %v13687_v9  ;;  %v14824_v4 = vld [vmem:[%s21303_s11 + $0x678] sm:$0xf0]  ;;  %v14821_v9 = vld [vmem:[%s21303_s11 + $0x664] sm:$0xf]  ;;  %v14834_v63 = vld [vmem:[%s21303_s11 + $0x6cc] sm:$0xf] }
 0xc79   : > { %v8232_v7 = vpop.f32.mrf.mxu2  ;;  %v8245_v41 = vpop.f32.mrf.mxu3  ;;  %v9045_v57 = vor.u32 %v9044_v62, %v9043_v47  ;;  %v13731_v47 = vld [vmem:[%s21303_s11 + $0x644] sm:$0xf0]  ;;  %v13737_v62 = vld [vmem:[%s21303_s11 + $0x630] sm:$0xf] }
 0xc7a   : > { %v8254_v0 = vadd.f32 %v8232_v7, %v19948_v16  ;;  %v8255_v19 = vadd.f32 %v8245_v41, %v19975_v37  ;;  %v8208_v44 = vpop.f32.mrf.mxu0  ;;  %v8221_v3 = vpop.f32.mrf.mxu1  ;;  %v14794_v16 = vld [vmem:[%s21303_s11 + $0x58c] sm:$0xf]  ;;  %v13688_v37 = vld [vmem:[%s21303_s11 + $0x5a4] sm:$0xf0]  ;;  %v13762_v7 = vor.u32 %v14821_v9, %v13759_v36  ;;  %v13774_v9 = vor.u32 %v14826_v38, %v13773_v49  ;;  %v14828_v38 = vld [vmem:[%s21303_s11 + $0x69c] sm:$0xf] }
 0xc7b   : > { %9351 = vmatpush.bf16.msrb.mxu0 %v13647_v43  ;;  %9364 = vmatpush.bf16.msrb.mxu1 %v13651_v40  ;;  %v20123_v12 = vpack.c.bf16 %v9045_v57, %v9045_v57  ;;  %v13691_v53 = vor.u32 %v14794_v16, %v13688_v37  ;;  %v9423_v40 = vld [vmem:[#allocation4 + $0xe] ss:$16 sm:$0x3]  ;;  %v13729_v41 = vld [vmem:[%s21303_s11 + $0x628] sm:$0xf]  ;;  %v13770_v44 = vor.u32 %v14822_v61, %v13767_v30 }
 0xc7c   : > { %v20090_v42 = vadd.f32 %v8254_v0, %v19606_v35  ;;  %v20093_v25 = vadd.f32 %v8255_v19, %v19609_v55  ;;  %9377 = vmatpush.bf16.msrb.mxu2 %v13655_v29  ;;  %9390 = vmatpush.bf16.msrb.mxu3 %v13659_v20  ;;  %v14798_v35 = vld [vmem:[%s21303_s11 + $0x5a8] sm:$0xf0]  ;;  %v13749_v55 = vld [vmem:[%s21303_s11 + $0x658] sm:$0xf]  ;;  %v14817_v0 = vld [vmem:[%s21303_s11 + $0x640] sm:$0xf0]  ;;  %v13766_v19 = vor.u32 %v14825_v46, %v13765_v54 }
 0xc7d   : > { %v13695_v24 = vor.u32 %v14798_v35, %v13694_v50  ;;  %v13750_v39 = vor.u32 %v14823_v17, %v13749_v55  ;;  %v9424_v29 = vld [vmem:[#allocation4 + $0xe] ss:$16 sm:$0xc]  ;;  %v14814_v3 = vld [vmem:[%s21303_s11 + $0x62c] sm:$0xf]  ;;  %v13730_v55 = vor.u32 %v14817_v0, %v13729_v41 }
 0xc7e   : > { %v14818_v57 = vld [vmem:[%s21303_s11 + $0x648] sm:$0xf0]  ;;  %v14815_v16 = vld [vmem:[%s21303_s11 + $0x634] sm:$0xf]  ;;  %v13739_v37 = vld [vmem:[%s21303_s11 + $0x64c] sm:$0xf0]  ;;  %v9425_v50 = vor.u32 %v9424_v29, %v9423_v40 }
 0xc7f   : > { %v9426_v35 = vld [vmem:[#allocation4 + $0xe] ss:$16 sm:$0x30]  ;;  %v13742_v17 = vor.u32 %v14815_v16, %v13739_v37  ;;  %v13745_v54 = vld [vmem:[%s21303_s11 + $0x638] sm:$0xf] }
 0xc80   : > { %v9427_v34 = vor.u32 %v9426_v35, %v9425_v50  ;;  %v14827_v61 = vld [vmem:[%s21303_s11 + $0x694] sm:$0xf]  ;;  %v13802_v30 = vld [vmem:[%s21303_s11 + $0x6ac] sm:$0xf0]  ;;  %v13808_v40 = vld [vmem:[%s21303_s11 + $0x698] sm:$0xf] }
 0xc81   : > { %v8234_v1 = vpop.f32.mrf.mxu2  ;;  %v8247_v23 = vpop.f32.mrf.mxu3  ;;  %v14831_v29 = vld [vmem:[%s21303_s11 + $0x6b0] sm:$0xf0]  ;;  %v13838_v16 = vld [vmem:[%s21303_s11 + $0x6ec] sm:$0xf0]  ;;  %v14836_v37 = vld [vmem:[%s21303_s11 + $0x6dc] sm:$0xf] }
 0xc82   : > { %v20119_v51 = vpop.f32.mrf.mxu0  ;;  %v20121_v48 = vpop.f32.mrf.mxu1  ;;  %v13734_v1 = vor.u32 %v14814_v3, %v13731_v47  ;;  %v13738_v23 = vor.u32 %v14818_v57, %v13737_v62  ;;  %v13809_v41 = vor.u32 %v14831_v29, %v13808_v40  ;;  %v14835_v57 = vld [vmem:[%s21303_s11 + $0x6d4] sm:$0xf] }
 0xc83   : > { %v9627_v40 = vld [vmem:[#allocation4 + $0xf] ss:$16 sm:$0xc0] }
 0xc85   : > { %13637 = vmatmul.msk.bf16.vlgmr.msra.gmra.mxu0 %vm5638_vm0, %v20036_v5  ;;  %13638 = vmatmul.msk.bf16.vlgmr.msra.gmra.mxu1 %vm5638_vm0, %v20036_v5 }
 0xc86   : > { %13639 = vmatmul.msk.bf16.vlgmr.msra.gmra.mxu2 %vm5638_vm0, %v20036_v5  ;;  %13696 = vmatmul.msk.bf16.vlgmr.msra.gmra.mxu3 %vm5638_vm0, %v20123_v12  ;;  %v13757_v5 = vld [vmem:[%s21303_s11 + $0x660] sm:$0xf] }
 0xc87   : > { %9402 = vmatpush.bf16.msra.mxu0 %v13691_v53  ;;  %9415 = vmatpush.bf16.msra.mxu1 %v13695_v24  ;;  %v13758_v20 = vor.u32 %v14824_v4, %v13757_v5 }
 0xc88   : > { %9529 = vmatpush.bf16.msra.mxu2 %v13750_v39  ;;  %9542 = vmatpush.bf16.msra.mxu3 %v13754_v52  ;;  %v9428_v39 = vld [vmem:[#allocation4 + $0xe] ss:$16 sm:$0xc0] }
 0xc89   : > { %v20157_v31 = vpop.f32.mrf.mxu2  ;;  %v20159_v45 = vpop.f32.mrf.mxu3  ;;  %v9429_v52 = vor.u32 %v9428_v39, %v9427_v34 }
 0xc8a   : > { %v8394_v56 = vpop.f32.mrf.mxu0  ;;  %v8407_v26 = vpop.f32.mrf.mxu1 }
 0xc8b   : > { %9403 = vmatpush.bf16.msra.mxu0 %v13663_v58  ;;  %9416 = vmatpush.bf16.msra.mxu1 %v13667_v6  ;;  %v13830_v58 = vld [vmem:[%s21303_s11 + $0x6e4] sm:$0xf0]  ;;  %v13836_v6 = vld [vmem:[%s21303_s11 + $0x6d0] sm:$0xf]  ;;  %v20250_v26 = vpack.c.bf16 %v9429_v52, %v9429_v52  ;;  %v13841_v52 = vor.u32 %v14835_v57, %v13838_v16  ;;  %v13901_v57 = vld [vmem:[%s21453_s28 + $0x5c] sm:$0xf0] }
 0xc8c   : > { %9530 = vmatpush.bf16.msra.mxu2 %v13722_v13  ;;  %9543 = vmatpush.bf16.msra.mxu3 %v13726_v15  ;;  %v14838_v13 = vld [vmem:[%s21303_s11 + $0x6e8] sm:$0xf0] }
 0xc8d   : > { %v13837_v46 = vor.u32 %v14838_v13, %v13836_v6  ;;  %v13824_v6 = vld [vmem:[%s21303_s11 + $0x6a8] sm:$0xf]  ;;  %v14833_v13 = vld [vmem:[%s21303_s11 + $0x6c0] sm:$0xf0] }
 0xc91   : > { %v8420_v10 = vpop.f32.mrf.mxu2  ;;  %v8433_v21 = vpop.f32.mrf.mxu3 }
 0xc92   : > { %v20185_v14 = vpop.f32.mrf.mxu0  ;;  %v20187_v43 = vpop.f32.mrf.mxu1  ;;  %v14819_v10 = vld [vmem:[%s21303_s11 + $0x650] sm:$0xf0]  ;;  %v13833_v21 = vor.u32 %v14834_v63, %v13830_v58  ;;  %v13818_v58 = vld [vmem:[%s21303_s11 + $0x6bc] sm:$0xf0] }
 0xc95   : > { %13697 = vmatmul.msk.bf16.vlgmr.msrb.gmra.mxu0 %vm5638_vm0, %v20123_v12  ;;  %13698 = vmatmul.msk.bf16.vlgmr.msrb.gmra.mxu1 %vm5638_vm0, %v20123_v12 }
 0xc96   : > { %13699 = vmatmul.msk.bf16.vlgmr.msrb.gmra.mxu2 %vm5638_vm0, %v20123_v12  ;;  %13700 = vmatmul.msk.bf16.vlgmr.msrb.gmra.mxu3 %vm5638_vm0, %v20123_v12 }
 0xc97   : > { %9555 = vmatpush.bf16.msrb.mxu0 %v13758_v20  ;;  %9568 = vmatpush.bf16.msrb.mxu1 %v13762_v7  ;;  %v13805_v7 = vor.u32 %v14827_v61, %v13802_v30 }
 0xc98   : > { %9581 = vmatpush.bf16.msrb.mxu2 %v13766_v19  ;;  %9594 = vmatpush.bf16.msrb.mxu3 %v13770_v44 }
 0xc99   : > { %v20221_v27 = vpop.f32.mrf.mxu2  ;;  %v8558_v59 = vpop.f32.mrf.mxu3 }
 0xc9a   : > { %v20224_v53 = vadd.f32 %v8558_v59, %v20119_v51  ;;  %v8446_v24 = vpop.f32.mrf.mxu0  ;;  %v8459_v18 = vpop.f32.mrf.mxu1  ;;  %v13828_v51 = vld [vmem:[%s21303_s11 + $0x6c8] sm:$0xf] }
 0xc9b   : > { %9556 = vmatpush.bf16.msrb.mxu0 %v13730_v55  ;;  %9569 = vmatpush.bf16.msrb.mxu1 %v13734_v1  ;;  %v13829_v36 = vor.u32 %v14837_v33, %v13828_v51  ;;  %v13846_v55 = vld [vmem:[%s21303_s11 + $0x6f4] sm:$0xf0]  ;;  %v13852_v1 = vld [vmem:[%s21303_s11 + $0x6e0] sm:$0xf] }
 0xc9c   : > { %9582 = vmatpush.bf16.msrb.mxu2 %v13738_v23  ;;  %9595 = vmatpush.bf16.msrb.mxu3 %v13742_v17  ;;  %v14840_v23 = vld [vmem:[%s21303_s11 + $0x6f8] sm:$0xf0]  ;;  %v9622_v24 = vld [vmem:[#allocation4 + $0xf] ss:$16 sm:$0x3]  ;;  %v13849_v33 = vor.u32 %v14836_v37, %v13846_v55 }
 0xc9d   : > { %v9623_v18 = vld [vmem:[#allocation4 + $0xf] ss:$16 sm:$0xc]  ;;  %v13810_v51 = vld [vmem:[%s21303_s11 + $0x6b4] sm:$0xf0]  ;;  %v13853_v63 = vor.u32 %v14840_v23, %v13852_v1 }
 0xc9e   : > { %v13863_v55 = vld [vmem:[%s21453_s28] sm:$0xf]  ;;  %v14844_v1 = vld [vmem:[%s21453_s28 + $0x18] sm:$0xf0] }
 0xca1   : > { %v8472_v32 = vpop.f32.mrf.mxu2  ;;  %v8560_v22 = vpop.f32.mrf.mxu3 }
 0xca2   : > { %v8571_v15 = vpop.f32.mrf.mxu0  ;;  %v8584_v56 = vpop.f32.mrf.mxu1  ;;  %v14829_v32 = vld [vmem:[%s21303_s11 + $0x6a4] sm:$0xf]  ;;  %v9624_v22 = vor.u32 %v9623_v18, %v9622_v24  ;;  %v14842_v18 = vld [vmem:[%s21453_s28 + $0xc] sm:$0xf] }
 0xca3   : > { %v20253_v5 = vadd.f32 %v8571_v15, %v20121_v48  ;;  %v20256_v4 = vadd.f32 %v8584_v56, %v20157_v31  ;;  %v13800_v48 = vld [vmem:[%s21303_s11 + $0x690] sm:$0xf]  ;;  %v14830_v31 = vld [vmem:[%s21303_s11 + $0x6a8] sm:$0xf0]  ;;  %v13813_v56 = vor.u32 %v14828_v38, %v13810_v51  ;;  %v14845_v24 = vld [vmem:[%s21453_s28 + $0x20] sm:$0xf0] }
 0xca4   : > { %v13801_v20 = vor.u32 %v14830_v31, %v13800_v48  ;;  %v9625_v15 = vld [vmem:[#allocation4 + $0xf] ss:$16 sm:$0x30] }
 0xca5   : > { %13701 = vmatmul.msk.bf16.vlgmr.msra.gmra.mxu0 %vm5638_vm0, %v20123_v12  ;;  %13702 = vmatmul.msk.bf16.vlgmr.msra.gmra.mxu1 %vm5638_vm0, %v20123_v12  ;;  %v13746_v12 = vor.u32 %v14819_v10, %v13745_v54  ;;  %v13825_v54 = vor.u32 %v14833_v13, %v13824_v6  ;;  %v14853_v6 = vld [vmem:[%s21453_s28 + $0x60] sm:$0xf0] }
 0xca6   : > { %13775 = vmatmul.msk.bf16.vlgmr.msra.gmra.mxu2 %vm5638_vm0, %v20250_v26  ;;  %13776 = vmatmul.msk.bf16.vlgmr.msra.gmra.mxu3 %vm5638_vm0, %v20250_v26 }
 0xca7   : > { %9607 = vmatpush.bf16.msra.mxu0 %v13774_v9  ;;  %9728 = vmatpush.bf16.msra.mxu1 %v13829_v36  ;;  %v13821_v36 = vor.u32 %v14829_v32, %v13818_v58  ;;  %v13907_v58 = vld [vmem:[%s21453_s28 + $0x48] sm:$0xf] }
 0xca8   : > { %9741 = vmatpush.bf16.msra.mxu2 %v13833_v21  ;;  %9754 = vmatpush.bf16.msra.mxu3 %v13837_v46  ;;  %v9626_v46 = vor.u32 %v9625_v15, %v9624_v22 }
 0xca9   : > { %v8597_v0 = vpop.f32.mrf.mxu2  ;;  %v8610_v19 = vpop.f32.mrf.mxu3 }
 0xcaa   : > { %v20291_v44 = vadd.f32 %v8597_v0, %v20159_v45  ;;  %v20294_v3 = vadd.f32 %v8610_v19, %v20185_v14  ;;  %v8573_v47 = vpop.f32.mrf.mxu0  ;;  %v8586_v62 = vpop.f32.mrf.mxu1  ;;  %v13844_v45 = vld [vmem:[%s21303_s11 + $0x6d8] sm:$0xf]  ;;  %v14839_v14 = vld [vmem:[%s21303_s11 + $0x6f0] sm:$0xf0]  ;;  %v9628_v29 = vor.u32 %v9627_v40, %v9626_v46  ;;  %v13908_v46 = vor.u32 %v14853_v6, %v13907_v58 }
 0xcab   : > { %9608 = vmatpush.bf16.msra.mxu0 %v13746_v12  ;;  %9729 = vmatpush.bf16.msra.mxu1 %v13801_v20  ;;  %v13845_v49 = vor.u32 %v14839_v14, %v13844_v45  ;;  %v13891_v12 = vld [vmem:[%s21453_s28 + $0x38] sm:$0xf]  ;;  %v14852_v47 = vld [vmem:[%s21453_s28 + $0x58] sm:$0xf0]  ;;  %v14849_v62 = vld [vmem:[%s21453_s28 + $0x44] sm:$0xf] }
 0xcac   : > { %9742 = vmatpush.bf16.msra.mxu2 %v13805_v7  ;;  %9755 = vmatpush.bf16.msra.mxu3 %v13809_v41  ;;  %v13893_v20 = vld [vmem:[%s21453_s28 + $0x54] sm:$0xf0]  ;;  %v13899_v7 = vld [vmem:[%s21453_s28 + $0x40] sm:$0xf]  ;;  %v20379_v19 = vpack.c.bf16 %v9628_v29, %v9628_v29  ;;  %v14846_v29 = vld [vmem:[%s21453_s28 + $0x28] sm:$0xf0] }
 0xcad   : > { %v13900_v23 = vor.u32 %v14852_v47, %v13899_v7 }
 0xcb1   : > { %v8599_v50 = vpop.f32.mrf.mxu2  ;;  %v8612_v35 = vpop.f32.mrf.mxu3 }
 0xcb2   : > { %v8623_v17 = vpop.f32.mrf.mxu0  ;;  %v8636_v59 = vpop.f32.mrf.mxu1 }
 0xcb3   : > { %v20321_v34 = vadd.f32 %v8623_v17, %v20187_v43  ;;  %v20324_v39 = vadd.f32 %v8636_v59, %v20221_v27  ;;  %v13816_v43 = vld [vmem:[%s21303_s11 + $0x6a0] sm:$0xf]  ;;  %v14832_v27 = vld [vmem:[%s21303_s11 + $0x6b8] sm:$0xf0]  ;;  %v13904_v17 = vor.u32 %v14849_v62, %v13901_v57  ;;  %v13871_v59 = vld [vmem:[%s21453_s28 + $0x8] sm:$0xf] }
 0xcb4   : > { %v13817_v9 = vor.u32 %v14832_v27, %v13816_v43  ;;  %v13872_v38 = vor.u32 %v14845_v24, %v13871_v59 }
 0xcb5   : > { %13777 = vmatmul.msk.bf16.vlgmr.msrb.gmra.mxu0 %vm5638_vm0, %v20250_v26  ;;  %13778 = vmatmul.msk.bf16.vlgmr.msrb.gmra.mxu1 %vm5638_vm0, %v20250_v26 }
 0xcb6   : > { %13779 = vmatmul.msk.bf16.vlgmr.msrb.gmra.mxu2 %vm5638_vm0, %v20250_v26  ;;  %13780 = vmatmul.msk.bf16.vlgmr.msrb.gmra.mxu3 %vm5638_vm0, %v20250_v26 }
 0xcb7   : > { %9767 = vmatpush.bf16.msrb.mxu0 %v13841_v52  ;;  %9780 = vmatpush.bf16.msrb.mxu1 %v13845_v49  ;;  %v13873_v52 = vld [vmem:[%s21453_s28 + $0x24] sm:$0xf0] }
 0xcb8   : > { %9793 = vmatpush.bf16.msrb.mxu2 %v13849_v33  ;;  %9806 = vmatpush.bf16.msrb.mxu3 %v13853_v63  ;;  %v13876_v51 = vor.u32 %v14842_v18, %v13873_v52 }
 0xcb9   : > { %v8750_v10 = vpop.f32.mrf.mxu2  ;;  %v8763_v21 = vpop.f32.mrf.mxu3 }
 0xcba   : > { %v20359_v48 = vadd.f32 %v8750_v10, %v20224_v53  ;;  %v20362_v31 = vadd.f32 %v8763_v21, %v20253_v5  ;;  %v8625_v61 = vpop.f32.mrf.mxu0  ;;  %v8638_v30 = vpop.f32.mrf.mxu1  ;;  %v14851_v53 = vld [vmem:[%s21453_s28 + $0x50] sm:$0xf0]  ;;  %v14848_v5 = vld [vmem:[%s21453_s28 + $0x3c] sm:$0xf] }
 0xcbb   : > { %9768 = vmatpush.bf16.msrb.mxu0 %v13813_v56  ;;  %9781 = vmatpush.bf16.msrb.mxu1 %v13817_v9  ;;  %v13892_v50 = vor.u32 %v14851_v53, %v13891_v12  ;;  %v13896_v35 = vor.u32 %v14848_v5, %v13893_v20  ;;  %v13915_v56 = vld [vmem:[%s21453_s28 + $0x50] sm:$0xf]  ;;  %v14854_v9 = vld [vmem:[%s21453_s28 + $0x68] sm:$0xf0]  ;;  %v14843_v12 = vld [vmem:[%s21453_s28 + $0x14] sm:$0xf] }
 0xcbc   : > { %9794 = vmatpush.bf16.msrb.mxu2 %v13821_v36  ;;  %9807 = vmatpush.bf16.msrb.mxu3 %v13825_v54  ;;  %v13879_v30 = vld [vmem:[%s21453_s28 + $0x10] sm:$0xf]  ;;  %v13916_v40 = vor.u32 %v14854_v9, %v13915_v56  ;;  %v14847_v53 = vld [vmem:[%s21453_s28 + $0x30] sm:$0xf0] }
 0xcbd   : > { %v13880_v5 = vor.u32 %v14846_v29, %v13879_v30 }
 0xcc1   : > { %v8752_v41 = vpop.f32.mrf.mxu2  ;;  %v8765_v0 = vpop.f32.mrf.mxu3 }
 0xcc2   : > { %v8776_v16 = vpop.f32.mrf.mxu0  ;;  %v8789_v45 = vpop.f32.mrf.mxu1 }
 0xcc3   : > { %v20391_v14 = vadd.f32 %v8776_v16, %v20256_v4  ;;  %v20394_v37 = vadd.f32 %v8789_v45, %v20291_v44  ;;  %v14841_v4 = vld [vmem:[%s21453_s28 + $0x4] sm:$0xf]  ;;  %v13865_v44 = vld [vmem:[%s21453_s28 + $0x1c] sm:$0xf0] }
 0xcc4   : > { %v13868_v49 = vor.u32 %v14841_v4, %v13865_v44 }
 0xcc5   : > { %13781 = vmatmul.msk.bf16.vlgmr.msra.gmra.mxu0 %vm5638_vm0, %v20250_v26  ;;  %13854 = vmatmul.msk.bf16.vlgmr.msra.gmra.mxu1 %vm5638_vm0, %v20379_v19  ;;  %v13864_v26 = vor.u32 %v14844_v1, %v13863_v55  ;;  %v9841_v55 = vld [vmem:[%s15270_s29] sm:$0xf]  ;;  %s21456_s29 = sld [smem:[#allocation43_spill]] }
 0xcc6   : > { %13855 = vmatmul.msk.bf16.vlgmr.msra.gmra.mxu2 %vm5638_vm0, %v20379_v19  ;;  %13856 = vmatmul.msk.bf16.vlgmr.msra.gmra.mxu3 %vm5638_vm0, %v20379_v19 }
 0xcc7   : > { %9939 = vmatpush.bf16.msra.mxu0 %v13892_v50  ;;  %9952 = vmatpush.bf16.msra.mxu1 %v13896_v35 }
 0xcc8   : > { %9965 = vmatpush.bf16.msra.mxu2 %v13900_v23  ;;  %9978 = vmatpush.bf16.msra.mxu3 %v13904_v17 }
 0xcc9   : > { %v8802_v33 = vpop.f32.mrf.mxu2  ;;  %v8815_v63 = vpop.f32.mrf.mxu3 }
 0xcca   : > { %v8836_v43 = vadd.f32 %v8802_v33, %v20294_v3  ;;  %v8837_v27 = vadd.f32 %v8815_v63, %v20321_v34  ;;  %v8778_v32 = vpop.f32.mrf.mxu0  ;;  %v8791_v22 = vpop.f32.mrf.mxu1  ;;  %v14850_v3 = vld [vmem:[%s21453_s28 + $0x4c] sm:$0xf]  ;;  %v13909_v34 = vld [vmem:[%s21453_s28 + $0x64] sm:$0xf0] }
 0xccb   : > { %9940 = vmatpush.bf16.msra.mxu0 %v13864_v26  ;;  %9953 = vmatpush.bf16.msra.mxu1 %v13868_v49  ;;  %v13912_v61 = vor.u32 %v14850_v3, %v13909_v34 }
 0xccc   : > { %9966 = vmatpush.bf16.msra.mxu2 %v13872_v38  ;;  %9979 = vmatpush.bf16.msra.mxu3 %v13876_v51 }
 0xcd1   : > { %v8804_v13 = vpop.f32.mrf.mxu2  ;;  %v8817_v15 = vpop.f32.mrf.mxu3 }
 0xcd2   : > { %v8828_v36 = vpop.f32.mrf.mxu0  ;;  %v8949_v54 = vpop.f32.mrf.mxu1 }
 0xcd3   : > { %v8838_v10 = vadd.f32 %v8828_v36, %v20324_v39  ;;  %v20450_v21 = vadd.f32 %v8949_v54, %v20359_v48  ;;  %v13881_v39 = vld [vmem:[%s21453_s28 + $0x2c] sm:$0xf0]  ;;  %v13887_v48 = vld [vmem:[%s21453_s28 + $0x18] sm:$0xf] }
 0xcd4   : > { %v13884_v20 = vor.u32 %v14843_v12, %v13881_v39  ;;  %v13888_v7 = vor.u32 %v14847_v53, %v13887_v48 }
 0xcd5   : > { %13857 = vmatmul.msk.bf16.vlgmr.msrb.gmra.mxu0 %vm5638_vm0, %v20379_v19  ;;  %13858 = vmatmul.msk.bf16.vlgmr.msrb.gmra.mxu1 %vm5638_vm0, %v20379_v19 }
 0xcd6   : > { %13859 = vmatmul.msk.bf16.vlgmr.msrb.gmra.mxu2 %vm5638_vm0, %v20379_v19  ;;  %13860 = vmatmul.msk.bf16.vlgmr.msrb.gmra.mxu3 %vm5638_vm0, %v20379_v19 }
 0xcd7   : > { %9991 = vmatpush.bf16.msrb.mxu0 %v13908_v46  ;;  %10004 = vmatpush.bf16.msrb.mxu1 %v13912_v61 }
 0xcd8   : > { %10017 = vmatpush.bf16.msrb.mxu2 %v13916_v40 }
 0xcd9   : > { %v8962_v41 = vpop.f32.mrf.mxu2  ;;  %v8975_v0 = vpop.f32.mrf.mxu3 }
 0xcda   : > { %v20479_v47 = vadd.f32 %v8962_v41, %v20362_v31  ;;  %v20482_v62 = vadd.f32 %v8975_v0, %v20391_v14  ;;  %v8830_v57 = vpop.f32.mrf.mxu0  ;;  %v8951_v16 = vpop.f32.mrf.mxu1  ;;  %v13982_v41 = vld [vmem:[%s21454_s25 + $0x70] sm:$0xf]  ;;  %v14870_v0 = vld [vmem:[%s21454_s25 + $0x74] sm:$0xf0] }
 0xcdb   : > { %9992 = vmatpush.bf16.msrb.mxu0 %v13880_v5  ;;  %10005 = vmatpush.bf16.msrb.mxu1 %v13884_v20  ;;  %v14046_v57 = vld [vmem:[%s21454_s25 + $0xf0] sm:$0xf] }
 0xcdc   : > { %10018 = vmatpush.bf16.msrb.mxu2 %v13888_v7 }
 0xce1   : > { %v8964_v19 = vpop.f32.mrf.mxu2  ;;  %v8977_v45 = vpop.f32.mrf.mxu3 }
 0xce2   : > { %v8988_v50 = vpop.f32.mrf.mxu0  ;;  %v9001_v35 = vpop.f32.mrf.mxu1  ;;  %v13983_v45 = vor.u32 %v14870_v0, %v13982_v41  ;;  %v13950_v41 = vld [vmem:[%s21454_s25 + $0x30] sm:$0xf]  ;;  %v14862_v0 = vld [vmem:[%s21454_s25 + $0x34] sm:$0xf0] }
 0xce3   : > { %v20486_v1 = vadd.f32 %v8988_v50, %v20394_v37  ;;  %v20488_v23 = vadd.f32 %v9001_v35, %v8836_v43  ;;  %v14886_v50 = vld [vmem:[%s21454_s25 + $0xf4] sm:$0xf0] }
 0xce4   : > { %v14047_v35 = vor.u32 %v14886_v50, %v14046_v57  ;;  %10775 = vmatpush.bf16.msrb.mxu3 %v13983_v45  ;;  %v14014_v57 = vld [vmem:[%s21454_s25 + $0xb0] sm:$0xf]  ;;  %v13951_v45 = vor.u32 %v14862_v0, %v13950_v41  ;;  %v14878_v50 = vld [vmem:[%s21454_s25 + $0xb4] sm:$0xf0]  ;;  %v14872_v0 = vld [vmem:[%s21454_s25 + $0x84] sm:$0xf0] }
 0xce5   : > { %13917 = vmatmul.msk.bf16.vlgmr.msra.gmra.mxu0 %vm5638_vm0, %v9841_v55  ;;  %13918 = vmatmul.msk.bf16.vlgmr.msra.gmra.mxu1 %vm5638_vm0, %v9841_v55 }
 0xce6   : > { %13919 = vmatmul.msk.bf16.vlgmr.msra.gmra.mxu2 %vm5638_vm0, %v9841_v55  ;;  %13920 = vmatmul.msk.bf16.vlgmr.msra.gmra.mxu3 %vm5638_vm0, %v9841_v55 }
 0xce7   : > { %10788 = vmatpush.bf16.msra.mxu0 %v14047_v35  ;;  %v14015_v35 = vor.u32 %v14878_v50, %v14014_v57 }
 0xce9   : > { %v9014_v31 = vpop.f32.mrf.mxu2  ;;  %v9027_v14 = vpop.f32.mrf.mxu3 }
 0xcea   : > { %v20494_v17 = vadd.f32 %v9014_v31, %v8837_v27  ;;  %v20496_v4 = vadd.f32 %v9027_v14, %v8838_v10  ;;  %v8990_v44 = vpop.f32.mrf.mxu0  ;;  %v9003_v59 = vpop.f32.mrf.mxu1  ;;  %v14868_v31 = vld [vmem:[%s21454_s25 + $0x64] sm:$0xf0]  ;;  %v14038_v14 = vld [vmem:[%s21454_s25 + $0xe0] sm:$0xf] }
 0xceb   : > { %v14884_v59 = vld [vmem:[%s21454_s25 + $0xe4] sm:$0xf0] }
 0xcf1   : > { %v9016_v37 = vpop.f32.mrf.mxu2  ;;  %v9029_v24 = vpop.f32.mrf.mxu3 }
 0xcf2   : > { %v9174_v18 = vpop.f32.mrf.mxu0  ;;  %v9187_v52 = vpop.f32.mrf.mxu1  ;;  %v14039_v37 = vor.u32 %v14884_v59, %v14038_v14  ;;  %v14174_v24 = vld [vmem:[%s21454_s25 + $0x1f0] sm:$0xf]  ;;  %v14860_v59 = vld [vmem:[%s21454_s25 + $0x24] sm:$0xf0] }
 0xcf4   : > { %10789 = vmatpush.bf16.msra.mxu0 %v14039_v37  ;;  %v14006_v37 = vld [vmem:[%s21454_s25 + $0xa0] sm:$0xf] }
 0xcf5   : > { %13921 = vmatmul.msk.bf16.vlgmr.msrb.gmra.mxu0 %vm5638_vm0, %v9841_v55  ;;  %13922 = vmatmul.msk.bf16.vlgmr.msrb.gmra.mxu1 %vm5638_vm0, %v9841_v55 }
 0xcf6   : > { %13923 = vmatmul.msk.bf16.vlgmr.msrb.gmra.mxu2 %vm5638_vm0, %v9841_v55  ;;  %v13974_v55 = vld [vmem:[%s21454_s25 + $0x60] sm:$0xf] }
 0xcf7   : > { %v13975_v44 = vor.u32 %v14868_v31, %v13974_v55  ;;  %v14150_v55 = vld [vmem:[%s21454_s25 + $0x1c0] sm:$0xf]  ;;  %v14912_v31 = vld [vmem:[%s21454_s25 + $0x1c4] sm:$0xf0] }
 0xcf8   : > { %v14151_v14 = vor.u32 %v14912_v31, %v14150_v55  ;;  %v14934_v55 = vld [vmem:[%s21454_s25 + $0x274] sm:$0xf0]  ;;  %v14302_v31 = vld [vmem:[%s21454_s25 + $0x2f0] sm:$0xf] }
 0xcf9   : > { %v9200_v26 = vpop.f32.mrf.mxu2  ;;  %v9213_v49 = vpop.f32.mrf.mxu3  ;;  %10776 = vmatpush.bf16.msrb.mxu3 %v13975_v44  ;;  %v13942_v44 = vld [vmem:[%s21454_s25 + $0x20] sm:$0xf] }
 0xcfa   : > { %v9176_v38 = vpop.f32.mrf.mxu0  ;;  %v9189_v51 = vpop.f32.mrf.mxu1 }
 0xcfb   : > { %v13966_v38 = vld [vmem:[%s21454_s25 + $0x50] sm:$0xf]  ;;  %v14866_v51 = vld [vmem:[%s21454_s25 + $0x54] sm:$0xf0] }
 0xd01   : > { %v9202_v33 = vpop.f32.mrf.mxu2  ;;  %v9215_v63 = vpop.f32.mrf.mxu3 }
 0xd02   : > { %v9226_v43 = vpop.f32.mrf.mxu0  ;;  %v9239_v27 = vpop.f32.mrf.mxu1  ;;  %v14030_v33 = vld [vmem:[%s21454_s25 + $0xd0] sm:$0xf] }
 0xd09   : > { %v9252_v32 = vpop.f32.mrf.mxu2  ;;  %v9340_v22 = vpop.f32.mrf.mxu3 }
 0xd0a   : > { %v20501_v58 = vadd.f32 %v9340_v22, %v9174_v18  ;;  %v9228_v6 = vpop.f32.mrf.mxu0  ;;  %v9241_v3 = vpop.f32.mrf.mxu1  ;;  %v14918_v18 = vld [vmem:[%s21454_s25 + $0x1f4] sm:$0xf0] }
 0xd0b   : > { %v14166_v6 = vld [vmem:[%s21454_s25 + $0x1e0] sm:$0xf]  ;;  %v14916_v3 = vld [vmem:[%s21454_s25 + $0x1e4] sm:$0xf0] }
 0xd11   : > { %v9254_v34 = vpop.f32.mrf.mxu2  ;;  %v9342_v13 = vpop.f32.mrf.mxu3 }
 0xd12   : > { %v9353_v15 = vpop.f32.mrf.mxu0  ;;  %v9366_v56 = vpop.f32.mrf.mxu1  ;;  %v14167_v34 = vor.u32 %v14916_v3, %v14166_v6  ;;  %v13958_v13 = vld [vmem:[%s21454_s25 + $0x40] sm:$0xf]  ;;  %v13998_v6 = vld [vmem:[%s21454_s25 + $0x90] sm:$0xf] }
 0xd13   : > { %v20503_v9 = vadd.f32 %v9353_v15, %v9187_v52  ;;  %v20505_v36 = vadd.f32 %v9366_v56, %v9200_v26  ;;  %v14175_v52 = vor.u32 %v14918_v18, %v14174_v24  ;;  %v14864_v15 = vld [vmem:[%s21454_s25 + $0x44] sm:$0xf0]  ;;  %v14022_v56 = vld [vmem:[%s21454_s25 + $0xc0] sm:$0xf]  ;;  %v13943_v24 = vor.u32 %v14860_v59, %v13942_v44 }
 0xd14   : > { %v14876_v18 = vld [vmem:[%s21454_s25 + $0xa4] sm:$0xf0] }
 0xd15   : > { %10814 = vmatpush.bf16.msra.mxu2 %v14175_v52  ;;  %v14007_v52 = vor.u32 %v14876_v18, %v14006_v37 }
 0xd19   : > { %v9379_v54 = vpop.f32.mrf.mxu2  ;;  %v9392_v10 = vpop.f32.mrf.mxu3  ;;  %10815 = vmatpush.bf16.msra.mxu2 %v14167_v34 }
 0xd1a   : > { %v20507_v46 = vadd.f32 %v9379_v54, %v9213_v49  ;;  %v20509_v61 = vadd.f32 %v9392_v10, %v9226_v43  ;;  %v9355_v30 = vpop.f32.mrf.mxu0  ;;  %v9368_v40 = vpop.f32.mrf.mxu1  ;;  %v13959_v54 = vor.u32 %v14864_v15, %v13958_v13  ;;  %v14880_v10 = vld [vmem:[%s21454_s25 + $0xc4] sm:$0xf0] }
 0xd1b   : > { %v14023_v30 = vor.u32 %v14880_v10, %v14022_v56  ;;  %v14158_v40 = vld [vmem:[%s21454_s25 + $0x1d0] sm:$0xf]  ;;  %v14134_v56 = vld [vmem:[%s21454_s25 + $0x1a0] sm:$0xf] }
 0xd21   : > { %v9381_v29 = vpop.f32.mrf.mxu2  ;;  %v9394_v12 = vpop.f32.mrf.mxu3 }
 0xd22   : > { %v9405_v39 = vpop.f32.mrf.mxu0  ;;  %v9418_v48 = vpop.f32.mrf.mxu1  ;;  %v14914_v29 = vld [vmem:[%s21454_s25 + $0x1d4] sm:$0xf0] }
 0xd23   : > { %v20511_v53 = vadd.f32 %v9405_v39, %v9239_v27  ;;  %v20513_v5 = vadd.f32 %v9418_v48, %v9252_v32  ;;  %v13967_v27 = vor.u32 %v14866_v51, %v13966_v38  ;;  %v14882_v32 = vld [vmem:[%s21454_s25 + $0xd4] sm:$0xf0]  ;;  %v14159_v12 = vor.u32 %v14914_v29, %v14158_v40  ;;  %v13926_v40 = vld [vmem:[%s21454_s25] sm:$0xf]  ;;  %v14856_v29 = vld [vmem:[%s21454_s25 + $0x4] sm:$0xf0] }
 0xd24   : > { %v14031_v22 = vor.u32 %v14882_v32, %v14030_v33  ;;  %v13934_v32 = vld [vmem:[%s21454_s25 + $0x10] sm:$0xf]  ;;  %v13927_v41 = vor.u32 %v14856_v29, %v13926_v40 }
 0xd25   : > { %10777 = vmatpush.bf16.msrb.mxu3 %v13967_v27  ;;  %10816 = vmatpush.bf16.msra.mxu2 %v14159_v12  ;;  %v13990_v12 = vld [vmem:[%s21454_s25 + $0x80] sm:$0xf]  ;;  %v14094_v40 = vld [vmem:[%s21454_s25 + $0x150] sm:$0xf] }
 0xd26   : > { %10790 = vmatpush.bf16.msra.mxu0 %v14031_v22  ;;  %v14858_v22 = vld [vmem:[%s21454_s25 + $0x14] sm:$0xf0]  ;;  %v13991_v57 = vor.u32 %v14872_v0, %v13990_v12 }
 0xd27   : > { %v14930_v12 = vld [vmem:[%s21454_s25 + $0x254] sm:$0xf0] }
 0xd28   : > { %v14946_v0 = vld [vmem:[%s21454_s25 + $0x2d4] sm:$0xf0] }
 0xd29   : > { %v20515_v20 = vpop.f32.mrf.mxu2  ;;  %v20517_v7 = vpop.f32.mrf.mxu3  ;;  %10778 = vmatpush.bf16.msrb.mxu3 %v13959_v54  ;;  %10817 = vmatpush.bf16.msra.mxu2 %v14151_v14  ;;  %v14908_v54 = vld [vmem:[%s21454_s25 + $0x1a4] sm:$0xf0]  ;;  %v14950_v14 = vld [vmem:[%s21454_s25 + $0x2f4] sm:$0xf0] }
 0xd2a   : > { %v9407_v16 = vpop.f32.mrf.mxu0  ;;  %v9420_v19 = vpop.f32.mrf.mxu1  ;;  %10791 = vmatpush.bf16.msra.mxu0 %v14023_v30  ;;  %v9614_v51 = vadd.f32 %v20515_v20, %v20501_v58  ;;  %v13935_v58 = vor.u32 %v14858_v22, %v13934_v32  ;;  %v14874_v20 = vld [vmem:[%s21454_s25 + $0x94] sm:$0xf0]  ;;  %v14135_v10 = vor.u32 %v14908_v54, %v14134_v56  ;;  %v9615_v50 = vadd.f32 %v20517_v7, %v20503_v9  ;;  %v14932_v22 = vld [vmem:[%s21454_s25 + $0x264] sm:$0xf0] }
 0xd2b   : > { %v13999_v15 = vor.u32 %v14874_v20, %v13998_v6  ;;  %v14303_v7 = vor.u32 %v14950_v14, %v14302_v31  ;;  %v14294_v6 = vld [vmem:[%s21454_s25 + $0x2e0] sm:$0xf] }
 0xd2d   : > { %10779 = vmatpush.bf16.msrb.mxu3 %v13951_v45  ;;  %v14238_v45 = vld [vmem:[%s21454_s25 + $0x270] sm:$0xf] }
 0xd2e   : > { %10792 = vmatpush.bf16.msra.mxu0 %v14015_v35  ;;  %v14239_v9 = vor.u32 %v14934_v55, %v14238_v45 }
 0xd31   : > { %v9534_v26 = vpop.f32.mrf.mxu2  ;;  %v9547_v49 = vpop.f32.mrf.mxu3  ;;  %10780 = vmatpush.bf16.msrb.mxu3 %v13943_v24 }
 0xd32   : > { %v20558_v63 = vpop.f32.mrf.mxu0  ;;  %v20560_v43 = vpop.f32.mrf.mxu1  ;;  %v14142_v26 = vld [vmem:[%s21454_s25 + $0x1b0] sm:$0xf]  ;;  %v14910_v49 = vld [vmem:[%s21454_s25 + $0x1b4] sm:$0xf0]  ;;  %10793 = vmatpush.bf16.msra.mxu0 %v14007_v52 }
 0xd33   : > { %v14143_v38 = vor.u32 %v14910_v49, %v14142_v26  ;;  %v14102_v49 = vld [vmem:[%s21454_s25 + $0x160] sm:$0xf] }
 0xd35   : > { %10818 = vmatpush.bf16.msra.mxu2 %v14143_v38  ;;  %10781 = vmatpush.bf16.msrb.mxu3 %v13935_v58  ;;  %v14900_v38 = vld [vmem:[%s21454_s25 + $0x164] sm:$0xf0] }
 0xd36   : > { %10794 = vmatpush.bf16.msra.mxu0 %v13999_v15  ;;  %v14103_v32 = vor.u32 %v14900_v38, %v14102_v49  ;;  %v13968_v49 = vld [vmem:[%s21454_s25 + $0x58] sm:$0xf0] }
 0xd39   : > { %v20589_v39 = vpop.f32.mrf.mxu2  ;;  %v20591_v48 = vpop.f32.mrf.mxu3  ;;  %10819 = vmatpush.bf16.msra.mxu2 %v14135_v10  ;;  %10782 = vmatpush.bf16.msrb.mxu3 %v13927_v41  ;;  %v13984_v10 = vld [vmem:[%s21454_s25 + $0x78] sm:$0xf0]  ;;  %v14286_v41 = vld [vmem:[%s21454_s25 + $0x2d0] sm:$0xf] }
 0xd3a   : > { %v9560_v16 = vpop.f32.mrf.mxu0  ;;  %v9573_v19 = vpop.f32.mrf.mxu1  ;;  %10795 = vmatpush.bf16.msra.mxu0 %v13991_v57  ;;  %v9617_v57 = vadd.f32 %v20560_v43, %v20507_v46  ;;  %v14867_v46 = vld [vmem:[%s21454_s25 + $0x64] sm:$0xf] }
 0xd3b   : > { %v14110_v16 = vld [vmem:[%s21454_s25 + $0x170] sm:$0xf]  ;;  %v14902_v19 = vld [vmem:[%s21454_s25 + $0x174] sm:$0xf0] }
 0xd3c   : > { %v14111_v35 = vor.u32 %v14902_v19, %v14110_v16  ;;  %v9618_v16 = vadd.f32 %v20589_v39, %v20509_v61  ;;  %v13976_v61 = vld [vmem:[%s21454_s25 + $0x68] sm:$0xf0] }
 0xd3d   : > { %10827 = vmatpush.bf16.msra.mxu3 %v14239_v9  ;;  %v14896_v9 = vld [vmem:[%s21454_s25 + $0x144] sm:$0xf0] }
 0xd3e   : > { %10801 = vmatpush.bf16.msra.mxu1 %v14111_v35  ;;  %10840 = vmatpush.bf16.msrb.mxu0 %v14303_v7  ;;  %v14214_v7 = vld [vmem:[%s21454_s25 + $0x240] sm:$0xf] }
 0xd41   : > { %v9586_v33 = vpop.f32.mrf.mxu2  ;;  %v9599_v27 = vpop.f32.mrf.mxu3 }
 0xd42   : > { %v20640_v3 = vpop.f32.mrf.mxu0  ;;  %v9731_v34 = vpop.f32.mrf.mxu1  ;;  %10802 = vmatpush.bf16.msra.mxu1 %v14103_v32 }
 0xd43   : > { %v9813_v13 = vadd.f32 %v9731_v34, %v9614_v51  ;;  %v14230_v51 = vld [vmem:[%s21454_s25 + $0x260] sm:$0xf]  ;;  %v14948_v34 = vld [vmem:[%s21454_s25 + $0x2e4] sm:$0xf0] }
 0xd44   : > { %v14231_v58 = vor.u32 %v14932_v22, %v14230_v51  ;;  %v14295_v20 = vor.u32 %v14948_v34, %v14294_v6  ;;  %v14078_v6 = vld [vmem:[%s21454_s25 + $0x130] sm:$0xf]  ;;  %v14894_v34 = vld [vmem:[%s21454_s25 + $0x134] sm:$0xf0] }
 0xd45   : > { %v9827_v30 = vadd.f32 %v9813_v13, %v20450_v21  ;;  %v14869_v13 = vld [vmem:[%s21454_s25 + $0x74] sm:$0xf] }
 0xd46   : > { %10828 = vmatpush.bf16.msra.mxu3 %v14231_v58  ;;  %10841 = vmatpush.bf16.msrb.mxu0 %v14295_v20  ;;  %v14206_v58 = vld [vmem:[%s21454_s25 + $0x230] sm:$0xf]  ;;  %v14079_v20 = vor.u32 %v14894_v34, %v14078_v6  ;;  %v14920_v6 = vld [vmem:[%s21454_s25 + $0x204] sm:$0xf0]  ;;  %v14246_v34 = vld [vmem:[%s21454_s25 + $0x280] sm:$0xf] }
 0xd47   : > { %v20665_v21 = vadd.f32 %v9827_v30, %v19994_v60  ;;  %v9616_v60 = vadd.f32 %v20558_v63, %v20505_v36  ;;  %v14126_v36 = vld [vmem:[%s21454_s25 + $0x190] sm:$0xf]  ;;  %v14906_v63 = vld [vmem:[%s21454_s25 + $0x194] sm:$0xf0]  ;;  %v13987_v30 = vor.u32 %v14869_v13, %v13984_v10  ;;  %v14863_v10 = vld [vmem:[%s21454_s25 + $0x44] sm:$0xf] }
 0xd48   : > { %v14127_v26 = vor.u32 %v14906_v63, %v14126_v36  ;;  %v14928_v63 = vld [vmem:[%s21454_s25 + $0x244] sm:$0xf0] }
 0xd49   : > { %v9744_v44 = vpop.f32.mrf.mxu2  ;;  %v9757_v59 = vpop.f32.mrf.mxu3 }
 0xd4a   : > { %v9814_v37 = vadd.f32 %v9744_v44, %v9615_v50  ;;  %v9815_v24 = vadd.f32 %v9757_v59, %v9616_v60  ;;  %v9612_v18 = vpop.f32.mrf.mxu0  ;;  %v9733_v52 = vpop.f32.mrf.mxu1  ;;  %10820 = vmatpush.bf16.msra.mxu2 %v14127_v26  ;;  %v14287_v60 = vor.u32 %v14946_v0, %v14286_v41  ;;  %v13979_v44 = vor.u32 %v14867_v46, %v13976_v61  ;;  %v14086_v59 = vld [vmem:[%s21454_s25 + $0x140] sm:$0xf]  ;;  %v14865_v26 = vld [vmem:[%s21454_s25 + $0x54] sm:$0xf] }
 0xd4b   : > { %v14215_v18 = vor.u32 %v14928_v63, %v14214_v7  ;;  %v14922_v7 = vld [vmem:[%s21454_s25 + $0x214] sm:$0xf0] }
 0xd4c   : > { %v9828_v33 = vadd.f32 %v9814_v37, %v20479_v47  ;;  %v9829_v27 = vadd.f32 %v9815_v24, %v20482_v62  ;;  %v14118_v47 = vld [vmem:[%s21454_s25 + $0x180] sm:$0xf]  ;;  %v14904_v62 = vld [vmem:[%s21454_s25 + $0x184] sm:$0xf0]  ;;  %10842 = vmatpush.bf16.msrb.mxu0 %v14287_v60  ;;  %v14938_v63 = vld [vmem:[%s21454_s25 + $0x294] sm:$0xf0] }
 0xd4d   : > { %v14119_v54 = vor.u32 %v14904_v62, %v14118_v47  ;;  %v14278_v37 = vld [vmem:[%s21454_s25 + $0x2c0] sm:$0xf]  ;;  %v14944_v24 = vld [vmem:[%s21454_s25 + $0x2c4] sm:$0xf0]  ;;  %v14942_v47 = vld [vmem:[%s21454_s25 + $0x2b4] sm:$0xf0] }
 0xd4e   : > { %v20725_v15 = vadd.f32 %v9828_v33, %v20016_v8  ;;  %v20728_v56 = vadd.f32 %v9829_v27, %v20019_v2  ;;  %v14898_v8 = vld [vmem:[%s21454_s25 + $0x154] sm:$0xf0]  ;;  %v14222_v2 = vld [vmem:[%s21454_s25 + $0x250] sm:$0xf]  ;;  %v14279_v52 = vor.u32 %v14944_v24, %v14278_v37  ;;  %v13971_v33 = vor.u32 %v14865_v26, %v13968_v49 }
 0xd4f   : > { %v14095_v29 = vor.u32 %v14898_v8, %v14094_v40  ;;  %10821 = vmatpush.bf16.msra.mxu2 %v14119_v54  ;;  %v14223_v50 = vor.u32 %v14930_v12, %v14222_v2  ;;  %v14198_v12 = vld [vmem:[%s21454_s25 + $0x220] sm:$0xf] }
 0xd50   : > { %10843 = vmatpush.bf16.msrb.mxu0 %v14279_v52 }
 0xd51   : > { %v9746_v19 = vpop.f32.mrf.mxu2  ;;  %v9759_v45 = vpop.f32.mrf.mxu3  ;;  %10803 = vmatpush.bf16.msra.mxu1 %v14095_v29  ;;  %10829 = vmatpush.bf16.msra.mxu3 %v14223_v50  ;;  %v14892_v29 = vld [vmem:[%s21454_s25 + $0x124] sm:$0xf0] }
 0xd52   : > { %v9770_v35 = vpop.f32.mrf.mxu0  ;;  %v9783_v55 = vpop.f32.mrf.mxu1  ;;  %v14262_v19 = vld [vmem:[%s21454_s25 + $0x2a0] sm:$0xf]  ;;  %v14940_v45 = vld [vmem:[%s21454_s25 + $0x2a4] sm:$0xf0] }
 0xd53   : > { %10866 = vmatpush.bf16.msrb.mxu2 %v13987_v30  ;;  %v9816_v31 = vadd.f32 %v9770_v35, %v9617_v57  ;;  %v9817_v14 = vadd.f32 %v9783_v55, %v9618_v16  ;;  %v13960_v30 = vld [vmem:[%s21454_s25 + $0x48] sm:$0xf0]  ;;  %v14924_v16 = vld [vmem:[%s21454_s25 + $0x224] sm:$0xf0]  ;;  %v14263_v55 = vor.u32 %v14940_v45, %v14262_v19 }
 0xd54   : > { %v14199_v35 = vor.u32 %v14924_v16, %v14198_v12  ;;  %v14310_v12 = vld [vmem:[%s21454_s25 + $0x300] sm:$0xf] }
 0xd55   : > { %v9830_v43 = vadd.f32 %v9816_v31, %v20486_v1  ;;  %v9831_v39 = vadd.f32 %v9817_v14, %v20488_v23  ;;  %v14087_v23 = vor.u32 %v14896_v9, %v14086_v59  ;;  %10830 = vmatpush.bf16.msra.mxu3 %v14215_v18  ;;  %v14861_v31 = vld [vmem:[%s21454_s25 + $0x34] sm:$0xf]  ;;  %v13952_v14 = vld [vmem:[%s21454_s25 + $0x38] sm:$0xf0]  ;;  %v14190_v59 = vld [vmem:[%s21454_s25 + $0x210] sm:$0xf] }
 0xd56   : > { %v14191_v37 = vor.u32 %v14922_v7, %v14190_v59 }
 0xd57   : > { %v20773_v36 = vadd.f32 %v9830_v43, %v20065_v11  ;;  %v20776_v1 = vadd.f32 %v9831_v39, %v20068_v28  ;;  %v9619_v11 = vadd.f32 %v20591_v48, %v20511_v53  ;;  %v9620_v28 = vadd.f32 %v20640_v3, %v20513_v5  ;;  %10867 = vmatpush.bf16.msrb.mxu2 %v13979_v44  ;;  %v20800_v5 = vld [vmem:[%s21455_s18] sm:$0x7f]  ;;  %v14062_v39 = vld [vmem:[%s21454_s25 + $0x110] sm:$0xf]  ;;  %v14890_v44 = vld [vmem:[%s21454_s25 + $0x114] sm:$0xf0] }
 0xd58   : > { %10804 = vmatpush.bf16.msra.mxu1 %v14087_v23  ;;  %v10033_v40 = vperm.slane %v20800_v5, 0  ;;  %v10034_v8 = vperm.slane %v20800_v5, 1  ;;  %v13955_v43 = vor.u32 %v14861_v31, %v13952_v14  ;;  %v14254_v23 = vld [vmem:[%s21454_s25 + $0x290] sm:$0xf]  ;;  %v10035_v26 = vperm.slane %v20800_v5, 2 }
 0xd59   : > { %v9796_v38 = vpop.f32.mrf.mxu2  ;;  %v9809_v51 = vpop.f32.mrf.mxu3  ;;  %v14255_v24 = vor.u32 %v14938_v63, %v14254_v23  ;;  %v10036_v49 = vperm.slane %v20800_v5, 3  ;;  %v13928_v31 = vld [vmem:[%s21454_s25 + $0x8] sm:$0xf0]  ;;  %v10038_v23 = vperm.slane %v20800_v5, 5 }
 0xd5a   : > { %v9818_v27 = vadd.f32 %v9796_v38, %v9619_v11  ;;  %v9819_v53 = vadd.f32 %v9809_v51, %v9620_v28  ;;  %v9772_v48 = vpop.f32.mrf.mxu0  ;;  %v9785_v32 = vpop.f32.mrf.mxu1  ;;  %v14859_v11 = vld [vmem:[%s21454_s25 + $0x24] sm:$0xf]  ;;  %v13944_v28 = vld [vmem:[%s21454_s25 + $0x28] sm:$0xf0]  ;;  %v14054_v51 = vld [vmem:[%s21454_s25 + $0x100] sm:$0xf] }
 0xd5b   : > { %10868 = vmatpush.bf16.msrb.mxu2 %v13971_v33  ;;  %v13947_v38 = vor.u32 %v14859_v11, %v13944_v28  ;;  %v14888_v33 = vld [vmem:[%s21454_s25 + $0x104] sm:$0xf0] }
 0xd5c   : > { %v9832_v3 = vadd.f32 %v9818_v27, %v20494_v17  ;;  %v9833_v22 = vadd.f32 %v9819_v53, %v20496_v4  ;;  %v14926_v17 = vld [vmem:[%s21454_s25 + $0x234] sm:$0xf0]  ;;  %v14270_v4 = vld [vmem:[%s21454_s25 + $0x2b0] sm:$0xf]  ;;  %10805 = vmatpush.bf16.msra.mxu1 %v14079_v20  ;;  %v14182_v27 = vld [vmem:[%s21454_s25 + $0x200] sm:$0xf] }
 0xd5d   : > { %v14207_v54 = vor.u32 %v14926_v17, %v14206_v58  ;;  %v14271_v2 = vor.u32 %v14942_v47, %v14270_v4  ;;  %v14183_v47 = vor.u32 %v14920_v6, %v14182_v27 }
 0xd5e   : > { %v20823_v62 = vadd.f32 %v9832_v3, %v20090_v42  ;;  %v20826_v13 = vadd.f32 %v9833_v22, %v20093_v25  ;;  %v13963_v42 = vor.u32 %v14863_v10, %v13960_v30  ;;  %v14070_v25 = vld [vmem:[%s21454_s25 + $0x120] sm:$0xf]  ;;  %v14055_v22 = vor.u32 %v14888_v33, %v14054_v51  ;;  %v14318_v10 = vld [vmem:[%s21454_s25 + $0x310] sm:$0xf]  ;;  %v14954_v30 = vld [vmem:[%s21454_s25 + $0x314] sm:$0xf0] }
 0xd5f   : > { %10831 = vmatpush.bf16.msra.mxu3 %v14207_v54  ;;  %10844 = vmatpush.bf16.msrb.mxu0 %v14271_v2  ;;  %v14071_v57 = vor.u32 %v14892_v29, %v14070_v25  ;;  %v14936_v54 = vld [vmem:[%s21454_s25 + $0x284] sm:$0xf0]  ;;  %v14857_v25 = vld [vmem:[%s21454_s25 + $0x14] sm:$0xf]  ;;  %v13936_v29 = vld [vmem:[%s21454_s25 + $0x18] sm:$0xf0] }
 0xd60   : > { %10869 = vmatpush.bf16.msrb.mxu2 %v13963_v42  ;;  %v13939_v16 = vor.u32 %v14857_v25, %v13936_v29 }
 0xd61   : > { %v9798_v41 = vpop.f32.mrf.mxu2  ;;  %v9811_v0 = vpop.f32.mrf.mxu3  ;;  %10806 = vmatpush.bf16.msra.mxu1 %v14071_v57 }
 0xd62   : > { %v9942_v50 = vpop.f32.mrf.mxu0  ;;  %v9955_v60 = vpop.f32.mrf.mxu1  ;;  %v14952_v0 = vld [vmem:[%s21454_s25 + $0x304] sm:$0xf0] }
 0xd63   : > { %v10024_v46 = vadd.f32 %v9942_v50, %v20665_v21  ;;  %v10025_v61 = vadd.f32 %v9955_v60, %v20725_v15  ;;  %10832 = vmatpush.bf16.msra.mxu3 %v14199_v35  ;;  %10845 = vmatpush.bf16.msrb.mxu0 %v14263_v55  ;;  %v14063_v15 = vor.u32 %v14890_v44, %v14062_v39  ;;  %v14855_v55 = vld [vmem:[%s21454_s25 + $0x4] sm:$0xf] }
 0xd64   : > { %10870 = vmatpush.bf16.msrb.mxu2 %v13955_v43  ;;  %v14311_v19 = vor.u32 %v14952_v0, %v14310_v12  ;;  %v13931_v39 = vor.u32 %v14855_v55, %v13928_v31  ;;  %v14917_v12 = vld [vmem:[%s21454_s25 + $0x1f4] sm:$0xf] }
 0xd65   : > { %v20871_v9 = vadd.f32 %v10033_v40, %v10024_v46  ;;  %v20873_v21 = vadd.f32 %v10034_v8, %v10025_v61  ;;  %10807 = vmatpush.bf16.msra.mxu1 %v14063_v15  ;;  %v14319_v8 = vor.u32 %v14954_v30, %v14318_v10  ;;  %v10037_v61 = vperm.slane %v20800_v5, 4 }
 0xd67   : > { %v10061_v18 = vand.u32 2147483647, %v20871_v9  ;;  %v10062_v52 = vand.u32 2147483647, %v20873_v21  ;;  %10833 = vmatpush.bf16.msra.mxu3 %v14191_v37  ;;  %10846 = vmatpush.bf16.msrb.mxu0 %v14255_v24  ;;  %v10055_v33 = vmax.f32 %v20873_v21, 0.0 }
 0xd68   : > { %10871 = vmatpush.bf16.msrb.mxu2 %v13947_v38  ;;  %v10054_v38 = vmax.f32 %v20871_v9, 0.0 }
 0xd69   : > { %v10068_v53 = vsub.f32 0.0, %v10061_v18  ;;  %v10069_v48 = vsub.f32 0.0, %v10062_v52  ;;  %v9968_v32 = vpop.f32.mrf.mxu2  ;;  %v9981_v3 = vpop.f32.mrf.mxu3  ;;  %10808 = vmatpush.bf16.msra.mxu1 %v14055_v22 }
 0xd6a   : > { %v10026_v58 = vadd.f32 %v9968_v32, %v20728_v56  ;;  %v10027_v20 = vadd.f32 %v9981_v3, %v20773_v36  ;;  %v9944_v17 = vpop.f32.mrf.mxu0  ;;  %v9957_v4 = vpop.f32.mrf.mxu1  ;;  %v14247_v36 = vor.u32 %v14936_v54, %v14246_v34 }
 0xd6b   : > { %v10075_v40 = vmul.f32 1.442695, %v10068_v53  ;;  %v10077_v56 = vmul.f32 1.442695, %v10069_v48  ;;  %10834 = vmatpush.bf16.msra.mxu3 %v14183_v47 }
 0xd6c   : > { %v20920_v2 = vadd.f32 %v10035_v26, %v10026_v58  ;;  %v20922_v42 = vadd.f32 %v10036_v49, %v10027_v20  ;;  %10847 = vmatpush.bf16.msrb.mxu0 %v14247_v36  ;;  %10872 = vmatpush.bf16.msrb.mxu2 %v13939_v16  ;;  %v10039_v49 = vperm.slane %v20800_v5, 6 }
 0xd6d   : > { %15127 = vpow2.f32 %v10075_v40  ;;  %10859 = vmatpush.bf16.msrb.mxu1 %v14319_v8 }
 0xd6e   : > { %15129 = vpow2.f32 %v10077_v56  ;;  %v10063_v41 = vand.u32 2147483647, %v20920_v2  ;;  %v10064_v57 = vand.u32 2147483647, %v20922_v42  ;;  %v10056_v9 = vmax.f32 %v20920_v2, 0.0 }
 0xd6f   : > { %v14040_v2 = vld [vmem:[%s21454_s25 + $0xe8] sm:$0xf0] }
 0xd70   : > { %v10070_v45 = vsub.f32 0.0, %v10063_v41  ;;  %v10071_v50 = vsub.f32 0.0, %v10064_v57  ;;  %10873 = vmatpush.bf16.msrb.mxu2 %v13931_v39 }
 0xd71   : > { %v9970_v60 = vpop.f32.mrf.mxu2  ;;  %v9983_v35 = vpop.f32.mrf.mxu3  ;;  %10860 = vmatpush.bf16.msrb.mxu1 %v14311_v19 }
 0xd72   : > { %v10079_v14 = vmul.f32 1.442695, %v10070_v45  ;;  %v9994_v46 = vpop.f32.mrf.mxu0  ;;  %v10007_v43 = vpop.f32.mrf.mxu1  ;;  %v10081_v59 = vmul.f32 1.442695, %v10071_v50  ;;  %v14899_v50 = vld [vmem:[%s21454_s25 + $0x164] sm:$0xf] }
 0xd73   : > { %v15128_v44 = vpop.eup %15127  ;;  %v10028_v15 = vadd.f32 %v9994_v46, %v20776_v1  ;;  %v10029_v7 = vadd.f32 %v10007_v43, %v20823_v62  ;;  %v20955_v1 = vld [vmem:[%s21454_s25 + $0x174] sm:$0xf]  ;;  %v20960_v62 = vld [vmem:[%s21454_s25 + $0x178] sm:$0xf0] }
 0xd74   : > { %v15130_v63 = vpop.eup %15129  ;;  %v10089_v37 = vadd.f32 1.0, %v15128_v44  ;;  %15131 = vpow2.f32 %v10079_v14  ;;  %v10092_v24 = vmul.f32 -0.5, %v15128_v44  ;;  %v10095_v32 = vand.u32 2147483647, %v15128_v44  ;;  %v14104_v14 = vld [vmem:[%s21454_s25 + $0x168] sm:$0xf0] }
 0xd75   : > { %v10098_v11 = vadd.f32 1.0, %v15130_v63  ;;  %15133 = vpow2.f32 %v10081_v59  ;;  %v10101_v28 = vmul.f32 -0.5, %v15130_v63  ;;  %v20948_v18 = vadd.f32 %v10037_v61, %v10028_v15 }
 0xd76   : > { %15135 = vlog2.f32 %v10089_v37  ;;  %v20950_v52 = vadd.f32 %v10038_v23, %v10029_v7  ;;  %v10093_v51 = vadd.f32 1.0, %v10092_v24  ;;  %v14115_v34 = vor.u32 %v20955_v1, %v20960_v62  ;;  %v14168_v7 = vld [vmem:[%s21454_s25 + $0x1e8] sm:$0xf0]  ;;  %v14885_v23 = vld [vmem:[%s21454_s25 + $0xf4] sm:$0xf] }
 0xd77   : > { %15137 = vlog2.f32 %v10098_v11  ;;  %v10065_v26 = vand.u32 2147483647, %v20948_v18  ;;  %v10102_v3 = vadd.f32 1.0, %v10101_v28  ;;  %v10104_v5 = vand.u32 2147483647, %v15130_v63 }
 0xd78   : > { %v10066_v27 = vand.u32 2147483647, %v20950_v52  ;;  %v10094_v36 = vmul.f32 %v15128_v44, %v10093_v51  ;;  %vm10096_vm11 = vcmp.lt.f32.partialorder %v10095_v32, 0.0004427343  ;;  %v14915_v44 = vld [vmem:[%s21454_s25 + $0x1e4] sm:$0xf] }
 0xd79   : > { %v10020_v53 = vpop.f32.mrf.mxu2  ;;  %v10072_v22 = vsub.f32 0.0, %v10065_v26  ;;  %v10103_v29 = vmul.f32 %v15130_v63, %v10102_v3  ;;  %vm10105_vm12 = vcmp.lt.f32.partialorder %v10104_v5, 0.0004427343  ;;  %v14048_v63 = vld [vmem:[%s21454_s25 + $0xf8] sm:$0xf0]  ;;  %v10057_v28 = vmax.f32 %v20922_v42, 0.0 }
 0xd7a   : > { %v20967_v48 = vpop.eup %15131  ;;  %v9996_v6 = vpop.f32.mrf.mxu0  ;;  %v10073_v17 = vsub.f32 0.0, %v10066_v27  ;;  %v10030_v30 = vadd.f32 %v10020_v53, %v20826_v13  ;;  %v14176_v13 = vld [vmem:[%s21454_s25 + $0x1f8] sm:$0xf0]  ;;  %v14933_v62 = vld [vmem:[%s21454_s25 + $0x274] sm:$0xf]  ;;  %v14171_v32 = vor.u32 %v14915_v44, %v14168_v7 }
 0xd7b   : > { %v10009_v58 = vpop.f32.mrf.mxu1  ;;  %v20971_v20 = vpop.eup %15133  ;;  %v10107_v21 = vadd.f32 1.0, %v20967_v48  ;;  %v10110_v47 = vmul.f32 -0.5, %v20967_v48  ;;  %v10083_v10 = vmul.f32 1.442695, %v10072_v22  ;;  %v10113_v35 = vand.u32 2147483647, %v20967_v48 }
 0xd7c   : > { %v15136_v4 = vpop.eup %15135  ;;  %v10116_v54 = vadd.f32 1.0, %v20971_v20  ;;  %v10119_v8 = vmul.f32 -0.5, %v20971_v20  ;;  %v10085_v0 = vmul.f32 1.442695, %v10073_v17  ;;  %v20985_v45 = vadd.f32 %v10039_v49, %v10030_v30  ;;  %v14240_v26 = vld [vmem:[%s21454_s25 + $0x278] sm:$0xf0] }
 0xd7d   : > { %v15138_v40 = vpop.eup %15137  ;;  %v10091_v56 = vmul.f32 0.6931472, %v15136_v4  ;;  %15139 = vlog2.f32 %v10107_v21  ;;  %v10111_v19 = vadd.f32 1.0, %v10110_v47  ;;  %v10122_v61 = vand.u32 2147483647, %v20971_v20 }
 0xd7e   : > { %v10100_v25 = vmul.f32 0.6931472, %v15138_v40  ;;  %15141 = vlog2.f32 %v10116_v54  ;;  %v10120_v55 = vadd.f32 1.0, %v10119_v8  ;;  %v10067_v43 = vand.u32 2147483647, %v20985_v45 }
 0xd7f   : > { %v10097_v41 = vsel %vm10096_vm11, %v10094_v36, %v10091_v56  ;;  %15143 = vpow2.f32 %v10083_v10  ;;  %v14179_v39 = vor.u32 %v14917_v12, %v14176_v13  ;;  %v10112_v11 = vmul.f32 %v20967_v48, %v10111_v19  ;;  %v14897_v49 = vld [vmem:[%s21454_s25 + $0x154] sm:$0xf]  ;;  %v14096_v27 = vld [vmem:[%s21454_s25 + $0x158] sm:$0xf0]  ;;  %v14883_v4 = vld [vmem:[%s21454_s25 + $0xe4] sm:$0xf] }
 0xd80   : > { %v10152_v57 = vadd.f32 %v10097_v41, %v10054_v38  ;;  %v10106_v16 = vsel %vm10105_vm12, %v10103_v29, %v10100_v25  ;;  %15145 = vpow2.f32 %v10085_v0  ;;  %v10074_v1 = vsub.f32 0.0, %v10067_v43  ;;  %v14913_v3 = vld [vmem:[%s21454_s25 + $0x1d4] sm:$0xf]  ;;  %v14160_v5 = vld [vmem:[%s21454_s25 + $0x1d8] sm:$0xf0] }
 0xd81   : > { %v10153_v60 = vadd.f32 %v10106_v16, %v10055_v33  ;;  %v10022_v31 = vpop.f32.mrf.mxu2  ;;  %vm10114_vm13 = vcmp.lt.f32.partialorder %v10113_v35, 0.0004427343  ;;  %v10121_v42 = vmul.f32 %v20971_v20, %v10120_v55  ;;  %v14107_v33 = vor.u32 %v14899_v50, %v14104_v14  ;;  %v14232_v40 = vld [vmem:[%s21454_s25 + $0x268] sm:$0xf0]  ;;  %v14895_v56 = vld [vmem:[%s21454_s25 + $0x144] sm:$0xf] }
 0xd82   : > { %v20994_v46 = vpack.c.bf16 %v10152_v57, %v10152_v57  ;;  %vm10123_vm14 = vcmp.lt.f32.partialorder %v10122_v61, 0.0004427343  ;;  %v10087_v20 = vmul.f32 1.442695, %v10074_v1  ;;  %v14051_v17 = vor.u32 %v14885_v23, %v14048_v63  ;;  %v14088_v29 = vld [vmem:[%s21454_s25 + $0x148] sm:$0xf0] }
 0xd83   : > { %v15140_v59 = vpop.eup %15139  ;;  %v21001_v15 = vpack.c.bf16 %v10153_v60, %v10153_v60  ;;  %v14243_v10 = vor.u32 %v14933_v62, %v14240_v26  ;;  %v14099_v30 = vor.u32 %v14897_v49, %v14096_v27  ;;  %v14163_v25 = vor.u32 %v14913_v3, %v14160_v5  ;;  %v14911_v12 = vld [vmem:[%s21454_s25 + $0x1c4] sm:$0xf]  ;;  %v14152_v13 = vld [vmem:[%s21454_s25 + $0x1c8] sm:$0xf0]  ;;  %v14881_v57 = vld [vmem:[%s21454_s25 + $0xd4] sm:$0xf] }
 0xd84   : > { %v15142_v37 = vpop.eup %15141  ;;  %v10109_v24 = vmul.f32 0.6931472, %v15140_v59  ;;  %10783 = vmatmul.bf16.vlgmr.msrb.gmra.mxu3 %v20994_v46  ;;  %v10058_v41 = vmax.f32 %v20948_v18, 0.0  ;;  %v14043_v19 = vor.u32 %v14883_v4, %v14040_v2  ;;  %v14032_v18 = vld [vmem:[%s21454_s25 + $0xd8] sm:$0xf0]  ;;  %v14091_v35 = vor.u32 %v14895_v56, %v14088_v29 }
 0xd85   : > { %v21024_v38 = vpop.eup %15143  ;;  %v10118_v51 = vmul.f32 0.6931472, %v15142_v37  ;;  %10796 = vmatmul.bf16.vlgmr.msra.gmra.mxu0 %v21001_v15  ;;  %10892 = vmatpush.bf16.msrb.mxu3 %v14115_v34  ;;  %v14929_v50 = vld [vmem:[%s21454_s25 + $0x254] sm:$0xf]  ;;  %v14224_v55 = vld [vmem:[%s21454_s25 + $0x258] sm:$0xf0]  ;;  %v14155_v44 = vor.u32 %v14911_v12, %v14152_v13 }
 0xd86   : > { %v10115_v53 = vsel %vm10114_vm13, %v10112_v11, %v10109_v24  ;;  %v10125_v48 = vadd.f32 1.0, %v21024_v38  ;;  %10905 = vmatpush.bf16.msra.mxu0 %v14179_v39  ;;  %v21035_v22 = vpop.eup %15145  ;;  %v10128_v58 = vmul.f32 -0.5, %v21024_v38  ;;  %v10131_v16 = vand.u32 2147483647, %v21024_v38  ;;  %v14893_v31 = vld [vmem:[%s21454_s25 + $0x134] sm:$0xf] }
 0xd87   : > { %v10154_v6 = vadd.f32 %v10115_v53, %v10056_v9  ;;  %v10124_v34 = vsel %vm10123_vm14, %v10121_v42, %v10118_v51  ;;  %v14931_v9 = vld [vmem:[%s21454_s25 + $0x264] sm:$0xf]  ;;  %v10134_v54 = vadd.f32 1.0, %v21035_v22  ;;  %v10137_v8 = vmul.f32 -0.5, %v21035_v22  ;;  %v14080_v14 = vld [vmem:[%s21454_s25 + $0x138] sm:$0xf0] }
 0xd88   : > { %v10155_v21 = vadd.f32 %v10124_v34, %v10057_v28  ;;  %15147 = vlog2.f32 %v10125_v48  ;;  %v10129_v0 = vadd.f32 1.0, %v10128_v58  ;;  %v14235_v60 = vor.u32 %v14931_v9, %v14232_v40  ;;  %v14909_v59 = vld [vmem:[%s21454_s25 + $0x1b4] sm:$0xf]  ;;  %v14144_v7 = vld [vmem:[%s21454_s25 + $0x1b8] sm:$0xf0] }
 0xd89   : > { %v21052_v47 = vpack.c.bf16 %v10154_v6, %v10154_v6  ;;  %10893 = vmatpush.bf16.msrb.mxu3 %v14107_v33  ;;  %15149 = vpow2.f32 %v10087_v20  ;;  %v10059_v43 = vmax.f32 %v20950_v52, 0.0  ;;  %v10138_v39 = vadd.f32 1.0, %v10137_v8  ;;  %v14879_v52 = vld [vmem:[%s21454_s25 + $0xc4] sm:$0xf]  ;;  %v14024_v1 = vld [vmem:[%s21454_s25 + $0xc8] sm:$0xf0] }
 0xd8a   : > { %v21061_v36 = vpack.c.bf16 %v10155_v21, %v10155_v21  ;;  %10906 = vmatpush.bf16.msra.mxu0 %v14171_v32  ;;  %15151 = vlog2.f32 %v10134_v54  ;;  %v10130_v63 = vmul.f32 %v21024_v38, %v10129_v0  ;;  %v10140_v37 = vand.u32 2147483647, %v21035_v22  ;;  %v14927_v62 = vld [vmem:[%s21454_s25 + $0x244] sm:$0xf]  ;;  %v14216_v33 = vld [vmem:[%s21454_s25 + $0x248] sm:$0xf0] }
 0xd8b   : > { %10809 = vmatmul.bf16.vlgmr.msra.gmra.mxu1 %v21052_v47  ;;  %vm10132_vm15 = vcmp.lt.f32.partialorder %v10131_v16, 0.0004427343  ;;  %v14035_v11 = vor.u32 %v14881_v57, %v14032_v18  ;;  %v14227_v28 = vor.u32 %v14929_v50, %v14224_v55  ;;  %v14083_v51 = vor.u32 %v14893_v31, %v14080_v14  ;;  %v14891_v27 = vld [vmem:[%s21454_s25 + $0x124] sm:$0xf]  ;;  %v14072_v6 = vld [vmem:[%s21454_s25 + $0x128] sm:$0xf0] }
 0xd8c   : > { %10822 = vmatmul.bf16.vlgmr.msra.gmra.mxu2 %v21061_v36  ;;  %10879 = vmatpush.bf16.msra.mxu1 %v14051_v17  ;;  %v14147_v42 = vor.u32 %v14909_v59, %v14144_v7  ;;  %v10139_v32 = vmul.f32 %v21035_v22, %v10138_v39  ;;  %vm10141_vm1 = vcmp.lt.f32.partialorder %v10140_v37, 0.0004427343  ;;  %v14907_v34 = vld [vmem:[%s21454_s25 + $0x1a4] sm:$0xf]  ;;  %v14136_v58 = vld [vmem:[%s21454_s25 + $0x1a8] sm:$0xf0]  ;;  %v14027_v5 = vor.u32 %v14879_v52, %v14024_v1 }
 0xd8d   : > { %10918 = vmatpush.bf16.msra.mxu2 %v14243_v10  ;;  %10894 = vmatpush.bf16.msrb.mxu3 %v14099_v30  ;;  %v14877_v21 = vld [vmem:[%s21454_s25 + $0xb4] sm:$0xf]  ;;  %v14219_v4 = vor.u32 %v14927_v62, %v14216_v33  ;;  %v14016_v2 = vld [vmem:[%s21454_s25 + $0xb8] sm:$0xf0]  ;;  %v14075_v30 = vor.u32 %v14891_v27, %v14072_v6  ;;  %v14139_v40 = vor.u32 %v14907_v34, %v14136_v58  ;;  %v10060_v0 = vmax.f32 %v20985_v45, 0.0 }
 0xd8e   : > { %v15148_v61 = vpop.eup %15147  ;;  %10907 = vmatpush.bf16.msra.mxu0 %v14163_v25  ;;  %v14925_v9 = vld [vmem:[%s21454_s25 + $0x234] sm:$0xf]  ;;  %v14208_v54 = vld [vmem:[%s21454_s25 + $0x238] sm:$0xf0]  ;;  %v14019_v13 = vor.u32 %v14877_v21, %v14016_v2  ;;  %v14875_v57 = vld [vmem:[%s21454_s25 + $0xa4] sm:$0xf] }
 0xd8f   : > { %v10127_v23 = vmul.f32 0.6931472, %v15148_v61  ;;  %v21107_v24 = vpop.eup %15149  ;;  %v14889_v56 = vld [vmem:[%s21454_s25 + $0x114] sm:$0xf]  ;;  %v14064_v8 = vld [vmem:[%s21454_s25 + $0x118] sm:$0xf0] }
 0xd90   : > { %10880 = vmatpush.bf16.msra.mxu1 %v14043_v19  ;;  %v15152_v26 = vpop.eup %15151  ;;  %v10143_v38 = vadd.f32 1.0, %v21107_v24  ;;  %v10146_v3 = vmul.f32 -0.5, %v21107_v24  ;;  %v10149_v29 = vand.u32 2147483647, %v21107_v24  ;;  %v14905_v12 = vld [vmem:[%s21454_s25 + $0x194] sm:$0xf]  ;;  %v14211_v19 = vor.u32 %v14925_v9, %v14208_v54 }
 0xd91   : > { %v10133_v49 = vsel %vm10132_vm15, %v10130_v63, %v10127_v23  ;;  %10919 = vmatpush.bf16.msra.mxu2 %v14235_v60  ;;  %10895 = vmatpush.bf16.msrb.mxu3 %v14091_v35  ;;  %v10136_v48 = vmul.f32 0.6931472, %v15152_v26  ;;  %v14008_v18 = vld [vmem:[%s21454_s25 + $0xa8] sm:$0xf0]  ;;  %v14923_v50 = vld [vmem:[%s21454_s25 + $0x224] sm:$0xf]  ;;  %v14067_v55 = vor.u32 %v14889_v56, %v14064_v8 }
 0xd92   : > { %v10156_v53 = vadd.f32 %v10133_v49, %v10058_v41  ;;  %10908 = vmatpush.bf16.msra.mxu0 %v14155_v44  ;;  %15153 = vlog2.f32 %v10143_v38  ;;  %v10147_v10 = vadd.f32 1.0, %v10146_v3  ;;  %v14128_v41 = vld [vmem:[%s21454_s25 + $0x198] sm:$0xf0]  ;;  %v14200_v45 = vld [vmem:[%s21454_s25 + $0x228] sm:$0xf0]  ;;  %v14011_v59 = vor.u32 %v14875_v57, %v14008_v18 }
 0xd93   : > { %v10142_v22 = vsel %vm10141_vm1, %v10139_v32, %v10136_v48  ;;  %v14131_v31 = vor.u32 %v14905_v12, %v14128_v41  ;;  %v14887_v14 = vld [vmem:[%s21454_s25 + $0x104] sm:$0xf]  ;;  %v14056_v61 = vld [vmem:[%s21454_s25 + $0x108] sm:$0xf0]  ;;  %vm10150_vm2 = vcmp.lt.f32.partialorder %v10149_v29, 0.0004427343  ;;  %v14203_v37 = vor.u32 %v14923_v50, %v14200_v45 }
 0xd94   : > { %v21133_v20 = vpack.c.bf16 %v10156_v53, %v10156_v53  ;;  %10881 = vmatpush.bf16.msra.mxu1 %v14035_v11  ;;  %v10157_v17 = vadd.f32 %v10142_v22, %v10059_v43  ;;  %v10148_v35 = vmul.f32 %v21107_v24, %v10147_v10  ;;  %v14903_v43 = vld [vmem:[%s21454_s25 + $0x184] sm:$0xf]  ;;  %v14120_v39 = vld [vmem:[%s21454_s25 + $0x188] sm:$0xf0]  ;;  %v14953_v7 = vld [vmem:[%s21454_s25 + $0x314] sm:$0xf]  ;;  %v14059_v24 = vor.u32 %v14887_v14, %v14056_v61 }
 0xd95   : > { %10920 = vmatpush.bf16.msra.mxu2 %v14227_v28  ;;  %10896 = vmatpush.bf16.msrb.mxu3 %v14083_v51  ;;  %v14320_v23 = vld [vmem:[%s21454_s25 + $0x318] sm:$0xf0]  ;;  %v14873_v52 = vld [vmem:[%s21454_s25 + $0x94] sm:$0xf]  ;;  %v14123_v11 = vor.u32 %v14903_v43, %v14120_v39  ;;  %v14951_v38 = vld [vmem:[%s21454_s25 + $0x304] sm:$0xf] }
 0xd96   : > { %10835 = vmatmul.bf16.vlgmr.msra.gmra.mxu3 %v21133_v20  ;;  %10909 = vmatpush.bf16.msra.mxu0 %v14147_v42  ;;  %v21154_v25 = vpack.c.bf16 %v10157_v17, %v10157_v17  ;;  %v14921_v28 = vld [vmem:[%s21454_s25 + $0x214] sm:$0xf]  ;;  %v14192_v1 = vld [vmem:[%s21454_s25 + $0x218] sm:$0xf0]  ;;  %v14323_v26 = vor.u32 %v14953_v7, %v14320_v23  ;;  %v14312_v51 = vld [vmem:[%s21454_s25 + $0x308] sm:$0xf0] }
 0xd97   : > { %v14195_v42 = vor.u32 %v14921_v28, %v14192_v1  ;;  %v14871_v33 = vld [vmem:[%s21454_s25 + $0x84] sm:$0xf]  ;;  %v13992_v27 = vld [vmem:[%s21454_s25 + $0x88] sm:$0xf0]  ;;  %v14949_v32 = vld [vmem:[%s21454_s25 + $0x2f4] sm:$0xf]  ;;  %v14315_v6 = vor.u32 %v14951_v38, %v14312_v51 }
 0xd98   : > { %10882 = vmatpush.bf16.msra.mxu1 %v14027_v5  ;;  %v15154_v16 = vpop.eup %15153  ;;  %10848 = vmatmul.bf16.vlgmr.msrb.gmra.mxu0 %v21154_v25  ;;  %v14919_v53 = vld [vmem:[%s21454_s25 + $0x204] sm:$0xf]  ;;  %v14184_v48 = vld [vmem:[%s21454_s25 + $0x208] sm:$0xf0]  ;;  %v14304_v3 = vld [vmem:[%s21454_s25 + $0x2f8] sm:$0xf0]  ;;  %v13995_v34 = vor.u32 %v14871_v33, %v13992_v27 }
 0xd99   : > { %10921 = vmatpush.bf16.msra.mxu2 %v14219_v4  ;;  %v10145_v60 = vmul.f32 0.6931472, %v15154_v16  ;;  %10897 = vmatpush.bf16.msrb.mxu3 %v14075_v30  ;;  %v14187_v58 = vor.u32 %v14919_v53, %v14184_v48  ;;  %v14307_v22 = vor.u32 %v14949_v32, %v14304_v3  ;;  %v14947_v5 = vld [vmem:[%s21454_s25 + $0x2e4] sm:$0xf]  ;;  %v14296_v21 = vld [vmem:[%s21454_s25 + $0x2e8] sm:$0xf0] }
 0xd9a   : > { %10910 = vmatpush.bf16.msra.mxu0 %v14139_v40  ;;  %v14299_v17 = vor.u32 %v14947_v5, %v14296_v21  ;;  %v14288_v4 = vld [vmem:[%s21454_s25 + $0x2d8] sm:$0xf0]  ;;  %v14943_v9 = vld [vmem:[%s21454_s25 + $0x2c4] sm:$0xf]  ;;  %v14941_v10 = vld [vmem:[%s21454_s25 + $0x2b4] sm:$0xf] }
 0xd9b   : > { %v10151_v44 = vsel %vm10150_vm2, %v10148_v35, %v10145_v60  ;;  %v14939_v40 = vld [vmem:[%s21454_s25 + $0x2a4] sm:$0xf]  ;;  %v14937_v8 = vld [vmem:[%s21454_s25 + $0x294] sm:$0xf]  ;;  %v14256_v29 = vld [vmem:[%s21454_s25 + $0x298] sm:$0xf0] }
 0xd9c   : > { %10874 = vmatmul.bf16.vlgmr.msrb.gmra.mxu2 %v20994_v46  ;;  %10883 = vmatpush.bf16.msra.mxu1 %v14019_v13  ;;  %v10158_v63 = vadd.f32 %v10151_v44, %v10060_v0  ;;  %v14000_v46 = vld [vmem:[%s21454_s25 + $0x98] sm:$0xf0]  ;;  %v14259_v12 = vor.u32 %v14937_v8, %v14256_v29  ;;  %v14935_v41 = vld [vmem:[%s21454_s25 + $0x284] sm:$0xf]  ;;  %v14248_v0 = vld [vmem:[%s21454_s25 + $0x288] sm:$0xf0] }
 0xd9d   : > { %10922 = vmatpush.bf16.msra.mxu2 %v14211_v19  ;;  %10898 = vmatpush.bf16.msrb.mxu3 %v14067_v55  ;;  %v14003_v49 = vor.u32 %v14873_v52, %v14000_v46  ;;  %v14251_v13 = vor.u32 %v14935_v41, %v14248_v0  ;;  %v10266_v16 = vld [vmem:[%s21456_s29] sm:$0x3] }
 0xd9e   : > { %10911 = vmatpush.bf16.msra.mxu0 %v14131_v31  ;;  %v10165_v62 = vpack.c.bf16 %v10158_v63, %v10158_v63  ;;  %v10268_v18 = vperm.slane %v10266_v16, 0  ;;  %v10269_v51 = vperm.slane %v10266_v16, 1 }
 0xda0   : > { %10884 = vmatpush.bf16.msra.mxu1 %v14011_v59 }
 0xda1   : > { %14324 = vmatmul.msk.bf16.vlgmr.msrb.gmra.mxu1 %vm5638_vm0, %v10165_v62  ;;  %10923 = vmatpush.bf16.msra.mxu2 %v14203_v37 }
 0xda2   : > { %10899 = vmatpush.bf16.msrb.mxu3 %v14059_v24  ;;  %10912 = vmatpush.bf16.msra.mxu0 %v14123_v11 }
 0xda4   : > { %10885 = vmatpush.bf16.msra.mxu1 %v14003_v49 }
 0xda5   : > { %10924 = vmatpush.bf16.msra.mxu2 %v14195_v42 }
 0xda6   : > { %10950 = vmatpush.bf16.msra.mxu3 %v14323_v26 }
 0xda7   : > { %10900 = vmatmul.bf16.vlgmr.msrb.gmra.mxu3 %v21052_v47  ;;  %v14945_v47 = vld [vmem:[%s21454_s25 + $0x2d4] sm:$0xf] }
 0xda8   : > { %10886 = vmatpush.bf16.msra.mxu1 %v13995_v34  ;;  %10913 = vmatmul.bf16.vlgmr.msra.gmra.mxu0 %v21061_v36  ;;  %v14291_v2 = vor.u32 %v14945_v47, %v14288_v4  ;;  %v14280_v36 = vld [vmem:[%s21454_s25 + $0x2c8] sm:$0xf0]  ;;  %v10960_v4 = vld [vmem:[%s15275_s17] sm:$0xff] }
 0xda9   : > { %10925 = vmatpush.bf16.msra.mxu2 %v14187_v58  ;;  %v14283_v54 = vor.u32 %v14943_v9, %v14280_v36 }
 0xdaa   : > { %10951 = vmatpush.bf16.msra.mxu3 %v14315_v6 }
 0xdac   : > { %10931 = vmatpush.bf16.msrb.mxu1 %v14307_v22  ;;  %10926 = vmatmul.bf16.vlgmr.msra.gmra.mxu2 %v21133_v20  ;;  %v14272_v20 = vld [vmem:[%s21454_s25 + $0x2b8] sm:$0xf0] }
 0xdad   : > { %v14275_v30 = vor.u32 %v14941_v10, %v14272_v20 }
 0xdb0   : > { %10932 = vmatpush.bf16.msrb.mxu1 %v14299_v17 }
 0xdb1   : > { %10887 = vmatmul.bf16.vlgmr.msra.gmra.mxu1 %v21001_v15  ;;  %v14264_v15 = vld [vmem:[%s21454_s25 + $0x2a8] sm:$0xf0] }
 0xdb2   : > { %v14267_v56 = vor.u32 %v14939_v40, %v14264_v15 }
 0xdb4   : > { %10933 = vmatpush.bf16.msrb.mxu1 %v14291_v2 }
 0xdb7   : > { %14325 = vmatmul.msk.bf16.vlgmr.msra.gmra.mxu3 %vm5638_vm0, %v10165_v62 }
 0xdb8   : > { %10934 = vmatpush.bf16.msrb.mxu1 %v14283_v54 }
 0xdbc   : > { %10935 = vmatpush.bf16.msrb.mxu1 %v14275_v30 }
 0xdc0   : > { %10936 = vmatpush.bf16.msrb.mxu1 %v14267_v56 }
 0xdc4   : > { %10937 = vmatpush.bf16.msrb.mxu1 %v14259_v12 }
 0xdc8   : > { %10938 = vmatpush.bf16.msrb.mxu1 %v14251_v13 }
 0xdcb   : > { %10939 = vmatmul.bf16.vlgmr.msrb.gmra.mxu1 %v21154_v25 }
 0xe02   : > { %v10797_v57 = vpop.f32.mrf.mxu0 }
 0xe07   : > { %v10784_v19 = vpop.f32.mrf.mxu3 }
 0xe08   : > { %v10810_v50 = vpop.f32.mrf.mxu1  ;;  %v10785_v60 = vadd.f32 %v10784_v19, %v10268_v18 }
 0xe0a   : > { %v10799_v45 = vpop.f32.mrf.mxu0  ;;  %v10798_v31 = vadd.f32 %v10797_v57, %v10785_v60 }
 0xe0c   : > { %v10811_v61 = vadd.f32 %v10810_v50, %v10798_v31 }
 0xe0f   : > { %v10823_v35 = vpop.f32.mrf.mxu2  ;;  %v10786_v55 = vpop.f32.mrf.mxu3 }
 0xe10   : > { %v10812_v14 = vpop.f32.mrf.mxu1  ;;  %v10824_v44 = vadd.f32 %v10823_v35, %v10811_v61 }
 0xe15   : > { %v10849_v43 = vpop.f32.mrf.mxu0 }
 0xe17   : > { %v10825_v39 = vpop.f32.mrf.mxu2 }
 0xe19   : > { %v10836_v25 = vpop.f32.mrf.mxu3 }
 0xe1a   : > { %v10837_v59 = vadd.f32 %v10836_v25, %v10824_v44 }
 0xe1c   : > { %v10850_v7 = vadd.f32 %v10849_v43, %v10837_v59 }
 0xe1d   : > { %v10851_v63 = vpop.f32.mrf.mxu0 }
 0xe1e   : > { %v10862_v23 = vpop.f32.mrf.mxu1 }
 0xe1f   : > { %v10863_v37 = vadd.f32 %v10862_v23, %v10850_v7  ;;  %v10875_v52 = vpop.f32.mrf.mxu2 }
 0xe20   : > { %v10876_v33 = vadd.f32 %v10875_v52, %v10269_v51 }
 0xe21   : > { %10964 = vst [vmem:[%s15285_s23 + $0x8] sm:$0xff] %v10863_v37  ;;  %v10838_v46 = vpop.f32.mrf.mxu3 }
 0xe25   : > { %v10914_v11 = vpop.f32.mrf.mxu0 }
 0xe26   : > { %v10864_v24 = vpop.f32.mrf.mxu1 }
 0xe27   : > { %v10877_v28 = vpop.f32.mrf.mxu2 }
 0xe2a   : > { %v10901_v1 = vpop.f32.mrf.mxu3 }
 0xe2d   : > { %v10916_v26 = vpop.f32.mrf.mxu0 }
 0xe2e   : > { %v10888_v62 = vpop.f32.mrf.mxu1 }
 0xe2f   : > { %v10927_v49 = vpop.f32.mrf.mxu2  ;;  %v10889_v53 = vadd.f32 %v10888_v62, %v10876_v33 }
 0xe31   : > { %v10902_v32 = vadd.f32 %v10901_v1, %v10889_v53 }
 0xe32   : > { %v10903_v38 = vpop.f32.mrf.mxu3 }
 0xe33   : > { %v10915_v3 = vadd.f32 %v10914_v11, %v10902_v32 }
 0xe35   : > { %v10928_v34 = vadd.f32 %v10927_v49, %v10915_v3 }
 0xe36   : > { %v10890_v42 = vpop.f32.mrf.mxu1 }
 0xe37   : > { %v10929_v27 = vpop.f32.mrf.mxu2 }
 0xe3a   : > { %v10953_v48 = vpop.f32.mrf.mxu3 }
 0xe42   : > { %v10955_v6 = vpop.f32.mrf.mxu3 }
 0xe48   : > { %v10940_v58 = vpop.f32.mrf.mxu1 }
 0xe49   : > { %v10941_v22 = vadd.f32 %v10940_v58, %v10928_v34 }
 0xe4b   : > { %v10954_v5 = vadd.f32 %v10953_v48, %v10941_v22 }
 0xe4d   : > { %v10957_v21 = vmul.f32 0.5, %v10954_v5  ;;  %10965 = vst [vmem:[%s15285_s23 + $0x10] sm:$0xff] %v10954_v5 }
 0xe4f   : > { %v10958_v17 = vmul.f32 1.442695, %v10957_v21 }
 0xe50   : > { %v10942_v47 = vpop.f32.mrf.mxu1 }
 0xe51   : > { %15155 = vpow2.f32 %v10958_v17 }
 0xe57   : > { %v15156_v2 = vpop.eup %15155 }
 0xe58   : > { %v10961_v9 = vmul.f32 %v15156_v2, %v10960_v4 }
 0xe5a   : > { %v10962_v36 = vadd.f32 %v10961_v9, %v10863_v37 }
 0xe5c   : > { %10963 = vst [vmem:[%s15285_s23] sm:$0xff] %v10962_v36 }
 0xe5d PF: > { %s21457_s21 = sld [smem:[#allocation5_spill]] }
 0xe63   : > { %s26_s21 = sadd.s32 1, %s21457_s21  }
 0xe64   : > { %p23_p6 = scmp.ge.s32.totalorder %s26_s21, 4  }
 0xe66   :  { %25 = sbr.rel (!%p23_p6) target bundleno = 6 (0x6), region = 218 }

</bundles_post_ra>
